<compile_context>
chip_gen: v7x
topology: tpu7x:2x2x1
jax: 0.10.0
libtpu: 0.0.40
codegen_flags: <defaults>
</compile_context>

<pallas_src>
import functools

import jax
import jax.numpy as jnp
from jax.experimental import pallas as pl
from jax.experimental.pallas import tpu as pltpu

EPS = 1e-5
NEG_SLOPE = 0.2


# ------------------------------------------------------------------ utils ---

def _round_up(x, m):
    return (x + m - 1) // m * m


def _pick_tm(m):
    # Row-tile: cap at 256 (fits v7x's smaller VMEM comfortably with
    # double-buffering), otherwise a single sublane-aligned block.
    return 256 if m > 256 else _round_up(m, 8)


# ---------------------------------------------------------------- kernels ---

def _conv_bias_act_kernel(p_ref, w_ref, b_ref, o_ref, *, act):
    # patches tile (TM, K) bf16 @ weights (K, Np) bf16 -> f32, + bias,
    # optional fused LeakyReLU(0.2).
    acc = jnp.dot(p_ref[...], w_ref[...], preferred_element_type=jnp.float32)
    acc = acc + b_ref[...]
    if act:
        acc = jnp.where(acc >= 0.0, acc, NEG_SLOPE * acc)
    o_ref[...] = acc


def _conv_bn_stats_kernel(p_ref, w_ref, o_ref, s_ref):
    # Conv matmul (no bias) + fused per-channel sum / sum-of-squares,
    # accumulated across the M grid axis (stats block stays VMEM-resident).
    acc = jnp.dot(p_ref[...], w_ref[...], preferred_element_type=jnp.float32)
    o_ref[...] = acc

    @pl.when(pl.program_id(0) == 0)
    def _():
        s_ref[...] = jnp.zeros_like(s_ref)

    part = jnp.concatenate(
        [jnp.sum(acc, axis=0, keepdims=True),
         jnp.sum(acc * acc, axis=0, keepdims=True)], axis=0)
    s_ref[...] = s_ref[...] + part


def _bn_lrelu_kernel(x_ref, s_ref, g_ref, b_ref, o_ref, *, inv_count):
    # Training-mode BatchNorm2d (biased variance) + affine + LeakyReLU(0.2).
    s = s_ref[...]
    mean = s[0:1, :] * inv_count
    ex2 = s[1:2, :] * inv_count
    var = ex2 - mean * mean
    scale = g_ref[...] * jax.lax.rsqrt(var + EPS)
    shift = b_ref[...] - mean * scale
    y = x_ref[...] * scale + shift
    o_ref[...] = jnp.where(y >= 0.0, y, NEG_SLOPE * y)


# --------------------------------------------------------------- wrappers ---

def conv_matmul_bias_act(patches, w_mat, bias, act):
    M, K = patches.shape
    N = w_mat.shape[1]
    Np = _round_up(N, 128)              # lane-dense output stores
    TM = _pick_tm(M)
    Mp = _round_up(M, TM)

    p = jnp.pad(patches, ((0, Mp - M), (0, 0))).astype(jnp.bfloat16)
    w = jnp.pad(w_mat, ((0, 0), (0, Np - N))).astype(jnp.bfloat16)
    b = jnp.pad(bias.reshape(1, N).astype(jnp.float32),
                ((0, 0), (0, Np - N)))

    out = pl.pallas_call(
        functools.partial(_conv_bias_act_kernel, act=act),
        out_shape=jax.ShapeDtypeStruct((Mp, Np), jnp.float32),
        grid=(Mp // TM,),
        in_specs=[pl.BlockSpec((TM, K), lambda i: (i, 0)),
                  pl.BlockSpec((K, Np), lambda i: (0, 0)),
                  pl.BlockSpec((1, Np), lambda i: (0, 0))],
        out_specs=pl.BlockSpec((TM, Np), lambda i: (i, 0)),
        compiler_params=pltpu.CompilerParams(
            dimension_semantics=("parallel",)),
    )(p, w, b)
    return out[:M, :N]


def conv_matmul_bn_stats(patches, w_mat):
    M, K = patches.shape
    N = w_mat.shape[1]
    Np = _round_up(N, 128)
    TM = _pick_tm(M)
    Mp = _round_up(M, TM)

    p = jnp.pad(patches, ((0, Mp - M), (0, 0))).astype(jnp.bfloat16)
    w = jnp.pad(w_mat, ((0, 0), (0, Np - N))).astype(jnp.bfloat16)

    out, stats = pl.pallas_call(
        _conv_bn_stats_kernel,
        out_shape=(jax.ShapeDtypeStruct((Mp, Np), jnp.float32),
                   jax.ShapeDtypeStruct((2, Np), jnp.float32)),
        grid=(Mp // TM,),
        in_specs=[pl.BlockSpec((TM, K), lambda i: (i, 0)),
                  pl.BlockSpec((K, Np), lambda i: (0, 0))],
        out_specs=(pl.BlockSpec((TM, Np), lambda i: (i, 0)),
                   pl.BlockSpec((2, Np), lambda i: (0, 0))),
        # stats output accumulates across the M axis -> must be arbitrary.
        compiler_params=pltpu.CompilerParams(
            dimension_semantics=("arbitrary",)),
    )(p, w)
    return out, stats        # still M/N padded; caller slices after BN


def bn_lrelu(x_pad, stats, gamma, beta, count):
    Mp, Cp = x_pad.shape
    C = gamma.shape[0]
    g = jnp.pad(gamma.reshape(1, C).astype(jnp.float32), ((0, 0), (0, Cp - C)))
    b = jnp.pad(beta.reshape(1, C).astype(jnp.float32), ((0, 0), (0, Cp - C)))

    TM = 256 if (Mp > 256 and Mp % 256 == 0) else Mp

    return pl.pallas_call(
        functools.partial(_bn_lrelu_kernel, inv_count=1.0 / count),
        out_shape=jax.ShapeDtypeStruct((Mp, Cp), jnp.float32),
        grid=(Mp // TM,),
        in_specs=[pl.BlockSpec((TM, Cp), lambda i: (i, 0)),
                  pl.BlockSpec((2, Cp), lambda i: (0, 0)),
                  pl.BlockSpec((1, Cp), lambda i: (0, 0)),
                  pl.BlockSpec((1, Cp), lambda i: (0, 0))],
        out_specs=pl.BlockSpec((TM, Cp), lambda i: (i, 0)),
        compiler_params=pltpu.CompilerParams(
            dimension_semantics=("parallel",)),
    )(x_pad, stats, g, b)


# ---------------------------------------------------------------- glue ------

def reflect_pad_nhwc(x, pad=1):
    return jnp.pad(x, ((0, 0), (pad, pad), (pad, pad), (0, 0)), mode="reflect")


def im2col(x, k, stride):
    # x: (B, Hp, Wp, C) already padded; k and stride are STATIC Python ints.
    B, Hp, Wp, C = x.shape
    Ho = (Hp - k) // stride + 1
    Wo = (Wp - k) // stride + 1
    cols = []
    for i in range(k):
        for j in range(k):
            cols.append(x[:, i:i + stride * Ho:stride,
                          j:j + stride * Wo:stride, :])
    p = jnp.stack(cols, axis=3)                     # (B, Ho, Wo, k*k, C)
    return p.reshape(B * Ho * Wo, k * k * C), (B, Ho, Wo)


def _conv_prep(x_nhwc, w_oihw, stride):
    Cout, Cin, k, _ = w_oihw.shape
    xp = reflect_pad_nhwc(x_nhwc.astype(jnp.bfloat16), 1)
    patches, dims = im2col(xp, k, stride)
    # (Cout, Cin, kh, kw) -> (kh, kw, Cin, Cout) -> (kh*kw*Cin, Cout),
    # matching the im2col patch ordering (i, j, cin).
    w_mat = jnp.transpose(w_oihw, (2, 3, 1, 0)).reshape(k * k * Cin, Cout)
    return patches, w_mat, dims, Cout


def conv_block_bias_act(x_nhwc, w, bias, stride, act):
    patches, w_mat, (B, Ho, Wo), Cout = _conv_prep(x_nhwc, w, stride)
    out = conv_matmul_bias_act(patches, w_mat, bias, act)
    return out.reshape(B, Ho, Wo, Cout)


def conv_bn_lrelu_block(x_nhwc, w, gamma, beta, stride):
    patches, w_mat, (B, Ho, Wo), Cout = _conv_prep(x_nhwc, w, stride)
    M = B * Ho * Wo
    out_pad, stats = conv_matmul_bn_stats(patches, w_mat)
    y_pad = bn_lrelu(out_pad, stats, gamma, beta, M)
    return y_pad[:M, :Cout].reshape(B, Ho, Wo, Cout)


# ------------------------------------------------------------- parameters ---

def init_params(key, in_channels=3, features=(64, 128, 256, 512)):
    # All parameters (conv weights, conv biases, BN gamma, BN beta) drawn from
    # N(0, 0.02), mirroring initialize_weights over named_parameters().
    # NOTE: only arrays live here — strides are derived statically in forward.
    def nrm(k, shape):
        return 0.02 * jax.random.normal(k, shape, jnp.float32)

    keys = iter(jax.random.split(key, 4 + 3 * (len(features) - 1)))
    params = {
        "w0": nrm(next(keys), (features[0], in_channels * 2, 4, 4)),
        "b0": nrm(next(keys), (features[0],)),
        "blocks": [],
    }
    cin = features[0]
    for f in features[1:]:
        params["blocks"].append(dict(
            w=nrm(next(keys), (f, cin, 4, 4)),          # bias=False in CNNBlock
            gamma=nrm(next(keys), (f,)),
            beta=nrm(next(keys), (f,)),
        ))
        cin = f
    params["wf"] = nrm(next(keys), (1, cin, 4, 4))
    params["bf"] = nrm(next(keys), (1,))
    return params


# ---------------------------------------------------------------- forward ---

def discriminator_forward(params, x_nchw, y_nchw):
    x = jnp.concatenate([x_nchw, y_nchw], axis=1)            # (B, 2*Cin, H, W)
    h = jnp.transpose(x, (0, 2, 3, 1)).astype(jnp.float32)   # -> NHWC

    # initial: Conv(stride 2, reflect) + LeakyReLU(0.2)
    h = conv_block_bias_act(h, params["w0"], params["b0"], stride=2, act=True)

    # CNN blocks: Conv(bias=False, reflect) + BatchNorm2d + LeakyReLU(0.2)
    n_blocks = len(params["blocks"])
    for idx, blk in enumerate(params["blocks"]):
        stride = 1 if idx == n_blocks - 1 else 2             # static int
        h = conv_bn_lrelu_block(h, blk["w"], blk["gamma"], blk["beta"], stride)

    # final: Conv(512 -> 1, stride 1, reflect), no activation
    h = conv_block_bias_act(h, params["wf"], params["bf"], stride=1, act=False)
    return jnp.transpose(h, (0, 3, 1, 2))                    # back to NCHW


# ------------------------------------------------------------------ main ----

if __name__ == "__main__":
    key = jax.random.PRNGKey(0)
    kp, kx, ky = jax.random.split(key, 3)

    # 32x32 spatial is the smallest power-of-two size for which all 5 layers
    # produce a non-empty output.
    B, C, H, W = 2, 3, 32, 32
    x = jax.random.normal(kx, (B, C, H, W), jnp.float32)
    y = jax.random.normal(ky, (B, C, H, W), jnp.float32)

    params = init_params(kp, in_channels=C)

    out = jax.jit(discriminator_forward)(params, x, y)
    out = jax.block_until_ready(out)

    assert out.shape == (B, 1, 2, 2), out.shape
    assert jnp.all(jnp.isfinite(out))
    print("KERNEL_OK")
</pallas_src>

<mosaic_0001>
module attributes {stable_mosaic.version = 11 : i64} {
  func.func @_conv_bias_act_kernel(%arg0: i32, %arg1: memref<256x96xbf16, #tpu.memory_space<vmem>>, %arg2: memref<96x128xbf16, #tpu.memory_space<vmem>>, %arg3: memref<1x128xf32, #tpu.memory_space<vmem>>, %arg4: memref<256x128xf32, #tpu.memory_space<vmem>>) attributes {dimension_semantics = [#tpu.dimension_semantics<parallel>], iteration_bounds = array<i64: 2>, scalar_prefetch = 0 : i64, scratch_operands = 0 : i64, tpu.core_type = #tpu.core_type<tc>, window_params = [{transform_indices = @transform_0, window_bounds = array<i64: 256, 96>}, {pipeline_mode = #tpu.pipeline_mode<synchronous>, transform_indices = @transform_1, window_bounds = array<i64: 96, 128>}, {pipeline_mode = #tpu.pipeline_mode<synchronous>, transform_indices = @transform_2, window_bounds = array<i64: 1, 128>}, {transform_indices = @transform_3, window_bounds = array<i64: 256, 128>}]} {
    %c0 = arith.constant 0 : index
    %c0_0 = arith.constant 0 : index
    %0 = vector.load %arg1[%c0, %c0_0] : memref<256x96xbf16, #tpu.memory_space<vmem>>, vector<256x96xbf16>
    %c0_1 = arith.constant 0 : index
    %c0_2 = arith.constant 0 : index
    %1 = vector.load %arg2[%c0_1, %c0_2] : memref<96x128xbf16, #tpu.memory_space<vmem>>, vector<96x128xbf16>
    %cst = arith.constant dense<0.000000e+00> : vector<256x128xf32>
    %2 = tpu.matmul %0, %1, %cst {dimension_numbers = #tpu.dot_dimension_numbers<[1], [0], [0], [1], [0, 0, 1, 1], [], []>} : vector<256x96xbf16>, vector<96x128xbf16>, vector<256x128xf32> -> vector<256x128xf32>
    %c0_3 = arith.constant 0 : index
    %c0_4 = arith.constant 0 : index
    %3 = vector.load %arg3[%c0_3, %c0_4] : memref<1x128xf32, #tpu.memory_space<vmem>>, vector<1x128xf32>
    %4 = vector.broadcast %3 : vector<1x128xf32> to vector<256x128xf32>
    %5 = arith.addf %2, %4 : vector<256x128xf32>
    %cst_5 = arith.constant 0.000000e+00 : f32
    %6 = vector.broadcast %cst_5 : f32 to vector<256x128xf32>
    %7 = arith.cmpf oge, %5, %6 : vector<256x128xf32>
    %cst_6 = arith.constant 2.000000e-01 : f32
    %8 = vector.broadcast %cst_6 : f32 to vector<256x128xf32>
    %9 = arith.mulf %8, %5 : vector<256x128xf32>
    %10 = arith.select %7, %5, %9 : vector<256x128xi1>, vector<256x128xf32>
    %c0_7 = arith.constant 0 : index
    %c0_8 = arith.constant 0 : index
    %11 = vector.load %arg4[%c0_7, %c0_8] : memref<256x128xf32, #tpu.memory_space<vmem>>, vector<256x128xf32>
    tpu.vector_store %arg4[%c0_7, %c0_8], %10 {strides = array<i32>} : memref<256x128xf32, #tpu.memory_space<vmem>>, vector<256x128xf32>,
    return
  }
  func.func @transform_0(%arg0: i32) -> (i32, i32) {
    %c0_i32 = arith.constant 0 : i32
    %c0_i32_0 = arith.constant 0 : i32
    return %arg0, %c0_i32 : i32, i32
  }
  func.func @transform_1(%arg0: i32) -> (i32, i32) {
    %c0_i32 = arith.constant 0 : i32
    %c0_i32_0 = arith.constant 0 : i32
    %c0_i32_1 = arith.constant 0 : i32
    return %c0_i32, %c0_i32_0 : i32, i32
  }
  func.func @transform_2(%arg0: i32) -> (i32, i32) {
    %c0_i32 = arith.constant 0 : i32
    %c0_i32_0 = arith.constant 0 : i32
    %c0_i32_1 = arith.constant 0 : i32
    return %c0_i32, %c0_i32_0 : i32, i32
  }
  func.func @transform_3(%arg0: i32) -> (i32, i32) {
    %c0_i32 = arith.constant 0 : i32
    %c0_i32_0 = arith.constant 0 : i32
    return %arg0, %c0_i32 : i32, i32
  }
}

module attributes {stable_mosaic.version = 11 : i64} {
  func.func @_conv_bn_stats_kernel(%arg0: i32, %arg1: memref<128x1024xbf16, #tpu.memory_space<vmem>>, %arg2: memref<1024x128xbf16, #tpu.memory_space<vmem>>, %arg3: memref<128x128xf32, #tpu.memory_space<vmem>>, %arg4: memref<2x128xf32, #tpu.memory_space<vmem>>) attributes {dimension_semantics = [#tpu.dimension_semantics<arbitrary>], iteration_bounds = array<i64: 1>, scalar_prefetch = 0 : i64, scratch_operands = 0 : i64, tpu.core_type = #tpu.core_type<tc>, window_params = [{transform_indices = @transform_0, window_bounds = array<i64: 128, 1024>}, {pipeline_mode = #tpu.pipeline_mode<synchronous>, transform_indices = @transform_1, window_bounds = array<i64: 1024, 128>}, {transform_indices = @transform_2, window_bounds = array<i64: 128, 128>}, {pipeline_mode = #tpu.pipeline_mode<synchronous>, transform_indices = @transform_3, window_bounds = array<i64: 2, 128>}]} {
    %c0 = arith.constant 0 : index
    %c0_0 = arith.constant 0 : index
    %0 = vector.load %arg1[%c0, %c0_0] : memref<128x1024xbf16, #tpu.memory_space<vmem>>, vector<128x1024xbf16>
    %c0_1 = arith.constant 0 : index
    %c0_2 = arith.constant 0 : index
    %1 = vector.load %arg2[%c0_1, %c0_2] : memref<1024x128xbf16, #tpu.memory_space<vmem>>, vector<1024x128xbf16>
    %cst = arith.constant dense<0.000000e+00> : vector<128x128xf32>
    %2 = tpu.matmul %0, %1, %cst {dimension_numbers = #tpu.dot_dimension_numbers<[1], [0], [0], [1], [0, 0, 1, 1], [], []>} : vector<128x1024xbf16>, vector<1024x128xbf16>, vector<128x128xf32> -> vector<128x128xf32>
    %c0_3 = arith.constant 0 : index
    %c0_4 = arith.constant 0 : index
    %3 = vector.load %arg3[%c0_3, %c0_4] : memref<128x128xf32, #tpu.memory_space<vmem>>, vector<128x128xf32>
    tpu.vector_store %arg3[%c0_3, %c0_4], %2 {strides = array<i32>} : memref<128x128xf32, #tpu.memory_space<vmem>>, vector<128x128xf32>,
    %c0_i32 = arith.constant 0 : i32
    %4 = arith.cmpi eq, %arg0, %c0_i32 : i32
    %5 = arith.extui %4 : i1 to i32
    %c0_i32_5 = arith.constant 0 : i32
    %6 = arith.cmpi ne, %5, %c0_i32_5 : i32
    scf.if %6 {
      %cst_12 = arith.constant 0.000000e+00 : f32
      %16 = vector.broadcast %cst_12 : f32 to vector<2x128xf32>
      %c0_13 = arith.constant 0 : index
      %c0_14 = arith.constant 0 : index
      %17 = vector.load %arg4[%c0_13, %c0_14] : memref<2x128xf32, #tpu.memory_space<vmem>>, vector<2x128xf32>
      tpu.vector_store %arg4[%c0_13, %c0_14], %16 {strides = array<i32>} : memref<2x128xf32, #tpu.memory_space<vmem>>, vector<2x128xf32>,
    } else {
    }
    %cst_6 = arith.constant dense<0.000000e+00> : vector<128xf32>
    %7 = vector.multi_reduction <add>, %2, %cst_6 [0] : vector<128x128xf32> to vector<128xf32>
    %8 = vector.shape_cast %7 : vector<128xf32> to vector<1x128xf32>
    %9 = arith.mulf %2, %2 : vector<128x128xf32>
    %cst_7 = arith.constant dense<0.000000e+00> : vector<128xf32>
    %10 = vector.multi_reduction <add>, %9, %cst_7 [0] : vector<128x128xf32> to vector<128xf32>
    %11 = vector.shape_cast %10 : vector<128xf32> to vector<1x128xf32>
    %12 = tpu.concatenate %8, %11 in 0 : vector<1x128xf32>, vector<1x128xf32> -> vector<2x128xf32>
    %c0_8 = arith.constant 0 : index
    %c0_9 = arith.constant 0 : index
    %13 = vector.load %arg4[%c0_8, %c0_9] : memref<2x128xf32, #tpu.memory_space<vmem>>, vector<2x128xf32>
    %14 = arith.addf %13, %12 : vector<2x128xf32>
    %c0_10 = arith.constant 0 : index
    %c0_11 = arith.constant 0 : index
    %15 = vector.load %arg4[%c0_10, %c0_11] : memref<2x128xf32, #tpu.memory_space<vmem>>, vector<2x128xf32>
    tpu.vector_store %arg4[%c0_10, %c0_11], %14 {strides = array<i32>} : memref<2x128xf32, #tpu.memory_space<vmem>>, vector<2x128xf32>,
    return
  }
  func.func @transform_0(%arg0: i32) -> (i32, i32) {
    %c0_i32 = arith.constant 0 : i32
    %c0_i32_0 = arith.constant 0 : i32
    return %arg0, %c0_i32 : i32, i32
  }
  func.func @transform_1(%arg0: i32) -> (i32, i32) {
    %c0_i32 = arith.constant 0 : i32
    %c0_i32_0 = arith.constant 0 : i32
    %c0_i32_1 = arith.constant 0 : i32
    return %c0_i32, %c0_i32_0 : i32, i32
  }
  func.func @transform_2(%arg0: i32) -> (i32, i32) {
    %c0_i32 = arith.constant 0 : i32
    %c0_i32_0 = arith.constant 0 : i32
    return %arg0, %c0_i32 : i32, i32
  }
  func.func @transform_3(%arg0: i32) -> (i32, i32) {
    %c0_i32 = arith.constant 0 : i32
    %c0_i32_0 = arith.constant 0 : i32
    %c0_i32_1 = arith.constant 0 : i32
    return %c0_i32, %c0_i32_0 : i32, i32
  }
}

module attributes {stable_mosaic.version = 11 : i64} {
  func.func @_bn_lrelu_kernel(%arg0: i32, %arg1: memref<128x128xf32, #tpu.memory_space<vmem>>, %arg2: memref<2x128xf32, #tpu.memory_space<vmem>>, %arg3: memref<1x128xf32, #tpu.memory_space<vmem>>, %arg4: memref<1x128xf32, #tpu.memory_space<vmem>>, %arg5: memref<128x128xf32, #tpu.memory_space<vmem>>) attributes {dimension_semantics = [#tpu.dimension_semantics<parallel>], iteration_bounds = array<i64: 1>, scalar_prefetch = 0 : i64, scratch_operands = 0 : i64, tpu.core_type = #tpu.core_type<tc>, window_params = [{transform_indices = @transform_0, window_bounds = array<i64: 128, 128>}, {pipeline_mode = #tpu.pipeline_mode<synchronous>, transform_indices = @transform_1, window_bounds = array<i64: 2, 128>}, {pipeline_mode = #tpu.pipeline_mode<synchronous>, transform_indices = @transform_2, window_bounds = array<i64: 1, 128>}, {pipeline_mode = #tpu.pipeline_mode<synchronous>, transform_indices = @transform_3, window_bounds = array<i64: 1, 128>}, {transform_indices = @transform_4, window_bounds = array<i64: 128, 128>}]} {
    %c0 = arith.constant 0 : index
    %c0_0 = arith.constant 0 : index
    %0 = vector.load %arg2[%c0, %c0_0] : memref<2x128xf32, #tpu.memory_space<vmem>>, vector<2x128xf32>
    %1 = vector.extract_strided_slice %0 {offsets = [0, 0], sizes = [1, 128], strides = [1, 1]} : vector<2x128xf32> to vector<1x128xf32>
    %cst = arith.constant 7.812500e-03 : f32
    %2 = vector.broadcast %cst : f32 to vector<1x128xf32>
    %3 = arith.mulf %1, %2 : vector<1x128xf32>
    %4 = vector.extract_strided_slice %0 {offsets = [1, 0], sizes = [1, 128], strides = [1, 1]} : vector<2x128xf32> to vector<1x128xf32>
    %cst_1 = arith.constant 7.812500e-03 : f32
    %5 = vector.broadcast %cst_1 : f32 to vector<1x128xf32>
    %6 = arith.mulf %4, %5 : vector<1x128xf32>
    %7 = arith.mulf %3, %3 : vector<1x128xf32>
    %8 = arith.subf %6, %7 : vector<1x128xf32>
    %c0_2 = arith.constant 0 : index
    %c0_3 = arith.constant 0 : index
    %9 = vector.load %arg3[%c0_2, %c0_3] : memref<1x128xf32, #tpu.memory_space<vmem>>, vector<1x128xf32>
    %cst_4 = arith.constant 9.99999974E-6 : f32
    %10 = vector.broadcast %cst_4 : f32 to vector<1x128xf32>
    %11 = arith.addf %8, %10 : vector<1x128xf32>
    %12 = math.rsqrt %11 : vector<1x128xf32>
    %13 = arith.mulf %9, %12 : vector<1x128xf32>
    %c0_5 = arith.constant 0 : index
    %c0_6 = arith.constant 0 : index
    %14 = vector.load %arg4[%c0_5, %c0_6] : memref<1x128xf32, #tpu.memory_space<vmem>>, vector<1x128xf32>
    %15 = arith.mulf %3, %13 : vector<1x128xf32>
    %16 = arith.subf %14, %15 : vector<1x128xf32>
    %c0_7 = arith.constant 0 : index
    %c0_8 = arith.constant 0 : index
    %17 = vector.load %arg1[%c0_7, %c0_8] : memref<128x128xf32, #tpu.memory_space<vmem>>, vector<128x128xf32>
    %18 = vector.broadcast %13 : vector<1x128xf32> to vector<128x128xf32>
    %19 = arith.mulf %17, %18 : vector<128x128xf32>
    %20 = vector.broadcast %16 : vector<1x128xf32> to vector<128x128xf32>
    %21 = arith.addf %19, %20 : vector<128x128xf32>
    %cst_9 = arith.constant 0.000000e+00 : f32
    %22 = vector.broadcast %cst_9 : f32 to vector<128x128xf32>
    %23 = arith.cmpf oge, %21, %22 : vector<128x128xf32>
    %cst_10 = arith.constant 2.000000e-01 : f32
    %24 = vector.broadcast %cst_10 : f32 to vector<128x128xf32>
    %25 = arith.mulf %24, %21 : vector<128x128xf32>
    %26 = arith.select %23, %21, %25 : vector<128x128xi1>, vector<128x128xf32>
    %c0_11 = arith.constant 0 : index
    %c0_12 = arith.constant 0 : index
    %27 = vector.load %arg5[%c0_11, %c0_12] : memref<128x128xf32, #tpu.memory_space<vmem>>, vector<128x128xf32>
    tpu.vector_store %arg5[%c0_11, %c0_12], %26 {strides = array<i32>} : memref<128x128xf32, #tpu.memory_space<vmem>>, vector<128x128xf32>,
    return
  }
  func.func @transform_0(%arg0: i32) -> (i32, i32) {
    %c0_i32 = arith.constant 0 : i32
    %c0_i32_0 = arith.constant 0 : i32
    return %arg0, %c0_i32 : i32, i32
  }
  func.func @transform_1(%arg0: i32) -> (i32, i32) {
    %c0_i32 = arith.constant 0 : i32
    %c0_i32_0 = arith.constant 0 : i32
    %c0_i32_1 = arith.constant 0 : i32
    return %c0_i32, %c0_i32_0 : i32, i32
  }
  func.func @transform_2(%arg0: i32) -> (i32, i32) {
    %c0_i32 = arith.constant 0 : i32
    %c0_i32_0 = arith.constant 0 : i32
    %c0_i32_1 = arith.constant 0 : i32
    return %c0_i32, %c0_i32_0 : i32, i32
  }
  func.func @transform_3(%arg0: i32) -> (i32, i32) {
    %c0_i32 = arith.constant 0 : i32
    %c0_i32_0 = arith.constant 0 : i32
    %c0_i32_1 = arith.constant 0 : i32
    return %c0_i32, %c0_i32_0 : i32, i32
  }
  func.func @transform_4(%arg0: i32) -> (i32, i32) {
    %c0_i32 = arith.constant 0 : i32
    %c0_i32_0 = arith.constant 0 : i32
    return %arg0, %c0_i32 : i32, i32
  }
}

module attributes {stable_mosaic.version = 11 : i64} {
  func.func @_conv_bn_stats_kernel(%arg0: i32, %arg1: memref<32x2048xbf16, #tpu.memory_space<vmem>>, %arg2: memref<2048x256xbf16, #tpu.memory_space<vmem>>, %arg3: memref<32x256xf32, #tpu.memory_space<vmem>>, %arg4: memref<2x256xf32, #tpu.memory_space<vmem>>) attributes {dimension_semantics = [#tpu.dimension_semantics<arbitrary>], iteration_bounds = array<i64: 1>, scalar_prefetch = 0 : i64, scratch_operands = 0 : i64, tpu.core_type = #tpu.core_type<tc>, window_params = [{transform_indices = @transform_0, window_bounds = array<i64: 32, 2048>}, {pipeline_mode = #tpu.pipeline_mode<synchronous>, transform_indices = @transform_1, window_bounds = array<i64: 2048, 256>}, {transform_indices = @transform_2, window_bounds = array<i64: 32, 256>}, {pipeline_mode = #tpu.pipeline_mode<synchronous>, transform_indices = @transform_3, window_bounds = array<i64: 2, 256>}]} {
    %c0 = arith.constant 0 : index
    %c0_0 = arith.constant 0 : index
    %0 = vector.load %arg1[%c0, %c0_0] : memref<32x2048xbf16, #tpu.memory_space<vmem>>, vector<32x2048xbf16>
    %c0_1 = arith.constant 0 : index
    %c0_2 = arith.constant 0 : index
    %1 = vector.load %arg2[%c0_1, %c0_2] : memref<2048x256xbf16, #tpu.memory_space<vmem>>, vector<2048x256xbf16>
    %cst = arith.constant dense<0.000000e+00> : vector<32x256xf32>
    %2 = tpu.matmul %0, %1, %cst {dimension_numbers = #tpu.dot_dimension_numbers<[1], [0], [0], [1], [0, 0, 1, 1], [], []>} : vector<32x2048xbf16>, vector<2048x256xbf16>, vector<32x256xf32> -> vector<32x256xf32>
    %c0_3 = arith.constant 0 : index
    %c0_4 = arith.constant 0 : index
    %3 = vector.load %arg3[%c0_3, %c0_4] : memref<32x256xf32, #tpu.memory_space<vmem>>, vector<32x256xf32>
    tpu.vector_store %arg3[%c0_3, %c0_4], %2 {strides = array<i32>} : memref<32x256xf32, #tpu.memory_space<vmem>>, vector<32x256xf32>,
    %c0_i32 = arith.constant 0 : i32
    %4 = arith.cmpi eq, %arg0, %c0_i32 : i32
    %5 = arith.extui %4 : i1 to i32
    %c0_i32_5 = arith.constant 0 : i32
    %6 = arith.cmpi ne, %5, %c0_i32_5 : i32
    scf.if %6 {
      %cst_12 = arith.constant 0.000000e+00 : f32
      %16 = vector.broadcast %cst_12 : f32 to vector<2x256xf32>
      %c0_13 = arith.constant 0 : index
      %c0_14 = arith.constant 0 : index
      %17 = vector.load %arg4[%c0_13, %c0_14] : memref<2x256xf32, #tpu.memory_space<vmem>>, vector<2x256xf32>
      tpu.vector_store %arg4[%c0_13, %c0_14], %16 {strides = array<i32>} : memref<2x256xf32, #tpu.memory_space<vmem>>, vector<2x256xf32>,
    } else {
    }
    %cst_6 = arith.constant dense<0.000000e+00> : vector<256xf32>
    %7 = vector.multi_reduction <add>, %2, %cst_6 [0] : vector<32x256xf32> to vector<256xf32>
    %8 = vector.shape_cast %7 : vector<256xf32> to vector<1x256xf32>
    %9 = arith.mulf %2, %2 : vector<32x256xf32>
    %cst_7 = arith.constant dense<0.000000e+00> : vector<256xf32>
    %10 = vector.multi_reduction <add>, %9, %cst_7 [0] : vector<32x256xf32> to vector<256xf32>
    %11 = vector.shape_cast %10 : vector<256xf32> to vector<1x256xf32>
    %12 = tpu.concatenate %8, %11 in 0 : vector<1x256xf32>, vector<1x256xf32> -> vector<2x256xf32>
    %c0_8 = arith.constant 0 : index
    %c0_9 = arith.constant 0 : index
    %13 = vector.load %arg4[%c0_8, %c0_9] : memref<2x256xf32, #tpu.memory_space<vmem>>, vector<2x256xf32>
    %14 = arith.addf %13, %12 : vector<2x256xf32>
    %c0_10 = arith.constant 0 : index
    %c0_11 = arith.constant 0 : index
    %15 = vector.load %arg4[%c0_10, %c0_11] : memref<2x256xf32, #tpu.memory_space<vmem>>, vector<2x256xf32>
    tpu.vector_store %arg4[%c0_10, %c0_11], %14 {strides = array<i32>} : memref<2x256xf32, #tpu.memory_space<vmem>>, vector<2x256xf32>,
    return
  }
  func.func @transform_0(%arg0: i32) -> (i32, i32) {
    %c0_i32 = arith.constant 0 : i32
    %c0_i32_0 = arith.constant 0 : i32
    return %arg0, %c0_i32 : i32, i32
  }
  func.func @transform_1(%arg0: i32) -> (i32, i32) {
    %c0_i32 = arith.constant 0 : i32
    %c0_i32_0 = arith.constant 0 : i32
    %c0_i32_1 = arith.constant 0 : i32
    return %c0_i32, %c0_i32_0 : i32, i32
  }
  func.func @transform_2(%arg0: i32) -> (i32, i32) {
    %c0_i32 = arith.constant 0 : i32
    %c0_i32_0 = arith.constant 0 : i32
    return %arg0, %c0_i32 : i32, i32
  }
  func.func @transform_3(%arg0: i32) -> (i32, i32) {
    %c0_i32 = arith.constant 0 : i32
    %c0_i32_0 = arith.constant 0 : i32
    %c0_i32_1 = arith.constant 0 : i32
    return %c0_i32, %c0_i32_0 : i32, i32
  }
}

module attributes {stable_mosaic.version = 11 : i64} {
  func.func @_bn_lrelu_kernel(%arg0: i32, %arg1: memref<32x256xf32, #tpu.memory_space<vmem>>, %arg2: memref<2x256xf32, #tpu.memory_space<vmem>>, %arg3: memref<1x256xf32, #tpu.memory_space<vmem>>, %arg4: memref<1x256xf32, #tpu.memory_space<vmem>>, %arg5: memref<32x256xf32, #tpu.memory_space<vmem>>) attributes {dimension_semantics = [#tpu.dimension_semantics<parallel>], iteration_bounds = array<i64: 1>, scalar_prefetch = 0 : i64, scratch_operands = 0 : i64, tpu.core_type = #tpu.core_type<tc>, window_params = [{transform_indices = @transform_0, window_bounds = array<i64: 32, 256>}, {pipeline_mode = #tpu.pipeline_mode<synchronous>, transform_indices = @transform_1, window_bounds = array<i64: 2, 256>}, {pipeline_mode = #tpu.pipeline_mode<synchronous>, transform_indices = @transform_2, window_bounds = array<i64: 1, 256>}, {pipeline_mode = #tpu.pipeline_mode<synchronous>, transform_indices = @transform_3, window_bounds = array<i64: 1, 256>}, {transform_indices = @transform_4, window_bounds = array<i64: 32, 256>}]} {
    %c0 = arith.constant 0 : index
    %c0_0 = arith.constant 0 : index
    %0 = vector.load %arg2[%c0, %c0_0] : memref<2x256xf32, #tpu.memory_space<vmem>>, vector<2x256xf32>
    %1 = vector.extract_strided_slice %0 {offsets = [0, 0], sizes = [1, 256], strides = [1, 1]} : vector<2x256xf32> to vector<1x256xf32>
    %cst = arith.constant 3.125000e-02 : f32
    %2 = vector.broadcast %cst : f32 to vector<1x256xf32>
    %3 = arith.mulf %1, %2 : vector<1x256xf32>
    %4 = vector.extract_strided_slice %0 {offsets = [1, 0], sizes = [1, 256], strides = [1, 1]} : vector<2x256xf32> to vector<1x256xf32>
    %cst_1 = arith.constant 3.125000e-02 : f32
    %5 = vector.broadcast %cst_1 : f32 to vector<1x256xf32>
    %6 = arith.mulf %4, %5 : vector<1x256xf32>
    %7 = arith.mulf %3, %3 : vector<1x256xf32>
    %8 = arith.subf %6, %7 : vector<1x256xf32>
    %c0_2 = arith.constant 0 : index
    %c0_3 = arith.constant 0 : index
    %9 = vector.load %arg3[%c0_2, %c0_3] : memref<1x256xf32, #tpu.memory_space<vmem>>, vector<1x256xf32>
    %cst_4 = arith.constant 9.99999974E-6 : f32
    %10 = vector.broadcast %cst_4 : f32 to vector<1x256xf32>
    %11 = arith.addf %8, %10 : vector<1x256xf32>
    %12 = math.rsqrt %11 : vector<1x256xf32>
    %13 = arith.mulf %9, %12 : vector<1x256xf32>
    %c0_5 = arith.constant 0 : index
    %c0_6 = arith.constant 0 : index
    %14 = vector.load %arg4[%c0_5, %c0_6] : memref<1x256xf32, #tpu.memory_space<vmem>>, vector<1x256xf32>
    %15 = arith.mulf %3, %13 : vector<1x256xf32>
    %16 = arith.subf %14, %15 : vector<1x256xf32>
    %c0_7 = arith.constant 0 : index
    %c0_8 = arith.constant 0 : index
    %17 = vector.load %arg1[%c0_7, %c0_8] : memref<32x256xf32, #tpu.memory_space<vmem>>, vector<32x256xf32>
    %18 = vector.broadcast %13 : vector<1x256xf32> to vector<32x256xf32>
    %19 = arith.mulf %17, %18 : vector<32x256xf32>
    %20 = vector.broadcast %16 : vector<1x256xf32> to vector<32x256xf32>
    %21 = arith.addf %19, %20 : vector<32x256xf32>
    %cst_9 = arith.constant 0.000000e+00 : f32
    %22 = vector.broadcast %cst_9 : f32 to vector<32x256xf32>
    %23 = arith.cmpf oge, %21, %22 : vector<32x256xf32>
    %cst_10 = arith.constant 2.000000e-01 : f32
    %24 = vector.broadcast %cst_10 : f32 to vector<32x256xf32>
    %25 = arith.mulf %24, %21 : vector<32x256xf32>
    %26 = arith.select %23, %21, %25 : vector<32x256xi1>, vector<32x256xf32>
    %c0_11 = arith.constant 0 : index
    %c0_12 = arith.constant 0 : index
    %27 = vector.load %arg5[%c0_11, %c0_12] : memref<32x256xf32, #tpu.memory_space<vmem>>, vector<32x256xf32>
    tpu.vector_store %arg5[%c0_11, %c0_12], %26 {strides = array<i32>} : memref<32x256xf32, #tpu.memory_space<vmem>>, vector<32x256xf32>,
    return
  }
  func.func @transform_0(%arg0: i32) -> (i32, i32) {
    %c0_i32 = arith.constant 0 : i32
    %c0_i32_0 = arith.constant 0 : i32
    return %arg0, %c0_i32 : i32, i32
  }
  func.func @transform_1(%arg0: i32) -> (i32, i32) {
    %c0_i32 = arith.constant 0 : i32
    %c0_i32_0 = arith.constant 0 : i32
    %c0_i32_1 = arith.constant 0 : i32
    return %c0_i32, %c0_i32_0 : i32, i32
  }
  func.func @transform_2(%arg0: i32) -> (i32, i32) {
    %c0_i32 = arith.constant 0 : i32
    %c0_i32_0 = arith.constant 0 : i32
    %c0_i32_1 = arith.constant 0 : i32
    return %c0_i32, %c0_i32_0 : i32, i32
  }
  func.func @transform_3(%arg0: i32) -> (i32, i32) {
    %c0_i32 = arith.constant 0 : i32
    %c0_i32_0 = arith.constant 0 : i32
    %c0_i32_1 = arith.constant 0 : i32
    return %c0_i32, %c0_i32_0 : i32, i32
  }
  func.func @transform_4(%arg0: i32) -> (i32, i32) {
    %c0_i32 = arith.constant 0 : i32
    %c0_i32_0 = arith.constant 0 : i32
    return %arg0, %c0_i32 : i32, i32
  }
}

module attributes {stable_mosaic.version = 11 : i64} {
  func.func @_conv_bn_stats_kernel(%arg0: i32, %arg1: memref<24x4096xbf16, #tpu.memory_space<vmem>>, %arg2: memref<4096x512xbf16, #tpu.memory_space<vmem>>, %arg3: memref<24x512xf32, #tpu.memory_space<vmem>>, %arg4: memref<2x512xf32, #tpu.memory_space<vmem>>) attributes {dimension_semantics = [#tpu.dimension_semantics<arbitrary>], iteration_bounds = array<i64: 1>, scalar_prefetch = 0 : i64, scratch_operands = 0 : i64, tpu.core_type = #tpu.core_type<tc>, window_params = [{transform_indices = @transform_0, window_bounds = array<i64: 24, 4096>}, {pipeline_mode = #tpu.pipeline_mode<synchronous>, transform_indices = @transform_1, window_bounds = array<i64: 4096, 512>}, {transform_indices = @transform_2, window_bounds = array<i64: 24, 512>}, {pipeline_mode = #tpu.pipeline_mode<synchronous>, transform_indices = @transform_3, window_bounds = array<i64: 2, 512>}]} {
    %c0 = arith.constant 0 : index
    %c0_0 = arith.constant 0 : index
    %0 = vector.load %arg1[%c0, %c0_0] : memref<24x4096xbf16, #tpu.memory_space<vmem>>, vector<24x4096xbf16>
    %c0_1 = arith.constant 0 : index
    %c0_2 = arith.constant 0 : index
    %1 = vector.load %arg2[%c0_1, %c0_2] : memref<4096x512xbf16, #tpu.memory_space<vmem>>, vector<4096x512xbf16>
    %cst = arith.constant dense<0.000000e+00> : vector<24x512xf32>
    %2 = tpu.matmul %0, %1, %cst {dimension_numbers = #tpu.dot_dimension_numbers<[1], [0], [0], [1], [0, 0, 1, 1], [], []>} : vector<24x4096xbf16>, vector<4096x512xbf16>, vector<24x512xf32> -> vector<24x512xf32>
    %c0_3 = arith.constant 0 : index
    %c0_4 = arith.constant 0 : index
    %3 = vector.load %arg3[%c0_3, %c0_4] : memref<24x512xf32, #tpu.memory_space<vmem>>, vector<24x512xf32>
    tpu.vector_store %arg3[%c0_3, %c0_4], %2 {strides = array<i32>} : memref<24x512xf32, #tpu.memory_space<vmem>>, vector<24x512xf32>,
    %c0_i32 = arith.constant 0 : i32
    %4 = arith.cmpi eq, %arg0, %c0_i32 : i32
    %5 = arith.extui %4 : i1 to i32
    %c0_i32_5 = arith.constant 0 : i32
    %6 = arith.cmpi ne, %5, %c0_i32_5 : i32
    scf.if %6 {
      %cst_12 = arith.constant 0.000000e+00 : f32
      %16 = vector.broadcast %cst_12 : f32 to vector<2x512xf32>
      %c0_13 = arith.constant 0 : index
      %c0_14 = arith.constant 0 : index
      %17 = vector.load %arg4[%c0_13, %c0_14] : memref<2x512xf32, #tpu.memory_space<vmem>>, vector<2x512xf32>
      tpu.vector_store %arg4[%c0_13, %c0_14], %16 {strides = array<i32>} : memref<2x512xf32, #tpu.memory_space<vmem>>, vector<2x512xf32>,
    } else {
    }
    %cst_6 = arith.constant dense<0.000000e+00> : vector<512xf32>
    %7 = vector.multi_reduction <add>, %2, %cst_6 [0] : vector<24x512xf32> to vector<512xf32>
    %8 = vector.shape_cast %7 : vector<512xf32> to vector<1x512xf32>
    %9 = arith.mulf %2, %2 : vector<24x512xf32>
    %cst_7 = arith.constant dense<0.000000e+00> : vector<512xf32>
    %10 = vector.multi_reduction <add>, %9, %cst_7 [0] : vector<24x512xf32> to vector<512xf32>
    %11 = vector.shape_cast %10 : vector<512xf32> to vector<1x512xf32>
    %12 = tpu.concatenate %8, %11 in 0 : vector<1x512xf32>, vector<1x512xf32> -> vector<2x512xf32>
    %c0_8 = arith.constant 0 : index
    %c0_9 = arith.constant 0 : index
    %13 = vector.load %arg4[%c0_8, %c0_9] : memref<2x512xf32, #tpu.memory_space<vmem>>, vector<2x512xf32>
    %14 = arith.addf %13, %12 : vector<2x512xf32>
    %c0_10 = arith.constant 0 : index
    %c0_11 = arith.constant 0 : index
    %15 = vector.load %arg4[%c0_10, %c0_11] : memref<2x512xf32, #tpu.memory_space<vmem>>, vector<2x512xf32>
    tpu.vector_store %arg4[%c0_10, %c0_11], %14 {strides = array<i32>} : memref<2x512xf32, #tpu.memory_space<vmem>>, vector<2x512xf32>,
    return
  }
  func.func @transform_0(%arg0: i32) -> (i32, i32) {
    %c0_i32 = arith.constant 0 : i32
    %c0_i32_0 = arith.constant 0 : i32
    return %arg0, %c0_i32 : i32, i32
  }
  func.func @transform_1(%arg0: i32) -> (i32, i32) {
    %c0_i32 = arith.constant 0 : i32
    %c0_i32_0 = arith.constant 0 : i32
    %c0_i32_1 = arith.constant 0 : i32
    return %c0_i32, %c0_i32_0 : i32, i32
  }
  func.func @transform_2(%arg0: i32) -> (i32, i32) {
    %c0_i32 = arith.constant 0 : i32
    %c0_i32_0 = arith.constant 0 : i32
    return %arg0, %c0_i32 : i32, i32
  }
  func.func @transform_3(%arg0: i32) -> (i32, i32) {
    %c0_i32 = arith.constant 0 : i32
    %c0_i32_0 = arith.constant 0 : i32
    %c0_i32_1 = arith.constant 0 : i32
    return %c0_i32, %c0_i32_0 : i32, i32
  }
}

module attributes {stable_mosaic.version = 11 : i64} {
  func.func @_bn_lrelu_kernel(%arg0: i32, %arg1: memref<24x512xf32, #tpu.memory_space<vmem>>, %arg2: memref<2x512xf32, #tpu.memory_space<vmem>>, %arg3: memref<1x512xf32, #tpu.memory_space<vmem>>, %arg4: memref<1x512xf32, #tpu.memory_space<vmem>>, %arg5: memref<24x512xf32, #tpu.memory_space<vmem>>) attributes {dimension_semantics = [#tpu.dimension_semantics<parallel>], iteration_bounds = array<i64: 1>, scalar_prefetch = 0 : i64, scratch_operands = 0 : i64, tpu.core_type = #tpu.core_type<tc>, window_params = [{transform_indices = @transform_0, window_bounds = array<i64: 24, 512>}, {pipeline_mode = #tpu.pipeline_mode<synchronous>, transform_indices = @transform_1, window_bounds = array<i64: 2, 512>}, {pipeline_mode = #tpu.pipeline_mode<synchronous>, transform_indices = @transform_2, window_bounds = array<i64: 1, 512>}, {pipeline_mode = #tpu.pipeline_mode<synchronous>, transform_indices = @transform_3, window_bounds = array<i64: 1, 512>}, {transform_indices = @transform_4, window_bounds = array<i64: 24, 512>}]} {
    %c0 = arith.constant 0 : index
    %c0_0 = arith.constant 0 : index
    %0 = vector.load %arg2[%c0, %c0_0] : memref<2x512xf32, #tpu.memory_space<vmem>>, vector<2x512xf32>
    %1 = vector.extract_strided_slice %0 {offsets = [0, 0], sizes = [1, 512], strides = [1, 1]} : vector<2x512xf32> to vector<1x512xf32>
    %cst = arith.constant 0.055555556 : f32
    %2 = vector.broadcast %cst : f32 to vector<1x512xf32>
    %3 = arith.mulf %1, %2 : vector<1x512xf32>
    %4 = vector.extract_strided_slice %0 {offsets = [1, 0], sizes = [1, 512], strides = [1, 1]} : vector<2x512xf32> to vector<1x512xf32>
    %cst_1 = arith.constant 0.055555556 : f32
    %5 = vector.broadcast %cst_1 : f32 to vector<1x512xf32>
    %6 = arith.mulf %4, %5 : vector<1x512xf32>
    %7 = arith.mulf %3, %3 : vector<1x512xf32>
    %8 = arith.subf %6, %7 : vector<1x512xf32>
    %c0_2 = arith.constant 0 : index
    %c0_3 = arith.constant 0 : index
    %9 = vector.load %arg3[%c0_2, %c0_3] : memref<1x512xf32, #tpu.memory_space<vmem>>, vector<1x512xf32>
    %cst_4 = arith.constant 9.99999974E-6 : f32
    %10 = vector.broadcast %cst_4 : f32 to vector<1x512xf32>
    %11 = arith.addf %8, %10 : vector<1x512xf32>
    %12 = math.rsqrt %11 : vector<1x512xf32>
    %13 = arith.mulf %9, %12 : vector<1x512xf32>
    %c0_5 = arith.constant 0 : index
    %c0_6 = arith.constant 0 : index
    %14 = vector.load %arg4[%c0_5, %c0_6] : memref<1x512xf32, #tpu.memory_space<vmem>>, vector<1x512xf32>
    %15 = arith.mulf %3, %13 : vector<1x512xf32>
    %16 = arith.subf %14, %15 : vector<1x512xf32>
    %c0_7 = arith.constant 0 : index
    %c0_8 = arith.constant 0 : index
    %17 = vector.load %arg1[%c0_7, %c0_8] : memref<24x512xf32, #tpu.memory_space<vmem>>, vector<24x512xf32>
    %18 = vector.broadcast %13 : vector<1x512xf32> to vector<24x512xf32>
    %19 = arith.mulf %17, %18 : vector<24x512xf32>
    %20 = vector.broadcast %16 : vector<1x512xf32> to vector<24x512xf32>
    %21 = arith.addf %19, %20 : vector<24x512xf32>
    %cst_9 = arith.constant 0.000000e+00 : f32
    %22 = vector.broadcast %cst_9 : f32 to vector<24x512xf32>
    %23 = arith.cmpf oge, %21, %22 : vector<24x512xf32>
    %cst_10 = arith.constant 2.000000e-01 : f32
    %24 = vector.broadcast %cst_10 : f32 to vector<24x512xf32>
    %25 = arith.mulf %24, %21 : vector<24x512xf32>
    %26 = arith.select %23, %21, %25 : vector<24x512xi1>, vector<24x512xf32>
    %c0_11 = arith.constant 0 : index
    %c0_12 = arith.constant 0 : index
    %27 = vector.load %arg5[%c0_11, %c0_12] : memref<24x512xf32, #tpu.memory_space<vmem>>, vector<24x512xf32>
    tpu.vector_store %arg5[%c0_11, %c0_12], %26 {strides = array<i32>} : memref<24x512xf32, #tpu.memory_space<vmem>>, vector<24x512xf32>,
    return
  }
  func.func @transform_0(%arg0: i32) -> (i32, i32) {
    %c0_i32 = arith.constant 0 : i32
    %c0_i32_0 = arith.constant 0 : i32
    return %arg0, %c0_i32 : i32, i32
  }
  func.func @transform_1(%arg0: i32) -> (i32, i32) {
    %c0_i32 = arith.constant 0 : i32
    %c0_i32_0 = arith.constant 0 : i32
    %c0_i32_1 = arith.constant 0 : i32
    return %c0_i32, %c0_i32_0 : i32, i32
  }
  func.func @transform_2(%arg0: i32) -> (i32, i32) {
    %c0_i32 = arith.constant 0 : i32
    %c0_i32_0 = arith.constant 0 : i32
    %c0_i32_1 = arith.constant 0 : i32
    return %c0_i32, %c0_i32_0 : i32, i32
  }
  func.func @transform_3(%arg0: i32) -> (i32, i32) {
    %c0_i32 = arith.constant 0 : i32
    %c0_i32_0 = arith.constant 0 : i32
    %c0_i32_1 = arith.constant 0 : i32
    return %c0_i32, %c0_i32_0 : i32, i32
  }
  func.func @transform_4(%arg0: i32) -> (i32, i32) {
    %c0_i32 = arith.constant 0 : i32
    %c0_i32_0 = arith.constant 0 : i32
    return %arg0, %c0_i32 : i32, i32
  }
}

module attributes {stable_mosaic.version = 11 : i64} {
  func.func @_conv_bias_act_kernel(%arg0: i32, %arg1: memref<8x8192xbf16, #tpu.memory_space<vmem>>, %arg2: memref<8192x128xbf16, #tpu.memory_space<vmem>>, %arg3: memref<1x128xf32, #tpu.memory_space<vmem>>, %arg4: memref<8x128xf32, #tpu.memory_space<vmem>>) attributes {dimension_semantics = [#tpu.dimension_semantics<parallel>], iteration_bounds = array<i64: 1>, scalar_prefetch = 0 : i64, scratch_operands = 0 : i64, tpu.core_type = #tpu.core_type<tc>, window_params = [{transform_indices = @transform_0, window_bounds = array<i64: 8, 8192>}, {pipeline_mode = #tpu.pipeline_mode<synchronous>, transform_indices = @transform_1, window_bounds = array<i64: 8192, 128>}, {pipeline_mode = #tpu.pipeline_mode<synchronous>, transform_indices = @transform_2, window_bounds = array<i64: 1, 128>}, {transform_indices = @transform_3, window_bounds = array<i64: 8, 128>}]} {
    %c0 = arith.constant 0 : index
    %c0_0 = arith.constant 0 : index
    %0 = vector.load %arg1[%c0, %c0_0] : memref<8x8192xbf16, #tpu.memory_space<vmem>>, vector<8x8192xbf16>
    %c0_1 = arith.constant 0 : index
    %c0_2 = arith.constant 0 : index
    %1 = vector.load %arg2[%c0_1, %c0_2] : memref<8192x128xbf16, #tpu.memory_space<vmem>>, vector<8192x128xbf16>
    %cst = arith.constant dense<0.000000e+00> : vector<8x128xf32>
    %2 = tpu.matmul %0, %1, %cst {dimension_numbers = #tpu.dot_dimension_numbers<[1], [0], [0], [1], [0, 0, 1, 1], [], []>} : vector<8x8192xbf16>, vector<8192x128xbf16>, vector<8x128xf32> -> vector<8x128xf32>
    %c0_3 = arith.constant 0 : index
    %c0_4 = arith.constant 0 : index
    %3 = vector.load %arg3[%c0_3, %c0_4] : memref<1x128xf32, #tpu.memory_space<vmem>>, vector<1x128xf32>
    %4 = vector.broadcast %3 : vector<1x128xf32> to vector<8x128xf32>
    %5 = arith.addf %2, %4 : vector<8x128xf32>
    %c0_5 = arith.constant 0 : index
    %c0_6 = arith.constant 0 : index
    %6 = vector.load %arg4[%c0_5, %c0_6] : memref<8x128xf32, #tpu.memory_space<vmem>>, vector<8x128xf32>
    tpu.vector_store %arg4[%c0_5, %c0_6], %5 {strides = array<i32>} : memref<8x128xf32, #tpu.memory_space<vmem>>, vector<8x128xf32>,
    return
  }
  func.func @transform_0(%arg0: i32) -> (i32, i32) {
    %c0_i32 = arith.constant 0 : i32
    %c0_i32_0 = arith.constant 0 : i32
    return %arg0, %c0_i32 : i32, i32
  }
  func.func @transform_1(%arg0: i32) -> (i32, i32) {
    %c0_i32 = arith.constant 0 : i32
    %c0_i32_0 = arith.constant 0 : i32
    %c0_i32_1 = arith.constant 0 : i32
    return %c0_i32, %c0_i32_0 : i32, i32
  }
  func.func @transform_2(%arg0: i32) -> (i32, i32) {
    %c0_i32 = arith.constant 0 : i32
    %c0_i32_0 = arith.constant 0 : i32
    %c0_i32_1 = arith.constant 0 : i32
    return %c0_i32, %c0_i32_0 : i32, i32
  }
  func.func @transform_3(%arg0: i32) -> (i32, i32) {
    %c0_i32 = arith.constant 0 : i32
    %c0_i32_0 = arith.constant 0 : i32
    return %arg0, %c0_i32 : i32, i32
  }
}

</mosaic_0001>

<bundles_post_ra>
// kernel: discriminator_forward.8
= control target key start
LH: loop header
LB: loop body
LE: loop exit
PB: predicated region body
PF: predicated region fallthrough
CT: control target
= control target key end

     0   :  { %s922_s12 = smov 0   ;;  %s1066_s0 = inlined_call_operand.vmem [shape: bf16[512,96], index: 0, kind: input, shape index: {}]   ;;  %s1067_s1 = inlined_call_operand.vmem [shape: bf16[96,128], index: 1, kind: input, shape index: {}]   ;;  %s1068_s2 = inlined_call_operand.vmem [shape: f32[1,128], index: 2, kind: input, shape index: {}]   ;;  %s1069_s3 = inlined_call_operand.vmem [shape: f32[512,128], index: 3, kind: output, shape index: {}]  }
   0x1 LB: > { %s736_s13 = sadd.s32 4294967295, %s900_s12   ;;  %p740_p0 = scmp.ge.s32.totalorder %s900_s12, 1  ;;  %s900_s12 = sphi %s922_s12, %s13_s12  }
   0x2   : > { %p138_p1 = scmp.lt.s32.totalorder %s900_s12, 3 }
   0x4   : > { %p139_p2 = pnand %p740_p0, %p138_p1 }
   0x5   : > { %v872_v0 = vld [vmem:[%s1067_s1] sm:$0xff] (!%p139_p2)   ;;  %s741_s16 = sshll.u32 (!%p139_p2), %s736_s13, 5  ;;  %v873_v1 = vld [vmem:[%s1067_s1 + $0x8] sm:$0xff] (!%p139_p2)   ;;  %v874_v2 = vld [vmem:[%s1067_s1 + $0x10] sm:$0xff] (!%p139_p2)   ;;  %vm342_vm0 = vcmask (!%p139_p2), 785408  }
   0x6   : > { %142 = sbr.rel (%p139_p2) target bundleno = 279 (0x117), region = 32  ;;  %p163_p3 = scmp.lt.s32.totalorder (!%p139_p2), %s741_s16, 63  ;;  %808 = vmatprep.subr.bf16.mxu0 (!%p139_p2), %v872_v0  ;;  %852 = vmatprep.subr.bf16.mxu1 (!%p139_p2), %v872_v0  ;;  %v875_v3 = vld [vmem:[%s1067_s1 + $0x18] sm:$0xff] (!%p139_p2)   ;;  %v876_v6 = vld [vmem:[%s1067_s1 + $0x20] sm:$0xff] (!%p139_p2)   ;;  %v877_v7 = vld [vmem:[%s1067_s1 + $0x28] sm:$0xff] (!%p139_p2)  }
   0x7   : > { %809 = vmatpush3.bf16.msra.mxu0 (!%p139_p2), %v872_v0  ;;  %858 = vmatpush3.bf16.msra.mxu1 (!%p139_p2), %v872_v0  ;;  %v991_v22 = vld [vmem:[%s1068_s2] ss:$0 sm:$0xff] (!%p139_p2) }
   0x8   : > { %810 = vmatprep.subr.bf16.mxu0 (!%p139_p2), %v873_v1  ;;  %853 = vmatprep.subr.bf16.mxu1 (!%p139_p2), %v873_v1 }
   0xb   : > { %811 = vmatpush3.bf16.msra.mxu0 (!%p139_p2), %v873_v1  ;;  %859 = vmatpush3.bf16.msra.mxu1 (!%p139_p2), %v873_v1 }
   0xc   : > { %812 = vmatprep.subr.bf16.mxu0 (!%p139_p2), %v874_v2  ;;  %854 = vmatprep.subr.bf16.mxu1 (!%p139_p2), %v874_v2 }
   0xd   : > { %s1071_s16 = smov (!%p163_p3, %s741_s16), 63 }
   0xe   : > { %s742_s21 = sshll.u32 %s1071_s16, 2  ;;  %s744_s6 = sshll.u32 %s1071_s16, 3 }
   0xf   : > { %s948_s26 = scalar_lea.vmem %s1066_s0, %s742_s21  ;;  %813 = vmatpush3.bf16.msra.mxu0 %v874_v2  ;;  %860 = vmatpush3.bf16.msra.mxu1 %v874_v2  ;;  %s1001_s9 = scalar_lea.vmem %s1069_s3, %s744_s6 }
  0x10   : > { %v878_v4 = vld [vmem:[%s948_s26] sm:$0xff]   ;;  %814 = vmatprep.subr.bf16.mxu0 %v875_v3  ;;  %855 = vmatprep.subr.bf16.mxu1 %v875_v3  ;;  %v880_v8 = vld [vmem:[%s948_s26 + $0x8] sm:$0xff]   ;;  %v882_v10 = vld [vmem:[%s948_s26 + $0x10] sm:$0xff]  }
  0x11   : > { %v879_v5 = vld [vmem:[%s948_s26 + $0x40] sm:$0xff]   ;;  %820 = vmatprep.mubr.msk.bf16.mxu0 %vm342_vm0, %v878_v4  ;;  %v881_v9 = vld [vmem:[%s948_s26 + $0x48] sm:$0xff]   ;;  %v883_v11 = vld [vmem:[%s948_s26 + $0x50] sm:$0xff]  }
  0x12   : > { %836 = vmatprep.mubr.msk.bf16.mxu1 %vm342_vm0, %v879_v5  ;;  %v884_v12 = vld [vmem:[%s948_s26 + $0x18] sm:$0xff]   ;;  %v886_v14 = vld [vmem:[%s948_s26 + $0x20] sm:$0xff]   ;;  %v888_v16 = vld [vmem:[%s948_s26 + $0x28] sm:$0xff]  }
  0x13   : > { %815 = vmatpush3.bf16.msra.mxu0 %v875_v3  ;;  %861 = vmatpush3.bf16.msra.mxu1 %v875_v3  ;;  %v885_v13 = vld [vmem:[%s948_s26 + $0x58] sm:$0xff]   ;;  %v887_v15 = vld [vmem:[%s948_s26 + $0x60] sm:$0xff]   ;;  %v889_v17 = vld [vmem:[%s948_s26 + $0x68] sm:$0xff]  }
  0x14   : > { %816 = vmatprep.subr.bf16.mxu0 %v876_v6  ;;  %856 = vmatprep.subr.bf16.mxu1 %v876_v6  ;;  %v890_v18 = vld [vmem:[%s948_s26 + $0x30] sm:$0xff]   ;;  %v892_v20 = vld [vmem:[%s948_s26 + $0x38] sm:$0xff]  }
  0x15   : > { %v891_v19 = vld [vmem:[%s948_s26 + $0x70] sm:$0xff]   ;;  %v893_v21 = vld [vmem:[%s948_s26 + $0x78] sm:$0xff]  }
  0x17   : > { %817 = vmatpush3.bf16.msra.mxu0 %v876_v6  ;;  %862 = vmatpush3.bf16.msra.mxu1 %v876_v6 }
  0x18   : > { %818 = vmatprep.subr.bf16.mxu0 %v877_v7  ;;  %857 = vmatprep.subr.bf16.mxu1 %v877_v7 }
  0x1b   : > { %819 = vmatpush3.bf16.msra.mxu0 %v877_v7  ;;  %863 = vmatpush3.bf16.msra.mxu1 %v877_v7 }
  0x1e   : > { %821 = vmatmul.mubr.msk.bf16.vlgmr.msra.gmra.mrb[0].mxu0 %vm342_vm0, %v880_v8  ;;  %837 = vmatmul.mubr.msk.bf16.vlgmr.msra.gmra.mrb[0].mxu1 %vm342_vm0, %v881_v9 }
  0x1f   : > { %824 = vmatprep.mubr.msk.bf16.mxu0 %vm342_vm0, %v882_v10  ;;  %840 = vmatprep.mubr.msk.bf16.mxu1 %vm342_vm0, %v883_v11 }
  0x26   : > { %825 = vmatmul.mubr.msk.bf16.gmra.mrb[4].mxu0 %vm342_vm0, %v884_v12  ;;  %841 = vmatmul.mubr.msk.bf16.gmra.mrb[4].mxu1 %vm342_vm0, %v885_v13 }
  0x27   : > { %828 = vmatprep.mubr.msk.bf16.mxu0 %vm342_vm0, %v886_v14  ;;  %844 = vmatprep.mubr.msk.bf16.mxu1 %vm342_vm0, %v887_v15 }
  0x2e   : > { %829 = vmatmul.mubr.msk.bf16.gmra.mrb[8].mxu0 %vm342_vm0, %v888_v16  ;;  %845 = vmatmul.mubr.msk.bf16.gmra.mrb[8].mxu1 %vm342_vm0, %v889_v17 }
  0x2f   : > { %832 = vmatprep.mubr.msk.bf16.mxu0 %vm342_vm0, %v890_v18  ;;  %848 = vmatprep.mubr.msk.bf16.mxu1 %vm342_vm0, %v891_v19 }
  0x36   : > { %833 = vmatmul.mubr.msk.bf16.gmra.mrb[12].mxu0 %vm342_vm0, %v892_v20  ;;  %849 = vmatmul.mubr.msk.bf16.gmra.mrb[12].mxu1 %vm342_vm0, %v893_v21 }
  0xf1   : > { %v822_v23 = vpop.f32.mrb[0].mxu0  ;;  %v838_v24 = vpop.f32.mrb[0].mxu1 }
  0xf2   : > { %v434_v25 = vadd.f32 %v822_v23, %v991_v22  ;;  %v498_v26 = vadd.f32 %v838_v24, %v991_v22  ;;  %v425_v27 = vpop.f32.mrb[1].mxu0  ;;  %v489_v28 = vpop.f32.mrb[1].mxu1 }
  0xf3   : > { %v426_v29 = vadd.f32 %v991_v22, %v425_v27  ;;  %v490_v30 = vadd.f32 %v991_v22, %v489_v28  ;;  %v823_v31 = vpop.f32.mrb[2].mxu0  ;;  %v839_v32 = vpop.f32.mrb[2].mxu1 }
  0xf4   : > { %vm554_vm1 = vcmp.ge.f32.partialorder %v434_v25, 0.0  ;;  %v586_v33 = vmul.f32 0.2, %v434_v25  ;;  %vm570_vm2 = vcmp.ge.f32.partialorder %v498_v26, 0.0  ;;  %v602_v34 = vmul.f32 0.2, %v498_v26 }
  0xf5   : > { %vm552_vm3 = vcmp.ge.f32.partialorder %v426_v29, 0.0  ;;  %v584_v35 = vmul.f32 0.2, %v426_v29  ;;  %vm568_vm4 = vcmp.ge.f32.partialorder %v490_v30, 0.0  ;;  %v600_v36 = vmul.f32 0.2, %v490_v30 }
  0xf6   : > { %v618_v37 = vsel %vm554_vm1, %v434_v25, %v586_v33  ;;  %v634_v38 = vsel %vm570_vm2, %v498_v26, %v602_v34  ;;  %v437_v39 = vadd.f32 %v823_v31, %v991_v22  ;;  %v501_v40 = vadd.f32 %v839_v32, %v991_v22  ;;  %v428_v41 = vpop.f32.mrb[3].mxu0  ;;  %v492_v42 = vpop.f32.mrb[3].mxu1 }
  0xf7   : > { %650 = vst [vmem:[%s1001_s9 + $0x10] sm:$0xff] %v618_v37  ;;  %666 = vst [vmem:[%s1001_s9 + $0x90] sm:$0xff] %v634_v38  ;;  %v616_v43 = vsel %vm552_vm3, %v426_v29, %v584_v35  ;;  %v632_v44 = vsel %vm568_vm4, %v490_v30, %v600_v36  ;;  %v429_v45 = vadd.f32 %v991_v22, %v428_v41 }
  0xf8   : > { %v493_v46 = vadd.f32 %v991_v22, %v492_v42  ;;  %648 = vst [vmem:[%s1001_s9] sm:$0xff] %v616_v43  ;;  %664 = vst [vmem:[%s1001_s9 + $0x80] sm:$0xff] %v632_v44  ;;  %vm555_vm5 = vcmp.ge.f32.partialorder %v437_v39, 0.0  ;;  %v587_v47 = vmul.f32 0.2, %v437_v39  ;;  %vm571_vm6 = vcmp.ge.f32.partialorder %v501_v40, 0.0 }
  0xf9   : > { %v603_v48 = vmul.f32 0.2, %v501_v40  ;;  %vm553_vm7 = vcmp.ge.f32.partialorder %v429_v45, 0.0  ;;  %v585_v49 = vmul.f32 0.2, %v429_v45  ;;  %v826_v53 = vpop.f32.mrb[4].mxu0 }
  0xfa   : > { %vm569_vm8 = vcmp.ge.f32.partialorder %v493_v46, 0.0  ;;  %v601_v50 = vmul.f32 0.2, %v493_v46  ;;  %v619_v51 = vsel %vm555_vm5, %v437_v39, %v587_v47  ;;  %v842_v54 = vpop.f32.mrb[4].mxu1  ;;  %v450_v57 = vadd.f32 %v826_v53, %v991_v22  ;;  %v441_v59 = vpop.f32.mrb[5].mxu0 }
  0xfb   : > { %v635_v52 = vsel %vm571_vm6, %v501_v40, %v603_v48  ;;  %651 = vst [vmem:[%s1001_s9 + $0x18] sm:$0xff] %v619_v51  ;;  %v617_v55 = vsel %vm553_vm7, %v429_v45, %v585_v49  ;;  %v514_v58 = vadd.f32 %v842_v54, %v991_v22  ;;  %v505_v60 = vpop.f32.mrb[5].mxu1  ;;  %v442_v61 = vadd.f32 %v991_v22, %v441_v59  ;;  %v827_v63 = vpop.f32.mrb[6].mxu0 }
  0xfc   : > { %667 = vst [vmem:[%s1001_s9 + $0x98] sm:$0xff] %v635_v52  ;;  %v633_v56 = vsel %vm569_vm8, %v493_v46, %v601_v50  ;;  %649 = vst [vmem:[%s1001_s9 + $0x8] sm:$0xff] %v617_v55  ;;  %v506_v62 = vadd.f32 %v991_v22, %v505_v60  ;;  %v843_v0 = vpop.f32.mrb[6].mxu1  ;;  %vm558_vm9 = vcmp.ge.f32.partialorder %v450_v57, 0.0  ;;  %v590_v1 = vmul.f32 0.2, %v450_v57 }
  0xfd   : > { %665 = vst [vmem:[%s1001_s9 + $0x88] sm:$0xff] %v633_v56  ;;  %vm574_vm10 = vcmp.ge.f32.partialorder %v514_v58, 0.0  ;;  %v606_v2 = vmul.f32 0.2, %v514_v58  ;;  %vm556_vm11 = vcmp.ge.f32.partialorder %v442_v61, 0.0  ;;  %v453_v7 = vadd.f32 %v827_v63, %v991_v22  ;;  %v444_v9 = vpop.f32.mrb[7].mxu0 }
  0xfe   : > { %v588_v3 = vmul.f32 0.2, %v442_v61  ;;  %vm572_vm12 = vcmp.ge.f32.partialorder %v506_v62, 0.0  ;;  %v604_v4 = vmul.f32 0.2, %v506_v62  ;;  %v622_v5 = vsel %vm558_vm9, %v450_v57, %v590_v1  ;;  %v508_v10 = vpop.f32.mrb[7].mxu1 }
  0xff   : > { %v638_v6 = vsel %vm574_vm10, %v514_v58, %v606_v2  ;;  %v517_v8 = vadd.f32 %v843_v0, %v991_v22  ;;  %654 = vst [vmem:[%s1001_s9 + $0x30] sm:$0xff] %v622_v5  ;;  %v445_v13 = vadd.f32 %v991_v22, %v444_v9  ;;  %v509_v14 = vadd.f32 %v991_v22, %v508_v10 }
 0x100   : > { %670 = vst [vmem:[%s1001_s9 + $0xb0] sm:$0xff] %v638_v6  ;;  %v620_v11 = vsel %vm556_vm11, %v442_v61, %v588_v3  ;;  %v636_v12 = vsel %vm572_vm12, %v506_v62, %v604_v4  ;;  %vm559_vm13 = vcmp.ge.f32.partialorder %v453_v7, 0.0  ;;  %v591_v15 = vmul.f32 0.2, %v453_v7 }
 0x101   : > { %652 = vst [vmem:[%s1001_s9 + $0x20] sm:$0xff] %v620_v11  ;;  %668 = vst [vmem:[%s1001_s9 + $0xa0] sm:$0xff] %v636_v12  ;;  %vm575_vm14 = vcmp.ge.f32.partialorder %v517_v8, 0.0  ;;  %v607_v16 = vmul.f32 0.2, %v517_v8  ;;  %vm557_vm15 = vcmp.ge.f32.partialorder %v445_v13, 0.0 }
 0x102   : > { %v589_v17 = vmul.f32 0.2, %v445_v13  ;;  %vm573_vm0 = vcmp.ge.f32.partialorder %v509_v14, 0.0  ;;  %v605_v18 = vmul.f32 0.2, %v509_v14  ;;  %v623_v19 = vsel %vm559_vm13, %v453_v7, %v591_v15  ;;  %v830_v21 = vpop.f32.mrb[8].mxu0 }
 0x103   : > { %v639_v20 = vsel %vm575_vm14, %v517_v8, %v607_v16  ;;  %v846_v23 = vpop.f32.mrb[8].mxu1  ;;  %655 = vst [vmem:[%s1001_s9 + $0x38] sm:$0xff] %v623_v19  ;;  %v466_v26 = vadd.f32 %v830_v21, %v991_v22  ;;  %v457_v28 = vpop.f32.mrb[9].mxu0 }
 0x104   : > { %671 = vst [vmem:[%s1001_s9 + $0xb8] sm:$0xff] %v639_v20  ;;  %v621_v24 = vsel %vm557_vm15, %v445_v13, %v589_v17  ;;  %v637_v25 = vsel %vm573_vm0, %v509_v14, %v605_v18  ;;  %v530_v27 = vadd.f32 %v846_v23, %v991_v22  ;;  %v521_v29 = vpop.f32.mrb[9].mxu1  ;;  %v458_v30 = vadd.f32 %v991_v22, %v457_v28  ;;  %v831_v32 = vpop.f32.mrb[10].mxu0 }
 0x105   : > { %653 = vst [vmem:[%s1001_s9 + $0x28] sm:$0xff] %v621_v24  ;;  %669 = vst [vmem:[%s1001_s9 + $0xa8] sm:$0xff] %v637_v25  ;;  %v522_v31 = vadd.f32 %v991_v22, %v521_v29  ;;  %v847_v33 = vpop.f32.mrb[10].mxu1  ;;  %vm562_vm1 = vcmp.ge.f32.partialorder %v466_v26, 0.0  ;;  %v594_v34 = vmul.f32 0.2, %v466_v26  ;;  %v469_v40 = vadd.f32 %v831_v32, %v991_v22 }
 0x106   : > { %vm578_vm2 = vcmp.ge.f32.partialorder %v530_v27, 0.0  ;;  %v610_v35 = vmul.f32 0.2, %v530_v27  ;;  %vm560_vm3 = vcmp.ge.f32.partialorder %v458_v30, 0.0  ;;  %v592_v36 = vmul.f32 0.2, %v458_v30 }
 0x107   : > { %vm576_vm4 = vcmp.ge.f32.partialorder %v522_v31, 0.0  ;;  %v608_v37 = vmul.f32 0.2, %v522_v31  ;;  %v626_v38 = vsel %vm562_vm1, %v466_v26, %v594_v34  ;;  %v533_v41 = vadd.f32 %v847_v33, %v991_v22  ;;  %v460_v42 = vpop.f32.mrb[11].mxu0  ;;  %v524_v43 = vpop.f32.mrb[11].mxu1 }
 0x108   : > { %v642_v39 = vsel %vm578_vm2, %v530_v27, %v610_v35  ;;  %658 = vst [vmem:[%s1001_s9 + $0x50] sm:$0xff] %v626_v38  ;;  %v624_v44 = vsel %vm560_vm3, %v458_v30, %v592_v36  ;;  %v461_v46 = vadd.f32 %v991_v22, %v460_v42  ;;  %v525_v47 = vadd.f32 %v991_v22, %v524_v43 }
 0x109   : > { %674 = vst [vmem:[%s1001_s9 + $0xd0] sm:$0xff] %v642_v39  ;;  %v640_v45 = vsel %vm576_vm4, %v522_v31, %v608_v37  ;;  %v834_v48 = vpop.f32.mrb[12].mxu0  ;;  %v850_v49 = vpop.f32.mrb[12].mxu1  ;;  %656 = vst [vmem:[%s1001_s9 + $0x40] sm:$0xff] %v624_v44  ;;  %vm563_vm5 = vcmp.ge.f32.partialorder %v469_v40, 0.0  ;;  %vm579_vm6 = vcmp.ge.f32.partialorder %v533_v41, 0.0 }
 0x10a   : > { %672 = vst [vmem:[%s1001_s9 + $0xc0] sm:$0xff] %v640_v45  ;;  %v595_v50 = vmul.f32 0.2, %v469_v40  ;;  %v611_v51 = vmul.f32 0.2, %v533_v41  ;;  %vm561_vm7 = vcmp.ge.f32.partialorder %v461_v46, 0.0  ;;  %v482_v56 = vadd.f32 %v834_v48, %v991_v22 }
 0x10b   : > { %v593_v52 = vmul.f32 0.2, %v461_v46  ;;  %vm577_vm8 = vcmp.ge.f32.partialorder %v525_v47, 0.0  ;;  %v609_v53 = vmul.f32 0.2, %v525_v47  ;;  %v546_v57 = vadd.f32 %v850_v49, %v991_v22  ;;  %v473_v58 = vpop.f32.mrb[13].mxu0 }
 0x10c   : > { %v627_v54 = vsel %vm563_vm5, %v469_v40, %v595_v50  ;;  %v643_v55 = vsel %vm579_vm6, %v533_v41, %v611_v51  ;;  %v537_v59 = vpop.f32.mrb[13].mxu1  ;;  %v474_v62 = vadd.f32 %v991_v22, %v473_v58  ;;  %v835_v0 = vpop.f32.mrb[14].mxu0  ;;  %vm566_vm9 = vcmp.ge.f32.partialorder %v482_v56, 0.0 }
 0x10d   : > { %659 = vst [vmem:[%s1001_s9 + $0x58] sm:$0xff] %v627_v54  ;;  %675 = vst [vmem:[%s1001_s9 + $0xd8] sm:$0xff] %v643_v55  ;;  %v625_v60 = vsel %vm561_vm7, %v461_v46, %v593_v52  ;;  %v641_v61 = vsel %vm577_vm8, %v525_v47, %v609_v53  ;;  %v538_v63 = vadd.f32 %v991_v22, %v537_v59  ;;  %v851_v1 = vpop.f32.mrb[14].mxu1  ;;  %v598_v2 = vmul.f32 0.2, %v482_v56  ;;  %v476_v10 = vpop.f32.mrb[15].mxu0 }
 0x10e   : > { %657 = vst [vmem:[%s1001_s9 + $0x48] sm:$0xff] %v625_v60  ;;  %673 = vst [vmem:[%s1001_s9 + $0xc8] sm:$0xff] %v641_v61  ;;  %vm582_vm10 = vcmp.ge.f32.partialorder %v546_v57, 0.0  ;;  %v614_v3 = vmul.f32 0.2, %v546_v57  ;;  %vm564_vm11 = vcmp.ge.f32.partialorder %v474_v62, 0.0  ;;  %v485_v8 = vadd.f32 %v835_v0, %v991_v22 }
 0x10f   : > { %v596_v4 = vmul.f32 0.2, %v474_v62  ;;  %vm580_vm12 = vcmp.ge.f32.partialorder %v538_v63, 0.0  ;;  %v612_v5 = vmul.f32 0.2, %v538_v63  ;;  %v630_v6 = vsel %vm566_vm9, %v482_v56, %v598_v2  ;;  %v540_v11 = vpop.f32.mrb[15].mxu1 }
 0x110   : > { %v646_v7 = vsel %vm582_vm10, %v546_v57, %v614_v3  ;;  %v549_v9 = vadd.f32 %v851_v1, %v991_v22  ;;  %662 = vst [vmem:[%s1001_s9 + $0x70] sm:$0xff] %v630_v6  ;;  %v477_v14 = vadd.f32 %v991_v22, %v476_v10  ;;  %v541_v15 = vadd.f32 %v991_v22, %v540_v11 }
 0x111   : > { %678 = vst [vmem:[%s1001_s9 + $0xf0] sm:$0xff] %v646_v7  ;;  %v628_v12 = vsel %vm564_vm11, %v474_v62, %v596_v4  ;;  %v644_v13 = vsel %vm580_vm12, %v538_v63, %v612_v5  ;;  %vm567_vm13 = vcmp.ge.f32.partialorder %v485_v8, 0.0  ;;  %v599_v16 = vmul.f32 0.2, %v485_v8 }
 0x112   : > { %660 = vst [vmem:[%s1001_s9 + $0x60] sm:$0xff] %v628_v12  ;;  %676 = vst [vmem:[%s1001_s9 + $0xe0] sm:$0xff] %v644_v13  ;;  %vm583_vm14 = vcmp.ge.f32.partialorder %v549_v9, 0.0  ;;  %v615_v17 = vmul.f32 0.2, %v549_v9  ;;  %vm565_vm15 = vcmp.ge.f32.partialorder %v477_v14, 0.0 }
 0x113   : > { %v597_v18 = vmul.f32 0.2, %v477_v14  ;;  %vm581_vm0 = vcmp.ge.f32.partialorder %v541_v15, 0.0  ;;  %v613_v19 = vmul.f32 0.2, %v541_v15  ;;  %v631_v20 = vsel %vm567_vm13, %v485_v8, %v599_v16 }
 0x114   : > { %v647_v21 = vsel %vm583_vm14, %v549_v9, %v615_v17  ;;  %663 = vst [vmem:[%s1001_s9 + $0x78] sm:$0xff] %v631_v20 }
 0x115   : > { %679 = vst [vmem:[%s1001_s9 + $0xf8] sm:$0xff] %v647_v21  ;;  %v629_v23 = vsel %vm565_vm15, %v477_v14, %v597_v18  ;;  %v645_v24 = vsel %vm581_vm0, %v541_v15, %v613_v19 }
 0x116   : > { %661 = vst [vmem:[%s1001_s9 + $0x68] sm:$0xff] %v629_v23  ;;  %677 = vst [vmem:[%s1001_s9 + $0xe8] sm:$0xff] %v645_v24 }
 0x117 PF: > { %s13_s12 = sadd.s32 1, %s900_s12  }
 0x118   : > { %p10_p4 = scmp.ge.s32.totalorder %s13_s12, 4  }
 0x11a   :  { %12 = sbr.rel (!%p10_p4) target bundleno = 1 (0x1), region = 62 }

// kernel: discriminator_forward.9
= control target key start
LH: loop header
LB: loop body
LE: loop exit
PB: predicated region body
PF: predicated region fallthrough
CT: control target
= control target key end

     0   :  { %vm1377_vm0 = vcmask 1040384   ;;  %s2349_s1 = inlined_call_operand.vmem [shape: bf16[1024,128], index: 1, kind: input, shape index: {}]   ;;  %s2350_s0 = inlined_call_operand.vmem [shape: bf16[128,1024], index: 0, kind: input, shape index: {}]   ;;  %s2351_s3 = inlined_call_operand.vmem [shape: f32[2,128], index: 3, kind: output, shape index: {1}]   ;;  %s2352_s2 = inlined_call_operand.vmem [shape: f32[128,128], index: 2, kind: output, shape index: {0}]  }
   0x1   :  { %v1775_v0 = vld [vmem:[%s2349_s1 + $0x40] sm:$0xff]   ;;  %v1779_v4 = vld [vmem:[%s2349_s1 + $0x48] sm:$0xff]   ;;  %v1783_v8 = vld [vmem:[%s2349_s1 + $0x50] sm:$0xff]  }
   0x2   :  { %v1776_v1 = vld [vmem:[%s2349_s1 + $0xc0] sm:$0xff]   ;;  %1518 = vmatprep.subr.bf16.mxu0 %v1775_v0  ;;  %v1780_v5 = vld [vmem:[%s2349_s1 + $0xc8] sm:$0xff]   ;;  %v1784_v9 = vld [vmem:[%s2349_s1 + $0xd0] sm:$0xff]  }
   0x3   :  { %v1777_v2 = vld [vmem:[%s2349_s1] sm:$0xff]   ;;  %1582 = vmatprep.subr.bf16.mxu1 %v1776_v1  ;;  %v1781_v6 = vld [vmem:[%s2349_s1 + $0x8] sm:$0xff]   ;;  %v1785_v10 = vld [vmem:[%s2349_s1 + $0x10] sm:$0xff]  }
   0x4   :  { %v1778_v3 = vld [vmem:[%s2349_s1 + $0x80] sm:$0xff]   ;;  %1519 = vmatpush3.bf16.msra.mxu0 %v1777_v2  ;;  %v1782_v7 = vld [vmem:[%s2349_s1 + $0x88] sm:$0xff]   ;;  %v1786_v11 = vld [vmem:[%s2349_s1 + $0x90] sm:$0xff]  }
   0x5   :  { %1583 = vmatpush3.bf16.msra.mxu1 %v1778_v3  ;;  %1520 = vmatprep.subr.bf16.mxu0 %v1779_v4  ;;  %v1787_v12 = vld [vmem:[%s2349_s1 + $0x58] sm:$0xff]   ;;  %v1791_v16 = vld [vmem:[%s2349_s1 + $0x60] sm:$0xff]   ;;  %v1795_v20 = vld [vmem:[%s2349_s1 + $0x68] sm:$0xff]  }
   0x6   :  { %1584 = vmatprep.subr.bf16.mxu1 %v1780_v5  ;;  %v1788_v13 = vld [vmem:[%s2349_s1 + $0xd8] sm:$0xff]   ;;  %v1792_v17 = vld [vmem:[%s2349_s1 + $0xe0] sm:$0xff]   ;;  %v1796_v21 = vld [vmem:[%s2349_s1 + $0xe8] sm:$0xff]  }
   0x7   :  { %v1789_v14 = vld [vmem:[%s2349_s1 + $0x18] sm:$0xff]   ;;  %v1793_v18 = vld [vmem:[%s2349_s1 + $0x20] sm:$0xff]   ;;  %v1797_v22 = vld [vmem:[%s2349_s1 + $0x28] sm:$0xff]  }
   0x8   :  { %1521 = vmatpush3.bf16.msra.mxu0 %v1781_v6  ;;  %v1790_v15 = vld [vmem:[%s2349_s1 + $0x98] sm:$0xff]   ;;  %v1794_v19 = vld [vmem:[%s2349_s1 + $0xa0] sm:$0xff]   ;;  %v1798_v23 = vld [vmem:[%s2349_s1 + $0xa8] sm:$0xff]  }
   0x9   :  { %1585 = vmatpush3.bf16.msra.mxu1 %v1782_v7  ;;  %1522 = vmatprep.subr.bf16.mxu0 %v1783_v8  ;;  %v1799_v24 = vld [vmem:[%s2349_s1 + $0x70] sm:$0xff]   ;;  %v1803_v28 = vld [vmem:[%s2349_s1 + $0x78] sm:$0xff]   ;;  %v14_v32 = vld [vmem:[%s2350_s0] sm:$0xff] }
   0xa   :  { %1586 = vmatprep.subr.bf16.mxu1 %v1784_v9  ;;  %v1800_v25 = vld [vmem:[%s2349_s1 + $0xf0] sm:$0xff]   ;;  %v1804_v29 = vld [vmem:[%s2349_s1 + $0xf8] sm:$0xff]   ;;  %v18_v33 = vld [vmem:[%s2350_s0 + $0x20] sm:$0xff] }
   0xb   :  { %v1801_v26 = vld [vmem:[%s2349_s1 + $0x30] sm:$0xff]   ;;  %v1805_v30 = vld [vmem:[%s2349_s1 + $0x38] sm:$0xff]   ;;  %v15_v34 = vld [vmem:[%s2350_s0 + $0x8] sm:$0xff]  ;;  %v1390_v35 = vcombine.low %v14_v32, %v18_v33  ;;  %v1391_v36 = vcombine.high %v14_v32, %v18_v33 }
   0xc   :  { %1523 = vmatpush3.bf16.msra.mxu0 %v1785_v10  ;;  %v1802_v27 = vld [vmem:[%s2349_s1 + $0xb0] sm:$0xff]   ;;  %v1806_v31 = vld [vmem:[%s2349_s1 + $0xb8] sm:$0xff]   ;;  %v19_v37 = vld [vmem:[%s2350_s0 + $0x28] sm:$0xff] }
   0xd   :  { %1587 = vmatpush3.bf16.msra.mxu1 %v1786_v11  ;;  %1524 = vmatprep.subr.bf16.mxu0 %v1787_v12  ;;  %v1392_v38 = vcombine.low %v15_v34, %v19_v37  ;;  %v1393_v39 = vcombine.high %v15_v34, %v19_v37  ;;  %v1807_v40 = vld [vmem:[%s2349_s1 + $0x140] sm:$0xff]   ;;  %v23_v47 = vld [vmem:[%s2350_s0 + $0x48] sm:$0xff]  ;;  %v1815_v62 = vld [vmem:[%s2349_s1 + $0x150] sm:$0xff]  }
   0xe   :  { %1588 = vmatprep.subr.bf16.mxu1 %v1788_v13  ;;  %942 = vmatprep.mubr.bf16.mxu0 %v1391_v36  ;;  %v1808_v41 = vld [vmem:[%s2349_s1 + $0x100] sm:$0xff]   ;;  %v27_v48 = vld [vmem:[%s2350_s0 + $0x68] sm:$0xff]  ;;  %v1816_v63 = vld [vmem:[%s2349_s1 + $0x110] sm:$0xff]  }
   0xf   :  { %1039 = vmatprep.mubr.bf16.mxu1 %v1393_v39  ;;  %v1809_v42 = vld [vmem:[%s2349_s1 + $0x1c0] sm:$0xff]   ;;  %v1401_v49 = vcombine.high %v23_v47, %v27_v48  ;;  %v1811_v50 = vld [vmem:[%s2349_s1 + $0x148] sm:$0xff]   ;;  %v1400_v53 = vcombine.low %v23_v47, %v27_v48  ;;  %v1817_v0 = vld [vmem:[%s2349_s1 + $0x1d0] sm:$0xff]  }
  0x10   :  { %1525 = vmatpush3.bf16.msra.mxu0 %v1789_v14  ;;  %v1810_v43 = vld [vmem:[%s2349_s1 + $0x180] sm:$0xff]   ;;  %v1812_v52 = vld [vmem:[%s2349_s1 + $0x108] sm:$0xff]   ;;  %v1818_v1 = vld [vmem:[%s2349_s1 + $0x190] sm:$0xff]  }
  0x11   :  { %1589 = vmatpush3.bf16.msra.mxu1 %v1790_v15  ;;  %1526 = vmatprep.subr.bf16.mxu0 %v1791_v16  ;;  %v22_v44 = vld [vmem:[%s2350_s0 + $0x40] sm:$0xff]  ;;  %v1813_v54 = vld [vmem:[%s2349_s1 + $0x1c8] sm:$0xff]   ;;  %v1819_v10 = vld [vmem:[%s2349_s1 + $0x158] sm:$0xff]  }
  0x12   :  { %1590 = vmatprep.subr.bf16.mxu1 %v1792_v17  ;;  %v26_v45 = vld [vmem:[%s2350_s0 + $0x60] sm:$0xff]  ;;  %v1814_v55 = vld [vmem:[%s2349_s1 + $0x188] sm:$0xff]   ;;  %v1820_v11 = vld [vmem:[%s2349_s1 + $0x118] sm:$0xff]  }
  0x13   :  { %v1399_v46 = vcombine.high %v22_v44, %v26_v45  ;;  %v1398_v51 = vcombine.low %v22_v44, %v26_v45  ;;  %v30_v56 = vld [vmem:[%s2350_s0 + $0x80] sm:$0xff]  ;;  %v31_v58 = vld [vmem:[%s2350_s0 + $0x88] sm:$0xff]  ;;  %v1821_v12 = vld [vmem:[%s2349_s1 + $0x1d8] sm:$0xff]  }
  0x14   :  { %1527 = vmatpush3.bf16.msra.mxu0 %v1793_v18  ;;  %v34_v57 = vld [vmem:[%s2350_s0 + $0xa0] sm:$0xff]  ;;  %v35_v59 = vld [vmem:[%s2350_s0 + $0xa8] sm:$0xff]  ;;  %v1822_v13 = vld [vmem:[%s2349_s1 + $0x198] sm:$0xff]  }
  0x15   :  { %1591 = vmatpush3.bf16.msra.mxu1 %v1794_v19  ;;  %1528 = vmatprep.subr.bf16.mxu0 %v1795_v20  ;;  %v1407_v60 = vcombine.high %v30_v56, %v34_v57  ;;  %v1409_v61 = vcombine.high %v31_v58, %v35_v59  ;;  %v1406_v2 = vcombine.low %v30_v56, %v34_v57  ;;  %v38_v3 = vld [vmem:[%s2350_s0 + $0xc0] sm:$0xff]  ;;  %v39_v5 = vld [vmem:[%s2350_s0 + $0xc8] sm:$0xff]  ;;  %v1832_v39 = vld [vmem:[%s2349_s1 + $0x130] sm:$0xff]  }
  0x16   :  { %1592 = vmatprep.subr.bf16.mxu1 %v1796_v21  ;;  %v42_v4 = vld [vmem:[%s2350_s0 + $0xe0] sm:$0xff]  ;;  %v1408_v6 = vcombine.low %v31_v58, %v35_v59  ;;  %v43_v8 = vld [vmem:[%s2350_s0 + $0xe8] sm:$0xff]  ;;  %v1836_v48 = vld [vmem:[%s2349_s1 + $0x138] sm:$0xff]  }
  0x17   :  { %v1415_v7 = vcombine.high %v38_v3, %v42_v4  ;;  %v1417_v9 = vcombine.high %v39_v5, %v43_v8  ;;  %v46_v14 = vld [vmem:[%s2350_s0 + $0x100] sm:$0xff]  ;;  %v47_v16 = vld [vmem:[%s2350_s0 + $0x108] sm:$0xff]  ;;  %v1414_v19 = vcombine.low %v38_v3, %v42_v4  ;;  %v1416_v21 = vcombine.low %v39_v5, %v43_v8  ;;  %v25_v8 = vld [vmem:[%s2350_s0 + $0x58] sm:$0xff] }
  0x18   :  { %1529 = vmatpush3.bf16.msra.mxu0 %v1797_v22  ;;  %v50_v15 = vld [vmem:[%s2350_s0 + $0x120] sm:$0xff]  ;;  %v51_v17 = vld [vmem:[%s2350_s0 + $0x128] sm:$0xff] }
  0x19   :  { %1593 = vmatpush3.bf16.msra.mxu1 %v1798_v23  ;;  %1530 = vmatprep.subr.bf16.mxu0 %v1799_v24  ;;  %v1823_v18 = vld [vmem:[%s2349_s1 + $0x160] sm:$0xff]   ;;  %v1423_v22 = vcombine.high %v46_v14, %v50_v15  ;;  %v1425_v24 = vcombine.high %v47_v16, %v51_v17  ;;  %v1829_v32 = vld [vmem:[%s2349_s1 + $0x1e8] sm:$0xff]   ;;  %v1422_v34 = vcombine.low %v46_v14, %v50_v15  ;;  %v32_v14 = vld [vmem:[%s2350_s0 + $0x90] sm:$0xff] }
  0x1a   :  { %1594 = vmatprep.subr.bf16.mxu1 %v1800_v25  ;;  %v1824_v20 = vld [vmem:[%s2349_s1 + $0x120] sm:$0xff]   ;;  %v1830_v33 = vld [vmem:[%s2349_s1 + $0x1a8] sm:$0xff]   ;;  %v36_v15 = vld [vmem:[%s2350_s0 + $0xb0] sm:$0xff] }
  0x1b   :  { %v1825_v23 = vld [vmem:[%s2349_s1 + $0x1e0] sm:$0xff]   ;;  %v63_v44 = vld [vmem:[%s2350_s0 + $0x188] sm:$0xff] }
  0x1c   :  { %1531 = vmatpush3.bf16.msra.mxu0 %v1801_v26  ;;  %v1826_v25 = vld [vmem:[%s2349_s1 + $0x1a0] sm:$0xff]   ;;  %v67_v45 = vld [vmem:[%s2350_s0 + $0x1a8] sm:$0xff] }
  0x1d   :  { %1595 = vmatpush3.bf16.msra.mxu1 %v1802_v27  ;;  %1532 = vmatprep.subr.bf16.mxu0 %v1803_v28  ;;  %v54_v26 = vld [vmem:[%s2350_s0 + $0x140] sm:$0xff]  ;;  %v1827_v28 = vld [vmem:[%s2349_s1 + $0x168] sm:$0xff]   ;;  %v1440_v59 = vcombine.low %v63_v44, %v67_v45 }
  0x1e   :  { %1596 = vmatprep.subr.bf16.mxu1 %v1804_v29  ;;  %v58_v27 = vld [vmem:[%s2350_s0 + $0x160] sm:$0xff]  ;;  %v55_v29 = vld [vmem:[%s2350_s0 + $0x148] sm:$0xff] }
  0x1f   :  { %v1431_v36 = vcombine.high %v54_v26, %v58_v27  ;;  %v1430_v47 = vcombine.low %v54_v26, %v58_v27  ;;  %v71_v56 = vld [vmem:[%s2350_s0 + $0x1c8] sm:$0xff]  ;;  %v1410_v26 = vcombine.low %v32_v14, %v36_v15 }
  0x20   :  { %1533 = vmatpush3.bf16.msra.mxu0 %v1805_v30  ;;  %v59_v30 = vld [vmem:[%s2350_s0 + $0x168] sm:$0xff] }
  0x21   :  { %1597 = vmatpush3.bf16.msra.mxu1 %v1806_v31  ;;  %1646 = vmatprep.subr.bf16.mxu0 %v1807_v40  ;;  %v1828_v31 = vld [vmem:[%s2349_s1 + $0x128] sm:$0xff]   ;;  %v1433_v37 = vcombine.high %v55_v29, %v59_v30  ;;  %v1833_v40 = vld [vmem:[%s2349_s1 + $0x1f0] sm:$0xff]  }
  0x22   :  { %1710 = vmatprep.subr.bf16.mxu1 %v1809_v42  ;;  %v66_v42 = vld [vmem:[%s2350_s0 + $0x1a0] sm:$0xff]  ;;  %v75_v57 = vld [vmem:[%s2350_s0 + $0x1e8] sm:$0xff] }
  0x23   :  { %943 = vmatmul.mubr.bf16.vlgmr.msra.gmra.mrb[0].mxu0 %v1390_v35  ;;  %v1424_v35 = vcombine.low %v47_v16, %v51_v17  ;;  %v1448_v3 = vcombine.low %v71_v56, %v75_v57  ;;  %v33_v16 = vld [vmem:[%s2350_s0 + $0x98] sm:$0xff] }
  0x24   :  { %1040 = vmatmul.mubr.bf16.vlgmr.msra.gmra.mrb[0].mxu1 %v1392_v38  ;;  %1647 = vmatpush3.bf16.msra.mxu0 %v1808_v41  ;;  %v1831_v38 = vld [vmem:[%s2349_s1 + $0x170] sm:$0xff]   ;;  %v62_v41 = vld [vmem:[%s2350_s0 + $0x180] sm:$0xff]  ;;  %v37_v17 = vld [vmem:[%s2350_s0 + $0xb8] sm:$0xff] }
  0x25   :  { %1711 = vmatpush3.bf16.msra.mxu1 %v1810_v43  ;;  %950 = vmatprep.mubr.bf16.mxu0 %v1399_v46  ;;  %v1834_v43 = vld [vmem:[%s2349_s1 + $0x1b0] sm:$0xff]   ;;  %v1835_v46 = vld [vmem:[%s2349_s1 + $0x178] sm:$0xff]   ;;  %v1438_v58 = vcombine.low %v62_v41, %v66_v42  ;;  %v1412_v27 = vcombine.low %v33_v16, %v37_v17 }
  0x26   :  { %1047 = vmatprep.mubr.bf16.mxu1 %v1401_v49  ;;  %1648 = vmatprep.subr.bf16.mxu0 %v1811_v50  ;;  %v1432_v49 = vcombine.low %v55_v29, %v59_v30  ;;  %v1439_v50 = vcombine.high %v62_v41, %v66_v42  ;;  %v48_v30 = vld [vmem:[%s2350_s0 + $0x110] sm:$0xff]  ;;  %v61_v41 = vld [vmem:[%s2350_s0 + $0x178] sm:$0xff] }
  0x27   :  { %1712 = vmatprep.subr.bf16.mxu1 %v1813_v54  ;;  %v70_v54 = vld [vmem:[%s2350_s0 + $0x1c0] sm:$0xff] }
  0x28   :  { %1649 = vmatpush3.bf16.msra.mxu0 %v1812_v52  ;;  %v1441_v52 = vcombine.high %v63_v44, %v67_v45 }
  0x29   :  { %1713 = vmatpush3.bf16.msra.mxu1 %v1814_v55  ;;  %1650 = vmatprep.subr.bf16.mxu0 %v1815_v62  ;;  %v74_v55 = vld [vmem:[%s2350_s0 + $0x1e0] sm:$0xff]  ;;  %v16_v62 = vld [vmem:[%s2350_s0 + $0x10] sm:$0xff] }
  0x2a   :  { %1714 = vmatprep.subr.bf16.mxu1 %v1817_v0  ;;  %v17_v0 = vld [vmem:[%s2350_s0 + $0x18] sm:$0xff] }
  0x2b   :  { %951 = vmatmul.mubr.bf16.gmra.mrb[4].mxu0 %v1398_v51  ;;  %v1837_v51 = vld [vmem:[%s2349_s1 + $0x1f8] sm:$0xff]  }
  0x2c   :  { %1048 = vmatmul.mubr.bf16.gmra.mrb[4].mxu1 %v1400_v53  ;;  %958 = vmatprep.mubr.bf16.mxu0 %v1407_v60  ;;  %v1838_v53 = vld [vmem:[%s2349_s1 + $0x1b8] sm:$0xff]   ;;  %v1447_v60 = vcombine.high %v70_v54, %v74_v55 }
  0x2d   :  { %1055 = vmatprep.mubr.bf16.mxu1 %v1409_v61  ;;  %1651 = vmatpush3.bf16.msra.mxu0 %v1816_v63  ;;  %v1449_v61 = vcombine.high %v71_v56, %v75_v57  ;;  %v20_v63 = vld [vmem:[%s2350_s0 + $0x30] sm:$0xff]  ;;  %v73_v56 = vld [vmem:[%s2350_s0 + $0x1d8] sm:$0xff] }
  0x2e   :  { %1715 = vmatpush3.bf16.msra.mxu1 %v1818_v1  ;;  %1652 = vmatprep.subr.bf16.mxu0 %v1819_v10  ;;  %v21_v1 = vld [vmem:[%s2350_s0 + $0x38] sm:$0xff]  ;;  %v1395_v4 = vcombine.high %v16_v62, %v20_v63  ;;  %v1394_v10 = vcombine.low %v16_v62, %v20_v63 }
  0x2f   :  { %1716 = vmatprep.subr.bf16.mxu1 %v1821_v12  ;;  %v1397_v5 = vcombine.high %v17_v0, %v21_v1  ;;  %v77_v57 = vld [vmem:[%s2350_s0 + $0x1f8] sm:$0xff] }
  0x30   :  { %v1452_v63 = vcombine.low %v73_v56, %v77_v57 }
  0x31   :  { %1653 = vmatpush3.bf16.msra.mxu0 %v1820_v11  ;;  %v1396_v11 = vcombine.low %v17_v0, %v21_v1 }
  0x32   :  { %1717 = vmatpush3.bf16.msra.mxu1 %v1822_v13  ;;  %1654 = vmatprep.subr.bf16.mxu0 %v1823_v18 }
  0x33   :  { %959 = vmatmul.mubr.bf16.gmra.mrb[8].mxu0 %v1406_v2  ;;  %1718 = vmatprep.subr.bf16.mxu1 %v1825_v23  ;;  %v1446_v2 = vcombine.low %v70_v54, %v74_v55  ;;  %v44_v23 = vld [vmem:[%s2350_s0 + $0xf0] sm:$0xff] }
  0x34   :  { %1056 = vmatmul.mubr.bf16.gmra.mrb[8].mxu1 %v1408_v6  ;;  %966 = vmatprep.mubr.bf16.mxu0 %v1415_v7  ;;  %v24_v6 = vld [vmem:[%s2350_s0 + $0x50] sm:$0xff] }
  0x35   :  { %1063 = vmatprep.mubr.bf16.mxu1 %v1417_v9  ;;  %1655 = vmatpush3.bf16.msra.mxu0 %v1824_v20  ;;  %v28_v7 = vld [vmem:[%s2350_s0 + $0x70] sm:$0xff]  ;;  %v29_v9 = vld [vmem:[%s2350_s0 + $0x78] sm:$0xff]  ;;  %v1411_v20 = vcombine.high %v32_v14, %v36_v15 }
  0x36   :  { %1719 = vmatpush3.bf16.msra.mxu1 %v1826_v25  ;;  %1656 = vmatprep.subr.bf16.mxu0 %v1827_v28  ;;  %v1403_v12 = vcombine.high %v24_v6, %v28_v7  ;;  %v1405_v13 = vcombine.high %v25_v8, %v29_v9  ;;  %v1402_v18 = vcombine.low %v24_v6, %v28_v7  ;;  %v45_v25 = vld [vmem:[%s2350_s0 + $0xf8] sm:$0xff]  ;;  %v72_v54 = vld [vmem:[%s2350_s0 + $0x1d0] sm:$0xff] }
  0x37   :  { %1720 = vmatprep.subr.bf16.mxu1 %v1829_v32  ;;  %v49_v32 = vld [vmem:[%s2350_s0 + $0x118] sm:$0xff]  ;;  %v76_v55 = vld [vmem:[%s2350_s0 + $0x1f0] sm:$0xff] }
  0x38   :  { %v1450_v62 = vcombine.low %v72_v54, %v76_v55 }
  0x39   :  { %1657 = vmatpush3.bf16.msra.mxu0 %v1828_v31  ;;  %v52_v31 = vld [vmem:[%s2350_s0 + $0x130] sm:$0xff] }
  0x3a   :  { %1721 = vmatpush3.bf16.msra.mxu1 %v1830_v33  ;;  %1658 = vmatprep.subr.bf16.mxu0 %v1831_v38  ;;  %v53_v33 = vld [vmem:[%s2350_s0 + $0x138] sm:$0xff]  ;;  %v56_v38 = vld [vmem:[%s2350_s0 + $0x150] sm:$0xff]  ;;  %v1426_v42 = vcombine.low %v48_v30, %v52_v31 }
  0x3b   :  { %967 = vmatmul.mubr.bf16.gmra.mrb[12].mxu0 %v1414_v19  ;;  %1722 = vmatprep.subr.bf16.mxu1 %v1833_v40  ;;  %v1404_v19 = vcombine.low %v25_v8, %v29_v9  ;;  %v57_v40 = vld [vmem:[%s2350_s0 + $0x158] sm:$0xff]  ;;  %v1839_v9 = vmov 0.0  }
  0x3c   :  { %1064 = vmatmul.mubr.bf16.gmra.mrb[12].mxu1 %v1416_v21  ;;  %974 = vmatprep.mubr.bf16.mxu0 %v1423_v22  ;;  %v1413_v21 = vcombine.high %v33_v16, %v37_v17  ;;  %v40_v22 = vld [vmem:[%s2350_s0 + $0xd0] sm:$0xff]  ;;  %v1437_v45 = vcombine.high %v57_v40, %v61_v41  ;;  %1318 = vst [vmem:[%s2351_s3] sm:$0x3] %v1839_v9 }
  0x3d   :  { %1071 = vmatprep.mubr.bf16.mxu1 %v1425_v24  ;;  %1659 = vmatpush3.bf16.msra.mxu0 %v1832_v39  ;;  %v41_v24 = vld [vmem:[%s2350_s0 + $0xd8] sm:$0xff]  ;;  %v1419_v28 = vcombine.high %v40_v22, %v44_v23  ;;  %v60_v39 = vld [vmem:[%s2350_s0 + $0x170] sm:$0xff] }
  0x3e   :  { %1723 = vmatpush3.bf16.msra.mxu1 %v1834_v43  ;;  %1660 = vmatprep.subr.bf16.mxu0 %v1835_v46  ;;  %v1421_v29 = vcombine.high %v41_v24, %v45_v25  ;;  %v1428_v43 = vcombine.low %v49_v32, %v53_v33  ;;  %v1435_v44 = vcombine.high %v56_v38, %v60_v39  ;;  %v64_v46 = vld [vmem:[%s2350_s0 + $0x190] sm:$0xff] }
  0x3f   :  { %1724 = vmatprep.subr.bf16.mxu1 %v1837_v51  ;;  %v1436_v51 = vcombine.low %v57_v40, %v61_v41 }
  0x41   :  { %1661 = vmatpush3.bf16.msra.mxu0 %v1836_v48  ;;  %v65_v48 = vld [vmem:[%s2350_s0 + $0x198] sm:$0xff] }
  0x42   :  { %1725 = vmatpush3.bf16.msra.mxu1 %v1838_v53 }
  0x43   :  { %975 = vmatmul.mubr.bf16.gmra.mrb[16].mxu0 %v1422_v34  ;;  %v1418_v34 = vcombine.low %v40_v22, %v44_v23 }
  0x44   :  { %1072 = vmatmul.mubr.bf16.gmra.mrb[16].mxu1 %v1424_v35  ;;  %982 = vmatprep.mubr.bf16.mxu0 %v1431_v36  ;;  %v1420_v35 = vcombine.low %v41_v24, %v45_v25  ;;  %v1427_v36 = vcombine.high %v48_v30, %v52_v31 }
  0x45   :  { %1079 = vmatprep.mubr.bf16.mxu1 %v1433_v37  ;;  %v1429_v37 = vcombine.high %v49_v32, %v53_v33 }
  0x4b   :  { %983 = vmatmul.mubr.bf16.gmra.mrb[20].mxu0 %v1430_v47  ;;  %v68_v47 = vld [vmem:[%s2350_s0 + $0x1b0] sm:$0xff] }
  0x4c   :  { %1080 = vmatmul.mubr.bf16.gmra.mrb[20].mxu1 %v1432_v49  ;;  %990 = vmatprep.mubr.bf16.mxu0 %v1439_v50  ;;  %v69_v49 = vld [vmem:[%s2350_s0 + $0x1b8] sm:$0xff]  ;;  %v1434_v50 = vcombine.low %v56_v38, %v60_v39 }
  0x4d   :  { %1087 = vmatprep.mubr.bf16.mxu1 %v1441_v52  ;;  %v1443_v52 = vcombine.high %v64_v46, %v68_v47  ;;  %v1445_v53 = vcombine.high %v65_v48, %v69_v49 }
  0x53   :  { %991 = vmatmul.mubr.bf16.gmra.mrb[24].mxu0 %v1438_v58  ;;  %v1442_v58 = vcombine.low %v64_v46, %v68_v47 }
  0x54   :  { %1088 = vmatmul.mubr.bf16.gmra.mrb[24].mxu1 %v1440_v59  ;;  %998 = vmatprep.mubr.bf16.mxu0 %v1447_v60  ;;  %v1444_v59 = vcombine.low %v65_v48, %v69_v49  ;;  %v1451_v60 = vcombine.high %v72_v54, %v76_v55 }
  0x55   :  { %1095 = vmatprep.mubr.bf16.mxu1 %v1449_v61  ;;  %v1453_v61 = vcombine.high %v73_v56, %v77_v57 }
  0x5b   :  { %999 = vmatmul.mubr.bf16.gmra.mrb[28].mxu0 %v1446_v2 }
  0x5c   :  { %1096 = vmatmul.mubr.bf16.gmra.mrb[28].mxu1 %v1448_v3  ;;  %1136 = vmatprep.mubr.bf16.mxu0 %v1395_v4 }
  0x5d   :  { %1233 = vmatprep.mubr.bf16.mxu1 %v1397_v5 }
  0x63   :  { %1137 = vmatmul.mubr.bf16.vlgmr.msra.gmra.mrb[32].mxu0 %v1394_v10 }
  0x64   :  { %1234 = vmatmul.mubr.bf16.vlgmr.msra.gmra.mrb[32].mxu1 %v1396_v11  ;;  %1144 = vmatprep.mubr.bf16.mxu0 %v1403_v12 }
  0x65   :  { %1241 = vmatprep.mubr.bf16.mxu1 %v1405_v13 }
  0x6b   :  { %1145 = vmatmul.mubr.bf16.gmra.mrb[36].mxu0 %v1402_v18 }
  0x6c   :  { %1242 = vmatmul.mubr.bf16.gmra.mrb[36].mxu1 %v1404_v19  ;;  %1152 = vmatprep.mubr.bf16.mxu0 %v1411_v20 }
  0x6d   :  { %1249 = vmatprep.mubr.bf16.mxu1 %v1413_v21 }
  0x73   :  { %1153 = vmatmul.mubr.bf16.gmra.mrb[40].mxu0 %v1410_v26 }
  0x74   :  { %1250 = vmatmul.mubr.bf16.gmra.mrb[40].mxu1 %v1412_v27  ;;  %1160 = vmatprep.mubr.bf16.mxu0 %v1419_v28 }
  0x75   :  { %1257 = vmatprep.mubr.bf16.mxu1 %v1421_v29 }
  0x7b   :  { %1161 = vmatmul.mubr.bf16.gmra.mrb[44].mxu0 %v1418_v34 }
  0x7c   :  { %1258 = vmatmul.mubr.bf16.gmra.mrb[44].mxu1 %v1420_v35  ;;  %1168 = vmatprep.mubr.bf16.mxu0 %v1427_v36 }
  0x7d   :  { %1265 = vmatprep.mubr.bf16.mxu1 %v1429_v37 }
  0x83   :  { %1169 = vmatmul.mubr.bf16.gmra.mrb[48].mxu0 %v1426_v42 }
  0x84   :  { %1266 = vmatmul.mubr.bf16.gmra.mrb[48].mxu1 %v1428_v43  ;;  %1176 = vmatprep.mubr.bf16.mxu0 %v1435_v44 }
  0x85   :  { %1273 = vmatprep.mubr.bf16.mxu1 %v1437_v45 }
  0x8b   :  { %1177 = vmatmul.mubr.bf16.gmra.mrb[52].mxu0 %v1434_v50 }
  0x8c   :  { %1274 = vmatmul.mubr.bf16.gmra.mrb[52].mxu1 %v1436_v51  ;;  %1184 = vmatprep.mubr.bf16.mxu0 %v1443_v52 }
  0x8d   :  { %1281 = vmatprep.mubr.bf16.mxu1 %v1445_v53 }
  0x93   :  { %1185 = vmatmul.mubr.bf16.gmra.mrb[56].mxu0 %v1442_v58 }
  0x94   :  { %1282 = vmatmul.mubr.bf16.gmra.mrb[56].mxu1 %v1444_v59  ;;  %1192 = vmatprep.mubr.bf16.mxu0 %v1451_v60 }
  0x95   :  { %1289 = vmatprep.mubr.bf16.mxu1 %v1453_v61 }
  0x9b   :  { %1193 = vmatmul.mubr.bf16.gmra.mrb[60].mxu0 %v1450_v62 }
  0x9c   :  { %1290 = vmatmul.mubr.bf16.gmra.mrb[60].mxu1 %v1452_v63 }
  0xf6   :  { %v1534_v0 = vpop.f32.mrb[0].mxu0 }
  0xf7   :  { %v1598_v1 = vpop.f32.mrb[0].mxu1  ;;  %v1535_v2 = vpop.f32.mrb[1].mxu0 }
  0xf8   :  { %v1536_v3 = vadd.f32 %v1535_v2, %v1534_v0  ;;  %v1599_v4 = vpop.f32.mrb[1].mxu1  ;;  %v1537_v5 = vpop.f32.mrb[2].mxu0 }
  0xf9   :  { %v1600_v6 = vadd.f32 %v1599_v4, %v1598_v1  ;;  %v1601_v7 = vpop.f32.mrb[2].mxu1  ;;  %v1538_v8 = vpop.f32.mrb[3].mxu0 }
  0xfa   :  { %v1539_v10 = vadd.f32 %v1538_v8, %v1537_v5  ;;  %v1602_v11 = vpop.f32.mrb[3].mxu1 }
  0xfb   :  { %v2247_v12 = vadd.f32 %v1600_v6, %v1536_v3  ;;  %v1603_v13 = vadd.f32 %v1602_v11, %v1601_v7 }
  0xfd   :  { %v2249_v14 = vadd.f32 %v1603_v13, %v1539_v10 }
  0xfe   :  { %v1540_v15 = vpop.f32.mrb[4].mxu0 }
  0xff   :  { %v1604_v16 = vpop.f32.mrb[4].mxu1  ;;  %v1541_v17 = vpop.f32.mrb[5].mxu0 }
 0x100   :  { %v1542_v18 = vadd.f32 %v1541_v17, %v1540_v15  ;;  %v1605_v19 = vpop.f32.mrb[5].mxu1  ;;  %v1543_v20 = vpop.f32.mrb[6].mxu0 }
 0x101   :  { %v1606_v21 = vadd.f32 %v1605_v19, %v1604_v16  ;;  %v1607_v22 = vpop.f32.mrb[6].mxu1  ;;  %v1544_v23 = vpop.f32.mrb[7].mxu0 }
 0x102   :  { %v1545_v24 = vadd.f32 %v1544_v23, %v1543_v20  ;;  %v1608_v25 = vpop.f32.mrb[7].mxu1 }
 0x103   :  { %v2251_v26 = vadd.f32 %v1606_v21, %v1542_v18  ;;  %v1609_v27 = vadd.f32 %v1608_v25, %v1607_v22 }
 0x105   :  { %v2253_v28 = vadd.f32 %v1609_v27, %v1545_v24 }
 0x106   :  { %v1546_v29 = vpop.f32.mrb[8].mxu0 }
 0x107   :  { %v1610_v30 = vpop.f32.mrb[8].mxu1  ;;  %v1547_v31 = vpop.f32.mrb[9].mxu0 }
 0x108   :  { %v1548_v32 = vadd.f32 %v1547_v31, %v1546_v29  ;;  %v1611_v33 = vpop.f32.mrb[9].mxu1  ;;  %v1549_v34 = vpop.f32.mrb[10].mxu0 }
 0x109   :  { %v1612_v35 = vadd.f32 %v1611_v33, %v1610_v30  ;;  %v1613_v36 = vpop.f32.mrb[10].mxu1  ;;  %v1550_v37 = vpop.f32.mrb[11].mxu0 }
 0x10a   :  { %v1551_v38 = vadd.f32 %v1550_v37, %v1549_v34  ;;  %v1614_v39 = vpop.f32.mrb[11].mxu1 }
 0x10b   :  { %v2255_v40 = vadd.f32 %v1612_v35, %v1548_v32  ;;  %v1615_v41 = vadd.f32 %v1614_v39, %v1613_v36 }
 0x10d   :  { %v2257_v42 = vadd.f32 %v1615_v41, %v1551_v38 }
 0x10e   :  { %v1552_v43 = vpop.f32.mrb[12].mxu0 }
 0x10f   :  { %v1616_v44 = vpop.f32.mrb[12].mxu1  ;;  %v1553_v45 = vpop.f32.mrb[13].mxu0 }
 0x110   :  { %v1554_v46 = vadd.f32 %v1553_v45, %v1552_v43  ;;  %v1617_v47 = vpop.f32.mrb[13].mxu1  ;;  %v1555_v48 = vpop.f32.mrb[14].mxu0 }
 0x111   :  { %v1618_v49 = vadd.f32 %v1617_v47, %v1616_v44  ;;  %v1619_v50 = vpop.f32.mrb[14].mxu1  ;;  %v1556_v51 = vpop.f32.mrb[15].mxu0 }
 0x112   :  { %v1557_v52 = vadd.f32 %v1556_v51, %v1555_v48  ;;  %v1620_v53 = vpop.f32.mrb[15].mxu1 }
 0x113   :  { %v2259_v54 = vadd.f32 %v1618_v49, %v1554_v46  ;;  %v1621_v55 = vadd.f32 %v1620_v53, %v1619_v50 }
 0x115   :  { %v2261_v56 = vadd.f32 %v1621_v55, %v1557_v52 }
 0x116   :  { %v1558_v57 = vpop.f32.mrb[16].mxu0 }
 0x117   :  { %v1622_v58 = vpop.f32.mrb[16].mxu1  ;;  %v1559_v59 = vpop.f32.mrb[17].mxu0 }
 0x118   :  { %v1560_v60 = vadd.f32 %v1559_v59, %v1558_v57  ;;  %v1623_v61 = vpop.f32.mrb[17].mxu1  ;;  %v1561_v62 = vpop.f32.mrb[18].mxu0 }
 0x119   :  { %v1624_v63 = vadd.f32 %v1623_v61, %v1622_v58  ;;  %v1625_v0 = vpop.f32.mrb[18].mxu1  ;;  %v1562_v1 = vpop.f32.mrb[19].mxu0 }
 0x11a   :  { %v1563_v2 = vadd.f32 %v1562_v1, %v1561_v62  ;;  %v1626_v3 = vpop.f32.mrb[19].mxu1 }
 0x11b   :  { %v2263_v4 = vadd.f32 %v1624_v63, %v1560_v60  ;;  %v1627_v5 = vadd.f32 %v1626_v3, %v1625_v0 }
 0x11d   :  { %v2265_v6 = vadd.f32 %v1627_v5, %v1563_v2 }
 0x11e   :  { %v1564_v7 = vpop.f32.mrb[20].mxu0 }
 0x11f   :  { %v1628_v8 = vpop.f32.mrb[20].mxu1  ;;  %v1565_v9 = vpop.f32.mrb[21].mxu0 }
 0x120   :  { %v1566_v10 = vadd.f32 %v1565_v9, %v1564_v7  ;;  %v1629_v11 = vpop.f32.mrb[21].mxu1  ;;  %v1567_v13 = vpop.f32.mrb[22].mxu0 }
 0x121   :  { %v1630_v15 = vadd.f32 %v1629_v11, %v1628_v8  ;;  %v1631_v16 = vpop.f32.mrb[22].mxu1  ;;  %v1568_v17 = vpop.f32.mrb[23].mxu0 }
 0x122   :  { %v1569_v18 = vadd.f32 %v1568_v17, %v1567_v13  ;;  %v1632_v19 = vpop.f32.mrb[23].mxu1 }
 0x123   :  { %v2267_v20 = vadd.f32 %v1630_v15, %v1566_v10  ;;  %v1633_v21 = vadd.f32 %v1632_v19, %v1631_v16 }
 0x125   :  { %v2269_v22 = vadd.f32 %v1633_v21, %v1569_v18 }
 0x126   :  { %v1570_v23 = vpop.f32.mrb[24].mxu0 }
 0x127   :  { %v1634_v24 = vpop.f32.mrb[24].mxu1  ;;  %v1571_v25 = vpop.f32.mrb[25].mxu0 }
 0x128   :  { %v1572_v27 = vadd.f32 %v1571_v25, %v1570_v23  ;;  %v1635_v29 = vpop.f32.mrb[25].mxu1  ;;  %v1573_v30 = vpop.f32.mrb[26].mxu0 }
 0x129   :  { %v1636_v31 = vadd.f32 %v1635_v29, %v1634_v24  ;;  %v1637_v32 = vpop.f32.mrb[26].mxu1  ;;  %v1574_v33 = vpop.f32.mrb[27].mxu0 }
 0x12a   :  { %v1575_v34 = vadd.f32 %v1574_v33, %v1573_v30  ;;  %v1638_v35 = vpop.f32.mrb[27].mxu1 }
 0x12b   :  { %v2271_v36 = vadd.f32 %v1636_v31, %v1572_v27  ;;  %v1639_v37 = vadd.f32 %v1638_v35, %v1637_v32 }
 0x12d   :  { %v2273_v38 = vadd.f32 %v1639_v37, %v1575_v34 }
 0x12e   :  { %v1576_v39 = vpop.f32.mrb[28].mxu0 }
 0x12f   :  { %v1640_v41 = vpop.f32.mrb[28].mxu1  ;;  %v1577_v43 = vpop.f32.mrb[29].mxu0 }
 0x130   :  { %v1578_v44 = vadd.f32 %v1577_v43, %v1576_v39  ;;  %v1641_v45 = vpop.f32.mrb[29].mxu1  ;;  %v1579_v46 = vpop.f32.mrb[30].mxu0 }
 0x131   :  { %v1642_v47 = vadd.f32 %v1641_v45, %v1640_v41  ;;  %v1643_v48 = vpop.f32.mrb[30].mxu1  ;;  %v1580_v49 = vpop.f32.mrb[31].mxu0 }
 0x132   :  { %v1581_v50 = vadd.f32 %v1580_v49, %v1579_v46  ;;  %v1644_v51 = vpop.f32.mrb[31].mxu1 }
 0x133   :  { %v2275_v52 = vadd.f32 %v1642_v47, %v1578_v44  ;;  %v1645_v53 = vadd.f32 %v1644_v51, %v1643_v48 }
 0x135   :  { %v2277_v55 = vadd.f32 %v1645_v53, %v1581_v50 }
 0x136   :  { %v1662_v57 = vpop.f32.mrb[32].mxu0 }
 0x137   :  { %v1726_v58 = vpop.f32.mrb[32].mxu1  ;;  %v1663_v59 = vpop.f32.mrb[33].mxu0 }
 0x138   :  { %v1664_v60 = vadd.f32 %v1663_v59, %v1662_v57  ;;  %v1727_v61 = vpop.f32.mrb[33].mxu1  ;;  %v1665_v62 = vpop.f32.mrb[34].mxu0 }
 0x139   :  { %v1728_v63 = vadd.f32 %v1727_v61, %v1726_v58  ;;  %v1729_v0 = vpop.f32.mrb[34].mxu1  ;;  %v1666_v1 = vpop.f32.mrb[35].mxu0 }
 0x13a   :  { %v1139_v2 = vadd.f32 %v1664_v60, %v2247_v12  ;;  %v1667_v3 = vadd.f32 %v1666_v1, %v1665_v62  ;;  %v1730_v5 = vpop.f32.mrb[35].mxu1 }
 0x13b   :  { %v1731_v7 = vadd.f32 %v1730_v5, %v1729_v0 }
 0x13c   :  { %v1236_v8 = vadd.f32 %v1728_v63, %v1139_v2  ;;  %v1142_v9 = vadd.f32 %v1667_v3, %v2249_v14 }
 0x13e   :  { %1298 = vst [vmem:[%s2352_s2] sm:$0xff] %v1236_v8  ;;  %v1239_v10 = vadd.f32 %v1731_v7, %v1142_v9  ;;  %v1668_v11 = vpop.f32.mrb[36].mxu0  ;;  %v1340_v16 = vmul.f32 %v1236_v8, %v1236_v8 }
 0x13f   :  { %v1732_v13 = vpop.f32.mrb[36].mxu1  ;;  %v1669_v15 = vpop.f32.mrb[37].mxu0 }
 0x140   :  { %1299 = vst [vmem:[%s2352_s2 + $0x8] sm:$0xff] %v1239_v10  ;;  %v1319_v12 = vadd.f32 %v1239_v10, %v1236_v8  ;;  %v1341_v17 = vmul.f32 %v1239_v10, %v1239_v10  ;;  %v1670_v18 = vadd.f32 %v1669_v15, %v1668_v11  ;;  %v1733_v19 = vpop.f32.mrb[37].mxu1  ;;  %v1671_v21 = vpop.f32.mrb[38].mxu0 }
 0x141   :  { %v1734_v23 = vadd.f32 %v1733_v19, %v1732_v13  ;;  %v1735_v14 = vpop.f32.mrb[38].mxu1  ;;  %v1672_v24 = vpop.f32.mrb[39].mxu0 }
 0x142   :  { %v1356_v25 = vadd.f32 %v1341_v17, %v1340_v16  ;;  %v1147_v27 = vadd.f32 %v1670_v18, %v2251_v26  ;;  %v1673_v29 = vadd.f32 %v1672_v24, %v1671_v21  ;;  %v1736_v30 = vpop.f32.mrb[39].mxu1 }
 0x143   :  { %v1737_v31 = vadd.f32 %v1736_v30, %v1735_v14 }
 0x144   :  { %v1244_v32 = vadd.f32 %v1734_v23, %v1147_v27  ;;  %v1150_v33 = vadd.f32 %v1673_v29, %v2253_v28 }
 0x146   :  { %1300 = vst [vmem:[%s2352_s2 + $0x10] sm:$0xff] %v1244_v32  ;;  %v1320_v34 = vadd.f32 %v1319_v12, %v1244_v32  ;;  %v1342_v35 = vmul.f32 %v1244_v32, %v1244_v32  ;;  %v1247_v37 = vadd.f32 %v1737_v31, %v1150_v33  ;;  %v1674_v39 = vpop.f32.mrb[40].mxu0 }
 0x147   :  { %v1738_v41 = vpop.f32.mrb[40].mxu1  ;;  %v1675_v43 = vpop.f32.mrb[41].mxu0 }
 0x148   :  { %v1357_v44 = vadd.f32 %v1356_v25, %v1342_v35  ;;  %1301 = vst [vmem:[%s2352_s2 + $0x18] sm:$0xff] %v1247_v37  ;;  %v1321_v26 = vadd.f32 %v1320_v34, %v1247_v37  ;;  %v1343_v45 = vmul.f32 %v1247_v37, %v1247_v37  ;;  %v1676_v46 = vadd.f32 %v1675_v43, %v1674_v39  ;;  %v1739_v47 = vpop.f32.mrb[41].mxu1  ;;  %v1677_v28 = vpop.f32.mrb[42].mxu0 }
 0x149   :  { %v1740_v48 = vadd.f32 %v1739_v47, %v1738_v41  ;;  %v1741_v49 = vpop.f32.mrb[42].mxu1  ;;  %v1678_v50 = vpop.f32.mrb[43].mxu0 }
 0x14a   :  { %v1358_v51 = vadd.f32 %v1357_v44, %v1343_v45  ;;  %v1155_v53 = vadd.f32 %v1676_v46, %v2255_v40  ;;  %v1679_v57 = vadd.f32 %v1678_v50, %v1677_v28  ;;  %v1742_v58 = vpop.f32.mrb[43].mxu1 }
 0x14b   :  { %v1743_v59 = vadd.f32 %v1742_v58, %v1741_v49 }
 0x14c   :  { %v1252_v60 = vadd.f32 %v1740_v48, %v1155_v53  ;;  %v1158_v61 = vadd.f32 %v1679_v57, %v2257_v42 }
 0x14e   :  { %1302 = vst [vmem:[%s2352_s2 + $0x20] sm:$0xff] %v1252_v60  ;;  %v1322_v62 = vadd.f32 %v1321_v26, %v1252_v60  ;;  %v1344_v63 = vmul.f32 %v1252_v60, %v1252_v60  ;;  %v1255_v0 = vadd.f32 %v1743_v59, %v1158_v61  ;;  %v1680_v1 = vpop.f32.mrb[44].mxu0 }
 0x14f   :  { %v1744_v2 = vpop.f32.mrb[44].mxu1  ;;  %v1681_v3 = vpop.f32.mrb[45].mxu0 }
 0x150   :  { %v1359_v5 = vadd.f32 %v1358_v51, %v1344_v63  ;;  %1303 = vst [vmem:[%s2352_s2 + $0x28] sm:$0xff] %v1255_v0  ;;  %v1323_v40 = vadd.f32 %v1322_v62, %v1255_v0  ;;  %v1345_v7 = vmul.f32 %v1255_v0, %v1255_v0  ;;  %v1682_v8 = vadd.f32 %v1681_v3, %v1680_v1  ;;  %v1745_v9 = vpop.f32.mrb[45].mxu1  ;;  %v1683_v42 = vpop.f32.mrb[46].mxu0 }
 0x151   :  { %v1746_v10 = vadd.f32 %v1745_v9, %v1744_v2  ;;  %v1747_v11 = vpop.f32.mrb[46].mxu1  ;;  %v1684_v13 = vpop.f32.mrb[47].mxu0 }
 0x152   :  { %v1360_v15 = vadd.f32 %v1359_v5, %v1345_v7  ;;  %v1163_v16 = vadd.f32 %v1682_v8, %v2259_v54  ;;  %v1685_v12 = vadd.f32 %v1684_v13, %v1683_v42  ;;  %v1748_v17 = vpop.f32.mrb[47].mxu1 }
 0x153   :  { %v1749_v18 = vadd.f32 %v1748_v17, %v1747_v11 }
 0x154   :  { %v1260_v19 = vadd.f32 %v1746_v10, %v1163_v16  ;;  %v1166_v21 = vadd.f32 %v1685_v12, %v2261_v56 }
 0x156   :  { %1304 = vst [vmem:[%s2352_s2 + $0x30] sm:$0xff] %v1260_v19  ;;  %v1324_v23 = vadd.f32 %v1323_v40, %v1260_v19  ;;  %v1346_v14 = vmul.f32 %v1260_v19, %v1260_v19  ;;  %v1263_v24 = vadd.f32 %v1749_v18, %v1166_v21  ;;  %v1686_v25 = vpop.f32.mrb[48].mxu0 }
 0x157   :  { %v1750_v27 = vpop.f32.mrb[48].mxu1  ;;  %v1687_v29 = vpop.f32.mrb[49].mxu0 }
 0x158   :  { %v1361_v30 = vadd.f32 %v1360_v15, %v1346_v14  ;;  %1305 = vst [vmem:[%s2352_s2 + $0x38] sm:$0xff] %v1263_v24  ;;  %v1325_v54 = vadd.f32 %v1324_v23, %v1263_v24  ;;  %v1347_v31 = vmul.f32 %v1263_v24, %v1263_v24  ;;  %v1688_v32 = vadd.f32 %v1687_v29, %v1686_v25  ;;  %v1751_v33 = vpop.f32.mrb[49].mxu1  ;;  %v1689_v56 = vpop.f32.mrb[50].mxu0 }
 0x159   :  { %v1752_v34 = vadd.f32 %v1751_v33, %v1750_v27  ;;  %v1753_v35 = vpop.f32.mrb[50].mxu1  ;;  %v1690_v37 = vpop.f32.mrb[51].mxu0 }
 0x15a   :  { %v1362_v39 = vadd.f32 %v1361_v30, %v1347_v31  ;;  %v1171_v41 = vadd.f32 %v1688_v32, %v2263_v4  ;;  %v1691_v43 = vadd.f32 %v1690_v37, %v1689_v56  ;;  %v1754_v44 = vpop.f32.mrb[51].mxu1 }
 0x15b   :  { %v1755_v26 = vadd.f32 %v1754_v44, %v1753_v35 }
 0x15c   :  { %v1268_v45 = vadd.f32 %v1752_v34, %v1171_v41  ;;  %v1174_v46 = vadd.f32 %v1691_v43, %v2265_v6 }
 0x15e   :  { %1306 = vst [vmem:[%s2352_s2 + $0x40] sm:$0xff] %v1268_v45  ;;  %v1326_v47 = vadd.f32 %v1325_v54, %v1268_v45  ;;  %v1348_v28 = vmul.f32 %v1268_v45, %v1268_v45  ;;  %v1271_v48 = vadd.f32 %v1755_v26, %v1174_v46  ;;  %v1692_v49 = vpop.f32.mrb[52].mxu0 }
 0x15f   :  { %v1756_v50 = vpop.f32.mrb[52].mxu1  ;;  %v1693_v51 = vpop.f32.mrb[53].mxu0 }
 0x160   :  { %v1363_v53 = vadd.f32 %v1362_v39, %v1348_v28  ;;  %1307 = vst [vmem:[%s2352_s2 + $0x48] sm:$0xff] %v1271_v48  ;;  %v1327_v4 = vadd.f32 %v1326_v47, %v1271_v48  ;;  %v1349_v57 = vmul.f32 %v1271_v48, %v1271_v48  ;;  %v1694_v58 = vadd.f32 %v1693_v51, %v1692_v49  ;;  %v1757_v59 = vpop.f32.mrb[53].mxu1  ;;  %v1695_v6 = vpop.f32.mrb[54].mxu0 }
 0x161   :  { %v1758_v60 = vadd.f32 %v1757_v59, %v1756_v50  ;;  %v1759_v61 = vpop.f32.mrb[54].mxu1  ;;  %v1696_v62 = vpop.f32.mrb[55].mxu0 }
 0x162   :  { %v1364_v63 = vadd.f32 %v1363_v53, %v1349_v57  ;;  %v1179_v0 = vadd.f32 %v1694_v58, %v2267_v20  ;;  %v1697_v1 = vadd.f32 %v1696_v62, %v1695_v6  ;;  %v1760_v2 = vpop.f32.mrb[55].mxu1 }
 0x163   :  { %v1761_v3 = vadd.f32 %v1760_v2, %v1759_v61 }
 0x164   :  { %v1276_v5 = vadd.f32 %v1758_v60, %v1179_v0  ;;  %v1182_v40 = vadd.f32 %v1697_v1, %v2269_v22 }
 0x166   :  { %1308 = vst [vmem:[%s2352_s2 + $0x50] sm:$0xff] %v1276_v5  ;;  %v1328_v7 = vadd.f32 %v1327_v4, %v1276_v5  ;;  %v1350_v8 = vmul.f32 %v1276_v5, %v1276_v5  ;;  %v1279_v9 = vadd.f32 %v1761_v3, %v1182_v40  ;;  %v1698_v42 = vpop.f32.mrb[56].mxu0  ;;  %v1379_v40 = vld [vmem:[%s2351_s3] sm:$0x3] }
 0x167   :  { %v1762_v10 = vpop.f32.mrb[56].mxu1  ;;  %v1699_v11 = vpop.f32.mrb[57].mxu0 }
 0x168   :  { %v1365_v13 = vadd.f32 %v1364_v63, %v1350_v8  ;;  %1309 = vst [vmem:[%s2352_s2 + $0x58] sm:$0xff] %v1279_v9  ;;  %v1329_v20 = vadd.f32 %v1328_v7, %v1279_v9  ;;  %v1351_v15 = vmul.f32 %v1279_v9, %v1279_v9  ;;  %v1700_v16 = vadd.f32 %v1699_v11, %v1698_v42  ;;  %v1763_v12 = vpop.f32.mrb[57].mxu1  ;;  %v1701_v22 = vpop.f32.mrb[58].mxu0 }
 0x169   :  { %v1764_v17 = vadd.f32 %v1763_v12, %v1762_v10  ;;  %v1765_v18 = vpop.f32.mrb[58].mxu1  ;;  %v1702_v19 = vpop.f32.mrb[59].mxu0 }
 0x16a   :  { %v1366_v21 = vadd.f32 %v1365_v13, %v1351_v15  ;;  %v1187_v23 = vadd.f32 %v1700_v16, %v2271_v36  ;;  %v1703_v14 = vadd.f32 %v1702_v19, %v1701_v22  ;;  %v1766_v24 = vpop.f32.mrb[59].mxu1 }
 0x16b   :  { %v1767_v25 = vadd.f32 %v1766_v24, %v1765_v18 }
 0x16c   :  { %v1284_v27 = vadd.f32 %v1764_v17, %v1187_v23  ;;  %v1190_v29 = vadd.f32 %v1703_v14, %v2273_v38 }
 0x16e   :  { %1310 = vst [vmem:[%s2352_s2 + $0x60] sm:$0xff] %v1284_v27  ;;  %v1330_v30 = vadd.f32 %v1329_v20, %v1284_v27  ;;  %v1352_v54 = vmul.f32 %v1284_v27, %v1284_v27  ;;  %v1287_v31 = vadd.f32 %v1767_v25, %v1190_v29  ;;  %v1704_v32 = vpop.f32.mrb[60].mxu0 }
 0x16f   :  { %v1768_v33 = vpop.f32.mrb[60].mxu1  ;;  %v1705_v56 = vpop.f32.mrb[61].mxu0 }
 0x170   :  { %v1367_v34 = vadd.f32 %v1366_v21, %v1352_v54  ;;  %1311 = vst [vmem:[%s2352_s2 + $0x68] sm:$0xff] %v1287_v31  ;;  %v1331_v36 = vadd.f32 %v1330_v30, %v1287_v31  ;;  %v1353_v35 = vmul.f32 %v1287_v31, %v1287_v31  ;;  %v1706_v37 = vadd.f32 %v1705_v56, %v1704_v32  ;;  %v1769_v39 = vpop.f32.mrb[61].mxu1  ;;  %v1707_v38 = vpop.f32.mrb[62].mxu0 }
 0x171   :  { %v1770_v41 = vadd.f32 %v1769_v39, %v1768_v33  ;;  %v1771_v43 = vpop.f32.mrb[62].mxu1  ;;  %v1708_v44 = vpop.f32.mrb[63].mxu0 }
 0x172   :  { %v1368_v26 = vadd.f32 %v1367_v34, %v1353_v35  ;;  %v1195_v45 = vadd.f32 %v1706_v37, %v2275_v52  ;;  %v1709_v46 = vadd.f32 %v1708_v44, %v1707_v38  ;;  %v1772_v47 = vpop.f32.mrb[63].mxu1 }
 0x173   :  { %v1773_v28 = vadd.f32 %v1772_v47, %v1771_v43 }
 0x174   :  { %v1292_v48 = vadd.f32 %v1770_v41, %v1195_v45  ;;  %v1198_v49 = vadd.f32 %v1709_v46, %v2277_v55 }
 0x176   :  { %1312 = vst [vmem:[%s2352_s2 + $0x70] sm:$0xff] %v1292_v48  ;;  %v1332_v50 = vadd.f32 %v1331_v36, %v1292_v48  ;;  %v1354_v51 = vmul.f32 %v1292_v48, %v1292_v48  ;;  %v1295_v53 = vadd.f32 %v1773_v28, %v1198_v49 }
 0x178   :  { %v1369_v4 = vadd.f32 %v1368_v26, %v1354_v51  ;;  %1313 = vst [vmem:[%s2352_s2 + $0x78] sm:$0xff] %v1295_v53  ;;  %v1333_v57 = vadd.f32 %v1332_v50, %v1295_v53  ;;  %v1355_v52 = vmul.f32 %v1295_v53, %v1295_v53 }
 0x17a   :  { %v1334_v58 = vrot.slane %v1333_v57, 4  ;;  %v1370_v59 = vadd.f32 %v1369_v4, %v1355_v52 }
 0x17c   :  { %v1335_v6 = vadd.f32 %v1334_v58, %v1333_v57  ;;  %v1371_v60 = vrot.slane %v1370_v59, 4 }
 0x17e   :  { %v1336_v61 = vrot.slane %v1335_v6, 2  ;;  %v1372_v55 = vadd.f32 %v1371_v60, %v1370_v59 }
 0x180   :  { %v1337_v62 = vadd.f32 %v1336_v61, %v1335_v6  ;;  %v1373_v63 = vrot.slane %v1372_v55, 2 }
 0x182   :  { %v1338_v0 = vrot.slane %v1337_v62, 1  ;;  %v1374_v1 = vadd.f32 %v1373_v63, %v1372_v55 }
 0x184   :  { %v1375_v2 = vrot.slane %v1374_v1, 1  ;;  %v1339_v3 = vadd.f32 %v1338_v0, %v1337_v62 }
 0x186   :  { %v1376_v5 = vadd.f32 %v1375_v2, %v1374_v1 }
 0x188   :  { %v1378_v7 = vsel %vm1377_vm0, %v1339_v3, %v1376_v5 }
 0x189   :  { %v1380_v8 = vadd.f32 %v1379_v40, %v1378_v7 }
 0x18b   :  { %1381 = vst [vmem:[%s2351_s3] sm:$0x3] %v1380_v8 }

// kernel: discriminator_forward.10
= control target key start
LH: loop header
LB: loop body
LE: loop exit
PB: predicated region body
PF: predicated region fallthrough
CT: control target
= control target key end

     0   :  { %v179_v6 = vmov 1966171168   ;;  %v31_v8 = vlaneseq  ;;  %s349_s1 = inlined_call_operand.vmem [shape: f32[2,128], index: 1, kind: input, shape index: {}]   ;;  %s350_s2 = inlined_call_operand.vmem [shape: f32[1,128], index: 2, kind: input, shape index: {}]   ;;  %s351_s0 = inlined_call_operand.vmem [shape: f32[128,128], index: 0, kind: input, shape index: {}]   ;;  %s352_s3 = inlined_call_operand.vmem [shape: f32[1,128], index: 3, kind: input, shape index: {}]   ;;  %s353_s4 = inlined_call_operand.vmem [shape: f32[128,128], index: 4, kind: output, shape index: {}]  }
   0x1   :  { %v17_v0 = vld [vmem:[%s349_s1] sm:$0x3]  ;;  %v29_v7 = vunpack.c.l.s4 %v179_v6  ;;  %v49_v21 = vld [vmem:[%s351_s0 + $0x8] sm:$0xff]  ;;  %v50_v22 = vld [vmem:[%s351_s0 + $0x10] sm:$0xff] }
   0x2   :  { %v18_v1 = vmul.f32 0.0078125, %v17_v0  ;;  %v32_v10 = vshrl.u32 %v31_v8, 7  ;;  %v24_v15 = vld [vmem:[%s350_s2] sm:$0x1]  ;;  %v51_v23 = vld [vmem:[%s351_s0 + $0x18] sm:$0xff]  ;;  %v53_v27 = vld [vmem:[%s351_s0 + $0x28] sm:$0xff] }
   0x3   :  { %v30_v9 = vunpack.c.0.s8 %v29_v7  ;;  %v45_v19 = vld [vmem:[%s352_s3] sm:$0x1]  ;;  %v54_v28 = vld [vmem:[%s351_s0 + $0x30] sm:$0xff]  ;;  %v55_v29 = vld [vmem:[%s351_s0 + $0x38] sm:$0xff] }
   0x4   :  { %v19_v2 = vmul.f32 %v18_v1, %v18_v1  ;;  %v67_v17 = vsub.s32 0, %v32_v10  ;;  %v48_v20 = vld [vmem:[%s351_s0] sm:$0xff]  ;;  %v57_v31 = vld [vmem:[%s351_s0 + $0x48] sm:$0xff]  ;;  %v58_v32 = vld [vmem:[%s351_s0 + $0x50] sm:$0xff] }
   0x5   :  { %v33_v11 = vsub.s32 %v30_v9, %v32_v10  ;;  %v52_v24 = vld [vmem:[%s351_s0 + $0x20] sm:$0xff]  ;;  %v59_v37 = vld [vmem:[%s351_s0 + $0x58] sm:$0xff]  ;;  %v61_v39 = vld [vmem:[%s351_s0 + $0x68] sm:$0xff] }
   0x6   :  { %v21_v3 = vrot.slane %v19_v2, 7  ;;  %v56_v30 = vld [vmem:[%s351_s0 + $0x40] sm:$0xff] }
   0x7   :  { %v60_v38 = vld [vmem:[%s351_s0 + $0x60] sm:$0xff] }
   0x8   :  { %v23_v4 = vsub.f32 %v18_v1, %v21_v3 }
   0xa   :  { %v25_v5 = vadd.f32 1e-05, %v23_v4 }
   0xc   :  { %177 = vrsqrt.f32 %v25_v5 }
  0x16   :  { %v178_v12 = vpop.eup %177 }
  0x17   :  { %v34_v13 = vrot.slane %v178_v12, %v33_v11 }
  0x19   :  { %v35_v14 = vcombine.high %v34_v13, %v34_v13 }
  0x1b   :  { %v42_v16 = vrot.slane %v35_v14, %v33_v11 }
  0x1d   :  { %v44_v18 = vmul.f32 %v42_v16, %v24_v15 }
  0x1f   :  { %v46_v25 = vmul.f32 %v44_v18, %v18_v1  ;;  %v229_v26 = vrot.slane %v44_v18, %v67_v17  ;;  %v62_v18 = vld [vmem:[%s351_s0 + $0x70] sm:$0xff] }
  0x21   :  { %v47_v33 = vsub.f32 %v45_v19, %v46_v25  ;;  %v70_v34 = vmul.f32 %v229_v26, %v48_v20  ;;  %v71_v35 = vmul.f32 %v229_v26, %v49_v21  ;;  %v72_v36 = vmul.f32 %v229_v26, %v50_v22  ;;  %v63_v19 = vld [vmem:[%s351_s0 + $0x78] sm:$0xff] }
  0x22   :  { %v73_v40 = vmul.f32 %v229_v26, %v51_v23  ;;  %v74_v41 = vmul.f32 %v229_v26, %v52_v24  ;;  %v75_v42 = vmul.f32 %v229_v26, %v53_v27  ;;  %v76_v43 = vmul.f32 %v229_v26, %v54_v28 }
  0x23   :  { %v265_v44 = vrot.slane %v47_v33, %v67_v17  ;;  %v77_v45 = vmul.f32 %v229_v26, %v55_v29  ;;  %v78_v46 = vmul.f32 %v229_v26, %v56_v30  ;;  %v79_v47 = vmul.f32 %v229_v26, %v57_v31 }
  0x24   :  { %v80_v48 = vmul.f32 %v229_v26, %v58_v32  ;;  %v81_v49 = vmul.f32 %v229_v26, %v59_v37  ;;  %v82_v50 = vmul.f32 %v229_v26, %v60_v38  ;;  %v274_v51 = vmul.f32 %v229_v26, %v61_v39 }
  0x25   :  { %v92_v52 = vadd.f32 %v265_v44, %v70_v34  ;;  %v93_v53 = vadd.f32 %v265_v44, %v71_v35  ;;  %v94_v54 = vadd.f32 %v265_v44, %v72_v36  ;;  %v95_v55 = vadd.f32 %v265_v44, %v73_v40 }
  0x26   :  { %v96_v56 = vadd.f32 %v265_v44, %v74_v41  ;;  %v97_v57 = vadd.f32 %v265_v44, %v75_v42  ;;  %v98_v58 = vadd.f32 %v265_v44, %v76_v43  ;;  %v99_v59 = vadd.f32 %v265_v44, %v77_v45 }
  0x27   :  { %vm108_vm0 = vcmp.ge.f32.partialorder %v92_v52, 0.0  ;;  %v124_v60 = vmul.f32 0.2, %v92_v52  ;;  %vm109_vm1 = vcmp.ge.f32.partialorder %v93_v53, 0.0  ;;  %v125_v61 = vmul.f32 0.2, %v93_v53 }
  0x28   :  { %vm110_vm2 = vcmp.ge.f32.partialorder %v94_v54, 0.0  ;;  %v126_v62 = vmul.f32 0.2, %v94_v54  ;;  %vm111_vm3 = vcmp.ge.f32.partialorder %v95_v55, 0.0  ;;  %v127_v63 = vmul.f32 0.2, %v95_v55 }
  0x29   :  { %v140_v0 = vsel %vm108_vm0, %v92_v52, %v124_v60  ;;  %v141_v1 = vsel %vm109_vm1, %v93_v53, %v125_v61  ;;  %vm112_vm4 = vcmp.ge.f32.partialorder %v96_v56, 0.0  ;;  %v128_v2 = vmul.f32 0.2, %v96_v56 }
  0x2a   :  { %156 = vst [vmem:[%s353_s4] sm:$0xff] %v140_v0  ;;  %157 = vst [vmem:[%s353_s4 + $0x8] sm:$0xff] %v141_v1  ;;  %v142_v3 = vsel %vm110_vm2, %v94_v54, %v126_v62  ;;  %v143_v4 = vsel %vm111_vm3, %v95_v55, %v127_v63  ;;  %vm113_vm5 = vcmp.ge.f32.partialorder %v97_v57, 0.0  ;;  %v129_v5 = vmul.f32 0.2, %v97_v57 }
  0x2b   :  { %158 = vst [vmem:[%s353_s4 + $0x10] sm:$0xff] %v142_v3  ;;  %159 = vst [vmem:[%s353_s4 + $0x18] sm:$0xff] %v143_v4  ;;  %v144_v6 = vsel %vm112_vm4, %v96_v56, %v128_v2  ;;  %vm114_vm6 = vcmp.ge.f32.partialorder %v98_v58, 0.0  ;;  %v130_v7 = vmul.f32 0.2, %v98_v58  ;;  %vm115_vm7 = vcmp.ge.f32.partialorder %v99_v59, 0.0 }
  0x2c   :  { %160 = vst [vmem:[%s353_s4 + $0x20] sm:$0xff] %v144_v6  ;;  %v145_v8 = vsel %vm113_vm5, %v97_v57, %v129_v5  ;;  %v131_v9 = vmul.f32 0.2, %v99_v59  ;;  %v100_v10 = vadd.f32 %v265_v44, %v78_v46  ;;  %v101_v11 = vadd.f32 %v265_v44, %v79_v47 }
  0x2d   :  { %161 = vst [vmem:[%s353_s4 + $0x28] sm:$0xff] %v145_v8  ;;  %v146_v12 = vsel %vm114_vm6, %v98_v58, %v130_v7  ;;  %v102_v13 = vadd.f32 %v265_v44, %v80_v48  ;;  %v103_v14 = vadd.f32 %v265_v44, %v81_v49  ;;  %v104_v15 = vadd.f32 %v265_v44, %v82_v50 }
  0x2e   :  { %162 = vst [vmem:[%s353_s4 + $0x30] sm:$0xff] %v146_v12  ;;  %v147_v16 = vsel %vm115_vm7, %v99_v59, %v131_v9  ;;  %vm116_vm8 = vcmp.ge.f32.partialorder %v100_v10, 0.0  ;;  %v132_v17 = vmul.f32 0.2, %v100_v10  ;;  %vm117_vm9 = vcmp.ge.f32.partialorder %v101_v11, 0.0 }
  0x2f   :  { %163 = vst [vmem:[%s353_s4 + $0x38] sm:$0xff] %v147_v16  ;;  %v133_v20 = vmul.f32 0.2, %v101_v11  ;;  %vm118_vm10 = vcmp.ge.f32.partialorder %v102_v13, 0.0  ;;  %v134_v21 = vmul.f32 0.2, %v102_v13  ;;  %v105_v28 = vadd.f32 %v265_v44, %v274_v51 }
  0x30   :  { %vm119_vm11 = vcmp.ge.f32.partialorder %v103_v14, 0.0  ;;  %v148_v22 = vsel %vm116_vm8, %v100_v10, %v132_v17  ;;  %v135_v23 = vmul.f32 0.2, %v103_v14  ;;  %vm120_vm12 = vcmp.ge.f32.partialorder %v104_v15, 0.0 }
  0x31   :  { %v136_v24 = vmul.f32 0.2, %v104_v15  ;;  %164 = vst [vmem:[%s353_s4 + $0x40] sm:$0xff] %v148_v22  ;;  %v149_v25 = vsel %vm117_vm9, %v101_v11, %v133_v20  ;;  %v150_v27 = vsel %vm118_vm10, %v102_v13, %v134_v21  ;;  %v84_v29 = vmul.f32 %v229_v26, %v62_v18 }
  0x32   :  { %165 = vst [vmem:[%s353_s4 + $0x48] sm:$0xff] %v149_v25  ;;  %166 = vst [vmem:[%s353_s4 + $0x50] sm:$0xff] %v150_v27  ;;  %v151_v30 = vsel %vm119_vm11, %v103_v14, %v135_v23  ;;  %v85_v32 = vmul.f32 %v229_v26, %v63_v19  ;;  %vm121_vm13 = vcmp.ge.f32.partialorder %v105_v28, 0.0  ;;  %v137_v33 = vmul.f32 0.2, %v105_v28 }
  0x33   :  { %v152_v31 = vsel %vm120_vm12, %v104_v15, %v136_v24  ;;  %167 = vst [vmem:[%s353_s4 + $0x58] sm:$0xff] %v151_v30  ;;  %v106_v34 = vadd.f32 %v265_v44, %v84_v29 }
  0x34   :  { %168 = vst [vmem:[%s353_s4 + $0x60] sm:$0xff] %v152_v31  ;;  %v107_v35 = vadd.f32 %v265_v44, %v85_v32  ;;  %v153_v36 = vsel %vm121_vm13, %v105_v28, %v137_v33 }
  0x35   :  { %vm122_vm14 = vcmp.ge.f32.partialorder %v106_v34, 0.0  ;;  %v138_v37 = vmul.f32 0.2, %v106_v34  ;;  %169 = vst [vmem:[%s353_s4 + $0x68] sm:$0xff] %v153_v36 }
  0x36   :  { %vm123_vm15 = vcmp.ge.f32.partialorder %v107_v35, 0.0  ;;  %v139_v26 = vmul.f32 0.2, %v107_v35 }
  0x37   :  { %v154_v38 = vsel %vm122_vm14, %v106_v34, %v138_v37 }
  0x38   :  { %170 = vst [vmem:[%s353_s4 + $0x70] sm:$0xff] %v154_v38  ;;  %v155_v39 = vsel %vm123_vm15, %v107_v35, %v139_v26 }
  0x39   :  { %171 = vst [vmem:[%s353_s4 + $0x78] sm:$0xff] %v155_v39 }

// kernel: discriminator_forward.11
= control target key start
LH: loop header
LB: loop body
LE: loop exit
PB: predicated region body
PF: predicated region fallthrough
CT: control target
= control target key end

     0   :  { %vm2222_vm0 = vcmask 1040384   ;;  %s3944_s1 = inlined_call_operand.vmem [shape: bf16[2048,256], index: 1, kind: input, shape index: {}]   ;;  %s3945_s0 = inlined_call_operand.vmem [shape: bf16[32,2048], index: 0, kind: input, shape index: {}]   ;;  %s3946_s3 = inlined_call_operand.vmem [shape: f32[2,256], index: 3, kind: output, shape index: {1}]   ;;  %s3947_s2 = inlined_call_operand.vmem [shape: f32[32,256], index: 2, kind: output, shape index: {0}]  }
   0x1   :  { %v2593_v0 = vld [vmem:[%s3944_s1 + $0x4] ss:$8 sps:$4 sm:$0xff]   ;;  %v2597_v2 = vld [vmem:[%s3944_s1] ss:$8 sps:$4 sm:$0xff]   ;;  %v2599_v4 = vld [vmem:[%s3944_s1 + $0x14] ss:$8 sps:$4 sm:$0xff]  }
   0x2   :  { %v2595_v1 = vld [vmem:[%s3944_s1 + $0x404] ss:$8 sps:$4 sm:$0xff]   ;;  %1741 = vmatprep.subr.bf16.mxu1 %v2593_v0  ;;  %v2598_v3 = vld [vmem:[%s3944_s1 + $0x400] ss:$8 sps:$4 sm:$0xff]   ;;  %v2601_v5 = vld [vmem:[%s3944_s1 + $0x414] ss:$8 sps:$4 sm:$0xff]  }
   0x3   :  { %1953 = vmatprep.subr.bf16.mxu0 %v2595_v1  ;;  %1742 = vmatpush1.bf16.msra.mxu1 %v2597_v2  ;;  %v2603_v6 = vld [vmem:[%s3944_s1 + $0x10] ss:$8 sps:$4 sm:$0xff]   ;;  %v2605_v8 = vld [vmem:[%s3944_s1 + $0x24] ss:$8 sps:$4 sm:$0xff]   ;;  %v2609_v10 = vld [vmem:[%s3944_s1 + $0x20] ss:$8 sps:$4 sm:$0xff]  }
   0x4   :  { %1954 = vmatpush1.bf16.msra.mxu0 %v2598_v3  ;;  %1743 = vmatprep.subr.bf16.mxu1 %v2599_v4  ;;  %v2604_v7 = vld [vmem:[%s3944_s1 + $0x410] ss:$8 sps:$4 sm:$0xff]   ;;  %v2607_v9 = vld [vmem:[%s3944_s1 + $0x424] ss:$8 sps:$4 sm:$0xff]   ;;  %v2610_v11 = vld [vmem:[%s3944_s1 + $0x420] ss:$8 sps:$4 sm:$0xff]  }
   0x5   :  { %1955 = vmatprep.subr.bf16.mxu0 %v2601_v5  ;;  %v2611_v12 = vld [vmem:[%s3944_s1 + $0x34] ss:$8 sps:$4 sm:$0xff]   ;;  %v2615_v14 = vld [vmem:[%s3944_s1 + $0x30] ss:$8 sps:$4 sm:$0xff]   ;;  %v2617_v16 = vld [vmem:[%s3944_s1 + $0x44] ss:$8 sps:$4 sm:$0xff]  }
   0x6   :  { %v2613_v13 = vld [vmem:[%s3944_s1 + $0x434] ss:$8 sps:$4 sm:$0xff]   ;;  %v2616_v15 = vld [vmem:[%s3944_s1 + $0x430] ss:$8 sps:$4 sm:$0xff]   ;;  %v2619_v17 = vld [vmem:[%s3944_s1 + $0x444] ss:$8 sps:$4 sm:$0xff]  }
   0x7   :  { %1744 = vmatpush1.bf16.msra.mxu1 %v2603_v6  ;;  %v2621_v18 = vld [vmem:[%s3944_s1 + $0x40] ss:$8 sps:$4 sm:$0xff]   ;;  %v2623_v20 = vld [vmem:[%s3944_s1 + $0x54] ss:$8 sps:$4 sm:$0xff]   ;;  %v2627_v22 = vld [vmem:[%s3944_s1 + $0x50] ss:$8 sps:$4 sm:$0xff]  }
   0x8   :  { %1956 = vmatpush1.bf16.msra.mxu0 %v2604_v7  ;;  %1745 = vmatprep.subr.bf16.mxu1 %v2605_v8  ;;  %v2622_v19 = vld [vmem:[%s3944_s1 + $0x440] ss:$8 sps:$4 sm:$0xff]   ;;  %v2625_v21 = vld [vmem:[%s3944_s1 + $0x454] ss:$8 sps:$4 sm:$0xff]   ;;  %v2628_v23 = vld [vmem:[%s3944_s1 + $0x450] ss:$8 sps:$4 sm:$0xff]  }
   0x9   :  { %1957 = vmatprep.subr.bf16.mxu0 %v2607_v9  ;;  %v2629_v24 = vld [vmem:[%s3944_s1 + $0x64] ss:$8 sps:$4 sm:$0xff]   ;;  %v2633_v26 = vld [vmem:[%s3944_s1 + $0x60] ss:$8 sps:$4 sm:$0xff]   ;;  %v2635_v28 = vld [vmem:[%s3944_s1 + $0x74] ss:$8 sps:$4 sm:$0xff]  }
   0xa   :  { %v2631_v25 = vld [vmem:[%s3944_s1 + $0x464] ss:$8 sps:$4 sm:$0xff]   ;;  %v2634_v27 = vld [vmem:[%s3944_s1 + $0x460] ss:$8 sps:$4 sm:$0xff]   ;;  %v2637_v29 = vld [vmem:[%s3944_s1 + $0x474] ss:$8 sps:$4 sm:$0xff]  }
   0xb   :  { %1746 = vmatpush1.bf16.msra.mxu1 %v2609_v10  ;;  %v2639_v30 = vld [vmem:[%s3944_s1 + $0x70] ss:$8 sps:$4 sm:$0xff]   ;;  %v2641_v32 = vld [vmem:[%s3944_s1 + $0x84] ss:$8 sps:$4 sm:$0xff]   ;;  %v2645_v34 = vld [vmem:[%s3944_s1 + $0x80] ss:$8 sps:$4 sm:$0xff]  }
   0xc   :  { %1958 = vmatpush1.bf16.msra.mxu0 %v2610_v11  ;;  %1747 = vmatprep.subr.bf16.mxu1 %v2611_v12  ;;  %v2640_v31 = vld [vmem:[%s3944_s1 + $0x470] ss:$8 sps:$4 sm:$0xff]   ;;  %v2643_v33 = vld [vmem:[%s3944_s1 + $0x484] ss:$8 sps:$4 sm:$0xff]   ;;  %v2646_v35 = vld [vmem:[%s3944_s1 + $0x480] ss:$8 sps:$4 sm:$0xff]  }
   0xd   :  { %1959 = vmatprep.subr.bf16.mxu0 %v2613_v13  ;;  %v2647_v36 = vld [vmem:[%s3944_s1 + $0x94] ss:$8 sps:$4 sm:$0xff]   ;;  %v2651_v38 = vld [vmem:[%s3944_s1 + $0x90] ss:$8 sps:$4 sm:$0xff]   ;;  %v2653_v40 = vld [vmem:[%s3944_s1 + $0xa4] ss:$8 sps:$4 sm:$0xff]  }
   0xe   :  { %v2649_v37 = vld [vmem:[%s3944_s1 + $0x494] ss:$8 sps:$4 sm:$0xff]   ;;  %v2652_v39 = vld [vmem:[%s3944_s1 + $0x490] ss:$8 sps:$4 sm:$0xff]   ;;  %v2655_v41 = vld [vmem:[%s3944_s1 + $0x4a4] ss:$8 sps:$4 sm:$0xff]  }
   0xf   :  { %1748 = vmatpush1.bf16.msra.mxu1 %v2615_v14  ;;  %v2657_v42 = vld [vmem:[%s3944_s1 + $0xa0] ss:$8 sps:$4 sm:$0xff]   ;;  %v2659_v44 = vld [vmem:[%s3944_s1 + $0xb4] ss:$8 sps:$4 sm:$0xff]   ;;  %v2663_v46 = vld [vmem:[%s3944_s1 + $0xb0] ss:$8 sps:$4 sm:$0xff]  }
  0x10   :  { %1960 = vmatpush1.bf16.msra.mxu0 %v2616_v15  ;;  %1749 = vmatprep.subr.bf16.mxu1 %v2617_v16  ;;  %v2658_v43 = vld [vmem:[%s3944_s1 + $0x4a0] ss:$8 sps:$4 sm:$0xff]   ;;  %v2661_v45 = vld [vmem:[%s3944_s1 + $0x4b4] ss:$8 sps:$4 sm:$0xff]   ;;  %v2664_v47 = vld [vmem:[%s3944_s1 + $0x4b0] ss:$8 sps:$4 sm:$0xff]  }
  0x11   :  { %1961 = vmatprep.subr.bf16.mxu0 %v2619_v17  ;;  %v13_v48 = vld [vmem:[%s3945_s0] sm:$0xff]  ;;  %v2671_v58 = vld [vmem:[%s3944_s1 + $0xd4] ss:$8 sps:$4 sm:$0xff]   ;;  %v2675_v60 = vld [vmem:[%s3944_s1 + $0xd0] ss:$8 sps:$4 sm:$0xff]  }
  0x12   :  { %v21_v49 = vld [vmem:[%s3945_s0 + $0x40] sm:$0xff]  ;;  %v2673_v59 = vld [vmem:[%s3944_s1 + $0x4d4] ss:$8 sps:$4 sm:$0xff]   ;;  %v2676_v61 = vld [vmem:[%s3944_s1 + $0x4d0] ss:$8 sps:$4 sm:$0xff]  }
  0x13   :  { %1750 = vmatpush1.bf16.msra.mxu1 %v2621_v18  ;;  %v2665_v50 = vld [vmem:[%s3944_s1 + $0xc4] ss:$8 sps:$4 sm:$0xff]   ;;  %v2248_v52 = vcombine.high %v13_v48, %v21_v49  ;;  %v2669_v56 = vld [vmem:[%s3944_s1 + $0xc0] ss:$8 sps:$4 sm:$0xff]   ;;  %v2683_v2 = vld [vmem:[%s3944_s1 + $0xf4] ss:$8 sps:$4 sm:$0xff]   ;;  %v2247_v8 = vcombine.low %v13_v48, %v21_v49 }
  0x14   :  { %1962 = vmatpush1.bf16.msra.mxu0 %v2622_v19  ;;  %1751 = vmatprep.subr.bf16.mxu1 %v2623_v20  ;;  %v2667_v51 = vld [vmem:[%s3944_s1 + $0x4c4] ss:$8 sps:$4 sm:$0xff]   ;;  %v2670_v57 = vld [vmem:[%s3944_s1 + $0x4c0] ss:$8 sps:$4 sm:$0xff]   ;;  %v2685_v3 = vld [vmem:[%s3944_s1 + $0x4f4] ss:$8 sps:$4 sm:$0xff]  }
  0x15   :  { %1963 = vmatprep.subr.bf16.mxu0 %v2625_v21  ;;  %v17_v53 = vld [vmem:[%s3945_s0 + $0x20] sm:$0xff]  ;;  %1773 = vmatprep.mubr.bf16.mxu1 %v2248_v52  ;;  %v2687_v4 = vld [vmem:[%s3944_s1 + $0xf0] ss:$8 sps:$4 sm:$0xff]   ;;  %v2697_v12 = vld [vmem:[%s3944_s1 + $0x114] ss:$8 sps:$4 sm:$0xff]  }
  0x16   :  { %v25_v54 = vld [vmem:[%s3945_s0 + $0x60] sm:$0xff]  ;;  %v2688_v5 = vld [vmem:[%s3944_s1 + $0x4f0] ss:$8 sps:$4 sm:$0xff]   ;;  %v2700_v13 = vld [vmem:[%s3944_s1 + $0x514] ss:$8 sps:$4 sm:$0xff]  }
  0x17   :  { %1752 = vmatpush1.bf16.msra.mxu1 %v2627_v22  ;;  %v2256_v55 = vcombine.high %v17_v53, %v25_v54  ;;  %v2677_v62 = vld [vmem:[%s3944_s1 + $0xe4] ss:$8 sps:$4 sm:$0xff]   ;;  %v2681_v0 = vld [vmem:[%s3944_s1 + $0xe0] ss:$8 sps:$4 sm:$0xff]   ;;  %v2255_v10 = vcombine.low %v17_v53, %v25_v54  ;;  %v2695_v14 = vld [vmem:[%s3944_s1 + $0x110] ss:$8 sps:$4 sm:$0xff]  }
  0x18   :  { %1964 = vmatpush1.bf16.msra.mxu0 %v2628_v23  ;;  %1753 = vmatprep.subr.bf16.mxu1 %v2629_v24  ;;  %v2679_v63 = vld [vmem:[%s3944_s1 + $0x4e4] ss:$8 sps:$4 sm:$0xff]   ;;  %v2682_v1 = vld [vmem:[%s3944_s1 + $0x4e0] ss:$8 sps:$4 sm:$0xff]   ;;  %v2698_v15 = vld [vmem:[%s3944_s1 + $0x510] ss:$8 sps:$4 sm:$0xff]  }
  0x19   :  { %1965 = vmatprep.subr.bf16.mxu0 %v2631_v25  ;;  %1985 = vmatprep.mubr.bf16.mxu0 %v2256_v55  ;;  %v2691_v6 = vld [vmem:[%s3944_s1 + $0x104] ss:$8 sps:$4 sm:$0xff]   ;;  %v2689_v9 = vld [vmem:[%s3944_s1 + $0x100] ss:$8 sps:$4 sm:$0xff]   ;;  %v2709_v20 = vld [vmem:[%s3944_s1 + $0x134] ss:$8 sps:$4 sm:$0xff]  }
  0x1a   :  { %v2694_v7 = vld [vmem:[%s3944_s1 + $0x504] ss:$8 sps:$4 sm:$0xff]   ;;  %v2692_v11 = vld [vmem:[%s3944_s1 + $0x500] ss:$8 sps:$4 sm:$0xff]   ;;  %v2712_v21 = vld [vmem:[%s3944_s1 + $0x534] ss:$8 sps:$4 sm:$0xff]  }
  0x1b   :  { %1754 = vmatpush1.bf16.msra.mxu1 %v2633_v26  ;;  %v2703_v16 = vld [vmem:[%s3944_s1 + $0x124] ss:$8 sps:$4 sm:$0xff]   ;;  %v2701_v18 = vld [vmem:[%s3944_s1 + $0x120] ss:$8 sps:$4 sm:$0xff]   ;;  %v2707_v22 = vld [vmem:[%s3944_s1 + $0x130] ss:$8 sps:$4 sm:$0xff]  }
  0x1c   :  { %1966 = vmatpush1.bf16.msra.mxu0 %v2634_v27  ;;  %1755 = vmatprep.subr.bf16.mxu1 %v2635_v28  ;;  %v2706_v17 = vld [vmem:[%s3944_s1 + $0x524] ss:$8 sps:$4 sm:$0xff]   ;;  %v2704_v19 = vld [vmem:[%s3944_s1 + $0x520] ss:$8 sps:$4 sm:$0xff]   ;;  %v2710_v23 = vld [vmem:[%s3944_s1 + $0x530] ss:$8 sps:$4 sm:$0xff]  }
  0x1d   :  { %1967 = vmatprep.subr.bf16.mxu0 %v2637_v29  ;;  %v2715_v24 = vld [vmem:[%s3944_s1 + $0x144] ss:$8 sps:$4 sm:$0xff]   ;;  %v2713_v26 = vld [vmem:[%s3944_s1 + $0x140] ss:$8 sps:$4 sm:$0xff]   ;;  %v2721_v28 = vld [vmem:[%s3944_s1 + $0x154] ss:$8 sps:$4 sm:$0xff]  }
  0x1e   :  { %v2718_v25 = vld [vmem:[%s3944_s1 + $0x544] ss:$8 sps:$4 sm:$0xff]   ;;  %v2716_v27 = vld [vmem:[%s3944_s1 + $0x540] ss:$8 sps:$4 sm:$0xff]   ;;  %v2724_v29 = vld [vmem:[%s3944_s1 + $0x554] ss:$8 sps:$4 sm:$0xff]  }
  0x1f   :  { %1756 = vmatpush1.bf16.msra.mxu1 %v2639_v30  ;;  %v29_v30 = vld [vmem:[%s3945_s0 + $0x80] sm:$0xff]  ;;  %v3320_v49 = vld [vmem:[%s3945_s0 + $0x28] sm:$0xff]  ;;  %v2734_v52 = vld [vmem:[%s3944_s1 + $0x570] ss:$8 sps:$4 sm:$0xff]  }
  0x20   :  { %1968 = vmatpush1.bf16.msra.mxu0 %v2640_v31  ;;  %1757 = vmatprep.subr.bf16.mxu1 %v2641_v32  ;;  %v37_v31 = vld [vmem:[%s3945_s0 + $0xc0] sm:$0xff]  ;;  %v2719_v32 = vld [vmem:[%s3944_s1 + $0x150] ss:$8 sps:$4 sm:$0xff]  }
  0x21   :  { %1969 = vmatprep.subr.bf16.mxu0 %v2643_v33  ;;  %v2264_v33 = vcombine.high %v29_v30, %v37_v31  ;;  %v2739_v54 = vld [vmem:[%s3944_s1 + $0x184] ss:$8 sps:$4 sm:$0xff]  }
  0x22   :  { %v2742_v55 = vld [vmem:[%s3944_s1 + $0x584] ss:$8 sps:$4 sm:$0xff]  }
  0x23   :  { %1758 = vmatpush1.bf16.msra.mxu1 %v2645_v34  ;;  %v2722_v34 = vld [vmem:[%s3944_s1 + $0x550] ss:$8 sps:$4 sm:$0xff]  }
  0x24   :  { %1970 = vmatpush1.bf16.msra.mxu0 %v2646_v35  ;;  %1759 = vmatprep.subr.bf16.mxu1 %v2647_v36  ;;  %v33_v35 = vld [vmem:[%s3945_s0 + $0xa0] sm:$0xff] }
  0x25   :  { %1971 = vmatprep.subr.bf16.mxu0 %v2649_v37  ;;  %v41_v36 = vld [vmem:[%s3945_s0 + $0xe0] sm:$0xff]  ;;  %v2263_v37 = vcombine.low %v29_v30, %v37_v31  ;;  %v2793_v30 = vld [vmem:[%s3944_s1 + $0x214] ss:$8 sps:$4 sm:$0xff]  }
  0x26   :  { %v2796_v31 = vld [vmem:[%s3944_s1 + $0x614] ss:$8 sps:$4 sm:$0xff]  }
  0x27   :  { %1760 = vmatpush1.bf16.msra.mxu1 %v2651_v38  ;;  %v2727_v38 = vld [vmem:[%s3944_s1 + $0x164] ss:$8 sps:$4 sm:$0xff]  }
  0x28   :  { %1972 = vmatpush1.bf16.msra.mxu0 %v2652_v39  ;;  %1761 = vmatprep.subr.bf16.mxu1 %v2653_v40  ;;  %v2272_v39 = vcombine.high %v33_v35, %v41_v36  ;;  %v2271_v40 = vcombine.low %v33_v35, %v41_v36  ;;  %v2791_v36 = vld [vmem:[%s3944_s1 + $0x210] ss:$8 sps:$4 sm:$0xff]  }
  0x29   :  { %1973 = vmatprep.subr.bf16.mxu0 %v2655_v41  ;;  %v2730_v41 = vld [vmem:[%s3944_s1 + $0x564] ss:$8 sps:$4 sm:$0xff]  }
  0x2b   :  { %1762 = vmatpush1.bf16.msra.mxu1 %v2657_v42  ;;  %v2725_v42 = vld [vmem:[%s3944_s1 + $0x160] ss:$8 sps:$4 sm:$0xff]  }
  0x2c   :  { %1974 = vmatpush1.bf16.msra.mxu0 %v2658_v43  ;;  %1763 = vmatprep.subr.bf16.mxu1 %v2659_v44  ;;  %v2728_v43 = vld [vmem:[%s3944_s1 + $0x560] ss:$8 sps:$4 sm:$0xff]  }
  0x2d   :  { %1975 = vmatprep.subr.bf16.mxu0 %v2661_v45  ;;  %v3302_v44 = vld [vmem:[%s3945_s0 + $0x8] sm:$0xff] }
  0x2e   :  { %v3307_v45 = vld [vmem:[%s3945_s0 + $0x48] sm:$0xff] }
  0x2f   :  { %1764 = vmatpush1.bf16.msra.mxu1 %v2663_v46  ;;  %v2733_v46 = vld [vmem:[%s3944_s1 + $0x174] ss:$8 sps:$4 sm:$0xff]   ;;  %v2250_v48 = vcombine.high %v3302_v44, %v3307_v45 }
  0x30   :  { %1976 = vmatpush1.bf16.msra.mxu0 %v2664_v47  ;;  %1765 = vmatprep.subr.bf16.mxu1 %v2665_v50  ;;  %v2736_v47 = vld [vmem:[%s3944_s1 + $0x574] ss:$8 sps:$4 sm:$0xff]   ;;  %v3325_v50 = vld [vmem:[%s3945_s0 + $0x68] sm:$0xff] }
  0x31   :  { %1977 = vmatprep.subr.bf16.mxu0 %v2667_v51  ;;  %v2731_v51 = vld [vmem:[%s3944_s1 + $0x170] ss:$8 sps:$4 sm:$0xff]   ;;  %v2258_v53 = vcombine.high %v3320_v49, %v3325_v50 }
  0x33   :  { %1766 = vmatpush1.bf16.msra.mxu1 %v2669_v56  ;;  %v2737_v56 = vld [vmem:[%s3944_s1 + $0x180] ss:$8 sps:$4 sm:$0xff]  }
  0x34   :  { %1978 = vmatpush1.bf16.msra.mxu0 %v2670_v57  ;;  %1767 = vmatprep.subr.bf16.mxu1 %v2671_v58  ;;  %v2740_v57 = vld [vmem:[%s3944_s1 + $0x580] ss:$8 sps:$4 sm:$0xff]   ;;  %v2745_v58 = vld [vmem:[%s3944_s1 + $0x194] ss:$8 sps:$4 sm:$0xff]  }
  0x35   :  { %1979 = vmatprep.subr.bf16.mxu0 %v2673_v59  ;;  %v2748_v59 = vld [vmem:[%s3944_s1 + $0x594] ss:$8 sps:$4 sm:$0xff]  }
  0x37   :  { %1768 = vmatpush1.bf16.msra.mxu1 %v2675_v60  ;;  %v2743_v60 = vld [vmem:[%s3944_s1 + $0x190] ss:$8 sps:$4 sm:$0xff]  }
  0x38   :  { %1980 = vmatpush1.bf16.msra.mxu0 %v2676_v61  ;;  %1769 = vmatprep.subr.bf16.mxu1 %v2677_v62  ;;  %v2746_v61 = vld [vmem:[%s3944_s1 + $0x590] ss:$8 sps:$4 sm:$0xff]   ;;  %v2751_v62 = vld [vmem:[%s3944_s1 + $0x1a4] ss:$8 sps:$4 sm:$0xff]  }
  0x39   :  { %1981 = vmatprep.subr.bf16.mxu0 %v2679_v63  ;;  %v2754_v63 = vld [vmem:[%s3944_s1 + $0x5a4] ss:$8 sps:$4 sm:$0xff]  }
  0x3b   :  { %1770 = vmatpush1.bf16.msra.mxu1 %v2681_v0  ;;  %v2749_v0 = vld [vmem:[%s3944_s1 + $0x1a0] ss:$8 sps:$4 sm:$0xff]  }
  0x3c   :  { %1982 = vmatpush1.bf16.msra.mxu0 %v2682_v1  ;;  %1771 = vmatprep.subr.bf16.mxu1 %v2683_v2  ;;  %v2752_v1 = vld [vmem:[%s3944_s1 + $0x5a0] ss:$8 sps:$4 sm:$0xff]   ;;  %v2757_v2 = vld [vmem:[%s3944_s1 + $0x1b4] ss:$8 sps:$4 sm:$0xff]  }
  0x3d   :  { %1983 = vmatprep.subr.bf16.mxu0 %v2685_v3  ;;  %v2760_v3 = vld [vmem:[%s3944_s1 + $0x5b4] ss:$8 sps:$4 sm:$0xff]  }
  0x3f   :  { %1772 = vmatpush1.bf16.msra.mxu1 %v2687_v4  ;;  %v2755_v4 = vld [vmem:[%s3944_s1 + $0x1b0] ss:$8 sps:$4 sm:$0xff]  }
  0x40   :  { %1984 = vmatpush1.bf16.msra.mxu0 %v2688_v5  ;;  %1794 = vmatprep.subr.bf16.mxu1 %v2691_v6  ;;  %v2758_v5 = vld [vmem:[%s3944_s1 + $0x5b0] ss:$8 sps:$4 sm:$0xff]   ;;  %v2763_v6 = vld [vmem:[%s3944_s1 + $0x1c4] ss:$8 sps:$4 sm:$0xff]  }
  0x41   :  { %2006 = vmatprep.subr.bf16.mxu0 %v2694_v7  ;;  %v2766_v7 = vld [vmem:[%s3944_s1 + $0x5c4] ss:$8 sps:$4 sm:$0xff]  }
  0x42   :  { %1774 = vmatmul.mubr.bf16.vlgmr.msra.gmra.mrb[0].mxu1 %v2247_v8  ;;  %v2761_v8 = vld [vmem:[%s3944_s1 + $0x1c0] ss:$8 sps:$4 sm:$0xff]  }
  0x43   :  { %1986 = vmatmul.mubr.bf16.vlgmr.msra.gmra.mrb[0].mxu0 %v2255_v10  ;;  %1795 = vmatpush1.bf16.msra.mxu1 %v2689_v9  ;;  %v2764_v9 = vld [vmem:[%s3944_s1 + $0x5c0] ss:$8 sps:$4 sm:$0xff]   ;;  %v2769_v10 = vld [vmem:[%s3944_s1 + $0x1d4] ss:$8 sps:$4 sm:$0xff]  }
  0x44   :  { %2007 = vmatpush1.bf16.msra.mxu0 %v2692_v11  ;;  %1796 = vmatprep.subr.bf16.mxu1 %v2697_v12  ;;  %v2772_v11 = vld [vmem:[%s3944_s1 + $0x5d4] ss:$8 sps:$4 sm:$0xff]   ;;  %v2767_v12 = vld [vmem:[%s3944_s1 + $0x1d0] ss:$8 sps:$4 sm:$0xff]  }
  0x45   :  { %2008 = vmatprep.subr.bf16.mxu0 %v2700_v13  ;;  %1783 = vmatprep.mubr.bf16.mxu1 %v2264_v33  ;;  %v2770_v13 = vld [vmem:[%s3944_s1 + $0x5d0] ss:$8 sps:$4 sm:$0xff]   ;;  %v42_v33 = vld [vmem:[%s3945_s0 + $0xe8] sm:$0xff] }
  0x46   :  { %1995 = vmatprep.mubr.bf16.mxu0 %v2272_v39  ;;  %v2802_v39 = vld [vmem:[%s3944_s1 + $0x624] ss:$8 sps:$4 sm:$0xff]  }
  0x47   :  { %1797 = vmatpush1.bf16.msra.mxu1 %v2695_v14  ;;  %v2775_v14 = vld [vmem:[%s3944_s1 + $0x1e4] ss:$8 sps:$4 sm:$0xff]  }
  0x48   :  { %2009 = vmatpush1.bf16.msra.mxu0 %v2698_v15  ;;  %1798 = vmatprep.subr.bf16.mxu1 %v2703_v16  ;;  %v2778_v15 = vld [vmem:[%s3944_s1 + $0x5e4] ss:$8 sps:$4 sm:$0xff]   ;;  %v2773_v16 = vld [vmem:[%s3944_s1 + $0x1e0] ss:$8 sps:$4 sm:$0xff]  }
  0x49   :  { %2010 = vmatprep.subr.bf16.mxu0 %v2706_v17  ;;  %v2776_v17 = vld [vmem:[%s3944_s1 + $0x5e0] ss:$8 sps:$4 sm:$0xff]  }
  0x4a   :  { %1784 = vmatmul.mubr.bf16.gmra.mrb[4].mxu1 %v2263_v37  ;;  %v2794_v37 = vld [vmem:[%s3944_s1 + $0x610] ss:$8 sps:$4 sm:$0xff]  }
  0x4b   :  { %1799 = vmatpush1.bf16.msra.mxu1 %v2701_v18  ;;  %1996 = vmatmul.mubr.bf16.gmra.mrb[4].mxu0 %v2271_v40  ;;  %v2781_v18 = vld [vmem:[%s3944_s1 + $0x1f4] ss:$8 sps:$4 sm:$0xff]   ;;  %v2797_v40 = vld [vmem:[%s3944_s1 + $0x220] ss:$8 sps:$4 sm:$0xff]  }
  0x4c   :  { %2011 = vmatpush1.bf16.msra.mxu0 %v2704_v19  ;;  %1800 = vmatprep.subr.bf16.mxu1 %v2709_v20  ;;  %v2784_v19 = vld [vmem:[%s3944_s1 + $0x5f4] ss:$8 sps:$4 sm:$0xff]   ;;  %v2779_v20 = vld [vmem:[%s3944_s1 + $0x1f0] ss:$8 sps:$4 sm:$0xff]  }
  0x4d   :  { %2012 = vmatprep.subr.bf16.mxu0 %v2712_v21  ;;  %1826 = vmatprep.mubr.bf16.mxu1 %v2250_v48  ;;  %v2782_v21 = vld [vmem:[%s3944_s1 + $0x5f0] ss:$8 sps:$4 sm:$0xff]   ;;  %v2805_v48 = vld [vmem:[%s3944_s1 + $0x234] ss:$8 sps:$4 sm:$0xff]  }
  0x4e   :  { %2038 = vmatprep.mubr.bf16.mxu0 %v2258_v53  ;;  %v2806_v53 = vld [vmem:[%s3944_s1 + $0x630] ss:$8 sps:$4 sm:$0xff]  }
  0x4f   :  { %1801 = vmatpush1.bf16.msra.mxu1 %v2707_v22  ;;  %v2787_v22 = vld [vmem:[%s3944_s1 + $0x204] ss:$8 sps:$4 sm:$0xff]  }
  0x50   :  { %2013 = vmatpush1.bf16.msra.mxu0 %v2710_v23  ;;  %1802 = vmatprep.subr.bf16.mxu1 %v2715_v24  ;;  %v2790_v23 = vld [vmem:[%s3944_s1 + $0x604] ss:$8 sps:$4 sm:$0xff]   ;;  %v2785_v24 = vld [vmem:[%s3944_s1 + $0x200] ss:$8 sps:$4 sm:$0xff]  }
  0x51   :  { %2014 = vmatprep.subr.bf16.mxu0 %v2718_v25  ;;  %v2788_v25 = vld [vmem:[%s3944_s1 + $0x600] ss:$8 sps:$4 sm:$0xff]  }
  0x53   :  { %1803 = vmatpush1.bf16.msra.mxu1 %v2713_v26  ;;  %v30_v26 = vld [vmem:[%s3945_s0 + $0x88] sm:$0xff] }
  0x54   :  { %2015 = vmatpush1.bf16.msra.mxu0 %v2716_v27  ;;  %1804 = vmatprep.subr.bf16.mxu1 %v2721_v28  ;;  %v2249_v27 = vcombine.low %v3302_v44, %v3307_v45  ;;  %v2257_v28 = vcombine.low %v3320_v49, %v3325_v50  ;;  %v3491_v45 = vld [vmem:[%s3945_s0 + $0x50] sm:$0xff] }
  0x55   :  { %2016 = vmatprep.subr.bf16.mxu0 %v2724_v29  ;;  %v38_v29 = vld [vmem:[%s3945_s0 + $0xc8] sm:$0xff]  ;;  %v2808_v49 = vld [vmem:[%s3944_s1 + $0x634] ss:$8 sps:$4 sm:$0xff]  }
  0x57   :  { %1805 = vmatpush1.bf16.msra.mxu1 %v2719_v32  ;;  %v34_v32 = vld [vmem:[%s3945_s0 + $0xa8] sm:$0xff] }
  0x58   :  { %2017 = vmatpush1.bf16.msra.mxu0 %v2722_v34  ;;  %1806 = vmatprep.subr.bf16.mxu1 %v2727_v38  ;;  %v2266_v34 = vcombine.high %v30_v26, %v38_v29  ;;  %v2274_v35 = vcombine.high %v34_v32, %v42_v33  ;;  %v2799_v38 = vld [vmem:[%s3944_s1 + $0x224] ss:$8 sps:$4 sm:$0xff]   ;;  %v2273_v44 = vcombine.low %v34_v32, %v42_v33  ;;  %v2869_v32 = vld [vmem:[%s3944_s1 + $0x2e0] ss:$8 sps:$4 sm:$0xff]  }
  0x59   :  { %2018 = vmatprep.subr.bf16.mxu0 %v2730_v41  ;;  %v2800_v41 = vld [vmem:[%s3944_s1 + $0x620] ss:$8 sps:$4 sm:$0xff]  }
  0x5a   :  { %v2872_v33 = vld [vmem:[%s3944_s1 + $0x6e0] ss:$8 sps:$4 sm:$0xff]  }
  0x5b   :  { %1807 = vmatpush1.bf16.msra.mxu1 %v2725_v42  ;;  %v3486_v42 = vld [vmem:[%s3945_s0 + $0x10] sm:$0xff] }
  0x5c   :  { %2019 = vmatpush1.bf16.msra.mxu0 %v2728_v43  ;;  %1808 = vmatprep.subr.bf16.mxu1 %v2733_v46  ;;  %v2265_v43 = vcombine.low %v30_v26, %v38_v29  ;;  %v3496_v46 = vld [vmem:[%s3945_s0 + $0x30] sm:$0xff]  ;;  %v2252_v50 = vcombine.high %v3486_v42, %v3491_v45 }
  0x5d   :  { %2020 = vmatprep.subr.bf16.mxu0 %v2736_v47  ;;  %v3501_v47 = vld [vmem:[%s3945_s0 + $0x70] sm:$0xff] }
  0x5e   :  { %v2865_v26 = vld [vmem:[%s3944_s1 + $0x2d4] ss:$8 sps:$4 sm:$0xff]   ;;  %v2866_v29 = vld [vmem:[%s3944_s1 + $0x6d0] ss:$8 sps:$4 sm:$0xff]  }
  0x5f   :  { %1809 = vmatpush1.bf16.msra.mxu1 %v2731_v51  ;;  %v2260_v51 = vcombine.high %v3496_v46, %v3501_v47 }
  0x60   :  { %2021 = vmatpush1.bf16.msra.mxu0 %v2734_v52  ;;  %1810 = vmatprep.subr.bf16.mxu1 %v2739_v54  ;;  %v2803_v52 = vld [vmem:[%s3944_s1 + $0x230] ss:$8 sps:$4 sm:$0xff]   ;;  %v2811_v54 = vld [vmem:[%s3944_s1 + $0x244] ss:$8 sps:$4 sm:$0xff]  }
  0x61   :  { %2022 = vmatprep.subr.bf16.mxu0 %v2742_v55  ;;  %v2814_v55 = vld [vmem:[%s3944_s1 + $0x644] ss:$8 sps:$4 sm:$0xff]  }
  0x63   :  { %1811 = vmatpush1.bf16.msra.mxu1 %v2737_v56  ;;  %v2809_v56 = vld [vmem:[%s3944_s1 + $0x240] ss:$8 sps:$4 sm:$0xff]  }
  0x64   :  { %2023 = vmatpush1.bf16.msra.mxu0 %v2740_v57  ;;  %1812 = vmatprep.subr.bf16.mxu1 %v2745_v58  ;;  %v2812_v57 = vld [vmem:[%s3944_s1 + $0x640] ss:$8 sps:$4 sm:$0xff]   ;;  %v2817_v58 = vld [vmem:[%s3944_s1 + $0x254] ss:$8 sps:$4 sm:$0xff]  }
  0x65   :  { %2024 = vmatprep.subr.bf16.mxu0 %v2748_v59  ;;  %v2820_v59 = vld [vmem:[%s3944_s1 + $0x654] ss:$8 sps:$4 sm:$0xff]  }
  0x67   :  { %1813 = vmatpush1.bf16.msra.mxu1 %v2743_v60  ;;  %v2815_v60 = vld [vmem:[%s3944_s1 + $0x250] ss:$8 sps:$4 sm:$0xff]  }
  0x68   :  { %2025 = vmatpush1.bf16.msra.mxu0 %v2746_v61  ;;  %1814 = vmatprep.subr.bf16.mxu1 %v2751_v62  ;;  %v2818_v61 = vld [vmem:[%s3944_s1 + $0x650] ss:$8 sps:$4 sm:$0xff]   ;;  %v2823_v62 = vld [vmem:[%s3944_s1 + $0x264] ss:$8 sps:$4 sm:$0xff]  }
  0x69   :  { %2026 = vmatprep.subr.bf16.mxu0 %v2754_v63  ;;  %v2826_v63 = vld [vmem:[%s3944_s1 + $0x664] ss:$8 sps:$4 sm:$0xff]  }
  0x6b   :  { %1815 = vmatpush1.bf16.msra.mxu1 %v2749_v0  ;;  %v2821_v0 = vld [vmem:[%s3944_s1 + $0x260] ss:$8 sps:$4 sm:$0xff]  }
  0x6c   :  { %2027 = vmatpush1.bf16.msra.mxu0 %v2752_v1  ;;  %1816 = vmatprep.subr.bf16.mxu1 %v2757_v2  ;;  %v2824_v1 = vld [vmem:[%s3944_s1 + $0x660] ss:$8 sps:$4 sm:$0xff]   ;;  %v2829_v2 = vld [vmem:[%s3944_s1 + $0x274] ss:$8 sps:$4 sm:$0xff]  }
  0x6d   :  { %2028 = vmatprep.subr.bf16.mxu0 %v2760_v3  ;;  %v2832_v3 = vld [vmem:[%s3944_s1 + $0x674] ss:$8 sps:$4 sm:$0xff]  }
  0x6f   :  { %1817 = vmatpush1.bf16.msra.mxu1 %v2755_v4  ;;  %v2827_v4 = vld [vmem:[%s3944_s1 + $0x270] ss:$8 sps:$4 sm:$0xff]  }
  0x70   :  { %2029 = vmatpush1.bf16.msra.mxu0 %v2758_v5  ;;  %1818 = vmatprep.subr.bf16.mxu1 %v2763_v6  ;;  %v2830_v5 = vld [vmem:[%s3944_s1 + $0x670] ss:$8 sps:$4 sm:$0xff]   ;;  %v2835_v6 = vld [vmem:[%s3944_s1 + $0x284] ss:$8 sps:$4 sm:$0xff]  }
  0x71   :  { %2030 = vmatprep.subr.bf16.mxu0 %v2766_v7  ;;  %v2838_v7 = vld [vmem:[%s3944_s1 + $0x684] ss:$8 sps:$4 sm:$0xff]  }
  0x73   :  { %1819 = vmatpush1.bf16.msra.mxu1 %v2761_v8  ;;  %v2833_v8 = vld [vmem:[%s3944_s1 + $0x280] ss:$8 sps:$4 sm:$0xff]  }
  0x74   :  { %2031 = vmatpush1.bf16.msra.mxu0 %v2764_v9  ;;  %1820 = vmatprep.subr.bf16.mxu1 %v2769_v10  ;;  %v2836_v9 = vld [vmem:[%s3944_s1 + $0x680] ss:$8 sps:$4 sm:$0xff]   ;;  %v2841_v10 = vld [vmem:[%s3944_s1 + $0x294] ss:$8 sps:$4 sm:$0xff]  }
  0x75   :  { %2032 = vmatprep.subr.bf16.mxu0 %v2772_v11  ;;  %v2844_v11 = vld [vmem:[%s3944_s1 + $0x694] ss:$8 sps:$4 sm:$0xff]  }
  0x77   :  { %1821 = vmatpush1.bf16.msra.mxu1 %v2767_v12  ;;  %v2839_v12 = vld [vmem:[%s3944_s1 + $0x290] ss:$8 sps:$4 sm:$0xff]  }
  0x78   :  { %2033 = vmatpush1.bf16.msra.mxu0 %v2770_v13  ;;  %1822 = vmatprep.subr.bf16.mxu1 %v2775_v14  ;;  %v2842_v13 = vld [vmem:[%s3944_s1 + $0x690] ss:$8 sps:$4 sm:$0xff]   ;;  %v2847_v14 = vld [vmem:[%s3944_s1 + $0x2a4] ss:$8 sps:$4 sm:$0xff]  }
  0x79   :  { %2034 = vmatprep.subr.bf16.mxu0 %v2778_v15  ;;  %v2850_v15 = vld [vmem:[%s3944_s1 + $0x6a4] ss:$8 sps:$4 sm:$0xff]  }
  0x7b   :  { %1823 = vmatpush1.bf16.msra.mxu1 %v2773_v16  ;;  %v2845_v16 = vld [vmem:[%s3944_s1 + $0x2a0] ss:$8 sps:$4 sm:$0xff]  }
  0x7c   :  { %2035 = vmatpush1.bf16.msra.mxu0 %v2776_v17  ;;  %1824 = vmatprep.subr.bf16.mxu1 %v2781_v18  ;;  %v2848_v17 = vld [vmem:[%s3944_s1 + $0x6a0] ss:$8 sps:$4 sm:$0xff]   ;;  %v2853_v18 = vld [vmem:[%s3944_s1 + $0x2b4] ss:$8 sps:$4 sm:$0xff]  }
  0x7d   :  { %2036 = vmatprep.subr.bf16.mxu0 %v2784_v19  ;;  %v2856_v19 = vld [vmem:[%s3944_s1 + $0x6b4] ss:$8 sps:$4 sm:$0xff]  }
  0x7f   :  { %1825 = vmatpush1.bf16.msra.mxu1 %v2779_v20  ;;  %v2851_v20 = vld [vmem:[%s3944_s1 + $0x2b0] ss:$8 sps:$4 sm:$0xff]  }
  0x80   :  { %2037 = vmatpush1.bf16.msra.mxu0 %v2782_v21  ;;  %1847 = vmatprep.subr.bf16.mxu1 %v2787_v22  ;;  %v2854_v21 = vld [vmem:[%s3944_s1 + $0x6b0] ss:$8 sps:$4 sm:$0xff]   ;;  %v2859_v22 = vld [vmem:[%s3944_s1 + $0x2c4] ss:$8 sps:$4 sm:$0xff]  }
  0x81   :  { %2059 = vmatprep.subr.bf16.mxu0 %v2790_v23  ;;  %v2862_v23 = vld [vmem:[%s3944_s1 + $0x6c4] ss:$8 sps:$4 sm:$0xff]  }
  0x82   :  { %1827 = vmatmul.mubr.bf16.vlgmr.msra.gmra.mrb[0].mxu1 %v2249_v27  ;;  %v2868_v27 = vld [vmem:[%s3944_s1 + $0x6d4] ss:$8 sps:$4 sm:$0xff]  }
  0x83   :  { %2039 = vmatmul.mubr.bf16.vlgmr.msra.gmra.mrb[0].mxu0 %v2257_v28  ;;  %1848 = vmatpush1.bf16.msra.mxu1 %v2785_v24  ;;  %v2857_v24 = vld [vmem:[%s3944_s1 + $0x2c0] ss:$8 sps:$4 sm:$0xff]   ;;  %v2863_v28 = vld [vmem:[%s3944_s1 + $0x2d0] ss:$8 sps:$4 sm:$0xff]  }
  0x84   :  { %2060 = vmatpush1.bf16.msra.mxu0 %v2788_v25  ;;  %1849 = vmatprep.subr.bf16.mxu1 %v2793_v30  ;;  %v2860_v25 = vld [vmem:[%s3944_s1 + $0x6c0] ss:$8 sps:$4 sm:$0xff]   ;;  %v2871_v30 = vld [vmem:[%s3944_s1 + $0x2e4] ss:$8 sps:$4 sm:$0xff]  }
  0x85   :  { %2061 = vmatprep.subr.bf16.mxu0 %v2796_v31  ;;  %1836 = vmatprep.mubr.bf16.mxu1 %v2266_v34  ;;  %v2874_v31 = vld [vmem:[%s3944_s1 + $0x6e4] ss:$8 sps:$4 sm:$0xff]   ;;  %v2877_v34 = vld [vmem:[%s3944_s1 + $0x2f4] ss:$8 sps:$4 sm:$0xff]  }
  0x86   :  { %2048 = vmatprep.mubr.bf16.mxu0 %v2274_v35  ;;  %v2880_v35 = vld [vmem:[%s3944_s1 + $0x6f4] ss:$8 sps:$4 sm:$0xff]  }
  0x87   :  { %1850 = vmatpush1.bf16.msra.mxu1 %v2791_v36  ;;  %v2875_v36 = vld [vmem:[%s3944_s1 + $0x2f0] ss:$8 sps:$4 sm:$0xff]  }
  0x88   :  { %2062 = vmatpush1.bf16.msra.mxu0 %v2794_v37  ;;  %1851 = vmatprep.subr.bf16.mxu1 %v2799_v38  ;;  %v2878_v37 = vld [vmem:[%s3944_s1 + $0x6f0] ss:$8 sps:$4 sm:$0xff]   ;;  %v2883_v38 = vld [vmem:[%s3944_s1 + $0x304] ss:$8 sps:$4 sm:$0xff]  }
  0x89   :  { %2063 = vmatprep.subr.bf16.mxu0 %v2802_v39  ;;  %v2886_v39 = vld [vmem:[%s3944_s1 + $0x704] ss:$8 sps:$4 sm:$0xff]  }
  0x8a   :  { %1837 = vmatmul.mubr.bf16.gmra.mrb[4].mxu1 %v2265_v43  ;;  %v2259_v43 = vcombine.low %v3496_v46, %v3501_v47  ;;  %v2889_v46 = vld [vmem:[%s3944_s1 + $0x314] ss:$8 sps:$4 sm:$0xff]  }
  0x8b   :  { %2049 = vmatmul.mubr.bf16.gmra.mrb[4].mxu0 %v2273_v44  ;;  %1852 = vmatpush1.bf16.msra.mxu1 %v2797_v40  ;;  %v31_v40 = vld [vmem:[%s3945_s0 + $0x90] sm:$0xff] }
  0x8c   :  { %2064 = vmatpush1.bf16.msra.mxu0 %v2800_v41  ;;  %1853 = vmatprep.subr.bf16.mxu1 %v2805_v48  ;;  %v2251_v41 = vcombine.low %v3486_v42, %v3491_v45  ;;  %v39_v44 = vld [vmem:[%s3945_s0 + $0xd0] sm:$0xff]  ;;  %v2881_v42 = vld [vmem:[%s3944_s1 + $0x300] ss:$8 sps:$4 sm:$0xff]  }
  0x8d   :  { %2065 = vmatprep.subr.bf16.mxu0 %v2808_v49  ;;  %1879 = vmatprep.mubr.bf16.mxu1 %v2252_v50  ;;  %v35_v48 = vld [vmem:[%s3945_s0 + $0xb0] sm:$0xff]  ;;  %v2884_v45 = vld [vmem:[%s3944_s1 + $0x700] ss:$8 sps:$4 sm:$0xff]   ;;  %v2268_v50 = vcombine.high %v31_v40, %v39_v44 }
  0x8e   :  { %2091 = vmatprep.mubr.bf16.mxu0 %v2260_v51  ;;  %v43_v49 = vld [vmem:[%s3945_s0 + $0xf0] sm:$0xff] }
  0x8f   :  { %1854 = vmatpush1.bf16.msra.mxu1 %v2803_v52  ;;  %v2892_v47 = vld [vmem:[%s3944_s1 + $0x714] ss:$8 sps:$4 sm:$0xff]   ;;  %v2276_v51 = vcombine.high %v35_v48, %v43_v49  ;;  %v2887_v52 = vld [vmem:[%s3944_s1 + $0x310] ss:$8 sps:$4 sm:$0xff]  }
  0x90   :  { %2066 = vmatpush1.bf16.msra.mxu0 %v2806_v53  ;;  %1855 = vmatprep.subr.bf16.mxu1 %v2811_v54  ;;  %v2890_v53 = vld [vmem:[%s3944_s1 + $0x710] ss:$8 sps:$4 sm:$0xff]   ;;  %v2895_v54 = vld [vmem:[%s3944_s1 + $0x324] ss:$8 sps:$4 sm:$0xff]  }
  0x91   :  { %2067 = vmatprep.subr.bf16.mxu0 %v2814_v55  ;;  %v2898_v55 = vld [vmem:[%s3944_s1 + $0x724] ss:$8 sps:$4 sm:$0xff]  }
  0x93   :  { %1856 = vmatpush1.bf16.msra.mxu1 %v2809_v56  ;;  %v3712_v56 = vld [vmem:[%s3945_s0 + $0x18] sm:$0xff] }
  0x94   :  { %2068 = vmatpush1.bf16.msra.mxu0 %v2812_v57  ;;  %1857 = vmatprep.subr.bf16.mxu1 %v2817_v58  ;;  %v2267_v57 = vcombine.low %v31_v40, %v39_v44  ;;  %v2275_v58 = vcombine.low %v35_v48, %v43_v49  ;;  %v2953_v40 = vld [vmem:[%s3944_s1 + $0x3c0] ss:$8 sps:$4 sm:$0xff]   ;;  %v2964_v44 = vld [vmem:[%s3944_s1 + $0x7d4] ss:$8 sps:$4 sm:$0xff]   ;;  %v2959_v48 = vld [vmem:[%s3944_s1 + $0x3d0] ss:$8 sps:$4 sm:$0xff]  }
  0x95   :  { %2069 = vmatprep.subr.bf16.mxu0 %v2820_v59  ;;  %v3717_v59 = vld [vmem:[%s3945_s0 + $0x58] sm:$0xff] }
  0x96   :  { %v2962_v49 = vld [vmem:[%s3944_s1 + $0x7d0] ss:$8 sps:$4 sm:$0xff]  }
  0x97   :  { %1858 = vmatpush1.bf16.msra.mxu1 %v2815_v60  ;;  %v3722_v60 = vld [vmem:[%s3945_s0 + $0x38] sm:$0xff] }
  0x98   :  { %2070 = vmatpush1.bf16.msra.mxu0 %v2818_v61  ;;  %1859 = vmatprep.subr.bf16.mxu1 %v2823_v62  ;;  %v3727_v61 = vld [vmem:[%s3945_s0 + $0x78] sm:$0xff]  ;;  %v2893_v62 = vld [vmem:[%s3944_s1 + $0x320] ss:$8 sps:$4 sm:$0xff]  }
  0x99   :  { %2071 = vmatprep.subr.bf16.mxu0 %v2826_v63  ;;  %v2896_v63 = vld [vmem:[%s3944_s1 + $0x720] ss:$8 sps:$4 sm:$0xff]  }
  0x9b   :  { %1860 = vmatpush1.bf16.msra.mxu1 %v2821_v0  ;;  %v2901_v0 = vld [vmem:[%s3944_s1 + $0x334] ss:$8 sps:$4 sm:$0xff]  }
  0x9c   :  { %2072 = vmatpush1.bf16.msra.mxu0 %v2824_v1  ;;  %1861 = vmatprep.subr.bf16.mxu1 %v2829_v2  ;;  %v2904_v1 = vld [vmem:[%s3944_s1 + $0x734] ss:$8 sps:$4 sm:$0xff]   ;;  %v2254_v2 = vcombine.high %v3712_v56, %v3717_v59 }
  0x9d   :  { %2073 = vmatprep.subr.bf16.mxu0 %v2832_v3  ;;  %v2262_v3 = vcombine.high %v3722_v60, %v3727_v61 }
  0x9f   :  { %1862 = vmatpush1.bf16.msra.mxu1 %v2827_v4  ;;  %v2899_v4 = vld [vmem:[%s3944_s1 + $0x330] ss:$8 sps:$4 sm:$0xff]  }
  0xa0   :  { %2074 = vmatpush1.bf16.msra.mxu0 %v2830_v5  ;;  %1863 = vmatprep.subr.bf16.mxu1 %v2835_v6  ;;  %v2902_v5 = vld [vmem:[%s3944_s1 + $0x730] ss:$8 sps:$4 sm:$0xff]   ;;  %v2907_v6 = vld [vmem:[%s3944_s1 + $0x344] ss:$8 sps:$4 sm:$0xff]  }
  0xa1   :  { %2075 = vmatprep.subr.bf16.mxu0 %v2838_v7  ;;  %v2910_v7 = vld [vmem:[%s3944_s1 + $0x744] ss:$8 sps:$4 sm:$0xff]  }
  0xa3   :  { %1864 = vmatpush1.bf16.msra.mxu1 %v2833_v8  ;;  %v2905_v8 = vld [vmem:[%s3944_s1 + $0x340] ss:$8 sps:$4 sm:$0xff]  }
  0xa4   :  { %2076 = vmatpush1.bf16.msra.mxu0 %v2836_v9  ;;  %1865 = vmatprep.subr.bf16.mxu1 %v2841_v10  ;;  %v2908_v9 = vld [vmem:[%s3944_s1 + $0x740] ss:$8 sps:$4 sm:$0xff]   ;;  %v2913_v10 = vld [vmem:[%s3944_s1 + $0x354] ss:$8 sps:$4 sm:$0xff]  }
  0xa5   :  { %2077 = vmatprep.subr.bf16.mxu0 %v2844_v11  ;;  %v2916_v11 = vld [vmem:[%s3944_s1 + $0x754] ss:$8 sps:$4 sm:$0xff]  }
  0xa7   :  { %1866 = vmatpush1.bf16.msra.mxu1 %v2839_v12  ;;  %v2911_v12 = vld [vmem:[%s3944_s1 + $0x350] ss:$8 sps:$4 sm:$0xff]  }
  0xa8   :  { %2078 = vmatpush1.bf16.msra.mxu0 %v2842_v13  ;;  %1867 = vmatprep.subr.bf16.mxu1 %v2847_v14  ;;  %v2914_v13 = vld [vmem:[%s3944_s1 + $0x750] ss:$8 sps:$4 sm:$0xff]   ;;  %v2919_v14 = vld [vmem:[%s3944_s1 + $0x364] ss:$8 sps:$4 sm:$0xff]  }
  0xa9   :  { %2079 = vmatprep.subr.bf16.mxu0 %v2850_v15  ;;  %v2922_v15 = vld [vmem:[%s3944_s1 + $0x764] ss:$8 sps:$4 sm:$0xff]  }
  0xab   :  { %1868 = vmatpush1.bf16.msra.mxu1 %v2845_v16  ;;  %v2917_v16 = vld [vmem:[%s3944_s1 + $0x360] ss:$8 sps:$4 sm:$0xff]  }
  0xac   :  { %2080 = vmatpush1.bf16.msra.mxu0 %v2848_v17  ;;  %1869 = vmatprep.subr.bf16.mxu1 %v2853_v18  ;;  %v2920_v17 = vld [vmem:[%s3944_s1 + $0x760] ss:$8 sps:$4 sm:$0xff]   ;;  %v2925_v18 = vld [vmem:[%s3944_s1 + $0x374] ss:$8 sps:$4 sm:$0xff]  }
  0xad   :  { %2081 = vmatprep.subr.bf16.mxu0 %v2856_v19  ;;  %v2928_v19 = vld [vmem:[%s3944_s1 + $0x774] ss:$8 sps:$4 sm:$0xff]  }
  0xaf   :  { %1870 = vmatpush1.bf16.msra.mxu1 %v2851_v20  ;;  %v2923_v20 = vld [vmem:[%s3944_s1 + $0x370] ss:$8 sps:$4 sm:$0xff]  }
  0xb0   :  { %2082 = vmatpush1.bf16.msra.mxu0 %v2854_v21  ;;  %1871 = vmatprep.subr.bf16.mxu1 %v2859_v22  ;;  %v2926_v21 = vld [vmem:[%s3944_s1 + $0x770] ss:$8 sps:$4 sm:$0xff]   ;;  %v2931_v22 = vld [vmem:[%s3944_s1 + $0x384] ss:$8 sps:$4 sm:$0xff]  }
  0xb1   :  { %2083 = vmatprep.subr.bf16.mxu0 %v2862_v23  ;;  %v2934_v23 = vld [vmem:[%s3944_s1 + $0x784] ss:$8 sps:$4 sm:$0xff]  }
  0xb3   :  { %1872 = vmatpush1.bf16.msra.mxu1 %v2857_v24  ;;  %v2929_v24 = vld [vmem:[%s3944_s1 + $0x380] ss:$8 sps:$4 sm:$0xff]  }
  0xb4   :  { %2084 = vmatpush1.bf16.msra.mxu0 %v2860_v25  ;;  %1873 = vmatprep.subr.bf16.mxu1 %v2865_v26  ;;  %v2932_v25 = vld [vmem:[%s3944_s1 + $0x780] ss:$8 sps:$4 sm:$0xff]   ;;  %v2937_v26 = vld [vmem:[%s3944_s1 + $0x394] ss:$8 sps:$4 sm:$0xff]  }
  0xb5   :  { %2085 = vmatprep.subr.bf16.mxu0 %v2868_v27  ;;  %v2940_v27 = vld [vmem:[%s3944_s1 + $0x794] ss:$8 sps:$4 sm:$0xff]  }
  0xb7   :  { %1874 = vmatpush1.bf16.msra.mxu1 %v2863_v28  ;;  %v2935_v28 = vld [vmem:[%s3944_s1 + $0x390] ss:$8 sps:$4 sm:$0xff]  }
  0xb8   :  { %2086 = vmatpush1.bf16.msra.mxu0 %v2866_v29  ;;  %1875 = vmatprep.subr.bf16.mxu1 %v2871_v30  ;;  %v2938_v29 = vld [vmem:[%s3944_s1 + $0x790] ss:$8 sps:$4 sm:$0xff]   ;;  %v2943_v30 = vld [vmem:[%s3944_s1 + $0x3a4] ss:$8 sps:$4 sm:$0xff]  }
  0xb9   :  { %2087 = vmatprep.subr.bf16.mxu0 %v2874_v31  ;;  %v2946_v31 = vld [vmem:[%s3944_s1 + $0x7a4] ss:$8 sps:$4 sm:$0xff]  }
  0xbb   :  { %1876 = vmatpush1.bf16.msra.mxu1 %v2869_v32  ;;  %v2941_v32 = vld [vmem:[%s3944_s1 + $0x3a0] ss:$8 sps:$4 sm:$0xff]  }
  0xbc   :  { %2088 = vmatpush1.bf16.msra.mxu0 %v2872_v33  ;;  %1877 = vmatprep.subr.bf16.mxu1 %v2877_v34  ;;  %v2944_v33 = vld [vmem:[%s3944_s1 + $0x7a0] ss:$8 sps:$4 sm:$0xff]   ;;  %v2949_v34 = vld [vmem:[%s3944_s1 + $0x3b4] ss:$8 sps:$4 sm:$0xff]  }
  0xbd   :  { %2089 = vmatprep.subr.bf16.mxu0 %v2880_v35  ;;  %v2952_v35 = vld [vmem:[%s3944_s1 + $0x7b4] ss:$8 sps:$4 sm:$0xff]  }
  0xbf   :  { %1878 = vmatpush1.bf16.msra.mxu1 %v2875_v36  ;;  %v2947_v36 = vld [vmem:[%s3944_s1 + $0x3b0] ss:$8 sps:$4 sm:$0xff]  }
  0xc0   :  { %2090 = vmatpush1.bf16.msra.mxu0 %v2878_v37  ;;  %1900 = vmatprep.subr.bf16.mxu1 %v2883_v38  ;;  %v2950_v37 = vld [vmem:[%s3944_s1 + $0x7b0] ss:$8 sps:$4 sm:$0xff]   ;;  %v2955_v38 = vld [vmem:[%s3944_s1 + $0x3c4] ss:$8 sps:$4 sm:$0xff]  }
  0xc1   :  { %2112 = vmatprep.subr.bf16.mxu0 %v2886_v39  ;;  %v2958_v39 = vld [vmem:[%s3944_s1 + $0x7c4] ss:$8 sps:$4 sm:$0xff]  }
  0xc2   :  { %1880 = vmatmul.mubr.bf16.vlgmr.msra.gmra.mrb[0].mxu1 %v2251_v41  ;;  %v2956_v41 = vld [vmem:[%s3944_s1 + $0x7c0] ss:$8 sps:$4 sm:$0xff]  }
  0xc3   :  { %2092 = vmatmul.mubr.bf16.vlgmr.msra.gmra.mrb[0].mxu0 %v2259_v43  ;;  %1901 = vmatpush1.bf16.msra.mxu1 %v2881_v42  ;;  %v2961_v43 = vld [vmem:[%s3944_s1 + $0x3d4] ss:$8 sps:$4 sm:$0xff]   ;;  %v2967_v42 = vld [vmem:[%s3944_s1 + $0x3e4] ss:$8 sps:$4 sm:$0xff]  }
  0xc4   :  { %2113 = vmatpush1.bf16.msra.mxu0 %v2884_v45  ;;  %1902 = vmatprep.subr.bf16.mxu1 %v2889_v46  ;;  %v2970_v45 = vld [vmem:[%s3944_s1 + $0x7e4] ss:$8 sps:$4 sm:$0xff]   ;;  %v2965_v46 = vld [vmem:[%s3944_s1 + $0x3e0] ss:$8 sps:$4 sm:$0xff]  }
  0xc5   :  { %2114 = vmatprep.subr.bf16.mxu0 %v2892_v47  ;;  %1889 = vmatprep.mubr.bf16.mxu1 %v2268_v50  ;;  %v2968_v47 = vld [vmem:[%s3944_s1 + $0x7e0] ss:$8 sps:$4 sm:$0xff]   ;;  %v2973_v50 = vld [vmem:[%s3944_s1 + $0x3f4] ss:$8 sps:$4 sm:$0xff]  }
  0xc6   :  { %2101 = vmatprep.mubr.bf16.mxu0 %v2276_v51  ;;  %v2976_v51 = vld [vmem:[%s3944_s1 + $0x7f4] ss:$8 sps:$4 sm:$0xff]  }
  0xc7   :  { %1903 = vmatpush1.bf16.msra.mxu1 %v2887_v52  ;;  %v2971_v52 = vld [vmem:[%s3944_s1 + $0x3f0] ss:$8 sps:$4 sm:$0xff]  }
  0xc8   :  { %2115 = vmatpush1.bf16.msra.mxu0 %v2890_v53  ;;  %1904 = vmatprep.subr.bf16.mxu1 %v2895_v54  ;;  %v2974_v53 = vld [vmem:[%s3944_s1 + $0x7f0] ss:$8 sps:$4 sm:$0xff]  }
  0xc9   :  { %2116 = vmatprep.subr.bf16.mxu0 %v2898_v55  ;;  %v32_v54 = vld [vmem:[%s3945_s0 + $0x98] sm:$0xff] }
  0xca   :  { %1890 = vmatmul.mubr.bf16.gmra.mrb[4].mxu1 %v2267_v57  ;;  %v40_v55 = vld [vmem:[%s3945_s0 + $0xd8] sm:$0xff] }
  0xcb   :  { %2102 = vmatmul.mubr.bf16.gmra.mrb[4].mxu0 %v2275_v58  ;;  %1905 = vmatpush1.bf16.msra.mxu1 %v2893_v62  ;;  %v36_v57 = vld [vmem:[%s3945_s0 + $0xb8] sm:$0xff]  ;;  %v2253_v62 = vcombine.low %v3712_v56, %v3717_v59 }
  0xcc   :  { %2117 = vmatpush1.bf16.msra.mxu0 %v2896_v63  ;;  %1906 = vmatprep.subr.bf16.mxu1 %v2901_v0  ;;  %v44_v58 = vld [vmem:[%s3945_s0 + $0xf8] sm:$0xff]  ;;  %v2261_v63 = vcombine.low %v3722_v60, %v3727_v61  ;;  %v2270_v0 = vcombine.high %v32_v54, %v40_v55 }
  0xcd   :  { %2118 = vmatprep.subr.bf16.mxu0 %v2904_v1  ;;  %1932 = vmatprep.mubr.bf16.mxu1 %v2254_v2  ;;  %v2278_v1 = vcombine.high %v36_v57, %v44_v58  ;;  %v2269_v2 = vcombine.low %v32_v54, %v40_v55 }
  0xce   :  { %2144 = vmatprep.mubr.bf16.mxu0 %v2262_v3  ;;  %v2277_v3 = vcombine.low %v36_v57, %v44_v58  ;;  %v2978_v58 = vmov 1983009808  }
  0xcf   :  { %1907 = vmatpush1.bf16.msra.mxu1 %v2899_v4  ;;  %v2977_v4 = vmov 0.0  }
  0xd0   :  { %2119 = vmatpush1.bf16.msra.mxu0 %v2902_v5  ;;  %1908 = vmatprep.subr.bf16.mxu1 %v2907_v6  ;;  %2177 = vst [vmem:[%s3946_s3] sm:$0xf] %v2977_v4 }
  0xd1   :  { %2120 = vmatprep.subr.bf16.mxu0 %v2910_v7 }
  0xd3   :  { %1909 = vmatpush1.bf16.msra.mxu1 %v2905_v8 }
  0xd4   :  { %2121 = vmatpush1.bf16.msra.mxu0 %v2908_v9  ;;  %1910 = vmatprep.subr.bf16.mxu1 %v2913_v10 }
  0xd5   :  { %2122 = vmatprep.subr.bf16.mxu0 %v2916_v11 }
  0xd7   :  { %1911 = vmatpush1.bf16.msra.mxu1 %v2911_v12 }
  0xd8   :  { %2123 = vmatpush1.bf16.msra.mxu0 %v2914_v13  ;;  %1912 = vmatprep.subr.bf16.mxu1 %v2919_v14 }
  0xd9   :  { %2124 = vmatprep.subr.bf16.mxu0 %v2922_v15 }
  0xdb   :  { %1913 = vmatpush1.bf16.msra.mxu1 %v2917_v16 }
  0xdc   :  { %2125 = vmatpush1.bf16.msra.mxu0 %v2920_v17  ;;  %1914 = vmatprep.subr.bf16.mxu1 %v2925_v18 }
  0xdd   :  { %2126 = vmatprep.subr.bf16.mxu0 %v2928_v19 }
  0xdf   :  { %1915 = vmatpush1.bf16.msra.mxu1 %v2923_v20 }
  0xe0   :  { %2127 = vmatpush1.bf16.msra.mxu0 %v2926_v21  ;;  %1916 = vmatprep.subr.bf16.mxu1 %v2931_v22 }
  0xe1   :  { %2128 = vmatprep.subr.bf16.mxu0 %v2934_v23 }
  0xe3   :  { %1917 = vmatpush1.bf16.msra.mxu1 %v2929_v24 }
  0xe4   :  { %2129 = vmatpush1.bf16.msra.mxu0 %v2932_v25  ;;  %1918 = vmatprep.subr.bf16.mxu1 %v2937_v26 }
  0xe5   :  { %2130 = vmatprep.subr.bf16.mxu0 %v2940_v27 }
  0xe7   :  { %1919 = vmatpush1.bf16.msra.mxu1 %v2935_v28 }
  0xe8   :  { %2131 = vmatpush1.bf16.msra.mxu0 %v2938_v29  ;;  %1920 = vmatprep.subr.bf16.mxu1 %v2943_v30 }
  0xe9   :  { %2132 = vmatprep.subr.bf16.mxu0 %v2946_v31 }
  0xeb   :  { %1921 = vmatpush1.bf16.msra.mxu1 %v2941_v32 }
  0xec   :  { %2133 = vmatpush1.bf16.msra.mxu0 %v2944_v33  ;;  %1922 = vmatprep.subr.bf16.mxu1 %v2949_v34 }
  0xed   :  { %2134 = vmatprep.subr.bf16.mxu0 %v2952_v35 }
  0xef   :  { %1923 = vmatpush1.bf16.msra.mxu1 %v2947_v36 }
  0xf0   :  { %2135 = vmatpush1.bf16.msra.mxu0 %v2950_v37  ;;  %1924 = vmatprep.subr.bf16.mxu1 %v2955_v38 }
  0xf1   :  { %2136 = vmatprep.subr.bf16.mxu0 %v2958_v39 }
  0xf3   :  { %1925 = vmatpush1.bf16.msra.mxu1 %v2953_v40 }
  0xf4   :  { %2137 = vmatpush1.bf16.msra.mxu0 %v2956_v41  ;;  %1926 = vmatprep.subr.bf16.mxu1 %v2961_v43 }
  0xf5   :  { %2138 = vmatprep.subr.bf16.mxu0 %v2964_v44 }
  0xf7   :  { %1927 = vmatpush1.bf16.msra.mxu1 %v2959_v48 }
  0xf8   :  { %2139 = vmatpush1.bf16.msra.mxu0 %v2962_v49  ;;  %1928 = vmatprep.subr.bf16.mxu1 %v2967_v42 }
  0xf9   :  { %2140 = vmatprep.subr.bf16.mxu0 %v2970_v45 }
  0xfb   :  { %1929 = vmatpush1.bf16.msra.mxu1 %v2965_v46 }
  0xfc   :  { %2141 = vmatpush1.bf16.msra.mxu0 %v2968_v47  ;;  %1930 = vmatprep.subr.bf16.mxu1 %v2973_v50 }
  0xfd   :  { %2142 = vmatprep.subr.bf16.mxu0 %v2976_v51 }
  0xff   :  { %1931 = vmatpush1.bf16.msra.mxu1 %v2971_v52 }
 0x100   :  { %2143 = vmatpush1.bf16.msra.mxu0 %v2974_v53 }
 0x102   :  { %1933 = vmatmul.mubr.bf16.vlgmr.msra.gmra.mrb[0].mxu1 %v2253_v62  ;;  %v2230_v62 = vunpack.c.l.s4 %v2978_v58 }
 0x103   :  { %2145 = vmatmul.mubr.bf16.vlgmr.msra.gmra.mrb[0].mxu0 %v2261_v63  ;;  %1942 = vmatprep.mubr.bf16.mxu1 %v2270_v0  ;;  %v2232_v63 = vlaneseq }
 0x104   :  { %2154 = vmatprep.mubr.bf16.mxu0 %v2278_v1 }
 0x10a   :  { %1943 = vmatmul.mubr.bf16.gmra.mrb[4].mxu1 %v2269_v2 }
 0x10b   :  { %2155 = vmatmul.mubr.bf16.gmra.mrb[4].mxu0 %v2277_v3 }
 0x1d5   :  { %v1934_v56 = vpop.f32.mrb[0].mxu1 }
 0x1d6   :  { %v2146_v59 = vpop.f32.mrb[0].mxu0  ;;  %v1936_v61 = vpop.f32.mrb[1].mxu1 }
 0x1d7   :  { %v2535_v60 = vadd.f32 %v2146_v59, %v1934_v56  ;;  %v2148_v5 = vpop.f32.mrb[1].mxu0  ;;  %v1938_v7 = vpop.f32.mrb[2].mxu1 }
 0x1d8   :  { %v2536_v6 = vadd.f32 %v2148_v5, %v1936_v61  ;;  %v2150_v8 = vpop.f32.mrb[2].mxu0  ;;  %v1940_v10 = vpop.f32.mrb[3].mxu1  ;;  %v2233_v61 = vshrl.u32 %v2232_v63, 7 }
 0x1d9   :  { %2165 = vst [vmem:[%s3947_s2] sm:$0xff] %v2535_v60  ;;  %v2537_v9 = vadd.f32 %v2150_v8, %v1938_v7  ;;  %v2152_v11 = vpop.f32.mrb[3].mxu0  ;;  %v2196_v13 = vmul.f32 %v2535_v60, %v2535_v60 }
 0x1da   :  { %2166 = vst [vmem:[%s3947_s2 + $0x8] sm:$0xff] %v2536_v6  ;;  %v2538_v12 = vadd.f32 %v2152_v11, %v1940_v10  ;;  %v2197_v16 = vmul.f32 %v2536_v6, %v2536_v6 }
 0x1db   :  { %2167 = vst [vmem:[%s3947_s2 + $0x10] sm:$0xff] %v2537_v9  ;;  %v2178_v14 = vadd.f32 %v2537_v9, %v2535_v60  ;;  %v2198_v15 = vmul.f32 %v2537_v9, %v2537_v9  ;;  %v2231_v60 = vunpack.c.0.s8 %v2230_v62 }
 0x1dc   :  { %2168 = vst [vmem:[%s3947_s2 + $0x18] sm:$0xff] %v2538_v12  ;;  %v2187_v17 = vadd.f32 %v2538_v12, %v2536_v6  ;;  %v2199_v18 = vmul.f32 %v2538_v12, %v2538_v12 }
 0x1dd   :  { %v2204_v19 = vadd.f32 %v2198_v15, %v2196_v13  ;;  %v1944_v21 = vpop.f32.mrb[4].mxu1  ;;  %v2234_v11 = vsub.s32 %v2231_v60, %v2233_v61 }
 0x1de   :  { %v2213_v20 = vadd.f32 %v2199_v18, %v2197_v16  ;;  %v2156_v22 = vpop.f32.mrb[4].mxu0  ;;  %v1946_v24 = vpop.f32.mrb[5].mxu1 }
 0x1df   :  { %v2539_v23 = vadd.f32 %v2156_v22, %v1944_v21  ;;  %v2158_v25 = vpop.f32.mrb[5].mxu0  ;;  %v1948_v27 = vpop.f32.mrb[6].mxu1 }
 0x1e0   :  { %v2540_v26 = vadd.f32 %v2158_v25, %v1946_v24  ;;  %v2160_v28 = vpop.f32.mrb[6].mxu0  ;;  %v1950_v32 = vpop.f32.mrb[7].mxu1 }
 0x1e1   :  { %2169 = vst [vmem:[%s3947_s2 + $0x20] sm:$0xff] %v2539_v23  ;;  %v2179_v29 = vadd.f32 %v2539_v23, %v2178_v14  ;;  %v2200_v30 = vmul.f32 %v2539_v23, %v2539_v23  ;;  %v2541_v31 = vadd.f32 %v2160_v28, %v1948_v27  ;;  %v2162_v33 = vpop.f32.mrb[7].mxu0  ;;  %v2225_v14 = vld [vmem:[%s3946_s3] sm:$0xf] }
 0x1e2   :  { %2170 = vst [vmem:[%s3947_s2 + $0x28] sm:$0xff] %v2540_v26  ;;  %v2188_v34 = vadd.f32 %v2540_v26, %v2187_v17  ;;  %v2201_v35 = vmul.f32 %v2540_v26, %v2540_v26  ;;  %v2542_v36 = vadd.f32 %v2162_v33, %v1950_v32 }
 0x1e3   :  { %v2205_v37 = vadd.f32 %v2204_v19, %v2200_v30  ;;  %2171 = vst [vmem:[%s3947_s2 + $0x30] sm:$0xff] %v2541_v31  ;;  %v2180_v38 = vadd.f32 %v2541_v31, %v2179_v29  ;;  %v2202_v39 = vmul.f32 %v2541_v31, %v2541_v31 }
 0x1e4   :  { %v2214_v40 = vadd.f32 %v2213_v20, %v2201_v35  ;;  %2172 = vst [vmem:[%s3947_s2 + $0x38] sm:$0xff] %v2542_v36  ;;  %v2189_v41 = vadd.f32 %v2542_v36, %v2188_v34  ;;  %v2203_v43 = vmul.f32 %v2542_v36, %v2542_v36 }
 0x1e5   :  { %v2181_v44 = vrot.slane %v2180_v38, 4  ;;  %v2206_v48 = vadd.f32 %v2205_v37, %v2202_v39 }
 0x1e6   :  { %v2190_v49 = vrot.slane %v2189_v41, 4  ;;  %v2215_v42 = vadd.f32 %v2214_v40, %v2203_v43 }
 0x1e7   :  { %v2182_v45 = vadd.f32 %v2181_v44, %v2180_v38  ;;  %v2207_v46 = vrot.slane %v2206_v48, 4 }
 0x1e8   :  { %v2191_v47 = vadd.f32 %v2190_v49, %v2189_v41  ;;  %v2216_v50 = vrot.slane %v2215_v42, 4 }
 0x1e9   :  { %v2183_v51 = vrot.slane %v2182_v45, 2  ;;  %v2208_v52 = vadd.f32 %v2207_v46, %v2206_v48 }
 0x1ea   :  { %v2192_v53 = vrot.slane %v2191_v47, 2  ;;  %v2217_v54 = vadd.f32 %v2216_v50, %v2215_v42 }
 0x1eb   :  { %v2184_v55 = vadd.f32 %v2183_v51, %v2182_v45  ;;  %v2209_v57 = vrot.slane %v2208_v52, 2 }
 0x1ec   :  { %v2193_v0 = vadd.f32 %v2192_v53, %v2191_v47  ;;  %v2218_v1 = vrot.slane %v2217_v54, 2 }
 0x1ed   :  { %v2185_v2 = vrot.slane %v2184_v55, 1  ;;  %v2210_v3 = vadd.f32 %v2209_v57, %v2208_v52 }
 0x1ee   :  { %v2194_v4 = vrot.slane %v2193_v0, 1  ;;  %v2219_v56 = vadd.f32 %v2218_v1, %v2217_v54 }
 0x1ef   :  { %v2211_v59 = vrot.slane %v2210_v3, 1  ;;  %v2186_v6 = vadd.f32 %v2185_v2, %v2184_v55 }
 0x1f0   :  { %v2220_v5 = vrot.slane %v2219_v56, 1  ;;  %v2195_v8 = vadd.f32 %v2194_v4, %v2193_v0 }
 0x1f1   :  { %v2212_v7 = vadd.f32 %v2211_v59, %v2210_v3 }
 0x1f2   :  { %v2221_v9 = vadd.f32 %v2220_v5, %v2219_v56 }
 0x1f3   :  { %v2223_v10 = vsel %vm2222_vm0, %v2186_v6, %v2212_v7 }
 0x1f4   :  { %v2224_v12 = vsel %vm2222_vm0, %v2195_v8, %v2221_v9 }
 0x1f5   :  { %v2228_v13 = vcombine.low %v2223_v10, %v2224_v12 }
 0x1f7   :  { %v2235_v15 = vrot.slane %v2228_v13, %v2234_v11 }
 0x1f9   :  { %v2237_v16 = vadd.f32 %v2235_v15, %v2225_v14 }
 0x1fb   :  { %2238 = vst [vmem:[%s3946_s3] sm:$0xf] %v2237_v16 }

// kernel: discriminator_forward.12
= control target key start
LH: loop header
LB: loop body
LE: loop exit
PB: predicated region body
PF: predicated region fallthrough
CT: control target
= control target key end

     0   :  { %v144_v6 = vmov 1966171168   ;;  %v31_v8 = vlaneseq  ;;  %v145_v11 = vmov 857870592   ;;  %s228_s1 = inlined_call_operand.vmem [shape: f32[2,256], index: 1, kind: input, shape index: {}]   ;;  %s229_s2 = inlined_call_operand.vmem [shape: f32[1,256], index: 2, kind: input, shape index: {}]   ;;  %s230_s0 = inlined_call_operand.vmem [shape: f32[32,256], index: 0, kind: input, shape index: {}]   ;;  %s231_s3 = inlined_call_operand.vmem [shape: f32[1,256], index: 3, kind: input, shape index: {}]   ;;  %s232_s4 = inlined_call_operand.vmem [shape: f32[32,256], index: 4, kind: output, shape index: {}]  }
   0x1   :  { %v17_v0 = vld [vmem:[%s228_s1] sm:$0xf]  ;;  %v29_v7 = vunpack.c.l.s4 %v144_v6  ;;  %v41_v12 = vunpack.c.l.s4 %v145_v11  ;;  %v60_v28 = vld [vmem:[%s230_s0 + $0x8] sm:$0xff]  ;;  %v61_v30 = vld [vmem:[%s230_s0 + $0x10] sm:$0xff] }
   0x2   :  { %v18_v1 = vmul.f32 0.03125, %v17_v0  ;;  %v32_v10 = vshrl.u32 %v31_v8, 7  ;;  %v24_v17 = vld [vmem:[%s229_s2] sm:$0x3]  ;;  %v62_v31 = vld [vmem:[%s230_s0 + $0x18] sm:$0xff]  ;;  %v64_v34 = vld [vmem:[%s230_s0 + $0x28] sm:$0xff] }
   0x3   :  { %v30_v9 = vunpack.c.0.s8 %v29_v7  ;;  %v42_v14 = vunpack.c.0.s8 %v41_v12  ;;  %v38_v25 = vld [vmem:[%s231_s3] sm:$0x3]  ;;  %v65_v35 = vld [vmem:[%s230_s0 + $0x30] sm:$0xff]  ;;  %v66_v36 = vld [vmem:[%s230_s0 + $0x38] sm:$0xff] }
   0x4   :  { %v19_v2 = vmul.f32 %v18_v1, %v18_v1  ;;  %v69_v20 = vsub.s32 0, %v32_v10  ;;  %v73_v22 = vsub.s32 1, %v32_v10  ;;  %v59_v27 = vld [vmem:[%s230_s0] sm:$0xff] }
   0x5   :  { %v33_v13 = vsub.s32 %v30_v9, %v32_v10  ;;  %v45_v19 = vsub.s32 %v42_v14, %v32_v10  ;;  %v63_v32 = vld [vmem:[%s230_s0 + $0x20] sm:$0xff] }
   0x6   :  { %v21_v3 = vrot.slane %v19_v2, 7 }
   0x8   :  { %v23_v4 = vsub.f32 %v18_v1, %v21_v3 }
   0xa   :  { %v25_v5 = vadd.f32 1e-05, %v23_v4 }
   0xc   :  { %142 = vrsqrt.f32 %v25_v5 }
  0x16   :  { %v143_v15 = vpop.eup %142 }
  0x17   :  { %v34_v16 = vrot.slane %v143_v15, %v33_v13 }
  0x19   :  { %v35_v18 = vcombine.high %v34_v16, %v34_v16 }
  0x1b   :  { %v37_v21 = vmul.f32 %v35_v18, %v24_v17 }
  0x1d   :  { %v46_v23 = vrot.slane %v37_v21, %v45_v19  ;;  %v70_v24 = vrot.slane %v37_v21, %v69_v20  ;;  %v74_v29 = vrot.slane %v37_v21, %v73_v22 }
  0x1f   :  { %v48_v26 = vmul.f32 %v46_v23, %v18_v1  ;;  %v77_v37 = vmul.f32 %v70_v24, %v59_v27  ;;  %v78_v39 = vmul.f32 %v74_v29, %v60_v28  ;;  %v79_v40 = vmul.f32 %v70_v24, %v61_v30 }
  0x20   :  { %v80_v41 = vmul.f32 %v74_v29, %v62_v31  ;;  %v81_v42 = vmul.f32 %v70_v24, %v63_v32  ;;  %v82_v43 = vmul.f32 %v74_v29, %v64_v34  ;;  %v83_v44 = vmul.f32 %v70_v24, %v65_v35 }
  0x21   :  { %v56_v33 = vrot.slane %v48_v26, %v33_v13  ;;  %v84_v45 = vmul.f32 %v74_v29, %v66_v36 }
  0x23   :  { %v58_v38 = vsub.f32 %v38_v25, %v56_v33 }
  0x25   :  { %v89_v46 = vrot.slane %v58_v38, %v69_v20  ;;  %v93_v47 = vrot.slane %v58_v38, %v73_v22 }
  0x27   :  { %v96_v48 = vadd.f32 %v89_v46, %v77_v37  ;;  %v97_v49 = vadd.f32 %v93_v47, %v78_v39  ;;  %v98_v50 = vadd.f32 %v89_v46, %v79_v40  ;;  %v99_v51 = vadd.f32 %v93_v47, %v80_v41 }
  0x28   :  { %v100_v52 = vadd.f32 %v89_v46, %v81_v42  ;;  %v101_v53 = vadd.f32 %v93_v47, %v82_v43  ;;  %v102_v54 = vadd.f32 %v89_v46, %v83_v44  ;;  %v103_v55 = vadd.f32 %v93_v47, %v84_v45 }
  0x29   :  { %vm104_vm0 = vcmp.ge.f32.partialorder %v96_v48, 0.0  ;;  %v112_v56 = vmul.f32 0.2, %v96_v48  ;;  %vm105_vm1 = vcmp.ge.f32.partialorder %v97_v49, 0.0  ;;  %v113_v57 = vmul.f32 0.2, %v97_v49 }
  0x2a   :  { %vm106_vm2 = vcmp.ge.f32.partialorder %v98_v50, 0.0  ;;  %v114_v58 = vmul.f32 0.2, %v98_v50  ;;  %vm107_vm3 = vcmp.ge.f32.partialorder %v99_v51, 0.0  ;;  %v115_v59 = vmul.f32 0.2, %v99_v51 }
  0x2b   :  { %v120_v60 = vsel %vm104_vm0, %v96_v48, %v112_v56  ;;  %v121_v61 = vsel %vm105_vm1, %v97_v49, %v113_v57  ;;  %vm108_vm4 = vcmp.ge.f32.partialorder %v100_v52, 0.0  ;;  %v116_v62 = vmul.f32 0.2, %v100_v52 }
  0x2c   :  { %128 = vst [vmem:[%s232_s4] sm:$0xff] %v120_v60  ;;  %129 = vst [vmem:[%s232_s4 + $0x8] sm:$0xff] %v121_v61  ;;  %v122_v63 = vsel %vm106_vm2, %v98_v50, %v114_v58  ;;  %v123_v0 = vsel %vm107_vm3, %v99_v51, %v115_v59  ;;  %vm109_vm5 = vcmp.ge.f32.partialorder %v101_v53, 0.0  ;;  %v117_v1 = vmul.f32 0.2, %v101_v53 }
  0x2d   :  { %130 = vst [vmem:[%s232_s4 + $0x10] sm:$0xff] %v122_v63  ;;  %131 = vst [vmem:[%s232_s4 + $0x18] sm:$0xff] %v123_v0  ;;  %v124_v2 = vsel %vm108_vm4, %v100_v52, %v116_v62  ;;  %vm110_vm6 = vcmp.ge.f32.partialorder %v102_v54, 0.0  ;;  %v118_v3 = vmul.f32 0.2, %v102_v54  ;;  %vm111_vm7 = vcmp.ge.f32.partialorder %v103_v55, 0.0 }
  0x2e   :  { %132 = vst [vmem:[%s232_s4 + $0x20] sm:$0xff] %v124_v2  ;;  %v125_v4 = vsel %vm109_vm5, %v101_v53, %v117_v1  ;;  %v119_v5 = vmul.f32 0.2, %v103_v55 }
  0x2f   :  { %133 = vst [vmem:[%s232_s4 + $0x28] sm:$0xff] %v125_v4  ;;  %v126_v6 = vsel %vm110_vm6, %v102_v54, %v118_v3 }
  0x30   :  { %134 = vst [vmem:[%s232_s4 + $0x30] sm:$0xff] %v126_v6  ;;  %v127_v7 = vsel %vm111_vm7, %v103_v55, %v119_v5 }
  0x31   :  { %135 = vst [vmem:[%s232_s4 + $0x38] sm:$0xff] %v127_v7 }

// kernel: discriminator_forward.14
= control target key start
LH: loop header
LB: loop body
LE: loop exit
PB: predicated region body
PF: predicated region fallthrough
CT: control target
= control target key end

     0   :  { %v192_v6 = vmov 1966171168   ;;  %v31_v8 = vlaneseq  ;;  %v193_v11 = vmov 857870592   ;;  %s300_s1 = inlined_call_operand.vmem [shape: f32[2,512], index: 1, kind: input, shape index: {}]   ;;  %s301_s2 = inlined_call_operand.vmem [shape: f32[1,512], index: 2, kind: input, shape index: {}]   ;;  %s302_s0 = inlined_call_operand.vmem [shape: f32[24,512], index: 0, kind: input, shape index: {}]   ;;  %s303_s3 = inlined_call_operand.vmem [shape: f32[1,512], index: 3, kind: input, shape index: {}]   ;;  %s304_s4 = inlined_call_operand.vmem [shape: f32[24,512], index: 4, kind: output, shape index: {}]  }
   0x1   :  { %v17_v0 = vld [vmem:[%s300_s1] sm:$0xff]  ;;  %v29_v7 = vunpack.c.l.s4 %v192_v6  ;;  %v41_v12 = vunpack.c.l.s4 %v193_v11  ;;  %v60_v30 = vld [vmem:[%s302_s0 + $0x8] sm:$0xff]  ;;  %v61_v34 = vld [vmem:[%s302_s0 + $0x10] sm:$0xff] }
   0x2   :  { %v18_v1 = vmul.f32 0.055555556, %v17_v0  ;;  %v32_v10 = vshrl.u32 %v31_v8, 7  ;;  %v24_v17 = vld [vmem:[%s301_s2] sm:$0xf]  ;;  %v62_v35 = vld [vmem:[%s302_s0 + $0x18] sm:$0xff] }
   0x3   :  { %v30_v9 = vunpack.c.0.s8 %v29_v7  ;;  %v42_v14 = vunpack.c.0.s8 %v41_v12  ;;  %v38_v27 = vld [vmem:[%s303_s3] sm:$0xf]  ;;  %v64_v38 = vld [vmem:[%s302_s0 + $0x28] sm:$0xff]  ;;  %v65_v39 = vld [vmem:[%s302_s0 + $0x30] sm:$0xff] }
   0x4   :  { %v19_v2 = vmul.f32 %v18_v1, %v18_v1  ;;  %v73_v20 = vsub.s32 0, %v32_v10  ;;  %v77_v22 = vsub.s32 1, %v32_v10  ;;  %v81_v23 = vsub.s32 2, %v32_v10  ;;  %v59_v29 = vld [vmem:[%s302_s0] sm:$0xff]  ;;  %v66_v40 = vld [vmem:[%s302_s0 + $0x38] sm:$0xff]  ;;  %v68_v47 = vld [vmem:[%s302_s0 + $0x48] sm:$0xff] }
   0x5   :  { %v33_v13 = vsub.s32 %v30_v9, %v32_v10  ;;  %v45_v19 = vsub.s32 %v42_v14, %v32_v10  ;;  %v85_v24 = vsub.s32 3, %v32_v10  ;;  %v63_v36 = vld [vmem:[%s302_s0 + $0x20] sm:$0xff]  ;;  %v69_v48 = vld [vmem:[%s302_s0 + $0x50] sm:$0xff]  ;;  %v70_v49 = vld [vmem:[%s302_s0 + $0x58] sm:$0xff] }
   0x6   :  { %v21_v3 = vrot.slane %v19_v2, 7  ;;  %v67_v42 = vld [vmem:[%s302_s0 + $0x40] sm:$0xff] }
   0x8   :  { %v23_v4 = vsub.f32 %v18_v1, %v21_v3 }
   0xa   :  { %v25_v5 = vadd.f32 1e-05, %v23_v4 }
   0xc   :  { %190 = vrsqrt.f32 %v25_v5 }
  0x16   :  { %v191_v15 = vpop.eup %190 }
  0x17   :  { %v34_v16 = vrot.slane %v191_v15, %v33_v13 }
  0x19   :  { %v35_v18 = vcombine.high %v34_v16, %v34_v16 }
  0x1b   :  { %v37_v21 = vmul.f32 %v35_v18, %v24_v17 }
  0x1d   :  { %v46_v25 = vrot.slane %v37_v21, %v45_v19  ;;  %v74_v26 = vrot.slane %v37_v21, %v73_v20  ;;  %v78_v31 = vrot.slane %v37_v21, %v77_v22  ;;  %v82_v32 = vrot.slane %v37_v21, %v81_v23 }
  0x1e   :  { %v86_v33 = vrot.slane %v37_v21, %v85_v24 }
  0x1f   :  { %v48_v28 = vmul.f32 %v46_v25, %v18_v1  ;;  %v91_v41 = vmul.f32 %v74_v26, %v59_v29  ;;  %v92_v44 = vmul.f32 %v78_v31, %v60_v30  ;;  %v93_v45 = vmul.f32 %v82_v32, %v61_v34 }
  0x20   :  { %v94_v46 = vmul.f32 %v86_v33, %v62_v35  ;;  %v95_v50 = vmul.f32 %v74_v26, %v63_v36  ;;  %v96_v51 = vmul.f32 %v78_v31, %v64_v38  ;;  %v97_v52 = vmul.f32 %v82_v32, %v65_v39 }
  0x21   :  { %v56_v37 = vrot.slane %v48_v28, %v33_v13  ;;  %v98_v53 = vmul.f32 %v86_v33, %v66_v40  ;;  %v99_v58 = vmul.f32 %v74_v26, %v67_v42  ;;  %v100_v59 = vmul.f32 %v78_v31, %v68_v47 }
  0x22   :  { %v101_v60 = vmul.f32 %v82_v32, %v69_v48  ;;  %v102_v61 = vmul.f32 %v86_v33, %v70_v49 }
  0x23   :  { %v58_v43 = vsub.f32 %v38_v27, %v56_v37 }
  0x25   :  { %v107_v54 = vrot.slane %v58_v43, %v73_v20  ;;  %v111_v55 = vrot.slane %v58_v43, %v77_v22  ;;  %v115_v56 = vrot.slane %v58_v43, %v81_v23  ;;  %v119_v57 = vrot.slane %v58_v43, %v85_v24 }
  0x27   :  { %v124_v62 = vadd.f32 %v107_v54, %v91_v41  ;;  %v125_v63 = vadd.f32 %v111_v55, %v92_v44  ;;  %v126_v0 = vadd.f32 %v115_v56, %v93_v45  ;;  %v127_v1 = vadd.f32 %v119_v57, %v94_v46 }
  0x28   :  { %v128_v2 = vadd.f32 %v107_v54, %v95_v50  ;;  %v129_v3 = vadd.f32 %v111_v55, %v96_v51  ;;  %v130_v4 = vadd.f32 %v115_v56, %v97_v52  ;;  %v131_v5 = vadd.f32 %v119_v57, %v98_v53 }
  0x29   :  { %vm136_vm0 = vcmp.ge.f32.partialorder %v124_v62, 0.0  ;;  %v148_v6 = vmul.f32 0.2, %v124_v62  ;;  %vm137_vm1 = vcmp.ge.f32.partialorder %v125_v63, 0.0  ;;  %v149_v7 = vmul.f32 0.2, %v125_v63 }
  0x2a   :  { %vm138_vm2 = vcmp.ge.f32.partialorder %v126_v0, 0.0  ;;  %v150_v8 = vmul.f32 0.2, %v126_v0  ;;  %vm139_vm3 = vcmp.ge.f32.partialorder %v127_v1, 0.0  ;;  %v151_v9 = vmul.f32 0.2, %v127_v1 }
  0x2b   :  { %v160_v10 = vsel %vm136_vm0, %v124_v62, %v148_v6  ;;  %v161_v11 = vsel %vm137_vm1, %v125_v63, %v149_v7  ;;  %vm140_vm4 = vcmp.ge.f32.partialorder %v128_v2, 0.0  ;;  %v152_v12 = vmul.f32 0.2, %v128_v2 }
  0x2c   :  { %172 = vst [vmem:[%s304_s4] sm:$0xff] %v160_v10  ;;  %173 = vst [vmem:[%s304_s4 + $0x8] sm:$0xff] %v161_v11  ;;  %v162_v13 = vsel %vm138_vm2, %v126_v0, %v150_v8  ;;  %v163_v14 = vsel %vm139_vm3, %v127_v1, %v151_v9  ;;  %vm141_vm5 = vcmp.ge.f32.partialorder %v129_v3, 0.0  ;;  %v153_v15 = vmul.f32 0.2, %v129_v3 }
  0x2d   :  { %174 = vst [vmem:[%s304_s4 + $0x10] sm:$0xff] %v162_v13  ;;  %175 = vst [vmem:[%s304_s4 + $0x18] sm:$0xff] %v163_v14  ;;  %v164_v16 = vsel %vm140_vm4, %v128_v2, %v152_v12  ;;  %vm142_vm6 = vcmp.ge.f32.partialorder %v130_v4, 0.0  ;;  %v154_v17 = vmul.f32 0.2, %v130_v4  ;;  %vm143_vm7 = vcmp.ge.f32.partialorder %v131_v5, 0.0 }
  0x2e   :  { %176 = vst [vmem:[%s304_s4 + $0x20] sm:$0xff] %v164_v16  ;;  %v165_v18 = vsel %vm141_vm5, %v129_v3, %v153_v15  ;;  %v155_v19 = vmul.f32 0.2, %v131_v5  ;;  %v132_v20 = vadd.f32 %v107_v54, %v99_v58  ;;  %v133_v21 = vadd.f32 %v111_v55, %v100_v59 }
  0x2f   :  { %177 = vst [vmem:[%s304_s4 + $0x28] sm:$0xff] %v165_v18  ;;  %v166_v22 = vsel %vm142_vm6, %v130_v4, %v154_v17  ;;  %v134_v23 = vadd.f32 %v115_v56, %v101_v60  ;;  %v135_v24 = vadd.f32 %v119_v57, %v102_v61 }
  0x30   :  { %178 = vst [vmem:[%s304_s4 + $0x30] sm:$0xff] %v166_v22  ;;  %v167_v25 = vsel %vm143_vm7, %v131_v5, %v155_v19  ;;  %vm144_vm8 = vcmp.ge.f32.partialorder %v132_v20, 0.0  ;;  %v156_v26 = vmul.f32 0.2, %v132_v20  ;;  %vm145_vm9 = vcmp.ge.f32.partialorder %v133_v21, 0.0 }
  0x31   :  { %179 = vst [vmem:[%s304_s4 + $0x38] sm:$0xff] %v167_v25  ;;  %v157_v27 = vmul.f32 0.2, %v133_v21  ;;  %vm146_vm10 = vcmp.ge.f32.partialorder %v134_v23, 0.0  ;;  %v158_v28 = vmul.f32 0.2, %v134_v23 }
  0x32   :  { %vm147_vm11 = vcmp.ge.f32.partialorder %v135_v24, 0.0  ;;  %v168_v29 = vsel %vm144_vm8, %v132_v20, %v156_v26  ;;  %v159_v30 = vmul.f32 0.2, %v135_v24 }
  0x33   :  { %180 = vst [vmem:[%s304_s4 + $0x40] sm:$0xff] %v168_v29  ;;  %v169_v31 = vsel %vm145_vm9, %v133_v21, %v157_v27  ;;  %v170_v32 = vsel %vm146_vm10, %v134_v23, %v158_v28 }
  0x34   :  { %181 = vst [vmem:[%s304_s4 + $0x48] sm:$0xff] %v169_v31  ;;  %182 = vst [vmem:[%s304_s4 + $0x50] sm:$0xff] %v170_v32  ;;  %v171_v33 = vsel %vm147_vm11, %v135_v24, %v159_v30 }
  0x35   :  { %183 = vst [vmem:[%s304_s4 + $0x58] sm:$0xff] %v171_v33 }

// kernel: discriminator_forward.13
= control target key start
LH: loop header
LB: loop body
LE: loop exit
PB: predicated region body
PF: predicated region fallthrough
CT: control target
= control target key end

     0   :  { %vm8202_vm0 = vcmask 1040384   ;;  %s14537_s1 = inlined_call_operand.vmem [shape: bf16[4096,512], index: 1, kind: input, shape index: {}]   ;;  %s14538_s0 = inlined_call_operand.vmem [shape: bf16[24,4096], index: 0, kind: input, shape index: {}]   ;;  %s14539_s2 = inlined_call_operand.vmem [shape: f32[24,512], index: 2, kind: output, shape index: {0}]   ;;  %s14540_s3 = inlined_call_operand.vmem [shape: f32[2,512], index: 3, kind: output, shape index: {1}]  }
   0x1   :  { %v9570_v0 = vld [vmem:[%s14537_s1 + $0x4] ss:$16 sps:$4 sm:$0xff]   ;;  %v9572_v1 = vld [vmem:[%s14537_s1 + $0xc] ss:$16 sps:$4 sm:$0xff]   ;;  %v9574_v2 = vld [vmem:[%s14537_s1] ss:$16 sps:$4 sm:$0xff]  }
   0x2   :  { %6477 = vmatprep.subr.bf16.mxu0 %v9570_v0  ;;  %v9575_v3 = vld [vmem:[%s14537_s1 + $0x8] ss:$16 sps:$4 sm:$0xff]   ;;  %7293 = vmatprep.subr.bf16.mxu1 %v9572_v1  ;;  %v9576_v4 = vld [vmem:[%s14537_s1 + $0x24] ss:$16 sps:$4 sm:$0xff]   ;;  %v9578_v5 = vld [vmem:[%s14537_s1 + $0x2c] ss:$16 sps:$4 sm:$0xff]  }
   0x3   :  { %6478 = vmatpush1.bf16.msra.mxu0 %v9574_v2  ;;  %7294 = vmatpush1.bf16.msra.mxu1 %v9575_v3  ;;  %v9580_v6 = vld [vmem:[%s14537_s1 + $0x20] ss:$16 sps:$4 sm:$0xff]   ;;  %v9581_v7 = vld [vmem:[%s14537_s1 + $0x28] ss:$16 sps:$4 sm:$0xff]   ;;  %v9582_v8 = vld [vmem:[%s14537_s1 + $0x44] ss:$16 sps:$4 sm:$0xff]  }
   0x4   :  { %6479 = vmatprep.subr.bf16.mxu0 %v9576_v4  ;;  %7295 = vmatprep.subr.bf16.mxu1 %v9578_v5  ;;  %v9584_v9 = vld [vmem:[%s14537_s1 + $0x4c] ss:$16 sps:$4 sm:$0xff]   ;;  %v9586_v10 = vld [vmem:[%s14537_s1 + $0x40] ss:$16 sps:$4 sm:$0xff]   ;;  %v9587_v11 = vld [vmem:[%s14537_s1 + $0x48] ss:$16 sps:$4 sm:$0xff]  }
   0x5   :  { %v9588_v12 = vld [vmem:[%s14537_s1 + $0x64] ss:$16 sps:$4 sm:$0xff]   ;;  %v9590_v13 = vld [vmem:[%s14537_s1 + $0x6c] ss:$16 sps:$4 sm:$0xff]   ;;  %v9592_v14 = vld [vmem:[%s14537_s1 + $0x60] ss:$16 sps:$4 sm:$0xff]  }
   0x6   :  { %v9593_v15 = vld [vmem:[%s14537_s1 + $0x68] ss:$16 sps:$4 sm:$0xff]   ;;  %v9594_v16 = vld [vmem:[%s14537_s1 + $0x84] ss:$16 sps:$4 sm:$0xff]   ;;  %v9596_v17 = vld [vmem:[%s14537_s1 + $0x8c] ss:$16 sps:$4 sm:$0xff]  }
   0x7   :  { %6480 = vmatpush1.bf16.msra.mxu0 %v9580_v6  ;;  %7296 = vmatpush1.bf16.msra.mxu1 %v9581_v7  ;;  %v9598_v18 = vld [vmem:[%s14537_s1 + $0x80] ss:$16 sps:$4 sm:$0xff]   ;;  %v9599_v19 = vld [vmem:[%s14537_s1 + $0x88] ss:$16 sps:$4 sm:$0xff]   ;;  %v9600_v20 = vld [vmem:[%s14537_s1 + $0xa4] ss:$16 sps:$4 sm:$0xff]  }
   0x8   :  { %6481 = vmatprep.subr.bf16.mxu0 %v9582_v8  ;;  %7297 = vmatprep.subr.bf16.mxu1 %v9584_v9  ;;  %v9602_v21 = vld [vmem:[%s14537_s1 + $0xac] ss:$16 sps:$4 sm:$0xff]   ;;  %v9604_v22 = vld [vmem:[%s14537_s1 + $0xa0] ss:$16 sps:$4 sm:$0xff]   ;;  %v9605_v23 = vld [vmem:[%s14537_s1 + $0xa8] ss:$16 sps:$4 sm:$0xff]  }
   0x9   :  { %v9606_v24 = vld [vmem:[%s14537_s1 + $0xc4] ss:$16 sps:$4 sm:$0xff]   ;;  %v9608_v25 = vld [vmem:[%s14537_s1 + $0xcc] ss:$16 sps:$4 sm:$0xff]   ;;  %v9610_v26 = vld [vmem:[%s14537_s1 + $0xc0] ss:$16 sps:$4 sm:$0xff]  }
   0xa   :  { %v9611_v27 = vld [vmem:[%s14537_s1 + $0xc8] ss:$16 sps:$4 sm:$0xff]   ;;  %v9612_v28 = vld [vmem:[%s14537_s1 + $0xe4] ss:$16 sps:$4 sm:$0xff]   ;;  %v9614_v29 = vld [vmem:[%s14537_s1 + $0xec] ss:$16 sps:$4 sm:$0xff]  }
   0xb   :  { %6482 = vmatpush1.bf16.msra.mxu0 %v9586_v10  ;;  %7298 = vmatpush1.bf16.msra.mxu1 %v9587_v11  ;;  %v9616_v30 = vld [vmem:[%s14537_s1 + $0xe0] ss:$16 sps:$4 sm:$0xff]   ;;  %v9617_v31 = vld [vmem:[%s14537_s1 + $0xe8] ss:$16 sps:$4 sm:$0xff]   ;;  %v9618_v32 = vld [vmem:[%s14537_s1 + $0x104] ss:$16 sps:$4 sm:$0xff]  }
   0xc   :  { %6483 = vmatprep.subr.bf16.mxu0 %v9588_v12  ;;  %7299 = vmatprep.subr.bf16.mxu1 %v9590_v13  ;;  %v9620_v33 = vld [vmem:[%s14537_s1 + $0x10c] ss:$16 sps:$4 sm:$0xff]   ;;  %v9622_v34 = vld [vmem:[%s14537_s1 + $0x100] ss:$16 sps:$4 sm:$0xff]   ;;  %v9623_v35 = vld [vmem:[%s14537_s1 + $0x108] ss:$16 sps:$4 sm:$0xff]  }
   0xd   :  { %v9624_v36 = vld [vmem:[%s14537_s1 + $0x124] ss:$16 sps:$4 sm:$0xff]   ;;  %v9626_v37 = vld [vmem:[%s14537_s1 + $0x12c] ss:$16 sps:$4 sm:$0xff]   ;;  %v9628_v38 = vld [vmem:[%s14537_s1 + $0x120] ss:$16 sps:$4 sm:$0xff]  }
   0xe   :  { %v9629_v39 = vld [vmem:[%s14537_s1 + $0x128] ss:$16 sps:$4 sm:$0xff]   ;;  %v9630_v40 = vld [vmem:[%s14537_s1 + $0x144] ss:$16 sps:$4 sm:$0xff]   ;;  %v9632_v41 = vld [vmem:[%s14537_s1 + $0x14c] ss:$16 sps:$4 sm:$0xff]  }
   0xf   :  { %6484 = vmatpush1.bf16.msra.mxu0 %v9592_v14  ;;  %7300 = vmatpush1.bf16.msra.mxu1 %v9593_v15  ;;  %v9634_v42 = vld [vmem:[%s14537_s1 + $0x140] ss:$16 sps:$4 sm:$0xff]   ;;  %v9635_v43 = vld [vmem:[%s14537_s1 + $0x148] ss:$16 sps:$4 sm:$0xff]   ;;  %v9636_v44 = vld [vmem:[%s14537_s1 + $0x164] ss:$16 sps:$4 sm:$0xff]  }
  0x10   :  { %6485 = vmatprep.subr.bf16.mxu0 %v9594_v16  ;;  %7301 = vmatprep.subr.bf16.mxu1 %v9596_v17  ;;  %v9638_v45 = vld [vmem:[%s14537_s1 + $0x16c] ss:$16 sps:$4 sm:$0xff]   ;;  %v13_v46 = vld [vmem:[%s14538_s0] sm:$0xff]  ;;  %v9641_v49 = vld [vmem:[%s14537_s1 + $0x168] ss:$16 sps:$4 sm:$0xff]  }
  0x11   :  { %v29_v47 = vld [vmem:[%s14538_s0 + $0x80] sm:$0xff]  ;;  %v9644_v52 = vld [vmem:[%s14537_s1 + $0x18c] ss:$16 sps:$4 sm:$0xff]   ;;  %v9647_v54 = vld [vmem:[%s14537_s1 + $0x188] ss:$16 sps:$4 sm:$0xff]  }
  0x12   :  { %v9640_v48 = vld [vmem:[%s14537_s1 + $0x160] ss:$16 sps:$4 sm:$0xff]   ;;  %v8241_v50 = vcombine.high %v13_v46, %v29_v47  ;;  %v9642_v51 = vld [vmem:[%s14537_s1 + $0x184] ss:$16 sps:$4 sm:$0xff]   ;;  %v9650_v56 = vld [vmem:[%s14537_s1 + $0x1ac] ss:$16 sps:$4 sm:$0xff]   ;;  %v8240_v5 = vcombine.low %v13_v46, %v29_v47 }
  0x13   :  { %6486 = vmatpush1.bf16.msra.mxu0 %v9598_v18  ;;  %7302 = vmatpush1.bf16.msra.mxu1 %v9599_v19  ;;  %v9646_v53 = vld [vmem:[%s14537_s1 + $0x180] ss:$16 sps:$4 sm:$0xff]   ;;  %v9648_v55 = vld [vmem:[%s14537_s1 + $0x1a4] ss:$16 sps:$4 sm:$0xff]   ;;  %v9653_v58 = vld [vmem:[%s14537_s1 + $0x1a8] ss:$16 sps:$4 sm:$0xff]  }
  0x14   :  { %6487 = vmatprep.subr.bf16.mxu0 %v9600_v20  ;;  %7303 = vmatprep.subr.bf16.mxu1 %v9602_v21  ;;  %v9652_v57 = vld [vmem:[%s14537_s1 + $0x1a0] ss:$16 sps:$4 sm:$0xff]   ;;  %v9654_v59 = vld [vmem:[%s14537_s1 + $0x1c4] ss:$16 sps:$4 sm:$0xff]   ;;  %v9656_v60 = vld [vmem:[%s14537_s1 + $0x1cc] ss:$16 sps:$4 sm:$0xff]  }
  0x15   :  { %6509 = vmatprep.mubr.bf16.mxu0 %v8241_v50  ;;  %7325 = vmatprep.mubr.bf16.mxu1 %v8241_v50  ;;  %v9658_v61 = vld [vmem:[%s14537_s1 + $0x1c0] ss:$16 sps:$4 sm:$0xff]   ;;  %v9659_v62 = vld [vmem:[%s14537_s1 + $0x1c8] ss:$16 sps:$4 sm:$0xff]   ;;  %v9660_v63 = vld [vmem:[%s14537_s1 + $0x1e4] ss:$16 sps:$4 sm:$0xff]  }
  0x16   :  { %v9662_v0 = vld [vmem:[%s14537_s1 + $0x1ec] ss:$16 sps:$4 sm:$0xff]   ;;  %v9664_v1 = vld [vmem:[%s14537_s1 + $0x1e0] ss:$16 sps:$4 sm:$0xff]   ;;  %v9665_v2 = vld [vmem:[%s14537_s1 + $0x1e8] ss:$16 sps:$4 sm:$0xff]  }
  0x17   :  { %6488 = vmatpush1.bf16.msra.mxu0 %v9604_v22  ;;  %7304 = vmatpush1.bf16.msra.mxu1 %v9605_v23  ;;  %v9668_v3 = vld [vmem:[%s14537_s1 + $0x204] ss:$16 sps:$4 sm:$0xff]   ;;  %v9671_v4 = vld [vmem:[%s14537_s1 + $0x20c] ss:$16 sps:$4 sm:$0xff]   ;;  %v9666_v6 = vld [vmem:[%s14537_s1 + $0x200] ss:$16 sps:$4 sm:$0xff]  }
  0x18   :  { %6489 = vmatprep.subr.bf16.mxu0 %v9606_v24  ;;  %7305 = vmatprep.subr.bf16.mxu1 %v9608_v25  ;;  %v9669_v7 = vld [vmem:[%s14537_s1 + $0x208] ss:$16 sps:$4 sm:$0xff]   ;;  %v9674_v8 = vld [vmem:[%s14537_s1 + $0x224] ss:$16 sps:$4 sm:$0xff]   ;;  %v9677_v9 = vld [vmem:[%s14537_s1 + $0x22c] ss:$16 sps:$4 sm:$0xff]  }
  0x19   :  { %v9672_v10 = vld [vmem:[%s14537_s1 + $0x220] ss:$16 sps:$4 sm:$0xff]   ;;  %v9675_v11 = vld [vmem:[%s14537_s1 + $0x228] ss:$16 sps:$4 sm:$0xff]   ;;  %v9680_v12 = vld [vmem:[%s14537_s1 + $0x244] ss:$16 sps:$4 sm:$0xff]  }
  0x1a   :  { %v9683_v13 = vld [vmem:[%s14537_s1 + $0x24c] ss:$16 sps:$4 sm:$0xff]   ;;  %v9678_v14 = vld [vmem:[%s14537_s1 + $0x240] ss:$16 sps:$4 sm:$0xff]   ;;  %v9681_v15 = vld [vmem:[%s14537_s1 + $0x248] ss:$16 sps:$4 sm:$0xff]  }
  0x1b   :  { %6490 = vmatpush1.bf16.msra.mxu0 %v9610_v26  ;;  %7306 = vmatpush1.bf16.msra.mxu1 %v9611_v27  ;;  %v9686_v16 = vld [vmem:[%s14537_s1 + $0x264] ss:$16 sps:$4 sm:$0xff]   ;;  %v9689_v17 = vld [vmem:[%s14537_s1 + $0x26c] ss:$16 sps:$4 sm:$0xff]   ;;  %v9684_v18 = vld [vmem:[%s14537_s1 + $0x260] ss:$16 sps:$4 sm:$0xff]  }
  0x1c   :  { %6491 = vmatprep.subr.bf16.mxu0 %v9612_v28  ;;  %7307 = vmatprep.subr.bf16.mxu1 %v9614_v29  ;;  %v9687_v19 = vld [vmem:[%s14537_s1 + $0x268] ss:$16 sps:$4 sm:$0xff]   ;;  %v9692_v20 = vld [vmem:[%s14537_s1 + $0x284] ss:$16 sps:$4 sm:$0xff]   ;;  %v9695_v21 = vld [vmem:[%s14537_s1 + $0x28c] ss:$16 sps:$4 sm:$0xff]  }
  0x1d   :  { %v9690_v22 = vld [vmem:[%s14537_s1 + $0x280] ss:$16 sps:$4 sm:$0xff]   ;;  %v9693_v23 = vld [vmem:[%s14537_s1 + $0x288] ss:$16 sps:$4 sm:$0xff]   ;;  %v9698_v24 = vld [vmem:[%s14537_s1 + $0x2a4] ss:$16 sps:$4 sm:$0xff]  }
  0x1e   :  { %v45_v25 = vld [vmem:[%s14538_s0 + $0x100] sm:$0xff]  ;;  %v9701_v26 = vld [vmem:[%s14537_s1 + $0x2ac] ss:$16 sps:$4 sm:$0xff]  }
  0x1f   :  { %6492 = vmatpush1.bf16.msra.mxu0 %v9616_v30  ;;  %7308 = vmatpush1.bf16.msra.mxu1 %v9617_v31  ;;  %v8273_v27 = vcombine.high %v45_v25, %v45_v25  ;;  %v8272_v28 = vcombine.low %v45_v25, %v45_v25  ;;  %v9696_v29 = vld [vmem:[%s14537_s1 + $0x2a0] ss:$16 sps:$4 sm:$0xff]   ;;  %v9699_v30 = vld [vmem:[%s14537_s1 + $0x2a8] ss:$16 sps:$4 sm:$0xff]   ;;  %v9704_v31 = vld [vmem:[%s14537_s1 + $0x2c4] ss:$16 sps:$4 sm:$0xff]  }
  0x20   :  { %6493 = vmatprep.subr.bf16.mxu0 %v9618_v32  ;;  %7309 = vmatprep.subr.bf16.mxu1 %v9620_v33  ;;  %v9707_v32 = vld [vmem:[%s14537_s1 + $0x2cc] ss:$16 sps:$4 sm:$0xff]   ;;  %v9722_v46 = vld [vmem:[%s14537_s1 + $0x324] ss:$16 sps:$4 sm:$0xff]  }
  0x21   :  { %v11441_v33 = vld [vmem:[%s14538_s0 + $0x8] sm:$0xff]  ;;  %v9728_v50 = vld [vmem:[%s14537_s1 + $0x344] ss:$16 sps:$4 sm:$0xff]  }
  0x22   :  { %v9725_v47 = vld [vmem:[%s14537_s1 + $0x32c] ss:$16 sps:$4 sm:$0xff]  }
  0x23   :  { %6494 = vmatpush1.bf16.msra.mxu0 %v9622_v34  ;;  %7310 = vmatpush1.bf16.msra.mxu1 %v9623_v35  ;;  %v11446_v34 = vld [vmem:[%s14538_s0 + $0x88] sm:$0xff]  ;;  %v9702_v35 = vld [vmem:[%s14537_s1 + $0x2c0] ss:$16 sps:$4 sm:$0xff]  }
  0x24   :  { %6495 = vmatprep.subr.bf16.mxu0 %v9624_v36  ;;  %7311 = vmatprep.subr.bf16.mxu1 %v9626_v37  ;;  %v8243_v36 = vcombine.high %v11441_v33, %v11446_v34  ;;  %v9705_v37 = vld [vmem:[%s14537_s1 + $0x2c8] ss:$16 sps:$4 sm:$0xff]  }
  0x27   :  { %6496 = vmatpush1.bf16.msra.mxu0 %v9628_v38  ;;  %7312 = vmatpush1.bf16.msra.mxu1 %v9629_v39  ;;  %v9710_v38 = vld [vmem:[%s14537_s1 + $0x2e4] ss:$16 sps:$4 sm:$0xff]   ;;  %v9713_v39 = vld [vmem:[%s14537_s1 + $0x2ec] ss:$16 sps:$4 sm:$0xff]  }
  0x28   :  { %6497 = vmatprep.subr.bf16.mxu0 %v9630_v40  ;;  %7313 = vmatprep.subr.bf16.mxu1 %v9632_v41  ;;  %v9708_v40 = vld [vmem:[%s14537_s1 + $0x2e0] ss:$16 sps:$4 sm:$0xff]   ;;  %v9711_v41 = vld [vmem:[%s14537_s1 + $0x2e8] ss:$16 sps:$4 sm:$0xff]  }
  0x2b   :  { %6498 = vmatpush1.bf16.msra.mxu0 %v9634_v42  ;;  %7314 = vmatpush1.bf16.msra.mxu1 %v9635_v43  ;;  %v9716_v42 = vld [vmem:[%s14537_s1 + $0x304] ss:$16 sps:$4 sm:$0xff]   ;;  %v9719_v43 = vld [vmem:[%s14537_s1 + $0x30c] ss:$16 sps:$4 sm:$0xff]  }
  0x2c   :  { %6499 = vmatprep.subr.bf16.mxu0 %v9636_v44  ;;  %7315 = vmatprep.subr.bf16.mxu1 %v9638_v45  ;;  %v9714_v44 = vld [vmem:[%s14537_s1 + $0x300] ss:$16 sps:$4 sm:$0xff]   ;;  %v9717_v45 = vld [vmem:[%s14537_s1 + $0x308] ss:$16 sps:$4 sm:$0xff]  }
  0x2f   :  { %6500 = vmatpush1.bf16.msra.mxu0 %v9640_v48  ;;  %7316 = vmatpush1.bf16.msra.mxu1 %v9641_v49  ;;  %v9720_v48 = vld [vmem:[%s14537_s1 + $0x320] ss:$16 sps:$4 sm:$0xff]   ;;  %v9723_v49 = vld [vmem:[%s14537_s1 + $0x328] ss:$16 sps:$4 sm:$0xff]  }
  0x30   :  { %6501 = vmatprep.subr.bf16.mxu0 %v9642_v51  ;;  %7317 = vmatprep.subr.bf16.mxu1 %v9644_v52  ;;  %v9731_v51 = vld [vmem:[%s14537_s1 + $0x34c] ss:$16 sps:$4 sm:$0xff]   ;;  %v9726_v52 = vld [vmem:[%s14537_s1 + $0x340] ss:$16 sps:$4 sm:$0xff]  }
  0x33   :  { %6502 = vmatpush1.bf16.msra.mxu0 %v9646_v53  ;;  %7318 = vmatpush1.bf16.msra.mxu1 %v9647_v54  ;;  %v9729_v53 = vld [vmem:[%s14537_s1 + $0x348] ss:$16 sps:$4 sm:$0xff]   ;;  %v9734_v54 = vld [vmem:[%s14537_s1 + $0x364] ss:$16 sps:$4 sm:$0xff]  }
  0x34   :  { %6503 = vmatprep.subr.bf16.mxu0 %v9648_v55  ;;  %7319 = vmatprep.subr.bf16.mxu1 %v9650_v56  ;;  %v9737_v55 = vld [vmem:[%s14537_s1 + $0x36c] ss:$16 sps:$4 sm:$0xff]   ;;  %v9732_v56 = vld [vmem:[%s14537_s1 + $0x360] ss:$16 sps:$4 sm:$0xff]  }
  0x37   :  { %6504 = vmatpush1.bf16.msra.mxu0 %v9652_v57  ;;  %7320 = vmatpush1.bf16.msra.mxu1 %v9653_v58  ;;  %v9735_v57 = vld [vmem:[%s14537_s1 + $0x368] ss:$16 sps:$4 sm:$0xff]   ;;  %v9740_v58 = vld [vmem:[%s14537_s1 + $0x384] ss:$16 sps:$4 sm:$0xff]  }
  0x38   :  { %6505 = vmatprep.subr.bf16.mxu0 %v9654_v59  ;;  %7321 = vmatprep.subr.bf16.mxu1 %v9656_v60  ;;  %v9743_v59 = vld [vmem:[%s14537_s1 + $0x38c] ss:$16 sps:$4 sm:$0xff]   ;;  %v9738_v60 = vld [vmem:[%s14537_s1 + $0x380] ss:$16 sps:$4 sm:$0xff]  }
  0x3b   :  { %6506 = vmatpush1.bf16.msra.mxu0 %v9658_v61  ;;  %7322 = vmatpush1.bf16.msra.mxu1 %v9659_v62  ;;  %v9741_v61 = vld [vmem:[%s14537_s1 + $0x388] ss:$16 sps:$4 sm:$0xff]   ;;  %v9746_v62 = vld [vmem:[%s14537_s1 + $0x3a4] ss:$16 sps:$4 sm:$0xff]  }
  0x3c   :  { %6507 = vmatprep.subr.bf16.mxu0 %v9660_v63  ;;  %7323 = vmatprep.subr.bf16.mxu1 %v9662_v0  ;;  %v9749_v63 = vld [vmem:[%s14537_s1 + $0x3ac] ss:$16 sps:$4 sm:$0xff]   ;;  %v9744_v0 = vld [vmem:[%s14537_s1 + $0x3a0] ss:$16 sps:$4 sm:$0xff]  }
  0x3f   :  { %6508 = vmatpush1.bf16.msra.mxu0 %v9664_v1  ;;  %7324 = vmatpush1.bf16.msra.mxu1 %v9665_v2  ;;  %v9747_v1 = vld [vmem:[%s14537_s1 + $0x3a8] ss:$16 sps:$4 sm:$0xff]   ;;  %v9753_v2 = vld [vmem:[%s14537_s1 + $0x3c4] ss:$16 sps:$4 sm:$0xff]  }
  0x40   :  { %6528 = vmatprep.subr.bf16.mxu0 %v9668_v3  ;;  %7344 = vmatprep.subr.bf16.mxu1 %v9671_v4  ;;  %v9756_v3 = vld [vmem:[%s14537_s1 + $0x3cc] ss:$16 sps:$4 sm:$0xff]   ;;  %v9751_v4 = vld [vmem:[%s14537_s1 + $0x3c0] ss:$16 sps:$4 sm:$0xff]  }
  0x42   :  { %6510 = vmatmul.mubr.bf16.vlgmr.msra.gmra.mrb[0].mxu0 %v8240_v5  ;;  %7326 = vmatmul.mubr.bf16.vlgmr.msra.gmra.mrb[0].mxu1 %v8240_v5  ;;  %v9754_v5 = vld [vmem:[%s14537_s1 + $0x3c8] ss:$16 sps:$4 sm:$0xff]  }
  0x43   :  { %6529 = vmatpush1.bf16.msra.mxu0 %v9666_v6  ;;  %7345 = vmatpush1.bf16.msra.mxu1 %v9669_v7  ;;  %v9760_v6 = vld [vmem:[%s14537_s1 + $0x3e4] ss:$16 sps:$4 sm:$0xff]   ;;  %v9763_v7 = vld [vmem:[%s14537_s1 + $0x3ec] ss:$16 sps:$4 sm:$0xff]  }
  0x44   :  { %6530 = vmatprep.subr.bf16.mxu0 %v9674_v8  ;;  %7346 = vmatprep.subr.bf16.mxu1 %v9677_v9  ;;  %v9758_v8 = vld [vmem:[%s14537_s1 + $0x3e0] ss:$16 sps:$4 sm:$0xff]   ;;  %v9761_v9 = vld [vmem:[%s14537_s1 + $0x3e8] ss:$16 sps:$4 sm:$0xff]  }
  0x45   :  { %6519 = vmatprep.mubr.bf16.mxu0 %v8273_v27  ;;  %7335 = vmatprep.mubr.bf16.mxu1 %v8273_v27  ;;  %v11613_v27 = vld [vmem:[%s14538_s0 + $0x90] sm:$0xff] }
  0x47   :  { %6531 = vmatpush1.bf16.msra.mxu0 %v9672_v10  ;;  %7347 = vmatpush1.bf16.msra.mxu1 %v9675_v11  ;;  %v9766_v10 = vld [vmem:[%s14537_s1 + $0x404] ss:$16 sps:$4 sm:$0xff]   ;;  %v9769_v11 = vld [vmem:[%s14537_s1 + $0x40c] ss:$16 sps:$4 sm:$0xff]  }
  0x48   :  { %6532 = vmatprep.subr.bf16.mxu0 %v9680_v12  ;;  %7348 = vmatprep.subr.bf16.mxu1 %v9683_v13  ;;  %v8242_v12 = vcombine.low %v11441_v33, %v11446_v34  ;;  %v46_v13 = vld [vmem:[%s14538_s0 + $0x108] sm:$0xff]  ;;  %v9790_v33 = vld [vmem:[%s14537_s1 + $0x484] ss:$16 sps:$4 sm:$0xff]  }
  0x49   :  { %v8274_v25 = vcombine.low %v46_v13, %v46_v13  ;;  %v9793_v34 = vld [vmem:[%s14537_s1 + $0x48c] ss:$16 sps:$4 sm:$0xff]  }
  0x4a   :  { %6520 = vmatmul.mubr.bf16.gmra.mrb[4].mxu0 %v8272_v28  ;;  %7336 = vmatmul.mubr.bf16.gmra.mrb[4].mxu1 %v8272_v28  ;;  %v9784_v28 = vld [vmem:[%s14537_s1 + $0x464] ss:$16 sps:$4 sm:$0xff]  }
  0x4b   :  { %6533 = vmatpush1.bf16.msra.mxu0 %v9678_v14  ;;  %7349 = vmatpush1.bf16.msra.mxu1 %v9681_v15  ;;  %v9764_v14 = vld [vmem:[%s14537_s1 + $0x400] ss:$16 sps:$4 sm:$0xff]   ;;  %v9767_v15 = vld [vmem:[%s14537_s1 + $0x408] ss:$16 sps:$4 sm:$0xff]  }
  0x4c   :  { %6534 = vmatprep.subr.bf16.mxu0 %v9686_v16  ;;  %7350 = vmatprep.subr.bf16.mxu1 %v9689_v17  ;;  %v9772_v16 = vld [vmem:[%s14537_s1 + $0x424] ss:$16 sps:$4 sm:$0xff]   ;;  %v9775_v17 = vld [vmem:[%s14537_s1 + $0x42c] ss:$16 sps:$4 sm:$0xff]  }
  0x4d   :  { %6560 = vmatprep.mubr.bf16.mxu0 %v8243_v36  ;;  %7376 = vmatprep.mubr.bf16.mxu1 %v8243_v36  ;;  %v9791_v36 = vld [vmem:[%s14537_s1 + $0x488] ss:$16 sps:$4 sm:$0xff]  }
  0x4f   :  { %6535 = vmatpush1.bf16.msra.mxu0 %v9684_v18  ;;  %7351 = vmatpush1.bf16.msra.mxu1 %v9687_v19  ;;  %v8275_v18 = vcombine.high %v46_v13, %v46_v13  ;;  %v9770_v19 = vld [vmem:[%s14537_s1 + $0x420] ss:$16 sps:$4 sm:$0xff]   ;;  %v9858_v13 = vld [vmem:[%s14537_s1 + $0x5e4] ss:$16 sps:$4 sm:$0xff]  }
  0x50   :  { %6536 = vmatprep.subr.bf16.mxu0 %v9692_v20  ;;  %7352 = vmatprep.subr.bf16.mxu1 %v9695_v21  ;;  %v9773_v20 = vld [vmem:[%s14537_s1 + $0x428] ss:$16 sps:$4 sm:$0xff]   ;;  %v9778_v21 = vld [vmem:[%s14537_s1 + $0x444] ss:$16 sps:$4 sm:$0xff]  }
  0x53   :  { %6537 = vmatpush1.bf16.msra.mxu0 %v9690_v22  ;;  %7353 = vmatpush1.bf16.msra.mxu1 %v9693_v23  ;;  %v9781_v22 = vld [vmem:[%s14537_s1 + $0x44c] ss:$16 sps:$4 sm:$0xff]   ;;  %v9776_v23 = vld [vmem:[%s14537_s1 + $0x440] ss:$16 sps:$4 sm:$0xff]  }
  0x54   :  { %6538 = vmatprep.subr.bf16.mxu0 %v9698_v24  ;;  %7354 = vmatprep.subr.bf16.mxu1 %v9701_v26  ;;  %v9779_v24 = vld [vmem:[%s14537_s1 + $0x448] ss:$16 sps:$4 sm:$0xff]   ;;  %v11608_v26 = vld [vmem:[%s14538_s0 + $0x10] sm:$0xff] }
  0x57   :  { %6539 = vmatpush1.bf16.msra.mxu0 %v9696_v29  ;;  %7355 = vmatpush1.bf16.msra.mxu1 %v9699_v30  ;;  %v9787_v29 = vld [vmem:[%s14537_s1 + $0x46c] ss:$16 sps:$4 sm:$0xff]   ;;  %v8245_v30 = vcombine.high %v11608_v26, %v11613_v27 }
  0x58   :  { %6540 = vmatprep.subr.bf16.mxu0 %v9704_v31  ;;  %7356 = vmatprep.subr.bf16.mxu1 %v9707_v32  ;;  %v9782_v31 = vld [vmem:[%s14537_s1 + $0x460] ss:$16 sps:$4 sm:$0xff]   ;;  %v9785_v32 = vld [vmem:[%s14537_s1 + $0x468] ss:$16 sps:$4 sm:$0xff]  }
  0x5b   :  { %6541 = vmatpush1.bf16.msra.mxu0 %v9702_v35  ;;  %7357 = vmatpush1.bf16.msra.mxu1 %v9705_v37  ;;  %v9788_v35 = vld [vmem:[%s14537_s1 + $0x480] ss:$16 sps:$4 sm:$0xff]   ;;  %v9796_v37 = vld [vmem:[%s14537_s1 + $0x4a4] ss:$16 sps:$4 sm:$0xff]  }
  0x5c   :  { %6542 = vmatprep.subr.bf16.mxu0 %v9710_v38  ;;  %7358 = vmatprep.subr.bf16.mxu1 %v9713_v39  ;;  %v9799_v38 = vld [vmem:[%s14537_s1 + $0x4ac] ss:$16 sps:$4 sm:$0xff]   ;;  %v9794_v39 = vld [vmem:[%s14537_s1 + $0x4a0] ss:$16 sps:$4 sm:$0xff]  }
  0x5f   :  { %6543 = vmatpush1.bf16.msra.mxu0 %v9708_v40  ;;  %7359 = vmatpush1.bf16.msra.mxu1 %v9711_v41  ;;  %v9797_v40 = vld [vmem:[%s14537_s1 + $0x4a8] ss:$16 sps:$4 sm:$0xff]   ;;  %v9802_v41 = vld [vmem:[%s14537_s1 + $0x4c4] ss:$16 sps:$4 sm:$0xff]  }
  0x60   :  { %6544 = vmatprep.subr.bf16.mxu0 %v9716_v42  ;;  %7360 = vmatprep.subr.bf16.mxu1 %v9719_v43  ;;  %v9805_v42 = vld [vmem:[%s14537_s1 + $0x4cc] ss:$16 sps:$4 sm:$0xff]   ;;  %v9800_v43 = vld [vmem:[%s14537_s1 + $0x4c0] ss:$16 sps:$4 sm:$0xff]  }
  0x63   :  { %6545 = vmatpush1.bf16.msra.mxu0 %v9714_v44  ;;  %7361 = vmatpush1.bf16.msra.mxu1 %v9717_v45  ;;  %v9803_v44 = vld [vmem:[%s14537_s1 + $0x4c8] ss:$16 sps:$4 sm:$0xff]   ;;  %v9808_v45 = vld [vmem:[%s14537_s1 + $0x4e4] ss:$16 sps:$4 sm:$0xff]  }
  0x64   :  { %6546 = vmatprep.subr.bf16.mxu0 %v9722_v46  ;;  %7362 = vmatprep.subr.bf16.mxu1 %v9725_v47  ;;  %v9811_v46 = vld [vmem:[%s14537_s1 + $0x4ec] ss:$16 sps:$4 sm:$0xff]   ;;  %v9806_v47 = vld [vmem:[%s14537_s1 + $0x4e0] ss:$16 sps:$4 sm:$0xff]  }
  0x67   :  { %6547 = vmatpush1.bf16.msra.mxu0 %v9720_v48  ;;  %7363 = vmatpush1.bf16.msra.mxu1 %v9723_v49  ;;  %v9809_v48 = vld [vmem:[%s14537_s1 + $0x4e8] ss:$16 sps:$4 sm:$0xff]   ;;  %v9814_v49 = vld [vmem:[%s14537_s1 + $0x504] ss:$16 sps:$4 sm:$0xff]  }
  0x68   :  { %6548 = vmatprep.subr.bf16.mxu0 %v9728_v50  ;;  %7364 = vmatprep.subr.bf16.mxu1 %v9731_v51  ;;  %v9817_v50 = vld [vmem:[%s14537_s1 + $0x50c] ss:$16 sps:$4 sm:$0xff]   ;;  %v9812_v51 = vld [vmem:[%s14537_s1 + $0x500] ss:$16 sps:$4 sm:$0xff]  }
  0x6b   :  { %6549 = vmatpush1.bf16.msra.mxu0 %v9726_v52  ;;  %7365 = vmatpush1.bf16.msra.mxu1 %v9729_v53  ;;  %v9815_v52 = vld [vmem:[%s14537_s1 + $0x508] ss:$16 sps:$4 sm:$0xff]   ;;  %v9820_v53 = vld [vmem:[%s14537_s1 + $0x524] ss:$16 sps:$4 sm:$0xff]  }
  0x6c   :  { %6550 = vmatprep.subr.bf16.mxu0 %v9734_v54  ;;  %7366 = vmatprep.subr.bf16.mxu1 %v9737_v55  ;;  %v9823_v54 = vld [vmem:[%s14537_s1 + $0x52c] ss:$16 sps:$4 sm:$0xff]   ;;  %v9818_v55 = vld [vmem:[%s14537_s1 + $0x520] ss:$16 sps:$4 sm:$0xff]  }
  0x6f   :  { %6551 = vmatpush1.bf16.msra.mxu0 %v9732_v56  ;;  %7367 = vmatpush1.bf16.msra.mxu1 %v9735_v57  ;;  %v9821_v56 = vld [vmem:[%s14537_s1 + $0x528] ss:$16 sps:$4 sm:$0xff]   ;;  %v9826_v57 = vld [vmem:[%s14537_s1 + $0x544] ss:$16 sps:$4 sm:$0xff]  }
  0x70   :  { %6552 = vmatprep.subr.bf16.mxu0 %v9740_v58  ;;  %7368 = vmatprep.subr.bf16.mxu1 %v9743_v59  ;;  %v9829_v58 = vld [vmem:[%s14537_s1 + $0x54c] ss:$16 sps:$4 sm:$0xff]   ;;  %v9824_v59 = vld [vmem:[%s14537_s1 + $0x540] ss:$16 sps:$4 sm:$0xff]  }
  0x73   :  { %6553 = vmatpush1.bf16.msra.mxu0 %v9738_v60  ;;  %7369 = vmatpush1.bf16.msra.mxu1 %v9741_v61  ;;  %v9827_v60 = vld [vmem:[%s14537_s1 + $0x548] ss:$16 sps:$4 sm:$0xff]   ;;  %v9832_v61 = vld [vmem:[%s14537_s1 + $0x564] ss:$16 sps:$4 sm:$0xff]  }
  0x74   :  { %6554 = vmatprep.subr.bf16.mxu0 %v9746_v62  ;;  %7370 = vmatprep.subr.bf16.mxu1 %v9749_v63  ;;  %v9835_v62 = vld [vmem:[%s14537_s1 + $0x56c] ss:$16 sps:$4 sm:$0xff]   ;;  %v9830_v63 = vld [vmem:[%s14537_s1 + $0x560] ss:$16 sps:$4 sm:$0xff]  }
  0x77   :  { %6555 = vmatpush1.bf16.msra.mxu0 %v9744_v0  ;;  %7371 = vmatpush1.bf16.msra.mxu1 %v9747_v1  ;;  %v9833_v0 = vld [vmem:[%s14537_s1 + $0x568] ss:$16 sps:$4 sm:$0xff]   ;;  %v9838_v1 = vld [vmem:[%s14537_s1 + $0x584] ss:$16 sps:$4 sm:$0xff]  }
  0x78   :  { %6556 = vmatprep.subr.bf16.mxu0 %v9753_v2  ;;  %7372 = vmatprep.subr.bf16.mxu1 %v9756_v3  ;;  %v9841_v2 = vld [vmem:[%s14537_s1 + $0x58c] ss:$16 sps:$4 sm:$0xff]   ;;  %v9836_v3 = vld [vmem:[%s14537_s1 + $0x580] ss:$16 sps:$4 sm:$0xff]  }
  0x7b   :  { %6557 = vmatpush1.bf16.msra.mxu0 %v9751_v4  ;;  %7373 = vmatpush1.bf16.msra.mxu1 %v9754_v5  ;;  %v9839_v4 = vld [vmem:[%s14537_s1 + $0x588] ss:$16 sps:$4 sm:$0xff]   ;;  %v9844_v5 = vld [vmem:[%s14537_s1 + $0x5a4] ss:$16 sps:$4 sm:$0xff]  }
  0x7c   :  { %6558 = vmatprep.subr.bf16.mxu0 %v9760_v6  ;;  %7374 = vmatprep.subr.bf16.mxu1 %v9763_v7  ;;  %v9847_v6 = vld [vmem:[%s14537_s1 + $0x5ac] ss:$16 sps:$4 sm:$0xff]   ;;  %v9842_v7 = vld [vmem:[%s14537_s1 + $0x5a0] ss:$16 sps:$4 sm:$0xff]  }
  0x7f   :  { %6559 = vmatpush1.bf16.msra.mxu0 %v9758_v8  ;;  %7375 = vmatpush1.bf16.msra.mxu1 %v9761_v9  ;;  %v9845_v8 = vld [vmem:[%s14537_s1 + $0x5a8] ss:$16 sps:$4 sm:$0xff]   ;;  %v9851_v9 = vld [vmem:[%s14537_s1 + $0x5c4] ss:$16 sps:$4 sm:$0xff]  }
  0x80   :  { %6579 = vmatprep.subr.bf16.mxu0 %v9766_v10  ;;  %7395 = vmatprep.subr.bf16.mxu1 %v9769_v11  ;;  %v9854_v10 = vld [vmem:[%s14537_s1 + $0x5cc] ss:$16 sps:$4 sm:$0xff]   ;;  %v9849_v11 = vld [vmem:[%s14537_s1 + $0x5c0] ss:$16 sps:$4 sm:$0xff]  }
  0x82   :  { %6561 = vmatmul.mubr.bf16.vlgmr.msra.gmra.mrb[0].mxu0 %v8242_v12  ;;  %7377 = vmatmul.mubr.bf16.vlgmr.msra.gmra.mrb[0].mxu1 %v8242_v12  ;;  %v9852_v12 = vld [vmem:[%s14537_s1 + $0x5c8] ss:$16 sps:$4 sm:$0xff]  }
  0x83   :  { %6580 = vmatpush1.bf16.msra.mxu0 %v9764_v14  ;;  %7396 = vmatpush1.bf16.msra.mxu1 %v9767_v15  ;;  %v9861_v14 = vld [vmem:[%s14537_s1 + $0x5ec] ss:$16 sps:$4 sm:$0xff]   ;;  %v9856_v15 = vld [vmem:[%s14537_s1 + $0x5e0] ss:$16 sps:$4 sm:$0xff]  }
  0x84   :  { %6581 = vmatprep.subr.bf16.mxu0 %v9772_v16  ;;  %7397 = vmatprep.subr.bf16.mxu1 %v9775_v17  ;;  %v9859_v16 = vld [vmem:[%s14537_s1 + $0x5e8] ss:$16 sps:$4 sm:$0xff]   ;;  %v9864_v17 = vld [vmem:[%s14537_s1 + $0x604] ss:$16 sps:$4 sm:$0xff]  }
  0x85   :  { %6570 = vmatprep.mubr.bf16.mxu0 %v8275_v18  ;;  %7386 = vmatprep.mubr.bf16.mxu1 %v8275_v18  ;;  %v9867_v18 = vld [vmem:[%s14537_s1 + $0x60c] ss:$16 sps:$4 sm:$0xff]  }
  0x87   :  { %6582 = vmatpush1.bf16.msra.mxu0 %v9770_v19  ;;  %7398 = vmatpush1.bf16.msra.mxu1 %v9773_v20  ;;  %v8244_v19 = vcombine.low %v11608_v26, %v11613_v27  ;;  %v9862_v20 = vld [vmem:[%s14537_s1 + $0x600] ss:$16 sps:$4 sm:$0xff]   ;;  %v9871_v27 = vld [vmem:[%s14537_s1 + $0x628] ss:$16 sps:$4 sm:$0xff]  }
  0x88   :  { %6583 = vmatprep.subr.bf16.mxu0 %v9778_v21  ;;  %7399 = vmatprep.subr.bf16.mxu1 %v9781_v22  ;;  %v47_v21 = vld [vmem:[%s14538_s0 + $0x110] sm:$0xff]  ;;  %v9865_v22 = vld [vmem:[%s14537_s1 + $0x608] ss:$16 sps:$4 sm:$0xff]  }
  0x89   :  { %v9868_v26 = vld [vmem:[%s14537_s1 + $0x620] ss:$16 sps:$4 sm:$0xff]  }
  0x8a   :  { %6571 = vmatmul.mubr.bf16.gmra.mrb[4].mxu0 %v8274_v25  ;;  %7387 = vmatmul.mubr.bf16.gmra.mrb[4].mxu1 %v8274_v25  ;;  %v8277_v25 = vcombine.high %v47_v21, %v47_v21 }
  0x8b   :  { %6584 = vmatpush1.bf16.msra.mxu0 %v9776_v23  ;;  %7400 = vmatpush1.bf16.msra.mxu1 %v9779_v24  ;;  %v9870_v23 = vld [vmem:[%s14537_s1 + $0x624] ss:$16 sps:$4 sm:$0xff]   ;;  %v9873_v24 = vld [vmem:[%s14537_s1 + $0x62c] ss:$16 sps:$4 sm:$0xff]  }
  0x8c   :  { %6585 = vmatprep.subr.bf16.mxu0 %v9784_v28  ;;  %7401 = vmatprep.subr.bf16.mxu1 %v9787_v29  ;;  %v9876_v28 = vld [vmem:[%s14537_s1 + $0x644] ss:$16 sps:$4 sm:$0xff]   ;;  %v9879_v29 = vld [vmem:[%s14537_s1 + $0x64c] ss:$16 sps:$4 sm:$0xff]  }
  0x8d   :  { %6611 = vmatprep.mubr.bf16.mxu0 %v8245_v30  ;;  %7427 = vmatprep.mubr.bf16.mxu1 %v8245_v30  ;;  %v9874_v30 = vld [vmem:[%s14537_s1 + $0x640] ss:$16 sps:$4 sm:$0xff]  }
  0x8f   :  { %6586 = vmatpush1.bf16.msra.mxu0 %v9782_v31  ;;  %7402 = vmatpush1.bf16.msra.mxu1 %v9785_v32  ;;  %v8276_v31 = vcombine.low %v47_v21, %v47_v21  ;;  %v11814_v32 = vld [vmem:[%s14538_s0 + $0x18] sm:$0xff] }
  0x90   :  { %6587 = vmatprep.subr.bf16.mxu0 %v9790_v33  ;;  %7403 = vmatprep.subr.bf16.mxu1 %v9793_v34  ;;  %v11819_v33 = vld [vmem:[%s14538_s0 + $0x98] sm:$0xff] }
  0x91   :  { %v9877_v34 = vld [vmem:[%s14537_s1 + $0x648] ss:$16 sps:$4 sm:$0xff]   ;;  %v9959_v21 = vld [vmem:[%s14537_s1 + $0x7ec] ss:$16 sps:$4 sm:$0xff]  }
  0x93   :  { %6588 = vmatpush1.bf16.msra.mxu0 %v9788_v35  ;;  %7404 = vmatpush1.bf16.msra.mxu1 %v9791_v36  ;;  %v9882_v35 = vld [vmem:[%s14537_s1 + $0x664] ss:$16 sps:$4 sm:$0xff]   ;;  %v9885_v36 = vld [vmem:[%s14537_s1 + $0x66c] ss:$16 sps:$4 sm:$0xff]  }
  0x94   :  { %6589 = vmatprep.subr.bf16.mxu0 %v9796_v37  ;;  %7405 = vmatprep.subr.bf16.mxu1 %v9799_v38  ;;  %v8247_v37 = vcombine.high %v11814_v32, %v11819_v33  ;;  %v9880_v38 = vld [vmem:[%s14537_s1 + $0x660] ss:$16 sps:$4 sm:$0xff]  }
  0x97   :  { %6590 = vmatpush1.bf16.msra.mxu0 %v9794_v39  ;;  %7406 = vmatpush1.bf16.msra.mxu1 %v9797_v40  ;;  %v9883_v39 = vld [vmem:[%s14537_s1 + $0x668] ss:$16 sps:$4 sm:$0xff]   ;;  %v9888_v40 = vld [vmem:[%s14537_s1 + $0x684] ss:$16 sps:$4 sm:$0xff]  }
  0x98   :  { %6591 = vmatprep.subr.bf16.mxu0 %v9802_v41  ;;  %7407 = vmatprep.subr.bf16.mxu1 %v9805_v42  ;;  %v9891_v41 = vld [vmem:[%s14537_s1 + $0x68c] ss:$16 sps:$4 sm:$0xff]   ;;  %v9886_v42 = vld [vmem:[%s14537_s1 + $0x680] ss:$16 sps:$4 sm:$0xff]  }
  0x9b   :  { %6592 = vmatpush1.bf16.msra.mxu0 %v9800_v43  ;;  %7408 = vmatpush1.bf16.msra.mxu1 %v9803_v44  ;;  %v9889_v43 = vld [vmem:[%s14537_s1 + $0x688] ss:$16 sps:$4 sm:$0xff]   ;;  %v9894_v44 = vld [vmem:[%s14537_s1 + $0x6a4] ss:$16 sps:$4 sm:$0xff]  }
  0x9c   :  { %6593 = vmatprep.subr.bf16.mxu0 %v9808_v45  ;;  %7409 = vmatprep.subr.bf16.mxu1 %v9811_v46  ;;  %v9897_v45 = vld [vmem:[%s14537_s1 + $0x6ac] ss:$16 sps:$4 sm:$0xff]   ;;  %v9892_v46 = vld [vmem:[%s14537_s1 + $0x6a0] ss:$16 sps:$4 sm:$0xff]  }
  0x9f   :  { %6594 = vmatpush1.bf16.msra.mxu0 %v9806_v47  ;;  %7410 = vmatpush1.bf16.msra.mxu1 %v9809_v48  ;;  %v9895_v47 = vld [vmem:[%s14537_s1 + $0x6a8] ss:$16 sps:$4 sm:$0xff]   ;;  %v9900_v48 = vld [vmem:[%s14537_s1 + $0x6c4] ss:$16 sps:$4 sm:$0xff]  }
  0xa0   :  { %6595 = vmatprep.subr.bf16.mxu0 %v9814_v49  ;;  %7411 = vmatprep.subr.bf16.mxu1 %v9817_v50  ;;  %v9903_v49 = vld [vmem:[%s14537_s1 + $0x6cc] ss:$16 sps:$4 sm:$0xff]   ;;  %v9898_v50 = vld [vmem:[%s14537_s1 + $0x6c0] ss:$16 sps:$4 sm:$0xff]  }
  0xa3   :  { %6596 = vmatpush1.bf16.msra.mxu0 %v9812_v51  ;;  %7412 = vmatpush1.bf16.msra.mxu1 %v9815_v52  ;;  %v9901_v51 = vld [vmem:[%s14537_s1 + $0x6c8] ss:$16 sps:$4 sm:$0xff]   ;;  %v9906_v52 = vld [vmem:[%s14537_s1 + $0x6e4] ss:$16 sps:$4 sm:$0xff]  }
  0xa4   :  { %6597 = vmatprep.subr.bf16.mxu0 %v9820_v53  ;;  %7413 = vmatprep.subr.bf16.mxu1 %v9823_v54  ;;  %v9909_v53 = vld [vmem:[%s14537_s1 + $0x6ec] ss:$16 sps:$4 sm:$0xff]   ;;  %v9904_v54 = vld [vmem:[%s14537_s1 + $0x6e0] ss:$16 sps:$4 sm:$0xff]  }
  0xa7   :  { %6598 = vmatpush1.bf16.msra.mxu0 %v9818_v55  ;;  %7414 = vmatpush1.bf16.msra.mxu1 %v9821_v56  ;;  %v9907_v55 = vld [vmem:[%s14537_s1 + $0x6e8] ss:$16 sps:$4 sm:$0xff]   ;;  %v9912_v56 = vld [vmem:[%s14537_s1 + $0x704] ss:$16 sps:$4 sm:$0xff]  }
  0xa8   :  { %6599 = vmatprep.subr.bf16.mxu0 %v9826_v57  ;;  %7415 = vmatprep.subr.bf16.mxu1 %v9829_v58  ;;  %v9915_v57 = vld [vmem:[%s14537_s1 + $0x70c] ss:$16 sps:$4 sm:$0xff]   ;;  %v9910_v58 = vld [vmem:[%s14537_s1 + $0x700] ss:$16 sps:$4 sm:$0xff]  }
  0xab   :  { %6600 = vmatpush1.bf16.msra.mxu0 %v9824_v59  ;;  %7416 = vmatpush1.bf16.msra.mxu1 %v9827_v60  ;;  %v9913_v59 = vld [vmem:[%s14537_s1 + $0x708] ss:$16 sps:$4 sm:$0xff]   ;;  %v9918_v60 = vld [vmem:[%s14537_s1 + $0x724] ss:$16 sps:$4 sm:$0xff]  }
  0xac   :  { %6601 = vmatprep.subr.bf16.mxu0 %v9832_v61  ;;  %7417 = vmatprep.subr.bf16.mxu1 %v9835_v62  ;;  %v9921_v61 = vld [vmem:[%s14537_s1 + $0x72c] ss:$16 sps:$4 sm:$0xff]   ;;  %v9916_v62 = vld [vmem:[%s14537_s1 + $0x720] ss:$16 sps:$4 sm:$0xff]  }
  0xaf   :  { %6602 = vmatpush1.bf16.msra.mxu0 %v9830_v63  ;;  %7418 = vmatpush1.bf16.msra.mxu1 %v9833_v0  ;;  %v9919_v63 = vld [vmem:[%s14537_s1 + $0x728] ss:$16 sps:$4 sm:$0xff]   ;;  %v9924_v0 = vld [vmem:[%s14537_s1 + $0x744] ss:$16 sps:$4 sm:$0xff]  }
  0xb0   :  { %6603 = vmatprep.subr.bf16.mxu0 %v9838_v1  ;;  %7419 = vmatprep.subr.bf16.mxu1 %v9841_v2  ;;  %v9927_v1 = vld [vmem:[%s14537_s1 + $0x74c] ss:$16 sps:$4 sm:$0xff]   ;;  %v9922_v2 = vld [vmem:[%s14537_s1 + $0x740] ss:$16 sps:$4 sm:$0xff]  }
  0xb3   :  { %6604 = vmatpush1.bf16.msra.mxu0 %v9836_v3  ;;  %7420 = vmatpush1.bf16.msra.mxu1 %v9839_v4  ;;  %v9925_v3 = vld [vmem:[%s14537_s1 + $0x748] ss:$16 sps:$4 sm:$0xff]   ;;  %v9930_v4 = vld [vmem:[%s14537_s1 + $0x764] ss:$16 sps:$4 sm:$0xff]  }
  0xb4   :  { %6605 = vmatprep.subr.bf16.mxu0 %v9844_v5  ;;  %7421 = vmatprep.subr.bf16.mxu1 %v9847_v6  ;;  %v9933_v5 = vld [vmem:[%s14537_s1 + $0x76c] ss:$16 sps:$4 sm:$0xff]   ;;  %v9928_v6 = vld [vmem:[%s14537_s1 + $0x760] ss:$16 sps:$4 sm:$0xff]  }
  0xb7   :  { %6606 = vmatpush1.bf16.msra.mxu0 %v9842_v7  ;;  %7422 = vmatpush1.bf16.msra.mxu1 %v9845_v8  ;;  %v9931_v7 = vld [vmem:[%s14537_s1 + $0x768] ss:$16 sps:$4 sm:$0xff]   ;;  %v9936_v8 = vld [vmem:[%s14537_s1 + $0x784] ss:$16 sps:$4 sm:$0xff]  }
  0xb8   :  { %6607 = vmatprep.subr.bf16.mxu0 %v9851_v9  ;;  %7423 = vmatprep.subr.bf16.mxu1 %v9854_v10  ;;  %v9939_v9 = vld [vmem:[%s14537_s1 + $0x78c] ss:$16 sps:$4 sm:$0xff]   ;;  %v9934_v10 = vld [vmem:[%s14537_s1 + $0x780] ss:$16 sps:$4 sm:$0xff]  }
  0xbb   :  { %6608 = vmatpush1.bf16.msra.mxu0 %v9849_v11  ;;  %7424 = vmatpush1.bf16.msra.mxu1 %v9852_v12  ;;  %v9937_v11 = vld [vmem:[%s14537_s1 + $0x788] ss:$16 sps:$4 sm:$0xff]   ;;  %v9942_v12 = vld [vmem:[%s14537_s1 + $0x7a4] ss:$16 sps:$4 sm:$0xff]  }
  0xbc   :  { %6609 = vmatprep.subr.bf16.mxu0 %v9858_v13  ;;  %7425 = vmatprep.subr.bf16.mxu1 %v9861_v14  ;;  %v9945_v13 = vld [vmem:[%s14537_s1 + $0x7ac] ss:$16 sps:$4 sm:$0xff]   ;;  %v9940_v14 = vld [vmem:[%s14537_s1 + $0x7a0] ss:$16 sps:$4 sm:$0xff]  }
  0xbf   :  { %6610 = vmatpush1.bf16.msra.mxu0 %v9856_v15  ;;  %7426 = vmatpush1.bf16.msra.mxu1 %v9859_v16  ;;  %v9943_v15 = vld [vmem:[%s14537_s1 + $0x7a8] ss:$16 sps:$4 sm:$0xff]   ;;  %v9949_v16 = vld [vmem:[%s14537_s1 + $0x7c4] ss:$16 sps:$4 sm:$0xff]  }
  0xc0   :  { %6630 = vmatprep.subr.bf16.mxu0 %v9864_v17  ;;  %7446 = vmatprep.subr.bf16.mxu1 %v9867_v18  ;;  %v9952_v17 = vld [vmem:[%s14537_s1 + $0x7cc] ss:$16 sps:$4 sm:$0xff]   ;;  %v9947_v18 = vld [vmem:[%s14537_s1 + $0x7c0] ss:$16 sps:$4 sm:$0xff]  }
  0xc2   :  { %6612 = vmatmul.mubr.bf16.vlgmr.msra.gmra.mrb[0].mxu0 %v8244_v19  ;;  %7428 = vmatmul.mubr.bf16.vlgmr.msra.gmra.mrb[0].mxu1 %v8244_v19  ;;  %v9950_v19 = vld [vmem:[%s14537_s1 + $0x7c8] ss:$16 sps:$4 sm:$0xff]  }
  0xc3   :  { %6631 = vmatpush1.bf16.msra.mxu0 %v9862_v20  ;;  %7447 = vmatpush1.bf16.msra.mxu1 %v9865_v22  ;;  %v9956_v20 = vld [vmem:[%s14537_s1 + $0x7e4] ss:$16 sps:$4 sm:$0xff]   ;;  %v9954_v22 = vld [vmem:[%s14537_s1 + $0x7e0] ss:$16 sps:$4 sm:$0xff]  }
  0xc4   :  { %6632 = vmatprep.subr.bf16.mxu0 %v9870_v23  ;;  %7448 = vmatprep.subr.bf16.mxu1 %v9873_v24  ;;  %v9957_v23 = vld [vmem:[%s14537_s1 + $0x7e8] ss:$16 sps:$4 sm:$0xff]   ;;  %v9962_v24 = vld [vmem:[%s14537_s1 + $0x804] ss:$16 sps:$4 sm:$0xff]  }
  0xc5   :  { %6621 = vmatprep.mubr.bf16.mxu0 %v8277_v25  ;;  %7437 = vmatprep.mubr.bf16.mxu1 %v8277_v25  ;;  %v9965_v25 = vld [vmem:[%s14537_s1 + $0x80c] ss:$16 sps:$4 sm:$0xff]  }
  0xc7   :  { %6633 = vmatpush1.bf16.msra.mxu0 %v9868_v26  ;;  %7449 = vmatpush1.bf16.msra.mxu1 %v9871_v27  ;;  %v8246_v26 = vcombine.low %v11814_v32, %v11819_v33  ;;  %v9960_v27 = vld [vmem:[%s14537_s1 + $0x800] ss:$16 sps:$4 sm:$0xff]  }
  0xc8   :  { %6634 = vmatprep.subr.bf16.mxu0 %v9876_v28  ;;  %7450 = vmatprep.subr.bf16.mxu1 %v9879_v29  ;;  %v48_v28 = vld [vmem:[%s14538_s0 + $0x118] sm:$0xff]  ;;  %v9966_v33 = vld [vmem:[%s14537_s1 + $0x820] ss:$16 sps:$4 sm:$0xff]  }
  0xc9   :  { %v9963_v29 = vld [vmem:[%s14537_s1 + $0x808] ss:$16 sps:$4 sm:$0xff]   ;;  %v8279_v32 = vcombine.high %v48_v28, %v48_v28 }
  0xca   :  { %6622 = vmatmul.mubr.bf16.gmra.mrb[4].mxu0 %v8276_v31  ;;  %7438 = vmatmul.mubr.bf16.gmra.mrb[4].mxu1 %v8276_v31  ;;  %v9971_v31 = vld [vmem:[%s14537_s1 + $0x82c] ss:$16 sps:$4 sm:$0xff]  }
  0xcb   :  { %6635 = vmatpush1.bf16.msra.mxu0 %v9874_v30  ;;  %7451 = vmatpush1.bf16.msra.mxu1 %v9877_v34  ;;  %v9968_v30 = vld [vmem:[%s14537_s1 + $0x824] ss:$16 sps:$4 sm:$0xff]   ;;  %v9969_v34 = vld [vmem:[%s14537_s1 + $0x828] ss:$16 sps:$4 sm:$0xff]  }
  0xcc   :  { %6636 = vmatprep.subr.bf16.mxu0 %v9882_v35  ;;  %7452 = vmatprep.subr.bf16.mxu1 %v9885_v36  ;;  %v9974_v35 = vld [vmem:[%s14537_s1 + $0x844] ss:$16 sps:$4 sm:$0xff]   ;;  %v9977_v36 = vld [vmem:[%s14537_s1 + $0x84c] ss:$16 sps:$4 sm:$0xff]  }
  0xcd   :  { %6662 = vmatprep.mubr.bf16.mxu0 %v8247_v37  ;;  %7478 = vmatprep.mubr.bf16.mxu1 %v8247_v37  ;;  %v9972_v37 = vld [vmem:[%s14537_s1 + $0x840] ss:$16 sps:$4 sm:$0xff]  }
  0xcf   :  { %6637 = vmatpush1.bf16.msra.mxu0 %v9880_v38  ;;  %7453 = vmatpush1.bf16.msra.mxu1 %v9883_v39  ;;  %v12023_v38 = vld [vmem:[%s14538_s0 + $0x20] sm:$0xff]  ;;  %v8278_v39 = vcombine.low %v48_v28, %v48_v28  ;;  %v10057_v28 = vld [vmem:[%s14537_s1 + $0x9ec] ss:$16 sps:$4 sm:$0xff]  }
  0xd0   :  { %6638 = vmatprep.subr.bf16.mxu0 %v9888_v40  ;;  %7454 = vmatprep.subr.bf16.mxu1 %v9891_v41  ;;  %v12028_v40 = vld [vmem:[%s14538_s0 + $0xa0] sm:$0xff]  ;;  %v9975_v41 = vld [vmem:[%s14537_s1 + $0x848] ss:$16 sps:$4 sm:$0xff]  }
  0xd3   :  { %6639 = vmatpush1.bf16.msra.mxu0 %v9886_v42  ;;  %7455 = vmatpush1.bf16.msra.mxu1 %v9889_v43  ;;  %v9980_v42 = vld [vmem:[%s14537_s1 + $0x864] ss:$16 sps:$4 sm:$0xff]   ;;  %v9983_v43 = vld [vmem:[%s14537_s1 + $0x86c] ss:$16 sps:$4 sm:$0xff]  }
  0xd4   :  { %6640 = vmatprep.subr.bf16.mxu0 %v9894_v44  ;;  %7456 = vmatprep.subr.bf16.mxu1 %v9897_v45  ;;  %v8249_v44 = vcombine.high %v12023_v38, %v12028_v40  ;;  %v9978_v45 = vld [vmem:[%s14537_s1 + $0x860] ss:$16 sps:$4 sm:$0xff]  }
  0xd7   :  { %6641 = vmatpush1.bf16.msra.mxu0 %v9892_v46  ;;  %7457 = vmatpush1.bf16.msra.mxu1 %v9895_v47  ;;  %v9981_v46 = vld [vmem:[%s14537_s1 + $0x868] ss:$16 sps:$4 sm:$0xff]   ;;  %v9986_v47 = vld [vmem:[%s14537_s1 + $0x884] ss:$16 sps:$4 sm:$0xff]  }
  0xd8   :  { %6642 = vmatprep.subr.bf16.mxu0 %v9900_v48  ;;  %7458 = vmatprep.subr.bf16.mxu1 %v9903_v49  ;;  %v9989_v48 = vld [vmem:[%s14537_s1 + $0x88c] ss:$16 sps:$4 sm:$0xff]   ;;  %v9984_v49 = vld [vmem:[%s14537_s1 + $0x880] ss:$16 sps:$4 sm:$0xff]  }
  0xdb   :  { %6643 = vmatpush1.bf16.msra.mxu0 %v9898_v50  ;;  %7459 = vmatpush1.bf16.msra.mxu1 %v9901_v51  ;;  %v9987_v50 = vld [vmem:[%s14537_s1 + $0x888] ss:$16 sps:$4 sm:$0xff]   ;;  %v9992_v51 = vld [vmem:[%s14537_s1 + $0x8a4] ss:$16 sps:$4 sm:$0xff]  }
  0xdc   :  { %6644 = vmatprep.subr.bf16.mxu0 %v9906_v52  ;;  %7460 = vmatprep.subr.bf16.mxu1 %v9909_v53  ;;  %v9995_v52 = vld [vmem:[%s14537_s1 + $0x8ac] ss:$16 sps:$4 sm:$0xff]   ;;  %v9990_v53 = vld [vmem:[%s14537_s1 + $0x8a0] ss:$16 sps:$4 sm:$0xff]  }
  0xdf   :  { %6645 = vmatpush1.bf16.msra.mxu0 %v9904_v54  ;;  %7461 = vmatpush1.bf16.msra.mxu1 %v9907_v55  ;;  %v9993_v54 = vld [vmem:[%s14537_s1 + $0x8a8] ss:$16 sps:$4 sm:$0xff]   ;;  %v9998_v55 = vld [vmem:[%s14537_s1 + $0x8c4] ss:$16 sps:$4 sm:$0xff]  }
  0xe0   :  { %6646 = vmatprep.subr.bf16.mxu0 %v9912_v56  ;;  %7462 = vmatprep.subr.bf16.mxu1 %v9915_v57  ;;  %v10001_v56 = vld [vmem:[%s14537_s1 + $0x8cc] ss:$16 sps:$4 sm:$0xff]   ;;  %v9996_v57 = vld [vmem:[%s14537_s1 + $0x8c0] ss:$16 sps:$4 sm:$0xff]  }
  0xe3   :  { %6647 = vmatpush1.bf16.msra.mxu0 %v9910_v58  ;;  %7463 = vmatpush1.bf16.msra.mxu1 %v9913_v59  ;;  %v9999_v58 = vld [vmem:[%s14537_s1 + $0x8c8] ss:$16 sps:$4 sm:$0xff]   ;;  %v10004_v59 = vld [vmem:[%s14537_s1 + $0x8e4] ss:$16 sps:$4 sm:$0xff]  }
  0xe4   :  { %6648 = vmatprep.subr.bf16.mxu0 %v9918_v60  ;;  %7464 = vmatprep.subr.bf16.mxu1 %v9921_v61  ;;  %v10007_v60 = vld [vmem:[%s14537_s1 + $0x8ec] ss:$16 sps:$4 sm:$0xff]   ;;  %v10002_v61 = vld [vmem:[%s14537_s1 + $0x8e0] ss:$16 sps:$4 sm:$0xff]  }
  0xe7   :  { %6649 = vmatpush1.bf16.msra.mxu0 %v9916_v62  ;;  %7465 = vmatpush1.bf16.msra.mxu1 %v9919_v63  ;;  %v10005_v62 = vld [vmem:[%s14537_s1 + $0x8e8] ss:$16 sps:$4 sm:$0xff]   ;;  %v10010_v63 = vld [vmem:[%s14537_s1 + $0x904] ss:$16 sps:$4 sm:$0xff]  }
  0xe8   :  { %6650 = vmatprep.subr.bf16.mxu0 %v9924_v0  ;;  %7466 = vmatprep.subr.bf16.mxu1 %v9927_v1  ;;  %v10013_v0 = vld [vmem:[%s14537_s1 + $0x90c] ss:$16 sps:$4 sm:$0xff]   ;;  %v10008_v1 = vld [vmem:[%s14537_s1 + $0x900] ss:$16 sps:$4 sm:$0xff]  }
  0xeb   :  { %6651 = vmatpush1.bf16.msra.mxu0 %v9922_v2  ;;  %7467 = vmatpush1.bf16.msra.mxu1 %v9925_v3  ;;  %v10011_v2 = vld [vmem:[%s14537_s1 + $0x908] ss:$16 sps:$4 sm:$0xff]   ;;  %v10016_v3 = vld [vmem:[%s14537_s1 + $0x924] ss:$16 sps:$4 sm:$0xff]  }
  0xec   :  { %6652 = vmatprep.subr.bf16.mxu0 %v9930_v4  ;;  %7468 = vmatprep.subr.bf16.mxu1 %v9933_v5  ;;  %v10019_v4 = vld [vmem:[%s14537_s1 + $0x92c] ss:$16 sps:$4 sm:$0xff]   ;;  %v10014_v5 = vld [vmem:[%s14537_s1 + $0x920] ss:$16 sps:$4 sm:$0xff]  }
  0xef   :  { %6653 = vmatpush1.bf16.msra.mxu0 %v9928_v6  ;;  %7469 = vmatpush1.bf16.msra.mxu1 %v9931_v7  ;;  %v10017_v6 = vld [vmem:[%s14537_s1 + $0x928] ss:$16 sps:$4 sm:$0xff]   ;;  %v10022_v7 = vld [vmem:[%s14537_s1 + $0x944] ss:$16 sps:$4 sm:$0xff]  }
  0xf0   :  { %6654 = vmatprep.subr.bf16.mxu0 %v9936_v8  ;;  %7470 = vmatprep.subr.bf16.mxu1 %v9939_v9  ;;  %v10025_v8 = vld [vmem:[%s14537_s1 + $0x94c] ss:$16 sps:$4 sm:$0xff]   ;;  %v10020_v9 = vld [vmem:[%s14537_s1 + $0x940] ss:$16 sps:$4 sm:$0xff]  }
  0xf3   :  { %6655 = vmatpush1.bf16.msra.mxu0 %v9934_v10  ;;  %7471 = vmatpush1.bf16.msra.mxu1 %v9937_v11  ;;  %v10023_v10 = vld [vmem:[%s14537_s1 + $0x948] ss:$16 sps:$4 sm:$0xff]   ;;  %v10028_v11 = vld [vmem:[%s14537_s1 + $0x964] ss:$16 sps:$4 sm:$0xff]  }
  0xf4   :  { %6656 = vmatprep.subr.bf16.mxu0 %v9942_v12  ;;  %7472 = vmatprep.subr.bf16.mxu1 %v9945_v13  ;;  %v10031_v12 = vld [vmem:[%s14537_s1 + $0x96c] ss:$16 sps:$4 sm:$0xff]   ;;  %v10026_v13 = vld [vmem:[%s14537_s1 + $0x960] ss:$16 sps:$4 sm:$0xff]  }
  0xf7   :  { %6657 = vmatpush1.bf16.msra.mxu0 %v9940_v14  ;;  %7473 = vmatpush1.bf16.msra.mxu1 %v9943_v15  ;;  %v10029_v14 = vld [vmem:[%s14537_s1 + $0x968] ss:$16 sps:$4 sm:$0xff]   ;;  %v10034_v15 = vld [vmem:[%s14537_s1 + $0x984] ss:$16 sps:$4 sm:$0xff]  }
  0xf8   :  { %6658 = vmatprep.subr.bf16.mxu0 %v9949_v16  ;;  %7474 = vmatprep.subr.bf16.mxu1 %v9952_v17  ;;  %v10037_v16 = vld [vmem:[%s14537_s1 + $0x98c] ss:$16 sps:$4 sm:$0xff]   ;;  %v10032_v17 = vld [vmem:[%s14537_s1 + $0x980] ss:$16 sps:$4 sm:$0xff]  }
  0xfb   :  { %6659 = vmatpush1.bf16.msra.mxu0 %v9947_v18  ;;  %7475 = vmatpush1.bf16.msra.mxu1 %v9950_v19  ;;  %v10035_v18 = vld [vmem:[%s14537_s1 + $0x988] ss:$16 sps:$4 sm:$0xff]   ;;  %v10040_v19 = vld [vmem:[%s14537_s1 + $0x9a4] ss:$16 sps:$4 sm:$0xff]  }
  0xfc   :  { %6660 = vmatprep.subr.bf16.mxu0 %v9956_v20  ;;  %7476 = vmatprep.subr.bf16.mxu1 %v9959_v21  ;;  %v10043_v20 = vld [vmem:[%s14537_s1 + $0x9ac] ss:$16 sps:$4 sm:$0xff]   ;;  %v10038_v21 = vld [vmem:[%s14537_s1 + $0x9a0] ss:$16 sps:$4 sm:$0xff]  }
  0xff   :  { %6661 = vmatpush1.bf16.msra.mxu0 %v9954_v22  ;;  %7477 = vmatpush1.bf16.msra.mxu1 %v9957_v23  ;;  %v10041_v22 = vld [vmem:[%s14537_s1 + $0x9a8] ss:$16 sps:$4 sm:$0xff]   ;;  %v10047_v23 = vld [vmem:[%s14537_s1 + $0x9c4] ss:$16 sps:$4 sm:$0xff]  }
 0x100   :  { %6681 = vmatprep.subr.bf16.mxu0 %v9962_v24  ;;  %7497 = vmatprep.subr.bf16.mxu1 %v9965_v25  ;;  %v10050_v24 = vld [vmem:[%s14537_s1 + $0x9cc] ss:$16 sps:$4 sm:$0xff]   ;;  %v10045_v25 = vld [vmem:[%s14537_s1 + $0x9c0] ss:$16 sps:$4 sm:$0xff]  }
 0x102   :  { %6663 = vmatmul.mubr.bf16.vlgmr.msra.gmra.mrb[0].mxu0 %v8246_v26  ;;  %7479 = vmatmul.mubr.bf16.vlgmr.msra.gmra.mrb[0].mxu1 %v8246_v26  ;;  %v10048_v26 = vld [vmem:[%s14537_s1 + $0x9c8] ss:$16 sps:$4 sm:$0xff]  }
 0x103   :  { %6682 = vmatpush1.bf16.msra.mxu0 %v9960_v27  ;;  %7498 = vmatpush1.bf16.msra.mxu1 %v9963_v29  ;;  %v10054_v27 = vld [vmem:[%s14537_s1 + $0x9e4] ss:$16 sps:$4 sm:$0xff]   ;;  %v10052_v29 = vld [vmem:[%s14537_s1 + $0x9e0] ss:$16 sps:$4 sm:$0xff]  }
 0x104   :  { %6683 = vmatprep.subr.bf16.mxu0 %v9968_v30  ;;  %7499 = vmatprep.subr.bf16.mxu1 %v9971_v31  ;;  %v10055_v30 = vld [vmem:[%s14537_s1 + $0x9e8] ss:$16 sps:$4 sm:$0xff]   ;;  %v10060_v31 = vld [vmem:[%s14537_s1 + $0xa04] ss:$16 sps:$4 sm:$0xff]  }
 0x105   :  { %6672 = vmatprep.mubr.bf16.mxu0 %v8279_v32  ;;  %7488 = vmatprep.mubr.bf16.mxu1 %v8279_v32  ;;  %v10063_v32 = vld [vmem:[%s14537_s1 + $0xa0c] ss:$16 sps:$4 sm:$0xff]  }
 0x107   :  { %6684 = vmatpush1.bf16.msra.mxu0 %v9966_v33  ;;  %7500 = vmatpush1.bf16.msra.mxu1 %v9969_v34  ;;  %v49_v33 = vld [vmem:[%s14538_s0 + $0x120] sm:$0xff]  ;;  %v8248_v34 = vcombine.low %v12023_v38, %v12028_v40  ;;  %v10069_v38 = vld [vmem:[%s14537_s1 + $0xa2c] ss:$16 sps:$4 sm:$0xff]   ;;  %v10067_v40 = vld [vmem:[%s14537_s1 + $0xa28] ss:$16 sps:$4 sm:$0xff]  }
 0x108   :  { %6685 = vmatprep.subr.bf16.mxu0 %v9974_v35  ;;  %7501 = vmatprep.subr.bf16.mxu1 %v9977_v36  ;;  %v10058_v35 = vld [vmem:[%s14537_s1 + $0xa00] ss:$16 sps:$4 sm:$0xff]   ;;  %v10061_v36 = vld [vmem:[%s14537_s1 + $0xa08] ss:$16 sps:$4 sm:$0xff]  }
 0x10a   :  { %6673 = vmatmul.mubr.bf16.gmra.mrb[4].mxu0 %v8278_v39  ;;  %7489 = vmatmul.mubr.bf16.gmra.mrb[4].mxu1 %v8278_v39  ;;  %v10064_v39 = vld [vmem:[%s14537_s1 + $0xa20] ss:$16 sps:$4 sm:$0xff]  }
 0x10b   :  { %6686 = vmatpush1.bf16.msra.mxu0 %v9972_v37  ;;  %7502 = vmatpush1.bf16.msra.mxu1 %v9975_v41  ;;  %v10066_v37 = vld [vmem:[%s14537_s1 + $0xa24] ss:$16 sps:$4 sm:$0xff]   ;;  %v8281_v41 = vcombine.high %v49_v33, %v49_v33 }
 0x10c   :  { %6687 = vmatprep.subr.bf16.mxu0 %v9980_v42  ;;  %7503 = vmatprep.subr.bf16.mxu1 %v9983_v43  ;;  %v10072_v42 = vld [vmem:[%s14537_s1 + $0xa44] ss:$16 sps:$4 sm:$0xff]   ;;  %v10075_v43 = vld [vmem:[%s14537_s1 + $0xa4c] ss:$16 sps:$4 sm:$0xff]  }
 0x10d   :  { %6713 = vmatprep.mubr.bf16.mxu0 %v8249_v44  ;;  %7529 = vmatprep.mubr.bf16.mxu1 %v8249_v44  ;;  %v12229_v44 = vld [vmem:[%s14538_s0 + $0x28] sm:$0xff] }
 0x10f   :  { %6688 = vmatpush1.bf16.msra.mxu0 %v9978_v45  ;;  %7504 = vmatpush1.bf16.msra.mxu1 %v9981_v46  ;;  %v12234_v45 = vld [vmem:[%s14538_s0 + $0xa8] sm:$0xff]  ;;  %v8280_v46 = vcombine.low %v49_v33, %v49_v33 }
 0x110   :  { %6689 = vmatprep.subr.bf16.mxu0 %v9986_v47  ;;  %7505 = vmatprep.subr.bf16.mxu1 %v9989_v48  ;;  %v10070_v47 = vld [vmem:[%s14537_s1 + $0xa40] ss:$16 sps:$4 sm:$0xff]   ;;  %v10073_v48 = vld [vmem:[%s14537_s1 + $0xa48] ss:$16 sps:$4 sm:$0xff]  }
 0x111   :  { %v10146_v33 = vld [vmem:[%s14537_s1 + $0xbc8] ss:$16 sps:$4 sm:$0xff]  }
 0x113   :  { %6690 = vmatpush1.bf16.msra.mxu0 %v9984_v49  ;;  %7506 = vmatpush1.bf16.msra.mxu1 %v9987_v50  ;;  %v10078_v49 = vld [vmem:[%s14537_s1 + $0xa64] ss:$16 sps:$4 sm:$0xff]   ;;  %v10081_v50 = vld [vmem:[%s14537_s1 + $0xa6c] ss:$16 sps:$4 sm:$0xff]  }
 0x114   :  { %6691 = vmatprep.subr.bf16.mxu0 %v9992_v51  ;;  %7507 = vmatprep.subr.bf16.mxu1 %v9995_v52  ;;  %v8251_v51 = vcombine.high %v12229_v44, %v12234_v45  ;;  %v10076_v52 = vld [vmem:[%s14537_s1 + $0xa60] ss:$16 sps:$4 sm:$0xff]  }
 0x117   :  { %6692 = vmatpush1.bf16.msra.mxu0 %v9990_v53  ;;  %7508 = vmatpush1.bf16.msra.mxu1 %v9993_v54  ;;  %v10079_v53 = vld [vmem:[%s14537_s1 + $0xa68] ss:$16 sps:$4 sm:$0xff]   ;;  %v10084_v54 = vld [vmem:[%s14537_s1 + $0xa84] ss:$16 sps:$4 sm:$0xff]  }
 0x118   :  { %6693 = vmatprep.subr.bf16.mxu0 %v9998_v55  ;;  %7509 = vmatprep.subr.bf16.mxu1 %v10001_v56  ;;  %v10087_v55 = vld [vmem:[%s14537_s1 + $0xa8c] ss:$16 sps:$4 sm:$0xff]   ;;  %v10082_v56 = vld [vmem:[%s14537_s1 + $0xa80] ss:$16 sps:$4 sm:$0xff]  }
 0x11b   :  { %6694 = vmatpush1.bf16.msra.mxu0 %v9996_v57  ;;  %7510 = vmatpush1.bf16.msra.mxu1 %v9999_v58  ;;  %v10085_v57 = vld [vmem:[%s14537_s1 + $0xa88] ss:$16 sps:$4 sm:$0xff]   ;;  %v10090_v58 = vld [vmem:[%s14537_s1 + $0xaa4] ss:$16 sps:$4 sm:$0xff]  }
 0x11c   :  { %6695 = vmatprep.subr.bf16.mxu0 %v10004_v59  ;;  %7511 = vmatprep.subr.bf16.mxu1 %v10007_v60  ;;  %v10093_v59 = vld [vmem:[%s14537_s1 + $0xaac] ss:$16 sps:$4 sm:$0xff]   ;;  %v10088_v60 = vld [vmem:[%s14537_s1 + $0xaa0] ss:$16 sps:$4 sm:$0xff]  }
 0x11f   :  { %6696 = vmatpush1.bf16.msra.mxu0 %v10002_v61  ;;  %7512 = vmatpush1.bf16.msra.mxu1 %v10005_v62  ;;  %v10091_v61 = vld [vmem:[%s14537_s1 + $0xaa8] ss:$16 sps:$4 sm:$0xff]   ;;  %v10096_v62 = vld [vmem:[%s14537_s1 + $0xac4] ss:$16 sps:$4 sm:$0xff]  }
 0x120   :  { %6697 = vmatprep.subr.bf16.mxu0 %v10010_v63  ;;  %7513 = vmatprep.subr.bf16.mxu1 %v10013_v0  ;;  %v10099_v63 = vld [vmem:[%s14537_s1 + $0xacc] ss:$16 sps:$4 sm:$0xff]   ;;  %v10094_v0 = vld [vmem:[%s14537_s1 + $0xac0] ss:$16 sps:$4 sm:$0xff]  }
 0x123   :  { %6698 = vmatpush1.bf16.msra.mxu0 %v10008_v1  ;;  %7514 = vmatpush1.bf16.msra.mxu1 %v10011_v2  ;;  %v10097_v1 = vld [vmem:[%s14537_s1 + $0xac8] ss:$16 sps:$4 sm:$0xff]   ;;  %v10102_v2 = vld [vmem:[%s14537_s1 + $0xae4] ss:$16 sps:$4 sm:$0xff]  }
 0x124   :  { %6699 = vmatprep.subr.bf16.mxu0 %v10016_v3  ;;  %7515 = vmatprep.subr.bf16.mxu1 %v10019_v4  ;;  %v10105_v3 = vld [vmem:[%s14537_s1 + $0xaec] ss:$16 sps:$4 sm:$0xff]   ;;  %v10100_v4 = vld [vmem:[%s14537_s1 + $0xae0] ss:$16 sps:$4 sm:$0xff]  }
 0x127   :  { %6700 = vmatpush1.bf16.msra.mxu0 %v10014_v5  ;;  %7516 = vmatpush1.bf16.msra.mxu1 %v10017_v6  ;;  %v10103_v5 = vld [vmem:[%s14537_s1 + $0xae8] ss:$16 sps:$4 sm:$0xff]   ;;  %v10108_v6 = vld [vmem:[%s14537_s1 + $0xb04] ss:$16 sps:$4 sm:$0xff]  }
 0x128   :  { %6701 = vmatprep.subr.bf16.mxu0 %v10022_v7  ;;  %7517 = vmatprep.subr.bf16.mxu1 %v10025_v8  ;;  %v10111_v7 = vld [vmem:[%s14537_s1 + $0xb0c] ss:$16 sps:$4 sm:$0xff]   ;;  %v10106_v8 = vld [vmem:[%s14537_s1 + $0xb00] ss:$16 sps:$4 sm:$0xff]  }
 0x12b   :  { %6702 = vmatpush1.bf16.msra.mxu0 %v10020_v9  ;;  %7518 = vmatpush1.bf16.msra.mxu1 %v10023_v10  ;;  %v10109_v9 = vld [vmem:[%s14537_s1 + $0xb08] ss:$16 sps:$4 sm:$0xff]   ;;  %v10114_v10 = vld [vmem:[%s14537_s1 + $0xb24] ss:$16 sps:$4 sm:$0xff]  }
 0x12c   :  { %6703 = vmatprep.subr.bf16.mxu0 %v10028_v11  ;;  %7519 = vmatprep.subr.bf16.mxu1 %v10031_v12  ;;  %v10117_v11 = vld [vmem:[%s14537_s1 + $0xb2c] ss:$16 sps:$4 sm:$0xff]   ;;  %v10112_v12 = vld [vmem:[%s14537_s1 + $0xb20] ss:$16 sps:$4 sm:$0xff]  }
 0x12f   :  { %6704 = vmatpush1.bf16.msra.mxu0 %v10026_v13  ;;  %7520 = vmatpush1.bf16.msra.mxu1 %v10029_v14  ;;  %v10115_v13 = vld [vmem:[%s14537_s1 + $0xb28] ss:$16 sps:$4 sm:$0xff]   ;;  %v10120_v14 = vld [vmem:[%s14537_s1 + $0xb44] ss:$16 sps:$4 sm:$0xff]  }
 0x130   :  { %6705 = vmatprep.subr.bf16.mxu0 %v10034_v15  ;;  %7521 = vmatprep.subr.bf16.mxu1 %v10037_v16  ;;  %v10123_v15 = vld [vmem:[%s14537_s1 + $0xb4c] ss:$16 sps:$4 sm:$0xff]   ;;  %v10118_v16 = vld [vmem:[%s14537_s1 + $0xb40] ss:$16 sps:$4 sm:$0xff]  }
 0x133   :  { %6706 = vmatpush1.bf16.msra.mxu0 %v10032_v17  ;;  %7522 = vmatpush1.bf16.msra.mxu1 %v10035_v18  ;;  %v10121_v17 = vld [vmem:[%s14537_s1 + $0xb48] ss:$16 sps:$4 sm:$0xff]   ;;  %v10126_v18 = vld [vmem:[%s14537_s1 + $0xb64] ss:$16 sps:$4 sm:$0xff]  }
 0x134   :  { %6707 = vmatprep.subr.bf16.mxu0 %v10040_v19  ;;  %7523 = vmatprep.subr.bf16.mxu1 %v10043_v20  ;;  %v10129_v19 = vld [vmem:[%s14537_s1 + $0xb6c] ss:$16 sps:$4 sm:$0xff]   ;;  %v10124_v20 = vld [vmem:[%s14537_s1 + $0xb60] ss:$16 sps:$4 sm:$0xff]  }
 0x137   :  { %6708 = vmatpush1.bf16.msra.mxu0 %v10038_v21  ;;  %7524 = vmatpush1.bf16.msra.mxu1 %v10041_v22  ;;  %v10127_v21 = vld [vmem:[%s14537_s1 + $0xb68] ss:$16 sps:$4 sm:$0xff]   ;;  %v10132_v22 = vld [vmem:[%s14537_s1 + $0xb84] ss:$16 sps:$4 sm:$0xff]  }
 0x138   :  { %6709 = vmatprep.subr.bf16.mxu0 %v10047_v23  ;;  %7525 = vmatprep.subr.bf16.mxu1 %v10050_v24  ;;  %v10135_v23 = vld [vmem:[%s14537_s1 + $0xb8c] ss:$16 sps:$4 sm:$0xff]   ;;  %v10130_v24 = vld [vmem:[%s14537_s1 + $0xb80] ss:$16 sps:$4 sm:$0xff]  }
 0x13b   :  { %6710 = vmatpush1.bf16.msra.mxu0 %v10045_v25  ;;  %7526 = vmatpush1.bf16.msra.mxu1 %v10048_v26  ;;  %v10133_v25 = vld [vmem:[%s14537_s1 + $0xb88] ss:$16 sps:$4 sm:$0xff]   ;;  %v10138_v26 = vld [vmem:[%s14537_s1 + $0xba4] ss:$16 sps:$4 sm:$0xff]  }
 0x13c   :  { %6711 = vmatprep.subr.bf16.mxu0 %v10054_v27  ;;  %7527 = vmatprep.subr.bf16.mxu1 %v10057_v28  ;;  %v10141_v27 = vld [vmem:[%s14537_s1 + $0xbac] ss:$16 sps:$4 sm:$0xff]   ;;  %v10136_v28 = vld [vmem:[%s14537_s1 + $0xba0] ss:$16 sps:$4 sm:$0xff]  }
 0x13f   :  { %6712 = vmatpush1.bf16.msra.mxu0 %v10052_v29  ;;  %7528 = vmatpush1.bf16.msra.mxu1 %v10055_v30  ;;  %v10139_v29 = vld [vmem:[%s14537_s1 + $0xba8] ss:$16 sps:$4 sm:$0xff]   ;;  %v10145_v30 = vld [vmem:[%s14537_s1 + $0xbc4] ss:$16 sps:$4 sm:$0xff]  }
 0x140   :  { %6732 = vmatprep.subr.bf16.mxu0 %v10060_v31  ;;  %7548 = vmatprep.subr.bf16.mxu1 %v10063_v32  ;;  %v10148_v31 = vld [vmem:[%s14537_s1 + $0xbcc] ss:$16 sps:$4 sm:$0xff]   ;;  %v10143_v32 = vld [vmem:[%s14537_s1 + $0xbc0] ss:$16 sps:$4 sm:$0xff]  }
 0x142   :  { %6714 = vmatmul.mubr.bf16.vlgmr.msra.gmra.mrb[0].mxu0 %v8248_v34  ;;  %7530 = vmatmul.mubr.bf16.vlgmr.msra.gmra.mrb[0].mxu1 %v8248_v34  ;;  %v10152_v34 = vld [vmem:[%s14537_s1 + $0xbe4] ss:$16 sps:$4 sm:$0xff]  }
 0x143   :  { %6733 = vmatpush1.bf16.msra.mxu0 %v10058_v35  ;;  %7549 = vmatpush1.bf16.msra.mxu1 %v10061_v36  ;;  %v10155_v35 = vld [vmem:[%s14537_s1 + $0xbec] ss:$16 sps:$4 sm:$0xff]   ;;  %v10150_v36 = vld [vmem:[%s14537_s1 + $0xbe0] ss:$16 sps:$4 sm:$0xff]  }
 0x144   :  { %6734 = vmatprep.subr.bf16.mxu0 %v10066_v37  ;;  %7550 = vmatprep.subr.bf16.mxu1 %v10069_v38  ;;  %v10153_v37 = vld [vmem:[%s14537_s1 + $0xbe8] ss:$16 sps:$4 sm:$0xff]   ;;  %v10158_v38 = vld [vmem:[%s14537_s1 + $0xc04] ss:$16 sps:$4 sm:$0xff]  }
 0x145   :  { %6723 = vmatprep.mubr.bf16.mxu0 %v8281_v41  ;;  %7539 = vmatprep.mubr.bf16.mxu1 %v8281_v41  ;;  %v8250_v41 = vcombine.low %v12229_v44, %v12234_v45  ;;  %v10167_v44 = vld [vmem:[%s14537_s1 + $0xc2c] ss:$16 sps:$4 sm:$0xff]   ;;  %v10162_v45 = vld [vmem:[%s14537_s1 + $0xc20] ss:$16 sps:$4 sm:$0xff]  }
 0x147   :  { %6735 = vmatpush1.bf16.msra.mxu0 %v10064_v39  ;;  %7551 = vmatpush1.bf16.msra.mxu1 %v10067_v40  ;;  %v10161_v39 = vld [vmem:[%s14537_s1 + $0xc0c] ss:$16 sps:$4 sm:$0xff]  }
 0x148   :  { %6736 = vmatprep.subr.bf16.mxu0 %v10072_v42  ;;  %7552 = vmatprep.subr.bf16.mxu1 %v10075_v43  ;;  %v50_v40 = vld [vmem:[%s14538_s0 + $0x128] sm:$0xff]  ;;  %v10156_v42 = vld [vmem:[%s14537_s1 + $0xc00] ss:$16 sps:$4 sm:$0xff]  }
 0x149   :  { %v10159_v43 = vld [vmem:[%s14537_s1 + $0xc08] ss:$16 sps:$4 sm:$0xff]  }
 0x14a   :  { %6724 = vmatmul.mubr.bf16.gmra.mrb[4].mxu0 %v8280_v46  ;;  %7540 = vmatmul.mubr.bf16.gmra.mrb[4].mxu1 %v8280_v46  ;;  %v10164_v46 = vld [vmem:[%s14537_s1 + $0xc24] ss:$16 sps:$4 sm:$0xff]  }
 0x14b   :  { %6737 = vmatpush1.bf16.msra.mxu0 %v10070_v47  ;;  %7553 = vmatpush1.bf16.msra.mxu1 %v10073_v48  ;;  %v10165_v47 = vld [vmem:[%s14537_s1 + $0xc28] ss:$16 sps:$4 sm:$0xff]   ;;  %v8283_v48 = vcombine.high %v50_v40, %v50_v40 }
 0x14c   :  { %6738 = vmatprep.subr.bf16.mxu0 %v10078_v49  ;;  %7554 = vmatprep.subr.bf16.mxu1 %v10081_v50  ;;  %v10170_v49 = vld [vmem:[%s14537_s1 + $0xc44] ss:$16 sps:$4 sm:$0xff]   ;;  %v10173_v50 = vld [vmem:[%s14537_s1 + $0xc4c] ss:$16 sps:$4 sm:$0xff]  }
 0x14d   :  { %6764 = vmatprep.mubr.bf16.mxu0 %v8251_v51  ;;  %7580 = vmatprep.mubr.bf16.mxu1 %v8251_v51  ;;  %v12438_v51 = vld [vmem:[%s14538_s0 + $0x30] sm:$0xff] }
 0x14f   :  { %6739 = vmatpush1.bf16.msra.mxu0 %v10076_v52  ;;  %7555 = vmatpush1.bf16.msra.mxu1 %v10079_v53  ;;  %v12443_v52 = vld [vmem:[%s14538_s0 + $0xb0] sm:$0xff]  ;;  %v8282_v53 = vcombine.low %v50_v40, %v50_v40  ;;  %v10244_v40 = vld [vmem:[%s14537_s1 + $0xdc8] ss:$16 sps:$4 sm:$0xff]  }
 0x150   :  { %6740 = vmatprep.subr.bf16.mxu0 %v10084_v54  ;;  %7556 = vmatprep.subr.bf16.mxu1 %v10087_v55  ;;  %v10168_v54 = vld [vmem:[%s14537_s1 + $0xc40] ss:$16 sps:$4 sm:$0xff]   ;;  %v10171_v55 = vld [vmem:[%s14537_s1 + $0xc48] ss:$16 sps:$4 sm:$0xff]  }
 0x153   :  { %6741 = vmatpush1.bf16.msra.mxu0 %v10082_v56  ;;  %7557 = vmatpush1.bf16.msra.mxu1 %v10085_v57  ;;  %v10176_v56 = vld [vmem:[%s14537_s1 + $0xc64] ss:$16 sps:$4 sm:$0xff]   ;;  %v10179_v57 = vld [vmem:[%s14537_s1 + $0xc6c] ss:$16 sps:$4 sm:$0xff]  }
 0x154   :  { %6742 = vmatprep.subr.bf16.mxu0 %v10090_v58  ;;  %7558 = vmatprep.subr.bf16.mxu1 %v10093_v59  ;;  %v8253_v58 = vcombine.high %v12438_v51, %v12443_v52  ;;  %v10174_v59 = vld [vmem:[%s14537_s1 + $0xc60] ss:$16 sps:$4 sm:$0xff]  }
 0x157   :  { %6743 = vmatpush1.bf16.msra.mxu0 %v10088_v60  ;;  %7559 = vmatpush1.bf16.msra.mxu1 %v10091_v61  ;;  %v10177_v60 = vld [vmem:[%s14537_s1 + $0xc68] ss:$16 sps:$4 sm:$0xff]   ;;  %v10182_v61 = vld [vmem:[%s14537_s1 + $0xc84] ss:$16 sps:$4 sm:$0xff]  }
 0x158   :  { %6744 = vmatprep.subr.bf16.mxu0 %v10096_v62  ;;  %7560 = vmatprep.subr.bf16.mxu1 %v10099_v63  ;;  %v10185_v62 = vld [vmem:[%s14537_s1 + $0xc8c] ss:$16 sps:$4 sm:$0xff]   ;;  %v10180_v63 = vld [vmem:[%s14537_s1 + $0xc80] ss:$16 sps:$4 sm:$0xff]  }
 0x15b   :  { %6745 = vmatpush1.bf16.msra.mxu0 %v10094_v0  ;;  %7561 = vmatpush1.bf16.msra.mxu1 %v10097_v1  ;;  %v10183_v0 = vld [vmem:[%s14537_s1 + $0xc88] ss:$16 sps:$4 sm:$0xff]   ;;  %v10188_v1 = vld [vmem:[%s14537_s1 + $0xca4] ss:$16 sps:$4 sm:$0xff]  }
 0x15c   :  { %6746 = vmatprep.subr.bf16.mxu0 %v10102_v2  ;;  %7562 = vmatprep.subr.bf16.mxu1 %v10105_v3  ;;  %v10191_v2 = vld [vmem:[%s14537_s1 + $0xcac] ss:$16 sps:$4 sm:$0xff]   ;;  %v10186_v3 = vld [vmem:[%s14537_s1 + $0xca0] ss:$16 sps:$4 sm:$0xff]  }
 0x15f   :  { %6747 = vmatpush1.bf16.msra.mxu0 %v10100_v4  ;;  %7563 = vmatpush1.bf16.msra.mxu1 %v10103_v5  ;;  %v10189_v4 = vld [vmem:[%s14537_s1 + $0xca8] ss:$16 sps:$4 sm:$0xff]   ;;  %v10194_v5 = vld [vmem:[%s14537_s1 + $0xcc4] ss:$16 sps:$4 sm:$0xff]  }
 0x160   :  { %6748 = vmatprep.subr.bf16.mxu0 %v10108_v6  ;;  %7564 = vmatprep.subr.bf16.mxu1 %v10111_v7  ;;  %v10197_v6 = vld [vmem:[%s14537_s1 + $0xccc] ss:$16 sps:$4 sm:$0xff]   ;;  %v10192_v7 = vld [vmem:[%s14537_s1 + $0xcc0] ss:$16 sps:$4 sm:$0xff]  }
 0x163   :  { %6749 = vmatpush1.bf16.msra.mxu0 %v10106_v8  ;;  %7565 = vmatpush1.bf16.msra.mxu1 %v10109_v9  ;;  %v10195_v8 = vld [vmem:[%s14537_s1 + $0xcc8] ss:$16 sps:$4 sm:$0xff]   ;;  %v10200_v9 = vld [vmem:[%s14537_s1 + $0xce4] ss:$16 sps:$4 sm:$0xff]  }
 0x164   :  { %6750 = vmatprep.subr.bf16.mxu0 %v10114_v10  ;;  %7566 = vmatprep.subr.bf16.mxu1 %v10117_v11  ;;  %v10203_v10 = vld [vmem:[%s14537_s1 + $0xcec] ss:$16 sps:$4 sm:$0xff]   ;;  %v10198_v11 = vld [vmem:[%s14537_s1 + $0xce0] ss:$16 sps:$4 sm:$0xff]  }
 0x167   :  { %6751 = vmatpush1.bf16.msra.mxu0 %v10112_v12  ;;  %7567 = vmatpush1.bf16.msra.mxu1 %v10115_v13  ;;  %v10201_v12 = vld [vmem:[%s14537_s1 + $0xce8] ss:$16 sps:$4 sm:$0xff]   ;;  %v10206_v13 = vld [vmem:[%s14537_s1 + $0xd04] ss:$16 sps:$4 sm:$0xff]  }
 0x168   :  { %6752 = vmatprep.subr.bf16.mxu0 %v10120_v14  ;;  %7568 = vmatprep.subr.bf16.mxu1 %v10123_v15  ;;  %v10209_v14 = vld [vmem:[%s14537_s1 + $0xd0c] ss:$16 sps:$4 sm:$0xff]   ;;  %v10204_v15 = vld [vmem:[%s14537_s1 + $0xd00] ss:$16 sps:$4 sm:$0xff]  }
 0x16b   :  { %6753 = vmatpush1.bf16.msra.mxu0 %v10118_v16  ;;  %7569 = vmatpush1.bf16.msra.mxu1 %v10121_v17  ;;  %v10207_v16 = vld [vmem:[%s14537_s1 + $0xd08] ss:$16 sps:$4 sm:$0xff]   ;;  %v10212_v17 = vld [vmem:[%s14537_s1 + $0xd24] ss:$16 sps:$4 sm:$0xff]  }
 0x16c   :  { %6754 = vmatprep.subr.bf16.mxu0 %v10126_v18  ;;  %7570 = vmatprep.subr.bf16.mxu1 %v10129_v19  ;;  %v10215_v18 = vld [vmem:[%s14537_s1 + $0xd2c] ss:$16 sps:$4 sm:$0xff]   ;;  %v10210_v19 = vld [vmem:[%s14537_s1 + $0xd20] ss:$16 sps:$4 sm:$0xff]  }
 0x16f   :  { %6755 = vmatpush1.bf16.msra.mxu0 %v10124_v20  ;;  %7571 = vmatpush1.bf16.msra.mxu1 %v10127_v21  ;;  %v10213_v20 = vld [vmem:[%s14537_s1 + $0xd28] ss:$16 sps:$4 sm:$0xff]   ;;  %v10218_v21 = vld [vmem:[%s14537_s1 + $0xd44] ss:$16 sps:$4 sm:$0xff]  }
 0x170   :  { %6756 = vmatprep.subr.bf16.mxu0 %v10132_v22  ;;  %7572 = vmatprep.subr.bf16.mxu1 %v10135_v23  ;;  %v10221_v22 = vld [vmem:[%s14537_s1 + $0xd4c] ss:$16 sps:$4 sm:$0xff]   ;;  %v10216_v23 = vld [vmem:[%s14537_s1 + $0xd40] ss:$16 sps:$4 sm:$0xff]  }
 0x173   :  { %6757 = vmatpush1.bf16.msra.mxu0 %v10130_v24  ;;  %7573 = vmatpush1.bf16.msra.mxu1 %v10133_v25  ;;  %v10219_v24 = vld [vmem:[%s14537_s1 + $0xd48] ss:$16 sps:$4 sm:$0xff]   ;;  %v10224_v25 = vld [vmem:[%s14537_s1 + $0xd64] ss:$16 sps:$4 sm:$0xff]  }
 0x174   :  { %6758 = vmatprep.subr.bf16.mxu0 %v10138_v26  ;;  %7574 = vmatprep.subr.bf16.mxu1 %v10141_v27  ;;  %v10227_v26 = vld [vmem:[%s14537_s1 + $0xd6c] ss:$16 sps:$4 sm:$0xff]   ;;  %v10222_v27 = vld [vmem:[%s14537_s1 + $0xd60] ss:$16 sps:$4 sm:$0xff]  }
 0x177   :  { %6759 = vmatpush1.bf16.msra.mxu0 %v10136_v28  ;;  %7575 = vmatpush1.bf16.msra.mxu1 %v10139_v29  ;;  %v10225_v28 = vld [vmem:[%s14537_s1 + $0xd68] ss:$16 sps:$4 sm:$0xff]   ;;  %v10230_v29 = vld [vmem:[%s14537_s1 + $0xd84] ss:$16 sps:$4 sm:$0xff]  }
 0x178   :  { %6760 = vmatprep.subr.bf16.mxu0 %v10145_v30  ;;  %7576 = vmatprep.subr.bf16.mxu1 %v10148_v31  ;;  %v10233_v30 = vld [vmem:[%s14537_s1 + $0xd8c] ss:$16 sps:$4 sm:$0xff]   ;;  %v10228_v31 = vld [vmem:[%s14537_s1 + $0xd80] ss:$16 sps:$4 sm:$0xff]  }
 0x17b   :  { %6761 = vmatpush1.bf16.msra.mxu0 %v10143_v32  ;;  %7577 = vmatpush1.bf16.msra.mxu1 %v10146_v33  ;;  %v10231_v32 = vld [vmem:[%s14537_s1 + $0xd88] ss:$16 sps:$4 sm:$0xff]   ;;  %v10236_v33 = vld [vmem:[%s14537_s1 + $0xda4] ss:$16 sps:$4 sm:$0xff]  }
 0x17c   :  { %6762 = vmatprep.subr.bf16.mxu0 %v10152_v34  ;;  %7578 = vmatprep.subr.bf16.mxu1 %v10155_v35  ;;  %v10239_v34 = vld [vmem:[%s14537_s1 + $0xdac] ss:$16 sps:$4 sm:$0xff]   ;;  %v10234_v35 = vld [vmem:[%s14537_s1 + $0xda0] ss:$16 sps:$4 sm:$0xff]  }
 0x17f   :  { %6763 = vmatpush1.bf16.msra.mxu0 %v10150_v36  ;;  %7579 = vmatpush1.bf16.msra.mxu1 %v10153_v37  ;;  %v10237_v36 = vld [vmem:[%s14537_s1 + $0xda8] ss:$16 sps:$4 sm:$0xff]   ;;  %v10243_v37 = vld [vmem:[%s14537_s1 + $0xdc4] ss:$16 sps:$4 sm:$0xff]  }
 0x180   :  { %6783 = vmatprep.subr.bf16.mxu0 %v10158_v38  ;;  %7599 = vmatprep.subr.bf16.mxu1 %v10161_v39  ;;  %v10246_v38 = vld [vmem:[%s14537_s1 + $0xdcc] ss:$16 sps:$4 sm:$0xff]   ;;  %v10241_v39 = vld [vmem:[%s14537_s1 + $0xdc0] ss:$16 sps:$4 sm:$0xff]  }
 0x182   :  { %6765 = vmatmul.mubr.bf16.vlgmr.msra.gmra.mrb[0].mxu0 %v8250_v41  ;;  %7581 = vmatmul.mubr.bf16.vlgmr.msra.gmra.mrb[0].mxu1 %v8250_v41  ;;  %v10250_v41 = vld [vmem:[%s14537_s1 + $0xde4] ss:$16 sps:$4 sm:$0xff]  }
 0x183   :  { %6784 = vmatpush1.bf16.msra.mxu0 %v10156_v42  ;;  %7600 = vmatpush1.bf16.msra.mxu1 %v10159_v43  ;;  %v10253_v42 = vld [vmem:[%s14537_s1 + $0xdec] ss:$16 sps:$4 sm:$0xff]   ;;  %v10248_v43 = vld [vmem:[%s14537_s1 + $0xde0] ss:$16 sps:$4 sm:$0xff]  }
 0x184   :  { %6785 = vmatprep.subr.bf16.mxu0 %v10164_v46  ;;  %7601 = vmatprep.subr.bf16.mxu1 %v10167_v44  ;;  %v10251_v46 = vld [vmem:[%s14537_s1 + $0xde8] ss:$16 sps:$4 sm:$0xff]   ;;  %v10256_v44 = vld [vmem:[%s14537_s1 + $0xe04] ss:$16 sps:$4 sm:$0xff]  }
 0x185   :  { %6774 = vmatprep.mubr.bf16.mxu0 %v8283_v48  ;;  %7590 = vmatprep.mubr.bf16.mxu1 %v8283_v48  ;;  %v8252_v48 = vcombine.low %v12438_v51, %v12443_v52  ;;  %v10265_v51 = vld [vmem:[%s14537_s1 + $0xe2c] ss:$16 sps:$4 sm:$0xff]   ;;  %v10260_v52 = vld [vmem:[%s14537_s1 + $0xe20] ss:$16 sps:$4 sm:$0xff]  }
 0x187   :  { %6786 = vmatpush1.bf16.msra.mxu0 %v10162_v45  ;;  %7602 = vmatpush1.bf16.msra.mxu1 %v10165_v47  ;;  %v10259_v45 = vld [vmem:[%s14537_s1 + $0xe0c] ss:$16 sps:$4 sm:$0xff]   ;;  %v51_v47 = vld [vmem:[%s14538_s0 + $0x130] sm:$0xff] }
 0x188   :  { %6787 = vmatprep.subr.bf16.mxu0 %v10170_v49  ;;  %7603 = vmatprep.subr.bf16.mxu1 %v10173_v50  ;;  %v10254_v49 = vld [vmem:[%s14537_s1 + $0xe00] ss:$16 sps:$4 sm:$0xff]   ;;  %v10257_v50 = vld [vmem:[%s14537_s1 + $0xe08] ss:$16 sps:$4 sm:$0xff]  }
 0x18a   :  { %6775 = vmatmul.mubr.bf16.gmra.mrb[4].mxu0 %v8282_v53  ;;  %7591 = vmatmul.mubr.bf16.gmra.mrb[4].mxu1 %v8282_v53  ;;  %v10262_v53 = vld [vmem:[%s14537_s1 + $0xe24] ss:$16 sps:$4 sm:$0xff]  }
 0x18b   :  { %6788 = vmatpush1.bf16.msra.mxu0 %v10168_v54  ;;  %7604 = vmatpush1.bf16.msra.mxu1 %v10171_v55  ;;  %v10263_v54 = vld [vmem:[%s14537_s1 + $0xe28] ss:$16 sps:$4 sm:$0xff]   ;;  %v8285_v55 = vcombine.high %v51_v47, %v51_v47 }
 0x18c   :  { %6789 = vmatprep.subr.bf16.mxu0 %v10176_v56  ;;  %7605 = vmatprep.subr.bf16.mxu1 %v10179_v57  ;;  %v10268_v56 = vld [vmem:[%s14537_s1 + $0xe44] ss:$16 sps:$4 sm:$0xff]   ;;  %v10271_v57 = vld [vmem:[%s14537_s1 + $0xe4c] ss:$16 sps:$4 sm:$0xff]  }
 0x18d   :  { %6815 = vmatprep.mubr.bf16.mxu0 %v8253_v58  ;;  %7631 = vmatprep.mubr.bf16.mxu1 %v8253_v58  ;;  %v12647_v58 = vld [vmem:[%s14538_s0 + $0x38] sm:$0xff] }
 0x18f   :  { %6790 = vmatpush1.bf16.msra.mxu0 %v10174_v59  ;;  %7606 = vmatpush1.bf16.msra.mxu1 %v10177_v60  ;;  %v12652_v59 = vld [vmem:[%s14538_s0 + $0xb8] sm:$0xff]  ;;  %v8284_v60 = vcombine.low %v51_v47, %v51_v47 }
 0x190   :  { %6791 = vmatprep.subr.bf16.mxu0 %v10182_v61  ;;  %7607 = vmatprep.subr.bf16.mxu1 %v10185_v62  ;;  %v10266_v61 = vld [vmem:[%s14537_s1 + $0xe40] ss:$16 sps:$4 sm:$0xff]   ;;  %v10269_v62 = vld [vmem:[%s14537_s1 + $0xe48] ss:$16 sps:$4 sm:$0xff]  }
 0x191   :  { %v10342_v47 = vld [vmem:[%s14537_s1 + $0xfc8] ss:$16 sps:$4 sm:$0xff]  }
 0x193   :  { %6792 = vmatpush1.bf16.msra.mxu0 %v10180_v63  ;;  %7608 = vmatpush1.bf16.msra.mxu1 %v10183_v0  ;;  %v10274_v63 = vld [vmem:[%s14537_s1 + $0xe64] ss:$16 sps:$4 sm:$0xff]   ;;  %v10277_v0 = vld [vmem:[%s14537_s1 + $0xe6c] ss:$16 sps:$4 sm:$0xff]  }
 0x194   :  { %6793 = vmatprep.subr.bf16.mxu0 %v10188_v1  ;;  %7609 = vmatprep.subr.bf16.mxu1 %v10191_v2  ;;  %v8255_v1 = vcombine.high %v12647_v58, %v12652_v59  ;;  %v10272_v2 = vld [vmem:[%s14537_s1 + $0xe60] ss:$16 sps:$4 sm:$0xff]  }
 0x197   :  { %6794 = vmatpush1.bf16.msra.mxu0 %v10186_v3  ;;  %7610 = vmatpush1.bf16.msra.mxu1 %v10189_v4  ;;  %v10275_v3 = vld [vmem:[%s14537_s1 + $0xe68] ss:$16 sps:$4 sm:$0xff]   ;;  %v10280_v4 = vld [vmem:[%s14537_s1 + $0xe84] ss:$16 sps:$4 sm:$0xff]  }
 0x198   :  { %6795 = vmatprep.subr.bf16.mxu0 %v10194_v5  ;;  %7611 = vmatprep.subr.bf16.mxu1 %v10197_v6  ;;  %v10283_v5 = vld [vmem:[%s14537_s1 + $0xe8c] ss:$16 sps:$4 sm:$0xff]   ;;  %v10278_v6 = vld [vmem:[%s14537_s1 + $0xe80] ss:$16 sps:$4 sm:$0xff]  }
 0x19b   :  { %6796 = vmatpush1.bf16.msra.mxu0 %v10192_v7  ;;  %7612 = vmatpush1.bf16.msra.mxu1 %v10195_v8  ;;  %v10281_v7 = vld [vmem:[%s14537_s1 + $0xe88] ss:$16 sps:$4 sm:$0xff]   ;;  %v10286_v8 = vld [vmem:[%s14537_s1 + $0xea4] ss:$16 sps:$4 sm:$0xff]  }
 0x19c   :  { %6797 = vmatprep.subr.bf16.mxu0 %v10200_v9  ;;  %7613 = vmatprep.subr.bf16.mxu1 %v10203_v10  ;;  %v10289_v9 = vld [vmem:[%s14537_s1 + $0xeac] ss:$16 sps:$4 sm:$0xff]   ;;  %v10284_v10 = vld [vmem:[%s14537_s1 + $0xea0] ss:$16 sps:$4 sm:$0xff]  }
 0x19f   :  { %6798 = vmatpush1.bf16.msra.mxu0 %v10198_v11  ;;  %7614 = vmatpush1.bf16.msra.mxu1 %v10201_v12  ;;  %v10287_v11 = vld [vmem:[%s14537_s1 + $0xea8] ss:$16 sps:$4 sm:$0xff]   ;;  %v10292_v12 = vld [vmem:[%s14537_s1 + $0xec4] ss:$16 sps:$4 sm:$0xff]  }
 0x1a0   :  { %6799 = vmatprep.subr.bf16.mxu0 %v10206_v13  ;;  %7615 = vmatprep.subr.bf16.mxu1 %v10209_v14  ;;  %v10295_v13 = vld [vmem:[%s14537_s1 + $0xecc] ss:$16 sps:$4 sm:$0xff]   ;;  %v10290_v14 = vld [vmem:[%s14537_s1 + $0xec0] ss:$16 sps:$4 sm:$0xff]  }
 0x1a3   :  { %6800 = vmatpush1.bf16.msra.mxu0 %v10204_v15  ;;  %7616 = vmatpush1.bf16.msra.mxu1 %v10207_v16  ;;  %v10293_v15 = vld [vmem:[%s14537_s1 + $0xec8] ss:$16 sps:$4 sm:$0xff]   ;;  %v10298_v16 = vld [vmem:[%s14537_s1 + $0xee4] ss:$16 sps:$4 sm:$0xff]  }
 0x1a4   :  { %6801 = vmatprep.subr.bf16.mxu0 %v10212_v17  ;;  %7617 = vmatprep.subr.bf16.mxu1 %v10215_v18  ;;  %v10301_v17 = vld [vmem:[%s14537_s1 + $0xeec] ss:$16 sps:$4 sm:$0xff]   ;;  %v10296_v18 = vld [vmem:[%s14537_s1 + $0xee0] ss:$16 sps:$4 sm:$0xff]  }
 0x1a7   :  { %6802 = vmatpush1.bf16.msra.mxu0 %v10210_v19  ;;  %7618 = vmatpush1.bf16.msra.mxu1 %v10213_v20  ;;  %v10299_v19 = vld [vmem:[%s14537_s1 + $0xee8] ss:$16 sps:$4 sm:$0xff]   ;;  %v10304_v20 = vld [vmem:[%s14537_s1 + $0xf04] ss:$16 sps:$4 sm:$0xff]  }
 0x1a8   :  { %6803 = vmatprep.subr.bf16.mxu0 %v10218_v21  ;;  %7619 = vmatprep.subr.bf16.mxu1 %v10221_v22  ;;  %v10307_v21 = vld [vmem:[%s14537_s1 + $0xf0c] ss:$16 sps:$4 sm:$0xff]   ;;  %v10302_v22 = vld [vmem:[%s14537_s1 + $0xf00] ss:$16 sps:$4 sm:$0xff]  }
 0x1ab   :  { %6804 = vmatpush1.bf16.msra.mxu0 %v10216_v23  ;;  %7620 = vmatpush1.bf16.msra.mxu1 %v10219_v24  ;;  %v10305_v23 = vld [vmem:[%s14537_s1 + $0xf08] ss:$16 sps:$4 sm:$0xff]   ;;  %v10310_v24 = vld [vmem:[%s14537_s1 + $0xf24] ss:$16 sps:$4 sm:$0xff]  }
 0x1ac   :  { %6805 = vmatprep.subr.bf16.mxu0 %v10224_v25  ;;  %7621 = vmatprep.subr.bf16.mxu1 %v10227_v26  ;;  %v10313_v25 = vld [vmem:[%s14537_s1 + $0xf2c] ss:$16 sps:$4 sm:$0xff]   ;;  %v10308_v26 = vld [vmem:[%s14537_s1 + $0xf20] ss:$16 sps:$4 sm:$0xff]  }
 0x1af   :  { %6806 = vmatpush1.bf16.msra.mxu0 %v10222_v27  ;;  %7622 = vmatpush1.bf16.msra.mxu1 %v10225_v28  ;;  %v10311_v27 = vld [vmem:[%s14537_s1 + $0xf28] ss:$16 sps:$4 sm:$0xff]   ;;  %v10316_v28 = vld [vmem:[%s14537_s1 + $0xf44] ss:$16 sps:$4 sm:$0xff]  }
 0x1b0   :  { %6807 = vmatprep.subr.bf16.mxu0 %v10230_v29  ;;  %7623 = vmatprep.subr.bf16.mxu1 %v10233_v30  ;;  %v10319_v29 = vld [vmem:[%s14537_s1 + $0xf4c] ss:$16 sps:$4 sm:$0xff]   ;;  %v10314_v30 = vld [vmem:[%s14537_s1 + $0xf40] ss:$16 sps:$4 sm:$0xff]  }
 0x1b3   :  { %6808 = vmatpush1.bf16.msra.mxu0 %v10228_v31  ;;  %7624 = vmatpush1.bf16.msra.mxu1 %v10231_v32  ;;  %v10317_v31 = vld [vmem:[%s14537_s1 + $0xf48] ss:$16 sps:$4 sm:$0xff]   ;;  %v10322_v32 = vld [vmem:[%s14537_s1 + $0xf64] ss:$16 sps:$4 sm:$0xff]  }
 0x1b4   :  { %6809 = vmatprep.subr.bf16.mxu0 %v10236_v33  ;;  %7625 = vmatprep.subr.bf16.mxu1 %v10239_v34  ;;  %v10325_v33 = vld [vmem:[%s14537_s1 + $0xf6c] ss:$16 sps:$4 sm:$0xff]   ;;  %v10320_v34 = vld [vmem:[%s14537_s1 + $0xf60] ss:$16 sps:$4 sm:$0xff]  }
 0x1b7   :  { %6810 = vmatpush1.bf16.msra.mxu0 %v10234_v35  ;;  %7626 = vmatpush1.bf16.msra.mxu1 %v10237_v36  ;;  %v10323_v35 = vld [vmem:[%s14537_s1 + $0xf68] ss:$16 sps:$4 sm:$0xff]   ;;  %v10328_v36 = vld [vmem:[%s14537_s1 + $0xf84] ss:$16 sps:$4 sm:$0xff]  }
 0x1b8   :  { %6811 = vmatprep.subr.bf16.mxu0 %v10243_v37  ;;  %7627 = vmatprep.subr.bf16.mxu1 %v10246_v38  ;;  %v10331_v37 = vld [vmem:[%s14537_s1 + $0xf8c] ss:$16 sps:$4 sm:$0xff]   ;;  %v10326_v38 = vld [vmem:[%s14537_s1 + $0xf80] ss:$16 sps:$4 sm:$0xff]  }
 0x1bb   :  { %6812 = vmatpush1.bf16.msra.mxu0 %v10241_v39  ;;  %7628 = vmatpush1.bf16.msra.mxu1 %v10244_v40  ;;  %v10329_v39 = vld [vmem:[%s14537_s1 + $0xf88] ss:$16 sps:$4 sm:$0xff]   ;;  %v10334_v40 = vld [vmem:[%s14537_s1 + $0xfa4] ss:$16 sps:$4 sm:$0xff]  }
 0x1bc   :  { %6813 = vmatprep.subr.bf16.mxu0 %v10250_v41  ;;  %7629 = vmatprep.subr.bf16.mxu1 %v10253_v42  ;;  %v10337_v41 = vld [vmem:[%s14537_s1 + $0xfac] ss:$16 sps:$4 sm:$0xff]   ;;  %v10332_v42 = vld [vmem:[%s14537_s1 + $0xfa0] ss:$16 sps:$4 sm:$0xff]  }
 0x1bf   :  { %6814 = vmatpush1.bf16.msra.mxu0 %v10248_v43  ;;  %7630 = vmatpush1.bf16.msra.mxu1 %v10251_v46  ;;  %v10335_v43 = vld [vmem:[%s14537_s1 + $0xfa8] ss:$16 sps:$4 sm:$0xff]   ;;  %v10341_v46 = vld [vmem:[%s14537_s1 + $0xfc4] ss:$16 sps:$4 sm:$0xff]  }
 0x1c0   :  { %6834 = vmatprep.subr.bf16.mxu0 %v10256_v44  ;;  %7650 = vmatprep.subr.bf16.mxu1 %v10259_v45  ;;  %v10344_v44 = vld [vmem:[%s14537_s1 + $0xfcc] ss:$16 sps:$4 sm:$0xff]   ;;  %v10339_v45 = vld [vmem:[%s14537_s1 + $0xfc0] ss:$16 sps:$4 sm:$0xff]  }
 0x1c2   :  { %6816 = vmatmul.mubr.bf16.vlgmr.msra.gmra.mrb[0].mxu0 %v8252_v48  ;;  %7632 = vmatmul.mubr.bf16.vlgmr.msra.gmra.mrb[0].mxu1 %v8252_v48  ;;  %v10348_v48 = vld [vmem:[%s14537_s1 + $0xfe4] ss:$16 sps:$4 sm:$0xff]  }
 0x1c3   :  { %6835 = vmatpush1.bf16.msra.mxu0 %v10254_v49  ;;  %7651 = vmatpush1.bf16.msra.mxu1 %v10257_v50  ;;  %v10351_v49 = vld [vmem:[%s14537_s1 + $0xfec] ss:$16 sps:$4 sm:$0xff]   ;;  %v10346_v50 = vld [vmem:[%s14537_s1 + $0xfe0] ss:$16 sps:$4 sm:$0xff]  }
 0x1c4   :  { %6836 = vmatprep.subr.bf16.mxu0 %v10262_v53  ;;  %7652 = vmatprep.subr.bf16.mxu1 %v10265_v51  ;;  %v10349_v53 = vld [vmem:[%s14537_s1 + $0xfe8] ss:$16 sps:$4 sm:$0xff]   ;;  %v10354_v51 = vld [vmem:[%s14537_s1 + $0x1004] ss:$16 sps:$4 sm:$0xff]  }
 0x1c5   :  { %6825 = vmatprep.mubr.bf16.mxu0 %v8285_v55  ;;  %7641 = vmatprep.mubr.bf16.mxu1 %v8285_v55  ;;  %v8254_v55 = vcombine.low %v12647_v58, %v12652_v59  ;;  %v10363_v58 = vld [vmem:[%s14537_s1 + $0x102c] ss:$16 sps:$4 sm:$0xff]   ;;  %v10358_v59 = vld [vmem:[%s14537_s1 + $0x1020] ss:$16 sps:$4 sm:$0xff]  }
 0x1c7   :  { %6837 = vmatpush1.bf16.msra.mxu0 %v10260_v52  ;;  %7653 = vmatpush1.bf16.msra.mxu1 %v10263_v54  ;;  %v10357_v52 = vld [vmem:[%s14537_s1 + $0x100c] ss:$16 sps:$4 sm:$0xff]  }
 0x1c8   :  { %6838 = vmatprep.subr.bf16.mxu0 %v10268_v56  ;;  %7654 = vmatprep.subr.bf16.mxu1 %v10271_v57  ;;  %v52_v54 = vld [vmem:[%s14538_s0 + $0x138] sm:$0xff]  ;;  %v10352_v56 = vld [vmem:[%s14537_s1 + $0x1000] ss:$16 sps:$4 sm:$0xff]  }
 0x1c9   :  { %v10355_v57 = vld [vmem:[%s14537_s1 + $0x1008] ss:$16 sps:$4 sm:$0xff]  }
 0x1ca   :  { %6826 = vmatmul.mubr.bf16.gmra.mrb[4].mxu0 %v8284_v60  ;;  %7642 = vmatmul.mubr.bf16.gmra.mrb[4].mxu1 %v8284_v60  ;;  %v10360_v60 = vld [vmem:[%s14537_s1 + $0x1024] ss:$16 sps:$4 sm:$0xff]  }
 0x1cb   :  { %6839 = vmatpush1.bf16.msra.mxu0 %v10266_v61  ;;  %7655 = vmatpush1.bf16.msra.mxu1 %v10269_v62  ;;  %v10361_v61 = vld [vmem:[%s14537_s1 + $0x1028] ss:$16 sps:$4 sm:$0xff]   ;;  %v8287_v62 = vcombine.high %v52_v54, %v52_v54 }
 0x1cc   :  { %6840 = vmatprep.subr.bf16.mxu0 %v10274_v63  ;;  %7656 = vmatprep.subr.bf16.mxu1 %v10277_v0  ;;  %v10366_v63 = vld [vmem:[%s14537_s1 + $0x1044] ss:$16 sps:$4 sm:$0xff]   ;;  %v10369_v0 = vld [vmem:[%s14537_s1 + $0x104c] ss:$16 sps:$4 sm:$0xff]  }
 0x1cd   :  { %6866 = vmatprep.mubr.bf16.mxu0 %v8255_v1  ;;  %7682 = vmatprep.mubr.bf16.mxu1 %v8255_v1  ;;  %v12856_v1 = vld [vmem:[%s14538_s0 + $0x40] sm:$0xff] }
 0x1cf   :  { %6841 = vmatpush1.bf16.msra.mxu0 %v10272_v2  ;;  %7657 = vmatpush1.bf16.msra.mxu1 %v10275_v3  ;;  %v12861_v2 = vld [vmem:[%s14538_s0 + $0xc0] sm:$0xff]  ;;  %v8286_v3 = vcombine.low %v52_v54, %v52_v54  ;;  %v10440_v54 = vld [vmem:[%s14537_s1 + $0x11c8] ss:$16 sps:$4 sm:$0xff]  }
 0x1d0   :  { %6842 = vmatprep.subr.bf16.mxu0 %v10280_v4  ;;  %7658 = vmatprep.subr.bf16.mxu1 %v10283_v5  ;;  %v10364_v4 = vld [vmem:[%s14537_s1 + $0x1040] ss:$16 sps:$4 sm:$0xff]   ;;  %v10367_v5 = vld [vmem:[%s14537_s1 + $0x1048] ss:$16 sps:$4 sm:$0xff]  }
 0x1d3   :  { %6843 = vmatpush1.bf16.msra.mxu0 %v10278_v6  ;;  %7659 = vmatpush1.bf16.msra.mxu1 %v10281_v7  ;;  %v10372_v6 = vld [vmem:[%s14537_s1 + $0x1064] ss:$16 sps:$4 sm:$0xff]   ;;  %v10375_v7 = vld [vmem:[%s14537_s1 + $0x106c] ss:$16 sps:$4 sm:$0xff]  }
 0x1d4   :  { %6844 = vmatprep.subr.bf16.mxu0 %v10286_v8  ;;  %7660 = vmatprep.subr.bf16.mxu1 %v10289_v9  ;;  %v8257_v8 = vcombine.high %v12856_v1, %v12861_v2  ;;  %v10370_v9 = vld [vmem:[%s14537_s1 + $0x1060] ss:$16 sps:$4 sm:$0xff]  }
 0x1d7   :  { %6845 = vmatpush1.bf16.msra.mxu0 %v10284_v10  ;;  %7661 = vmatpush1.bf16.msra.mxu1 %v10287_v11  ;;  %v10373_v10 = vld [vmem:[%s14537_s1 + $0x1068] ss:$16 sps:$4 sm:$0xff]   ;;  %v10378_v11 = vld [vmem:[%s14537_s1 + $0x1084] ss:$16 sps:$4 sm:$0xff]  }
 0x1d8   :  { %6846 = vmatprep.subr.bf16.mxu0 %v10292_v12  ;;  %7662 = vmatprep.subr.bf16.mxu1 %v10295_v13  ;;  %v10381_v12 = vld [vmem:[%s14537_s1 + $0x108c] ss:$16 sps:$4 sm:$0xff]   ;;  %v10376_v13 = vld [vmem:[%s14537_s1 + $0x1080] ss:$16 sps:$4 sm:$0xff]  }
 0x1db   :  { %6847 = vmatpush1.bf16.msra.mxu0 %v10290_v14  ;;  %7663 = vmatpush1.bf16.msra.mxu1 %v10293_v15  ;;  %v10379_v14 = vld [vmem:[%s14537_s1 + $0x1088] ss:$16 sps:$4 sm:$0xff]   ;;  %v10384_v15 = vld [vmem:[%s14537_s1 + $0x10a4] ss:$16 sps:$4 sm:$0xff]  }
 0x1dc   :  { %6848 = vmatprep.subr.bf16.mxu0 %v10298_v16  ;;  %7664 = vmatprep.subr.bf16.mxu1 %v10301_v17  ;;  %v10387_v16 = vld [vmem:[%s14537_s1 + $0x10ac] ss:$16 sps:$4 sm:$0xff]   ;;  %v10382_v17 = vld [vmem:[%s14537_s1 + $0x10a0] ss:$16 sps:$4 sm:$0xff]  }
 0x1df   :  { %6849 = vmatpush1.bf16.msra.mxu0 %v10296_v18  ;;  %7665 = vmatpush1.bf16.msra.mxu1 %v10299_v19  ;;  %v10385_v18 = vld [vmem:[%s14537_s1 + $0x10a8] ss:$16 sps:$4 sm:$0xff]   ;;  %v10390_v19 = vld [vmem:[%s14537_s1 + $0x10c4] ss:$16 sps:$4 sm:$0xff]  }
 0x1e0   :  { %6850 = vmatprep.subr.bf16.mxu0 %v10304_v20  ;;  %7666 = vmatprep.subr.bf16.mxu1 %v10307_v21  ;;  %v10393_v20 = vld [vmem:[%s14537_s1 + $0x10cc] ss:$16 sps:$4 sm:$0xff]   ;;  %v10388_v21 = vld [vmem:[%s14537_s1 + $0x10c0] ss:$16 sps:$4 sm:$0xff]  }
 0x1e3   :  { %6851 = vmatpush1.bf16.msra.mxu0 %v10302_v22  ;;  %7667 = vmatpush1.bf16.msra.mxu1 %v10305_v23  ;;  %v10391_v22 = vld [vmem:[%s14537_s1 + $0x10c8] ss:$16 sps:$4 sm:$0xff]   ;;  %v10396_v23 = vld [vmem:[%s14537_s1 + $0x10e4] ss:$16 sps:$4 sm:$0xff]  }
 0x1e4   :  { %6852 = vmatprep.subr.bf16.mxu0 %v10310_v24  ;;  %7668 = vmatprep.subr.bf16.mxu1 %v10313_v25  ;;  %v10399_v24 = vld [vmem:[%s14537_s1 + $0x10ec] ss:$16 sps:$4 sm:$0xff]   ;;  %v10394_v25 = vld [vmem:[%s14537_s1 + $0x10e0] ss:$16 sps:$4 sm:$0xff]  }
 0x1e7   :  { %6853 = vmatpush1.bf16.msra.mxu0 %v10308_v26  ;;  %7669 = vmatpush1.bf16.msra.mxu1 %v10311_v27  ;;  %v10397_v26 = vld [vmem:[%s14537_s1 + $0x10e8] ss:$16 sps:$4 sm:$0xff]   ;;  %v10402_v27 = vld [vmem:[%s14537_s1 + $0x1104] ss:$16 sps:$4 sm:$0xff]  }
 0x1e8   :  { %6854 = vmatprep.subr.bf16.mxu0 %v10316_v28  ;;  %7670 = vmatprep.subr.bf16.mxu1 %v10319_v29  ;;  %v10405_v28 = vld [vmem:[%s14537_s1 + $0x110c] ss:$16 sps:$4 sm:$0xff]   ;;  %v10400_v29 = vld [vmem:[%s14537_s1 + $0x1100] ss:$16 sps:$4 sm:$0xff]  }
 0x1eb   :  { %6855 = vmatpush1.bf16.msra.mxu0 %v10314_v30  ;;  %7671 = vmatpush1.bf16.msra.mxu1 %v10317_v31  ;;  %v10403_v30 = vld [vmem:[%s14537_s1 + $0x1108] ss:$16 sps:$4 sm:$0xff]   ;;  %v10408_v31 = vld [vmem:[%s14537_s1 + $0x1124] ss:$16 sps:$4 sm:$0xff]  }
 0x1ec   :  { %6856 = vmatprep.subr.bf16.mxu0 %v10322_v32  ;;  %7672 = vmatprep.subr.bf16.mxu1 %v10325_v33  ;;  %v10411_v32 = vld [vmem:[%s14537_s1 + $0x112c] ss:$16 sps:$4 sm:$0xff]   ;;  %v10406_v33 = vld [vmem:[%s14537_s1 + $0x1120] ss:$16 sps:$4 sm:$0xff]  }
 0x1ef   :  { %6857 = vmatpush1.bf16.msra.mxu0 %v10320_v34  ;;  %7673 = vmatpush1.bf16.msra.mxu1 %v10323_v35  ;;  %v10409_v34 = vld [vmem:[%s14537_s1 + $0x1128] ss:$16 sps:$4 sm:$0xff]   ;;  %v10414_v35 = vld [vmem:[%s14537_s1 + $0x1144] ss:$16 sps:$4 sm:$0xff]  }
 0x1f0   :  { %6858 = vmatprep.subr.bf16.mxu0 %v10328_v36  ;;  %7674 = vmatprep.subr.bf16.mxu1 %v10331_v37  ;;  %v10417_v36 = vld [vmem:[%s14537_s1 + $0x114c] ss:$16 sps:$4 sm:$0xff]   ;;  %v10412_v37 = vld [vmem:[%s14537_s1 + $0x1140] ss:$16 sps:$4 sm:$0xff]  }
 0x1f3   :  { %6859 = vmatpush1.bf16.msra.mxu0 %v10326_v38  ;;  %7675 = vmatpush1.bf16.msra.mxu1 %v10329_v39  ;;  %v10415_v38 = vld [vmem:[%s14537_s1 + $0x1148] ss:$16 sps:$4 sm:$0xff]   ;;  %v10420_v39 = vld [vmem:[%s14537_s1 + $0x1164] ss:$16 sps:$4 sm:$0xff]  }
 0x1f4   :  { %6860 = vmatprep.subr.bf16.mxu0 %v10334_v40  ;;  %7676 = vmatprep.subr.bf16.mxu1 %v10337_v41  ;;  %v10423_v40 = vld [vmem:[%s14537_s1 + $0x116c] ss:$16 sps:$4 sm:$0xff]   ;;  %v10418_v41 = vld [vmem:[%s14537_s1 + $0x1160] ss:$16 sps:$4 sm:$0xff]  }
 0x1f7   :  { %6861 = vmatpush1.bf16.msra.mxu0 %v10332_v42  ;;  %7677 = vmatpush1.bf16.msra.mxu1 %v10335_v43  ;;  %v10421_v42 = vld [vmem:[%s14537_s1 + $0x1168] ss:$16 sps:$4 sm:$0xff]   ;;  %v10426_v43 = vld [vmem:[%s14537_s1 + $0x1184] ss:$16 sps:$4 sm:$0xff]  }
 0x1f8   :  { %6862 = vmatprep.subr.bf16.mxu0 %v10341_v46  ;;  %7678 = vmatprep.subr.bf16.mxu1 %v10344_v44  ;;  %v10429_v46 = vld [vmem:[%s14537_s1 + $0x118c] ss:$16 sps:$4 sm:$0xff]   ;;  %v10424_v44 = vld [vmem:[%s14537_s1 + $0x1180] ss:$16 sps:$4 sm:$0xff]  }
 0x1fb   :  { %6863 = vmatpush1.bf16.msra.mxu0 %v10339_v45  ;;  %7679 = vmatpush1.bf16.msra.mxu1 %v10342_v47  ;;  %v10427_v45 = vld [vmem:[%s14537_s1 + $0x1188] ss:$16 sps:$4 sm:$0xff]   ;;  %v10432_v47 = vld [vmem:[%s14537_s1 + $0x11a4] ss:$16 sps:$4 sm:$0xff]  }
 0x1fc   :  { %6864 = vmatprep.subr.bf16.mxu0 %v10348_v48  ;;  %7680 = vmatprep.subr.bf16.mxu1 %v10351_v49  ;;  %v10435_v48 = vld [vmem:[%s14537_s1 + $0x11ac] ss:$16 sps:$4 sm:$0xff]   ;;  %v10430_v49 = vld [vmem:[%s14537_s1 + $0x11a0] ss:$16 sps:$4 sm:$0xff]  }
 0x1ff   :  { %6865 = vmatpush1.bf16.msra.mxu0 %v10346_v50  ;;  %7681 = vmatpush1.bf16.msra.mxu1 %v10349_v53  ;;  %v10433_v50 = vld [vmem:[%s14537_s1 + $0x11a8] ss:$16 sps:$4 sm:$0xff]   ;;  %v10439_v53 = vld [vmem:[%s14537_s1 + $0x11c4] ss:$16 sps:$4 sm:$0xff]  }
 0x200   :  { %6885 = vmatprep.subr.bf16.mxu0 %v10354_v51  ;;  %7701 = vmatprep.subr.bf16.mxu1 %v10357_v52  ;;  %v10442_v51 = vld [vmem:[%s14537_s1 + $0x11cc] ss:$16 sps:$4 sm:$0xff]   ;;  %v10437_v52 = vld [vmem:[%s14537_s1 + $0x11c0] ss:$16 sps:$4 sm:$0xff]  }
 0x202   :  { %6867 = vmatmul.mubr.bf16.vlgmr.msra.gmra.mrb[0].mxu0 %v8254_v55  ;;  %7683 = vmatmul.mubr.bf16.vlgmr.msra.gmra.mrb[0].mxu1 %v8254_v55  ;;  %v10446_v55 = vld [vmem:[%s14537_s1 + $0x11e4] ss:$16 sps:$4 sm:$0xff]  }
 0x203   :  { %6886 = vmatpush1.bf16.msra.mxu0 %v10352_v56  ;;  %7702 = vmatpush1.bf16.msra.mxu1 %v10355_v57  ;;  %v10449_v56 = vld [vmem:[%s14537_s1 + $0x11ec] ss:$16 sps:$4 sm:$0xff]   ;;  %v10444_v57 = vld [vmem:[%s14537_s1 + $0x11e0] ss:$16 sps:$4 sm:$0xff]  }
 0x204   :  { %6887 = vmatprep.subr.bf16.mxu0 %v10360_v60  ;;  %7703 = vmatprep.subr.bf16.mxu1 %v10363_v58  ;;  %v10447_v60 = vld [vmem:[%s14537_s1 + $0x11e8] ss:$16 sps:$4 sm:$0xff]   ;;  %v10452_v58 = vld [vmem:[%s14537_s1 + $0x1204] ss:$16 sps:$4 sm:$0xff]  }
 0x205   :  { %6876 = vmatprep.mubr.bf16.mxu0 %v8287_v62  ;;  %7692 = vmatprep.mubr.bf16.mxu1 %v8287_v62  ;;  %v8256_v62 = vcombine.low %v12856_v1, %v12861_v2  ;;  %v10461_v1 = vld [vmem:[%s14537_s1 + $0x122c] ss:$16 sps:$4 sm:$0xff]   ;;  %v10456_v2 = vld [vmem:[%s14537_s1 + $0x1220] ss:$16 sps:$4 sm:$0xff]  }
 0x207   :  { %6888 = vmatpush1.bf16.msra.mxu0 %v10358_v59  ;;  %7704 = vmatpush1.bf16.msra.mxu1 %v10361_v61  ;;  %v10455_v59 = vld [vmem:[%s14537_s1 + $0x120c] ss:$16 sps:$4 sm:$0xff]   ;;  %v53_v61 = vld [vmem:[%s14538_s0 + $0x140] sm:$0xff] }
 0x208   :  { %6889 = vmatprep.subr.bf16.mxu0 %v10366_v63  ;;  %7705 = vmatprep.subr.bf16.mxu1 %v10369_v0  ;;  %v10450_v63 = vld [vmem:[%s14537_s1 + $0x1200] ss:$16 sps:$4 sm:$0xff]   ;;  %v10453_v0 = vld [vmem:[%s14537_s1 + $0x1208] ss:$16 sps:$4 sm:$0xff]  }
 0x20a   :  { %6877 = vmatmul.mubr.bf16.gmra.mrb[4].mxu0 %v8286_v3  ;;  %7693 = vmatmul.mubr.bf16.gmra.mrb[4].mxu1 %v8286_v3  ;;  %v10458_v3 = vld [vmem:[%s14537_s1 + $0x1224] ss:$16 sps:$4 sm:$0xff]  }
 0x20b   :  { %6890 = vmatpush1.bf16.msra.mxu0 %v10364_v4  ;;  %7706 = vmatpush1.bf16.msra.mxu1 %v10367_v5  ;;  %v10459_v4 = vld [vmem:[%s14537_s1 + $0x1228] ss:$16 sps:$4 sm:$0xff]   ;;  %v8289_v5 = vcombine.high %v53_v61, %v53_v61 }
 0x20c   :  { %6891 = vmatprep.subr.bf16.mxu0 %v10372_v6  ;;  %7707 = vmatprep.subr.bf16.mxu1 %v10375_v7  ;;  %v10464_v6 = vld [vmem:[%s14537_s1 + $0x1244] ss:$16 sps:$4 sm:$0xff]   ;;  %v10467_v7 = vld [vmem:[%s14537_s1 + $0x124c] ss:$16 sps:$4 sm:$0xff]  }
 0x20d   :  { %6917 = vmatprep.mubr.bf16.mxu0 %v8257_v8  ;;  %7733 = vmatprep.mubr.bf16.mxu1 %v8257_v8  ;;  %v13065_v8 = vld [vmem:[%s14538_s0 + $0x48] sm:$0xff] }
 0x20f   :  { %6892 = vmatpush1.bf16.msra.mxu0 %v10370_v9  ;;  %7708 = vmatpush1.bf16.msra.mxu1 %v10373_v10  ;;  %v13070_v9 = vld [vmem:[%s14538_s0 + $0xc8] sm:$0xff]  ;;  %v8288_v10 = vcombine.low %v53_v61, %v53_v61 }
 0x210   :  { %6893 = vmatprep.subr.bf16.mxu0 %v10378_v11  ;;  %7709 = vmatprep.subr.bf16.mxu1 %v10381_v12  ;;  %v10462_v11 = vld [vmem:[%s14537_s1 + $0x1240] ss:$16 sps:$4 sm:$0xff]   ;;  %v10465_v12 = vld [vmem:[%s14537_s1 + $0x1248] ss:$16 sps:$4 sm:$0xff]  }
 0x211   :  { %v10538_v61 = vld [vmem:[%s14537_s1 + $0x13c8] ss:$16 sps:$4 sm:$0xff]  }
 0x213   :  { %6894 = vmatpush1.bf16.msra.mxu0 %v10376_v13  ;;  %7710 = vmatpush1.bf16.msra.mxu1 %v10379_v14  ;;  %v10470_v13 = vld [vmem:[%s14537_s1 + $0x1264] ss:$16 sps:$4 sm:$0xff]   ;;  %v10473_v14 = vld [vmem:[%s14537_s1 + $0x126c] ss:$16 sps:$4 sm:$0xff]  }
 0x214   :  { %6895 = vmatprep.subr.bf16.mxu0 %v10384_v15  ;;  %7711 = vmatprep.subr.bf16.mxu1 %v10387_v16  ;;  %v8259_v15 = vcombine.high %v13065_v8, %v13070_v9  ;;  %v10468_v16 = vld [vmem:[%s14537_s1 + $0x1260] ss:$16 sps:$4 sm:$0xff]  }
 0x217   :  { %6896 = vmatpush1.bf16.msra.mxu0 %v10382_v17  ;;  %7712 = vmatpush1.bf16.msra.mxu1 %v10385_v18  ;;  %v10471_v17 = vld [vmem:[%s14537_s1 + $0x1268] ss:$16 sps:$4 sm:$0xff]   ;;  %v10476_v18 = vld [vmem:[%s14537_s1 + $0x1284] ss:$16 sps:$4 sm:$0xff]  }
 0x218   :  { %6897 = vmatprep.subr.bf16.mxu0 %v10390_v19  ;;  %7713 = vmatprep.subr.bf16.mxu1 %v10393_v20  ;;  %v10479_v19 = vld [vmem:[%s14537_s1 + $0x128c] ss:$16 sps:$4 sm:$0xff]   ;;  %v10474_v20 = vld [vmem:[%s14537_s1 + $0x1280] ss:$16 sps:$4 sm:$0xff]  }
 0x21b   :  { %6898 = vmatpush1.bf16.msra.mxu0 %v10388_v21  ;;  %7714 = vmatpush1.bf16.msra.mxu1 %v10391_v22  ;;  %v10477_v21 = vld [vmem:[%s14537_s1 + $0x1288] ss:$16 sps:$4 sm:$0xff]   ;;  %v10482_v22 = vld [vmem:[%s14537_s1 + $0x12a4] ss:$16 sps:$4 sm:$0xff]  }
 0x21c   :  { %6899 = vmatprep.subr.bf16.mxu0 %v10396_v23  ;;  %7715 = vmatprep.subr.bf16.mxu1 %v10399_v24  ;;  %v10485_v23 = vld [vmem:[%s14537_s1 + $0x12ac] ss:$16 sps:$4 sm:$0xff]   ;;  %v10480_v24 = vld [vmem:[%s14537_s1 + $0x12a0] ss:$16 sps:$4 sm:$0xff]  }
 0x21f   :  { %6900 = vmatpush1.bf16.msra.mxu0 %v10394_v25  ;;  %7716 = vmatpush1.bf16.msra.mxu1 %v10397_v26  ;;  %v10483_v25 = vld [vmem:[%s14537_s1 + $0x12a8] ss:$16 sps:$4 sm:$0xff]   ;;  %v10488_v26 = vld [vmem:[%s14537_s1 + $0x12c4] ss:$16 sps:$4 sm:$0xff]  }
 0x220   :  { %6901 = vmatprep.subr.bf16.mxu0 %v10402_v27  ;;  %7717 = vmatprep.subr.bf16.mxu1 %v10405_v28  ;;  %v10491_v27 = vld [vmem:[%s14537_s1 + $0x12cc] ss:$16 sps:$4 sm:$0xff]   ;;  %v10486_v28 = vld [vmem:[%s14537_s1 + $0x12c0] ss:$16 sps:$4 sm:$0xff]  }
 0x223   :  { %6902 = vmatpush1.bf16.msra.mxu0 %v10400_v29  ;;  %7718 = vmatpush1.bf16.msra.mxu1 %v10403_v30  ;;  %v10489_v29 = vld [vmem:[%s14537_s1 + $0x12c8] ss:$16 sps:$4 sm:$0xff]   ;;  %v10494_v30 = vld [vmem:[%s14537_s1 + $0x12e4] ss:$16 sps:$4 sm:$0xff]  }
 0x224   :  { %6903 = vmatprep.subr.bf16.mxu0 %v10408_v31  ;;  %7719 = vmatprep.subr.bf16.mxu1 %v10411_v32  ;;  %v10497_v31 = vld [vmem:[%s14537_s1 + $0x12ec] ss:$16 sps:$4 sm:$0xff]   ;;  %v10492_v32 = vld [vmem:[%s14537_s1 + $0x12e0] ss:$16 sps:$4 sm:$0xff]  }
 0x227   :  { %6904 = vmatpush1.bf16.msra.mxu0 %v10406_v33  ;;  %7720 = vmatpush1.bf16.msra.mxu1 %v10409_v34  ;;  %v10495_v33 = vld [vmem:[%s14537_s1 + $0x12e8] ss:$16 sps:$4 sm:$0xff]   ;;  %v10500_v34 = vld [vmem:[%s14537_s1 + $0x1304] ss:$16 sps:$4 sm:$0xff]  }
 0x228   :  { %6905 = vmatprep.subr.bf16.mxu0 %v10414_v35  ;;  %7721 = vmatprep.subr.bf16.mxu1 %v10417_v36  ;;  %v10503_v35 = vld [vmem:[%s14537_s1 + $0x130c] ss:$16 sps:$4 sm:$0xff]   ;;  %v10498_v36 = vld [vmem:[%s14537_s1 + $0x1300] ss:$16 sps:$4 sm:$0xff]  }
 0x22b   :  { %6906 = vmatpush1.bf16.msra.mxu0 %v10412_v37  ;;  %7722 = vmatpush1.bf16.msra.mxu1 %v10415_v38  ;;  %v10501_v37 = vld [vmem:[%s14537_s1 + $0x1308] ss:$16 sps:$4 sm:$0xff]   ;;  %v10506_v38 = vld [vmem:[%s14537_s1 + $0x1324] ss:$16 sps:$4 sm:$0xff]  }
 0x22c   :  { %6907 = vmatprep.subr.bf16.mxu0 %v10420_v39  ;;  %7723 = vmatprep.subr.bf16.mxu1 %v10423_v40  ;;  %v10509_v39 = vld [vmem:[%s14537_s1 + $0x132c] ss:$16 sps:$4 sm:$0xff]   ;;  %v10504_v40 = vld [vmem:[%s14537_s1 + $0x1320] ss:$16 sps:$4 sm:$0xff]  }
 0x22f   :  { %6908 = vmatpush1.bf16.msra.mxu0 %v10418_v41  ;;  %7724 = vmatpush1.bf16.msra.mxu1 %v10421_v42  ;;  %v10507_v41 = vld [vmem:[%s14537_s1 + $0x1328] ss:$16 sps:$4 sm:$0xff]   ;;  %v10512_v42 = vld [vmem:[%s14537_s1 + $0x1344] ss:$16 sps:$4 sm:$0xff]  }
 0x230   :  { %6909 = vmatprep.subr.bf16.mxu0 %v10426_v43  ;;  %7725 = vmatprep.subr.bf16.mxu1 %v10429_v46  ;;  %v10515_v43 = vld [vmem:[%s14537_s1 + $0x134c] ss:$16 sps:$4 sm:$0xff]   ;;  %v10510_v46 = vld [vmem:[%s14537_s1 + $0x1340] ss:$16 sps:$4 sm:$0xff]  }
 0x233   :  { %6910 = vmatpush1.bf16.msra.mxu0 %v10424_v44  ;;  %7726 = vmatpush1.bf16.msra.mxu1 %v10427_v45  ;;  %v10513_v44 = vld [vmem:[%s14537_s1 + $0x1348] ss:$16 sps:$4 sm:$0xff]   ;;  %v10518_v45 = vld [vmem:[%s14537_s1 + $0x1364] ss:$16 sps:$4 sm:$0xff]  }
 0x234   :  { %6911 = vmatprep.subr.bf16.mxu0 %v10432_v47  ;;  %7727 = vmatprep.subr.bf16.mxu1 %v10435_v48  ;;  %v10521_v47 = vld [vmem:[%s14537_s1 + $0x136c] ss:$16 sps:$4 sm:$0xff]   ;;  %v10516_v48 = vld [vmem:[%s14537_s1 + $0x1360] ss:$16 sps:$4 sm:$0xff]  }
 0x237   :  { %6912 = vmatpush1.bf16.msra.mxu0 %v10430_v49  ;;  %7728 = vmatpush1.bf16.msra.mxu1 %v10433_v50  ;;  %v10519_v49 = vld [vmem:[%s14537_s1 + $0x1368] ss:$16 sps:$4 sm:$0xff]   ;;  %v10524_v50 = vld [vmem:[%s14537_s1 + $0x1384] ss:$16 sps:$4 sm:$0xff]  }
 0x238   :  { %6913 = vmatprep.subr.bf16.mxu0 %v10439_v53  ;;  %7729 = vmatprep.subr.bf16.mxu1 %v10442_v51  ;;  %v10527_v53 = vld [vmem:[%s14537_s1 + $0x138c] ss:$16 sps:$4 sm:$0xff]   ;;  %v10522_v51 = vld [vmem:[%s14537_s1 + $0x1380] ss:$16 sps:$4 sm:$0xff]  }
 0x23b   :  { %6914 = vmatpush1.bf16.msra.mxu0 %v10437_v52  ;;  %7730 = vmatpush1.bf16.msra.mxu1 %v10440_v54  ;;  %v10525_v52 = vld [vmem:[%s14537_s1 + $0x1388] ss:$16 sps:$4 sm:$0xff]   ;;  %v10530_v54 = vld [vmem:[%s14537_s1 + $0x13a4] ss:$16 sps:$4 sm:$0xff]  }
 0x23c   :  { %6915 = vmatprep.subr.bf16.mxu0 %v10446_v55  ;;  %7731 = vmatprep.subr.bf16.mxu1 %v10449_v56  ;;  %v10533_v55 = vld [vmem:[%s14537_s1 + $0x13ac] ss:$16 sps:$4 sm:$0xff]   ;;  %v10528_v56 = vld [vmem:[%s14537_s1 + $0x13a0] ss:$16 sps:$4 sm:$0xff]  }
 0x23f   :  { %6916 = vmatpush1.bf16.msra.mxu0 %v10444_v57  ;;  %7732 = vmatpush1.bf16.msra.mxu1 %v10447_v60  ;;  %v10531_v57 = vld [vmem:[%s14537_s1 + $0x13a8] ss:$16 sps:$4 sm:$0xff]   ;;  %v10537_v60 = vld [vmem:[%s14537_s1 + $0x13c4] ss:$16 sps:$4 sm:$0xff]  }
 0x240   :  { %6936 = vmatprep.subr.bf16.mxu0 %v10452_v58  ;;  %7752 = vmatprep.subr.bf16.mxu1 %v10455_v59  ;;  %v10540_v58 = vld [vmem:[%s14537_s1 + $0x13cc] ss:$16 sps:$4 sm:$0xff]   ;;  %v10535_v59 = vld [vmem:[%s14537_s1 + $0x13c0] ss:$16 sps:$4 sm:$0xff]  }
 0x242   :  { %6918 = vmatmul.mubr.bf16.vlgmr.msra.gmra.mrb[0].mxu0 %v8256_v62  ;;  %7734 = vmatmul.mubr.bf16.vlgmr.msra.gmra.mrb[0].mxu1 %v8256_v62  ;;  %v10544_v62 = vld [vmem:[%s14537_s1 + $0x13e4] ss:$16 sps:$4 sm:$0xff]  }
 0x243   :  { %6937 = vmatpush1.bf16.msra.mxu0 %v10450_v63  ;;  %7753 = vmatpush1.bf16.msra.mxu1 %v10453_v0  ;;  %v10547_v63 = vld [vmem:[%s14537_s1 + $0x13ec] ss:$16 sps:$4 sm:$0xff]   ;;  %v10542_v0 = vld [vmem:[%s14537_s1 + $0x13e0] ss:$16 sps:$4 sm:$0xff]  }
 0x244   :  { %6938 = vmatprep.subr.bf16.mxu0 %v10458_v3  ;;  %7754 = vmatprep.subr.bf16.mxu1 %v10461_v1  ;;  %v10545_v3 = vld [vmem:[%s14537_s1 + $0x13e8] ss:$16 sps:$4 sm:$0xff]   ;;  %v10550_v1 = vld [vmem:[%s14537_s1 + $0x1404] ss:$16 sps:$4 sm:$0xff]  }
 0x245   :  { %6927 = vmatprep.mubr.bf16.mxu0 %v8289_v5  ;;  %7743 = vmatprep.mubr.bf16.mxu1 %v8289_v5  ;;  %v54_v5 = vld [vmem:[%s14538_s0 + $0x148] sm:$0xff] }
 0x247   :  { %6939 = vmatpush1.bf16.msra.mxu0 %v10456_v2  ;;  %7755 = vmatpush1.bf16.msra.mxu1 %v10459_v4  ;;  %v10553_v2 = vld [vmem:[%s14537_s1 + $0x140c] ss:$16 sps:$4 sm:$0xff]   ;;  %v8258_v4 = vcombine.low %v13065_v8, %v13070_v9  ;;  %v10556_v8 = vld [vmem:[%s14537_s1 + $0x1424] ss:$16 sps:$4 sm:$0xff]  }
 0x248   :  { %6940 = vmatprep.subr.bf16.mxu0 %v10464_v6  ;;  %7756 = vmatprep.subr.bf16.mxu1 %v10467_v7  ;;  %v10548_v6 = vld [vmem:[%s14537_s1 + $0x1400] ss:$16 sps:$4 sm:$0xff]   ;;  %v10551_v7 = vld [vmem:[%s14537_s1 + $0x1408] ss:$16 sps:$4 sm:$0xff]   ;;  %v10559_v9 = vld [vmem:[%s14537_s1 + $0x142c] ss:$16 sps:$4 sm:$0xff]  }
 0x24a   :  { %6928 = vmatmul.mubr.bf16.gmra.mrb[4].mxu0 %v8288_v10  ;;  %7744 = vmatmul.mubr.bf16.gmra.mrb[4].mxu1 %v8288_v10  ;;  %v8291_v10 = vcombine.high %v54_v5, %v54_v5 }
 0x24b   :  { %6941 = vmatpush1.bf16.msra.mxu0 %v10462_v11  ;;  %7757 = vmatpush1.bf16.msra.mxu1 %v10465_v12  ;;  %v10554_v11 = vld [vmem:[%s14537_s1 + $0x1420] ss:$16 sps:$4 sm:$0xff]   ;;  %v10557_v12 = vld [vmem:[%s14537_s1 + $0x1428] ss:$16 sps:$4 sm:$0xff]  }
 0x24c   :  { %6942 = vmatprep.subr.bf16.mxu0 %v10470_v13  ;;  %7758 = vmatprep.subr.bf16.mxu1 %v10473_v14  ;;  %v10562_v13 = vld [vmem:[%s14537_s1 + $0x1444] ss:$16 sps:$4 sm:$0xff]   ;;  %v10565_v14 = vld [vmem:[%s14537_s1 + $0x144c] ss:$16 sps:$4 sm:$0xff]  }
 0x24d   :  { %6968 = vmatprep.mubr.bf16.mxu0 %v8259_v15  ;;  %7784 = vmatprep.mubr.bf16.mxu1 %v8259_v15  ;;  %v8290_v15 = vcombine.low %v54_v5, %v54_v5  ;;  %v10642_v5 = vld [vmem:[%s14537_s1 + $0x15e4] ss:$16 sps:$4 sm:$0xff]  }
 0x24f   :  { %6943 = vmatpush1.bf16.msra.mxu0 %v10468_v16  ;;  %7759 = vmatpush1.bf16.msra.mxu1 %v10471_v17  ;;  %v13274_v16 = vld [vmem:[%s14538_s0 + $0x50] sm:$0xff] }
 0x250   :  { %6944 = vmatprep.subr.bf16.mxu0 %v10476_v18  ;;  %7760 = vmatprep.subr.bf16.mxu1 %v10479_v19  ;;  %v13279_v17 = vld [vmem:[%s14538_s0 + $0xd0] sm:$0xff]  ;;  %v10563_v19 = vld [vmem:[%s14537_s1 + $0x1448] ss:$16 sps:$4 sm:$0xff]  }
 0x251   :  { %v10560_v18 = vld [vmem:[%s14537_s1 + $0x1440] ss:$16 sps:$4 sm:$0xff]  }
 0x253   :  { %6945 = vmatpush1.bf16.msra.mxu0 %v10474_v20  ;;  %7761 = vmatpush1.bf16.msra.mxu1 %v10477_v21  ;;  %v10568_v20 = vld [vmem:[%s14537_s1 + $0x1464] ss:$16 sps:$4 sm:$0xff]   ;;  %v10571_v21 = vld [vmem:[%s14537_s1 + $0x146c] ss:$16 sps:$4 sm:$0xff]  }
 0x254   :  { %6946 = vmatprep.subr.bf16.mxu0 %v10482_v22  ;;  %7762 = vmatprep.subr.bf16.mxu1 %v10485_v23  ;;  %v8261_v22 = vcombine.high %v13274_v16, %v13279_v17  ;;  %v10566_v23 = vld [vmem:[%s14537_s1 + $0x1460] ss:$16 sps:$4 sm:$0xff]  }
 0x257   :  { %6947 = vmatpush1.bf16.msra.mxu0 %v10480_v24  ;;  %7763 = vmatpush1.bf16.msra.mxu1 %v10483_v25  ;;  %v10569_v24 = vld [vmem:[%s14537_s1 + $0x1468] ss:$16 sps:$4 sm:$0xff]   ;;  %v10574_v25 = vld [vmem:[%s14537_s1 + $0x1484] ss:$16 sps:$4 sm:$0xff]  }
 0x258   :  { %6948 = vmatprep.subr.bf16.mxu0 %v10488_v26  ;;  %7764 = vmatprep.subr.bf16.mxu1 %v10491_v27  ;;  %v10577_v26 = vld [vmem:[%s14537_s1 + $0x148c] ss:$16 sps:$4 sm:$0xff]   ;;  %v10572_v27 = vld [vmem:[%s14537_s1 + $0x1480] ss:$16 sps:$4 sm:$0xff]  }
 0x25b   :  { %6949 = vmatpush1.bf16.msra.mxu0 %v10486_v28  ;;  %7765 = vmatpush1.bf16.msra.mxu1 %v10489_v29  ;;  %v10575_v28 = vld [vmem:[%s14537_s1 + $0x1488] ss:$16 sps:$4 sm:$0xff]   ;;  %v10580_v29 = vld [vmem:[%s14537_s1 + $0x14a4] ss:$16 sps:$4 sm:$0xff]  }
 0x25c   :  { %6950 = vmatprep.subr.bf16.mxu0 %v10494_v30  ;;  %7766 = vmatprep.subr.bf16.mxu1 %v10497_v31  ;;  %v10583_v30 = vld [vmem:[%s14537_s1 + $0x14ac] ss:$16 sps:$4 sm:$0xff]   ;;  %v10578_v31 = vld [vmem:[%s14537_s1 + $0x14a0] ss:$16 sps:$4 sm:$0xff]  }
 0x25f   :  { %6951 = vmatpush1.bf16.msra.mxu0 %v10492_v32  ;;  %7767 = vmatpush1.bf16.msra.mxu1 %v10495_v33  ;;  %v10581_v32 = vld [vmem:[%s14537_s1 + $0x14a8] ss:$16 sps:$4 sm:$0xff]   ;;  %v10586_v33 = vld [vmem:[%s14537_s1 + $0x14c4] ss:$16 sps:$4 sm:$0xff]  }
 0x260   :  { %6952 = vmatprep.subr.bf16.mxu0 %v10500_v34  ;;  %7768 = vmatprep.subr.bf16.mxu1 %v10503_v35  ;;  %v10589_v34 = vld [vmem:[%s14537_s1 + $0x14cc] ss:$16 sps:$4 sm:$0xff]   ;;  %v10584_v35 = vld [vmem:[%s14537_s1 + $0x14c0] ss:$16 sps:$4 sm:$0xff]  }
 0x263   :  { %6953 = vmatpush1.bf16.msra.mxu0 %v10498_v36  ;;  %7769 = vmatpush1.bf16.msra.mxu1 %v10501_v37  ;;  %v10587_v36 = vld [vmem:[%s14537_s1 + $0x14c8] ss:$16 sps:$4 sm:$0xff]   ;;  %v10592_v37 = vld [vmem:[%s14537_s1 + $0x14e4] ss:$16 sps:$4 sm:$0xff]  }
 0x264   :  { %6954 = vmatprep.subr.bf16.mxu0 %v10506_v38  ;;  %7770 = vmatprep.subr.bf16.mxu1 %v10509_v39  ;;  %v10595_v38 = vld [vmem:[%s14537_s1 + $0x14ec] ss:$16 sps:$4 sm:$0xff]   ;;  %v10590_v39 = vld [vmem:[%s14537_s1 + $0x14e0] ss:$16 sps:$4 sm:$0xff]  }
 0x267   :  { %6955 = vmatpush1.bf16.msra.mxu0 %v10504_v40  ;;  %7771 = vmatpush1.bf16.msra.mxu1 %v10507_v41  ;;  %v10593_v40 = vld [vmem:[%s14537_s1 + $0x14e8] ss:$16 sps:$4 sm:$0xff]   ;;  %v10598_v41 = vld [vmem:[%s14537_s1 + $0x1504] ss:$16 sps:$4 sm:$0xff]  }
 0x268   :  { %6956 = vmatprep.subr.bf16.mxu0 %v10512_v42  ;;  %7772 = vmatprep.subr.bf16.mxu1 %v10515_v43  ;;  %v10601_v42 = vld [vmem:[%s14537_s1 + $0x150c] ss:$16 sps:$4 sm:$0xff]   ;;  %v10596_v43 = vld [vmem:[%s14537_s1 + $0x1500] ss:$16 sps:$4 sm:$0xff]  }
 0x26b   :  { %6957 = vmatpush1.bf16.msra.mxu0 %v10510_v46  ;;  %7773 = vmatpush1.bf16.msra.mxu1 %v10513_v44  ;;  %v10599_v46 = vld [vmem:[%s14537_s1 + $0x1508] ss:$16 sps:$4 sm:$0xff]   ;;  %v10604_v44 = vld [vmem:[%s14537_s1 + $0x1524] ss:$16 sps:$4 sm:$0xff]  }
 0x26c   :  { %6958 = vmatprep.subr.bf16.mxu0 %v10518_v45  ;;  %7774 = vmatprep.subr.bf16.mxu1 %v10521_v47  ;;  %v10607_v45 = vld [vmem:[%s14537_s1 + $0x152c] ss:$16 sps:$4 sm:$0xff]   ;;  %v10602_v47 = vld [vmem:[%s14537_s1 + $0x1520] ss:$16 sps:$4 sm:$0xff]  }
 0x26f   :  { %6959 = vmatpush1.bf16.msra.mxu0 %v10516_v48  ;;  %7775 = vmatpush1.bf16.msra.mxu1 %v10519_v49  ;;  %v10605_v48 = vld [vmem:[%s14537_s1 + $0x1528] ss:$16 sps:$4 sm:$0xff]   ;;  %v10610_v49 = vld [vmem:[%s14537_s1 + $0x1544] ss:$16 sps:$4 sm:$0xff]  }
 0x270   :  { %6960 = vmatprep.subr.bf16.mxu0 %v10524_v50  ;;  %7776 = vmatprep.subr.bf16.mxu1 %v10527_v53  ;;  %v10613_v50 = vld [vmem:[%s14537_s1 + $0x154c] ss:$16 sps:$4 sm:$0xff]   ;;  %v10608_v53 = vld [vmem:[%s14537_s1 + $0x1540] ss:$16 sps:$4 sm:$0xff]  }
 0x273   :  { %6961 = vmatpush1.bf16.msra.mxu0 %v10522_v51  ;;  %7777 = vmatpush1.bf16.msra.mxu1 %v10525_v52  ;;  %v10611_v51 = vld [vmem:[%s14537_s1 + $0x1548] ss:$16 sps:$4 sm:$0xff]   ;;  %v10616_v52 = vld [vmem:[%s14537_s1 + $0x1564] ss:$16 sps:$4 sm:$0xff]  }
 0x274   :  { %6962 = vmatprep.subr.bf16.mxu0 %v10530_v54  ;;  %7778 = vmatprep.subr.bf16.mxu1 %v10533_v55  ;;  %v10619_v54 = vld [vmem:[%s14537_s1 + $0x156c] ss:$16 sps:$4 sm:$0xff]   ;;  %v10614_v55 = vld [vmem:[%s14537_s1 + $0x1560] ss:$16 sps:$4 sm:$0xff]  }
 0x277   :  { %6963 = vmatpush1.bf16.msra.mxu0 %v10528_v56  ;;  %7779 = vmatpush1.bf16.msra.mxu1 %v10531_v57  ;;  %v10617_v56 = vld [vmem:[%s14537_s1 + $0x1568] ss:$16 sps:$4 sm:$0xff]   ;;  %v10622_v57 = vld [vmem:[%s14537_s1 + $0x1584] ss:$16 sps:$4 sm:$0xff]  }
 0x278   :  { %6964 = vmatprep.subr.bf16.mxu0 %v10537_v60  ;;  %7780 = vmatprep.subr.bf16.mxu1 %v10540_v58  ;;  %v10625_v60 = vld [vmem:[%s14537_s1 + $0x158c] ss:$16 sps:$4 sm:$0xff]   ;;  %v10620_v58 = vld [vmem:[%s14537_s1 + $0x1580] ss:$16 sps:$4 sm:$0xff]  }
 0x27b   :  { %6965 = vmatpush1.bf16.msra.mxu0 %v10535_v59  ;;  %7781 = vmatpush1.bf16.msra.mxu1 %v10538_v61  ;;  %v10623_v59 = vld [vmem:[%s14537_s1 + $0x1588] ss:$16 sps:$4 sm:$0xff]   ;;  %v10628_v61 = vld [vmem:[%s14537_s1 + $0x15a4] ss:$16 sps:$4 sm:$0xff]  }
 0x27c   :  { %6966 = vmatprep.subr.bf16.mxu0 %v10544_v62  ;;  %7782 = vmatprep.subr.bf16.mxu1 %v10547_v63  ;;  %v10631_v62 = vld [vmem:[%s14537_s1 + $0x15ac] ss:$16 sps:$4 sm:$0xff]   ;;  %v10626_v63 = vld [vmem:[%s14537_s1 + $0x15a0] ss:$16 sps:$4 sm:$0xff]  }
 0x27f   :  { %6967 = vmatpush1.bf16.msra.mxu0 %v10542_v0  ;;  %7783 = vmatpush1.bf16.msra.mxu1 %v10545_v3  ;;  %v10629_v0 = vld [vmem:[%s14537_s1 + $0x15a8] ss:$16 sps:$4 sm:$0xff]   ;;  %v10635_v3 = vld [vmem:[%s14537_s1 + $0x15c4] ss:$16 sps:$4 sm:$0xff]  }
 0x280   :  { %6987 = vmatprep.subr.bf16.mxu0 %v10550_v1  ;;  %7803 = vmatprep.subr.bf16.mxu1 %v10553_v2  ;;  %v10638_v1 = vld [vmem:[%s14537_s1 + $0x15cc] ss:$16 sps:$4 sm:$0xff]   ;;  %v10633_v2 = vld [vmem:[%s14537_s1 + $0x15c0] ss:$16 sps:$4 sm:$0xff]  }
 0x282   :  { %6969 = vmatmul.mubr.bf16.vlgmr.msra.gmra.mrb[0].mxu0 %v8258_v4  ;;  %7785 = vmatmul.mubr.bf16.vlgmr.msra.gmra.mrb[0].mxu1 %v8258_v4  ;;  %v10636_v4 = vld [vmem:[%s14537_s1 + $0x15c8] ss:$16 sps:$4 sm:$0xff]  }
 0x283   :  { %6988 = vmatpush1.bf16.msra.mxu0 %v10548_v6  ;;  %7804 = vmatpush1.bf16.msra.mxu1 %v10551_v7  ;;  %v10645_v6 = vld [vmem:[%s14537_s1 + $0x15ec] ss:$16 sps:$4 sm:$0xff]   ;;  %v10640_v7 = vld [vmem:[%s14537_s1 + $0x15e0] ss:$16 sps:$4 sm:$0xff]  }
 0x284   :  { %6989 = vmatprep.subr.bf16.mxu0 %v10556_v8  ;;  %7805 = vmatprep.subr.bf16.mxu1 %v10559_v9  ;;  %v10643_v8 = vld [vmem:[%s14537_s1 + $0x15e8] ss:$16 sps:$4 sm:$0xff]   ;;  %v10648_v9 = vld [vmem:[%s14537_s1 + $0x1604] ss:$16 sps:$4 sm:$0xff]  }
 0x285   :  { %6978 = vmatprep.mubr.bf16.mxu0 %v8291_v10  ;;  %7794 = vmatprep.mubr.bf16.mxu1 %v8291_v10  ;;  %v10651_v10 = vld [vmem:[%s14537_s1 + $0x160c] ss:$16 sps:$4 sm:$0xff]  }
 0x287   :  { %6990 = vmatpush1.bf16.msra.mxu0 %v10554_v11  ;;  %7806 = vmatpush1.bf16.msra.mxu1 %v10557_v12  ;;  %v8260_v11 = vcombine.low %v13274_v16, %v13279_v17  ;;  %v55_v12 = vld [vmem:[%s14538_s0 + $0x150] sm:$0xff]  ;;  %v10657_v16 = vld [vmem:[%s14537_s1 + $0x162c] ss:$16 sps:$4 sm:$0xff]  }
 0x288   :  { %6991 = vmatprep.subr.bf16.mxu0 %v10562_v13  ;;  %7807 = vmatprep.subr.bf16.mxu1 %v10565_v14  ;;  %v10646_v13 = vld [vmem:[%s14537_s1 + $0x1600] ss:$16 sps:$4 sm:$0xff]   ;;  %v10649_v14 = vld [vmem:[%s14537_s1 + $0x1608] ss:$16 sps:$4 sm:$0xff]   ;;  %v8293_v17 = vcombine.high %v55_v12, %v55_v12 }
 0x28a   :  { %6979 = vmatmul.mubr.bf16.gmra.mrb[4].mxu0 %v8290_v15  ;;  %7795 = vmatmul.mubr.bf16.gmra.mrb[4].mxu1 %v8290_v15  ;;  %v10654_v15 = vld [vmem:[%s14537_s1 + $0x1624] ss:$16 sps:$4 sm:$0xff]  }
 0x28b   :  { %6992 = vmatpush1.bf16.msra.mxu0 %v10560_v18  ;;  %7808 = vmatpush1.bf16.msra.mxu1 %v10563_v19  ;;  %v10652_v18 = vld [vmem:[%s14537_s1 + $0x1620] ss:$16 sps:$4 sm:$0xff]   ;;  %v10655_v19 = vld [vmem:[%s14537_s1 + $0x1628] ss:$16 sps:$4 sm:$0xff]  }
 0x28c   :  { %6993 = vmatprep.subr.bf16.mxu0 %v10568_v20  ;;  %7809 = vmatprep.subr.bf16.mxu1 %v10571_v21  ;;  %v10660_v20 = vld [vmem:[%s14537_s1 + $0x1644] ss:$16 sps:$4 sm:$0xff]   ;;  %v10663_v21 = vld [vmem:[%s14537_s1 + $0x164c] ss:$16 sps:$4 sm:$0xff]  }
 0x28d   :  { %7019 = vmatprep.mubr.bf16.mxu0 %v8261_v22  ;;  %7835 = vmatprep.mubr.bf16.mxu1 %v8261_v22  ;;  %v8292_v22 = vcombine.low %v55_v12, %v55_v12  ;;  %v10740_v12 = vld [vmem:[%s14537_s1 + $0x17e4] ss:$16 sps:$4 sm:$0xff]  }
 0x28f   :  { %6994 = vmatpush1.bf16.msra.mxu0 %v10566_v23  ;;  %7810 = vmatpush1.bf16.msra.mxu1 %v10569_v24  ;;  %v13483_v23 = vld [vmem:[%s14538_s0 + $0x58] sm:$0xff] }
 0x290   :  { %6995 = vmatprep.subr.bf16.mxu0 %v10574_v25  ;;  %7811 = vmatprep.subr.bf16.mxu1 %v10577_v26  ;;  %v13488_v24 = vld [vmem:[%s14538_s0 + $0xd8] sm:$0xff]  ;;  %v10658_v25 = vld [vmem:[%s14537_s1 + $0x1640] ss:$16 sps:$4 sm:$0xff]  }
 0x291   :  { %v10661_v26 = vld [vmem:[%s14537_s1 + $0x1648] ss:$16 sps:$4 sm:$0xff]  }
 0x293   :  { %6996 = vmatpush1.bf16.msra.mxu0 %v10572_v27  ;;  %7812 = vmatpush1.bf16.msra.mxu1 %v10575_v28  ;;  %v10666_v27 = vld [vmem:[%s14537_s1 + $0x1664] ss:$16 sps:$4 sm:$0xff]   ;;  %v10669_v28 = vld [vmem:[%s14537_s1 + $0x166c] ss:$16 sps:$4 sm:$0xff]  }
 0x294   :  { %6997 = vmatprep.subr.bf16.mxu0 %v10580_v29  ;;  %7813 = vmatprep.subr.bf16.mxu1 %v10583_v30  ;;  %v8263_v29 = vcombine.high %v13483_v23, %v13488_v24  ;;  %v10664_v30 = vld [vmem:[%s14537_s1 + $0x1660] ss:$16 sps:$4 sm:$0xff]  }
 0x297   :  { %6998 = vmatpush1.bf16.msra.mxu0 %v10578_v31  ;;  %7814 = vmatpush1.bf16.msra.mxu1 %v10581_v32  ;;  %v10667_v31 = vld [vmem:[%s14537_s1 + $0x1668] ss:$16 sps:$4 sm:$0xff]   ;;  %v10672_v32 = vld [vmem:[%s14537_s1 + $0x1684] ss:$16 sps:$4 sm:$0xff]  }
 0x298   :  { %6999 = vmatprep.subr.bf16.mxu0 %v10586_v33  ;;  %7815 = vmatprep.subr.bf16.mxu1 %v10589_v34  ;;  %v10675_v33 = vld [vmem:[%s14537_s1 + $0x168c] ss:$16 sps:$4 sm:$0xff]   ;;  %v10670_v34 = vld [vmem:[%s14537_s1 + $0x1680] ss:$16 sps:$4 sm:$0xff]  }
 0x29b   :  { %7000 = vmatpush1.bf16.msra.mxu0 %v10584_v35  ;;  %7816 = vmatpush1.bf16.msra.mxu1 %v10587_v36  ;;  %v10673_v35 = vld [vmem:[%s14537_s1 + $0x1688] ss:$16 sps:$4 sm:$0xff]   ;;  %v10678_v36 = vld [vmem:[%s14537_s1 + $0x16a4] ss:$16 sps:$4 sm:$0xff]  }
 0x29c   :  { %7001 = vmatprep.subr.bf16.mxu0 %v10592_v37  ;;  %7817 = vmatprep.subr.bf16.mxu1 %v10595_v38  ;;  %v10681_v37 = vld [vmem:[%s14537_s1 + $0x16ac] ss:$16 sps:$4 sm:$0xff]   ;;  %v10676_v38 = vld [vmem:[%s14537_s1 + $0x16a0] ss:$16 sps:$4 sm:$0xff]  }
 0x29f   :  { %7002 = vmatpush1.bf16.msra.mxu0 %v10590_v39  ;;  %7818 = vmatpush1.bf16.msra.mxu1 %v10593_v40  ;;  %v10679_v39 = vld [vmem:[%s14537_s1 + $0x16a8] ss:$16 sps:$4 sm:$0xff]   ;;  %v10684_v40 = vld [vmem:[%s14537_s1 + $0x16c4] ss:$16 sps:$4 sm:$0xff]  }
 0x2a0   :  { %7003 = vmatprep.subr.bf16.mxu0 %v10598_v41  ;;  %7819 = vmatprep.subr.bf16.mxu1 %v10601_v42  ;;  %v10687_v41 = vld [vmem:[%s14537_s1 + $0x16cc] ss:$16 sps:$4 sm:$0xff]   ;;  %v10682_v42 = vld [vmem:[%s14537_s1 + $0x16c0] ss:$16 sps:$4 sm:$0xff]  }
 0x2a3   :  { %7004 = vmatpush1.bf16.msra.mxu0 %v10596_v43  ;;  %7820 = vmatpush1.bf16.msra.mxu1 %v10599_v46  ;;  %v10685_v43 = vld [vmem:[%s14537_s1 + $0x16c8] ss:$16 sps:$4 sm:$0xff]   ;;  %v10690_v46 = vld [vmem:[%s14537_s1 + $0x16e4] ss:$16 sps:$4 sm:$0xff]  }
 0x2a4   :  { %7005 = vmatprep.subr.bf16.mxu0 %v10604_v44  ;;  %7821 = vmatprep.subr.bf16.mxu1 %v10607_v45  ;;  %v10693_v44 = vld [vmem:[%s14537_s1 + $0x16ec] ss:$16 sps:$4 sm:$0xff]   ;;  %v10688_v45 = vld [vmem:[%s14537_s1 + $0x16e0] ss:$16 sps:$4 sm:$0xff]  }
 0x2a7   :  { %7006 = vmatpush1.bf16.msra.mxu0 %v10602_v47  ;;  %7822 = vmatpush1.bf16.msra.mxu1 %v10605_v48  ;;  %v10691_v47 = vld [vmem:[%s14537_s1 + $0x16e8] ss:$16 sps:$4 sm:$0xff]   ;;  %v10696_v48 = vld [vmem:[%s14537_s1 + $0x1704] ss:$16 sps:$4 sm:$0xff]  }
 0x2a8   :  { %7007 = vmatprep.subr.bf16.mxu0 %v10610_v49  ;;  %7823 = vmatprep.subr.bf16.mxu1 %v10613_v50  ;;  %v10699_v49 = vld [vmem:[%s14537_s1 + $0x170c] ss:$16 sps:$4 sm:$0xff]   ;;  %v10694_v50 = vld [vmem:[%s14537_s1 + $0x1700] ss:$16 sps:$4 sm:$0xff]  }
 0x2ab   :  { %7008 = vmatpush1.bf16.msra.mxu0 %v10608_v53  ;;  %7824 = vmatpush1.bf16.msra.mxu1 %v10611_v51  ;;  %v10697_v53 = vld [vmem:[%s14537_s1 + $0x1708] ss:$16 sps:$4 sm:$0xff]   ;;  %v10702_v51 = vld [vmem:[%s14537_s1 + $0x1724] ss:$16 sps:$4 sm:$0xff]  }
 0x2ac   :  { %7009 = vmatprep.subr.bf16.mxu0 %v10616_v52  ;;  %7825 = vmatprep.subr.bf16.mxu1 %v10619_v54  ;;  %v10705_v52 = vld [vmem:[%s14537_s1 + $0x172c] ss:$16 sps:$4 sm:$0xff]   ;;  %v10700_v54 = vld [vmem:[%s14537_s1 + $0x1720] ss:$16 sps:$4 sm:$0xff]  }
 0x2af   :  { %7010 = vmatpush1.bf16.msra.mxu0 %v10614_v55  ;;  %7826 = vmatpush1.bf16.msra.mxu1 %v10617_v56  ;;  %v10703_v55 = vld [vmem:[%s14537_s1 + $0x1728] ss:$16 sps:$4 sm:$0xff]   ;;  %v10708_v56 = vld [vmem:[%s14537_s1 + $0x1744] ss:$16 sps:$4 sm:$0xff]  }
 0x2b0   :  { %7011 = vmatprep.subr.bf16.mxu0 %v10622_v57  ;;  %7827 = vmatprep.subr.bf16.mxu1 %v10625_v60  ;;  %v10711_v57 = vld [vmem:[%s14537_s1 + $0x174c] ss:$16 sps:$4 sm:$0xff]   ;;  %v10706_v60 = vld [vmem:[%s14537_s1 + $0x1740] ss:$16 sps:$4 sm:$0xff]  }
 0x2b3   :  { %7012 = vmatpush1.bf16.msra.mxu0 %v10620_v58  ;;  %7828 = vmatpush1.bf16.msra.mxu1 %v10623_v59  ;;  %v10709_v58 = vld [vmem:[%s14537_s1 + $0x1748] ss:$16 sps:$4 sm:$0xff]   ;;  %v10714_v59 = vld [vmem:[%s14537_s1 + $0x1764] ss:$16 sps:$4 sm:$0xff]  }
 0x2b4   :  { %7013 = vmatprep.subr.bf16.mxu0 %v10628_v61  ;;  %7829 = vmatprep.subr.bf16.mxu1 %v10631_v62  ;;  %v10717_v61 = vld [vmem:[%s14537_s1 + $0x176c] ss:$16 sps:$4 sm:$0xff]   ;;  %v10712_v62 = vld [vmem:[%s14537_s1 + $0x1760] ss:$16 sps:$4 sm:$0xff]  }
 0x2b7   :  { %7014 = vmatpush1.bf16.msra.mxu0 %v10626_v63  ;;  %7830 = vmatpush1.bf16.msra.mxu1 %v10629_v0  ;;  %v10715_v63 = vld [vmem:[%s14537_s1 + $0x1768] ss:$16 sps:$4 sm:$0xff]   ;;  %v10720_v0 = vld [vmem:[%s14537_s1 + $0x1784] ss:$16 sps:$4 sm:$0xff]  }
 0x2b8   :  { %7015 = vmatprep.subr.bf16.mxu0 %v10635_v3  ;;  %7831 = vmatprep.subr.bf16.mxu1 %v10638_v1  ;;  %v10723_v3 = vld [vmem:[%s14537_s1 + $0x178c] ss:$16 sps:$4 sm:$0xff]   ;;  %v10718_v1 = vld [vmem:[%s14537_s1 + $0x1780] ss:$16 sps:$4 sm:$0xff]  }
 0x2bb   :  { %7016 = vmatpush1.bf16.msra.mxu0 %v10633_v2  ;;  %7832 = vmatpush1.bf16.msra.mxu1 %v10636_v4  ;;  %v10721_v2 = vld [vmem:[%s14537_s1 + $0x1788] ss:$16 sps:$4 sm:$0xff]   ;;  %v10726_v4 = vld [vmem:[%s14537_s1 + $0x17a4] ss:$16 sps:$4 sm:$0xff]  }
 0x2bc   :  { %7017 = vmatprep.subr.bf16.mxu0 %v10642_v5  ;;  %7833 = vmatprep.subr.bf16.mxu1 %v10645_v6  ;;  %v10729_v5 = vld [vmem:[%s14537_s1 + $0x17ac] ss:$16 sps:$4 sm:$0xff]   ;;  %v10724_v6 = vld [vmem:[%s14537_s1 + $0x17a0] ss:$16 sps:$4 sm:$0xff]  }
 0x2bf   :  { %7018 = vmatpush1.bf16.msra.mxu0 %v10640_v7  ;;  %7834 = vmatpush1.bf16.msra.mxu1 %v10643_v8  ;;  %v10727_v7 = vld [vmem:[%s14537_s1 + $0x17a8] ss:$16 sps:$4 sm:$0xff]   ;;  %v10733_v8 = vld [vmem:[%s14537_s1 + $0x17c4] ss:$16 sps:$4 sm:$0xff]  }
 0x2c0   :  { %7038 = vmatprep.subr.bf16.mxu0 %v10648_v9  ;;  %7854 = vmatprep.subr.bf16.mxu1 %v10651_v10  ;;  %v10736_v9 = vld [vmem:[%s14537_s1 + $0x17cc] ss:$16 sps:$4 sm:$0xff]   ;;  %v10731_v10 = vld [vmem:[%s14537_s1 + $0x17c0] ss:$16 sps:$4 sm:$0xff]  }
 0x2c2   :  { %7020 = vmatmul.mubr.bf16.vlgmr.msra.gmra.mrb[0].mxu0 %v8260_v11  ;;  %7836 = vmatmul.mubr.bf16.vlgmr.msra.gmra.mrb[0].mxu1 %v8260_v11  ;;  %v10734_v11 = vld [vmem:[%s14537_s1 + $0x17c8] ss:$16 sps:$4 sm:$0xff]  }
 0x2c3   :  { %7039 = vmatpush1.bf16.msra.mxu0 %v10646_v13  ;;  %7855 = vmatpush1.bf16.msra.mxu1 %v10649_v14  ;;  %v10743_v13 = vld [vmem:[%s14537_s1 + $0x17ec] ss:$16 sps:$4 sm:$0xff]   ;;  %v10738_v14 = vld [vmem:[%s14537_s1 + $0x17e0] ss:$16 sps:$4 sm:$0xff]  }
 0x2c4   :  { %7040 = vmatprep.subr.bf16.mxu0 %v10654_v15  ;;  %7856 = vmatprep.subr.bf16.mxu1 %v10657_v16  ;;  %v10741_v15 = vld [vmem:[%s14537_s1 + $0x17e8] ss:$16 sps:$4 sm:$0xff]   ;;  %v10746_v16 = vld [vmem:[%s14537_s1 + $0x1804] ss:$16 sps:$4 sm:$0xff]  }
 0x2c5   :  { %7029 = vmatprep.mubr.bf16.mxu0 %v8293_v17  ;;  %7845 = vmatprep.mubr.bf16.mxu1 %v8293_v17  ;;  %v10749_v17 = vld [vmem:[%s14537_s1 + $0x180c] ss:$16 sps:$4 sm:$0xff]  }
 0x2c7   :  { %7041 = vmatpush1.bf16.msra.mxu0 %v10652_v18  ;;  %7857 = vmatpush1.bf16.msra.mxu1 %v10655_v19  ;;  %v8262_v18 = vcombine.low %v13483_v23, %v13488_v24  ;;  %v56_v19 = vld [vmem:[%s14538_s0 + $0x158] sm:$0xff] }
 0x2c8   :  { %7042 = vmatprep.subr.bf16.mxu0 %v10660_v20  ;;  %7858 = vmatprep.subr.bf16.mxu1 %v10663_v21  ;;  %v10744_v20 = vld [vmem:[%s14537_s1 + $0x1800] ss:$16 sps:$4 sm:$0xff]   ;;  %v10747_v21 = vld [vmem:[%s14537_s1 + $0x1808] ss:$16 sps:$4 sm:$0xff]   ;;  %v10755_v23 = vld [vmem:[%s14537_s1 + $0x182c] ss:$16 sps:$4 sm:$0xff]   ;;  %v8295_v24 = vcombine.high %v56_v19, %v56_v19 }
 0x2ca   :  { %7030 = vmatmul.mubr.bf16.gmra.mrb[4].mxu0 %v8292_v22  ;;  %7846 = vmatmul.mubr.bf16.gmra.mrb[4].mxu1 %v8292_v22  ;;  %v10752_v22 = vld [vmem:[%s14537_s1 + $0x1824] ss:$16 sps:$4 sm:$0xff]  }
 0x2cb   :  { %7043 = vmatpush1.bf16.msra.mxu0 %v10658_v25  ;;  %7859 = vmatpush1.bf16.msra.mxu1 %v10661_v26  ;;  %v10750_v25 = vld [vmem:[%s14537_s1 + $0x1820] ss:$16 sps:$4 sm:$0xff]   ;;  %v10753_v26 = vld [vmem:[%s14537_s1 + $0x1828] ss:$16 sps:$4 sm:$0xff]  }
 0x2cc   :  { %7044 = vmatprep.subr.bf16.mxu0 %v10666_v27  ;;  %7860 = vmatprep.subr.bf16.mxu1 %v10669_v28  ;;  %v10758_v27 = vld [vmem:[%s14537_s1 + $0x1844] ss:$16 sps:$4 sm:$0xff]   ;;  %v10761_v28 = vld [vmem:[%s14537_s1 + $0x184c] ss:$16 sps:$4 sm:$0xff]  }
 0x2cd   :  { %7070 = vmatprep.mubr.bf16.mxu0 %v8263_v29  ;;  %7886 = vmatprep.mubr.bf16.mxu1 %v8263_v29  ;;  %v8294_v29 = vcombine.low %v56_v19, %v56_v19  ;;  %v10838_v19 = vld [vmem:[%s14537_s1 + $0x19e4] ss:$16 sps:$4 sm:$0xff]  }
 0x2cf   :  { %7045 = vmatpush1.bf16.msra.mxu0 %v10664_v30  ;;  %7861 = vmatpush1.bf16.msra.mxu1 %v10667_v31  ;;  %v13692_v30 = vld [vmem:[%s14538_s0 + $0x60] sm:$0xff] }
 0x2d0   :  { %7046 = vmatprep.subr.bf16.mxu0 %v10672_v32  ;;  %7862 = vmatprep.subr.bf16.mxu1 %v10675_v33  ;;  %v13697_v31 = vld [vmem:[%s14538_s0 + $0xe0] sm:$0xff]  ;;  %v10759_v33 = vld [vmem:[%s14537_s1 + $0x1848] ss:$16 sps:$4 sm:$0xff]  }
 0x2d1   :  { %v10756_v32 = vld [vmem:[%s14537_s1 + $0x1840] ss:$16 sps:$4 sm:$0xff]  }
 0x2d3   :  { %7047 = vmatpush1.bf16.msra.mxu0 %v10670_v34  ;;  %7863 = vmatpush1.bf16.msra.mxu1 %v10673_v35  ;;  %v10764_v34 = vld [vmem:[%s14537_s1 + $0x1864] ss:$16 sps:$4 sm:$0xff]   ;;  %v10767_v35 = vld [vmem:[%s14537_s1 + $0x186c] ss:$16 sps:$4 sm:$0xff]  }
 0x2d4   :  { %7048 = vmatprep.subr.bf16.mxu0 %v10678_v36  ;;  %7864 = vmatprep.subr.bf16.mxu1 %v10681_v37  ;;  %v8265_v36 = vcombine.high %v13692_v30, %v13697_v31  ;;  %v10762_v37 = vld [vmem:[%s14537_s1 + $0x1860] ss:$16 sps:$4 sm:$0xff]  }
 0x2d7   :  { %7049 = vmatpush1.bf16.msra.mxu0 %v10676_v38  ;;  %7865 = vmatpush1.bf16.msra.mxu1 %v10679_v39  ;;  %v10765_v38 = vld [vmem:[%s14537_s1 + $0x1868] ss:$16 sps:$4 sm:$0xff]   ;;  %v10770_v39 = vld [vmem:[%s14537_s1 + $0x1884] ss:$16 sps:$4 sm:$0xff]  }
 0x2d8   :  { %7050 = vmatprep.subr.bf16.mxu0 %v10684_v40  ;;  %7866 = vmatprep.subr.bf16.mxu1 %v10687_v41  ;;  %v10773_v40 = vld [vmem:[%s14537_s1 + $0x188c] ss:$16 sps:$4 sm:$0xff]   ;;  %v10768_v41 = vld [vmem:[%s14537_s1 + $0x1880] ss:$16 sps:$4 sm:$0xff]  }
 0x2db   :  { %7051 = vmatpush1.bf16.msra.mxu0 %v10682_v42  ;;  %7867 = vmatpush1.bf16.msra.mxu1 %v10685_v43  ;;  %v10771_v42 = vld [vmem:[%s14537_s1 + $0x1888] ss:$16 sps:$4 sm:$0xff]   ;;  %v10776_v43 = vld [vmem:[%s14537_s1 + $0x18a4] ss:$16 sps:$4 sm:$0xff]  }
 0x2dc   :  { %7052 = vmatprep.subr.bf16.mxu0 %v10690_v46  ;;  %7868 = vmatprep.subr.bf16.mxu1 %v10693_v44  ;;  %v10779_v46 = vld [vmem:[%s14537_s1 + $0x18ac] ss:$16 sps:$4 sm:$0xff]   ;;  %v10774_v44 = vld [vmem:[%s14537_s1 + $0x18a0] ss:$16 sps:$4 sm:$0xff]  }
 0x2df   :  { %7053 = vmatpush1.bf16.msra.mxu0 %v10688_v45  ;;  %7869 = vmatpush1.bf16.msra.mxu1 %v10691_v47  ;;  %v10777_v45 = vld [vmem:[%s14537_s1 + $0x18a8] ss:$16 sps:$4 sm:$0xff]   ;;  %v10782_v47 = vld [vmem:[%s14537_s1 + $0x18c4] ss:$16 sps:$4 sm:$0xff]  }
 0x2e0   :  { %7054 = vmatprep.subr.bf16.mxu0 %v10696_v48  ;;  %7870 = vmatprep.subr.bf16.mxu1 %v10699_v49  ;;  %v10785_v48 = vld [vmem:[%s14537_s1 + $0x18cc] ss:$16 sps:$4 sm:$0xff]   ;;  %v10780_v49 = vld [vmem:[%s14537_s1 + $0x18c0] ss:$16 sps:$4 sm:$0xff]  }
 0x2e3   :  { %7055 = vmatpush1.bf16.msra.mxu0 %v10694_v50  ;;  %7871 = vmatpush1.bf16.msra.mxu1 %v10697_v53  ;;  %v10783_v50 = vld [vmem:[%s14537_s1 + $0x18c8] ss:$16 sps:$4 sm:$0xff]   ;;  %v10788_v53 = vld [vmem:[%s14537_s1 + $0x18e4] ss:$16 sps:$4 sm:$0xff]  }
 0x2e4   :  { %7056 = vmatprep.subr.bf16.mxu0 %v10702_v51  ;;  %7872 = vmatprep.subr.bf16.mxu1 %v10705_v52  ;;  %v10791_v51 = vld [vmem:[%s14537_s1 + $0x18ec] ss:$16 sps:$4 sm:$0xff]   ;;  %v10786_v52 = vld [vmem:[%s14537_s1 + $0x18e0] ss:$16 sps:$4 sm:$0xff]  }
 0x2e7   :  { %7057 = vmatpush1.bf16.msra.mxu0 %v10700_v54  ;;  %7873 = vmatpush1.bf16.msra.mxu1 %v10703_v55  ;;  %v10789_v54 = vld [vmem:[%s14537_s1 + $0x18e8] ss:$16 sps:$4 sm:$0xff]   ;;  %v10794_v55 = vld [vmem:[%s14537_s1 + $0x1904] ss:$16 sps:$4 sm:$0xff]  }
 0x2e8   :  { %7058 = vmatprep.subr.bf16.mxu0 %v10708_v56  ;;  %7874 = vmatprep.subr.bf16.mxu1 %v10711_v57  ;;  %v10797_v56 = vld [vmem:[%s14537_s1 + $0x190c] ss:$16 sps:$4 sm:$0xff]   ;;  %v10792_v57 = vld [vmem:[%s14537_s1 + $0x1900] ss:$16 sps:$4 sm:$0xff]  }
 0x2eb   :  { %7059 = vmatpush1.bf16.msra.mxu0 %v10706_v60  ;;  %7875 = vmatpush1.bf16.msra.mxu1 %v10709_v58  ;;  %v10795_v60 = vld [vmem:[%s14537_s1 + $0x1908] ss:$16 sps:$4 sm:$0xff]   ;;  %v10800_v58 = vld [vmem:[%s14537_s1 + $0x1924] ss:$16 sps:$4 sm:$0xff]  }
 0x2ec   :  { %7060 = vmatprep.subr.bf16.mxu0 %v10714_v59  ;;  %7876 = vmatprep.subr.bf16.mxu1 %v10717_v61  ;;  %v10803_v59 = vld [vmem:[%s14537_s1 + $0x192c] ss:$16 sps:$4 sm:$0xff]   ;;  %v10798_v61 = vld [vmem:[%s14537_s1 + $0x1920] ss:$16 sps:$4 sm:$0xff]  }
 0x2ef   :  { %7061 = vmatpush1.bf16.msra.mxu0 %v10712_v62  ;;  %7877 = vmatpush1.bf16.msra.mxu1 %v10715_v63  ;;  %v10801_v62 = vld [vmem:[%s14537_s1 + $0x1928] ss:$16 sps:$4 sm:$0xff]   ;;  %v10806_v63 = vld [vmem:[%s14537_s1 + $0x1944] ss:$16 sps:$4 sm:$0xff]  }
 0x2f0   :  { %7062 = vmatprep.subr.bf16.mxu0 %v10720_v0  ;;  %7878 = vmatprep.subr.bf16.mxu1 %v10723_v3  ;;  %v10809_v0 = vld [vmem:[%s14537_s1 + $0x194c] ss:$16 sps:$4 sm:$0xff]   ;;  %v10804_v3 = vld [vmem:[%s14537_s1 + $0x1940] ss:$16 sps:$4 sm:$0xff]  }
 0x2f3   :  { %7063 = vmatpush1.bf16.msra.mxu0 %v10718_v1  ;;  %7879 = vmatpush1.bf16.msra.mxu1 %v10721_v2  ;;  %v10807_v1 = vld [vmem:[%s14537_s1 + $0x1948] ss:$16 sps:$4 sm:$0xff]   ;;  %v10812_v2 = vld [vmem:[%s14537_s1 + $0x1964] ss:$16 sps:$4 sm:$0xff]  }
 0x2f4   :  { %7064 = vmatprep.subr.bf16.mxu0 %v10726_v4  ;;  %7880 = vmatprep.subr.bf16.mxu1 %v10729_v5  ;;  %v10815_v4 = vld [vmem:[%s14537_s1 + $0x196c] ss:$16 sps:$4 sm:$0xff]   ;;  %v10810_v5 = vld [vmem:[%s14537_s1 + $0x1960] ss:$16 sps:$4 sm:$0xff]  }
 0x2f7   :  { %7065 = vmatpush1.bf16.msra.mxu0 %v10724_v6  ;;  %7881 = vmatpush1.bf16.msra.mxu1 %v10727_v7  ;;  %v10813_v6 = vld [vmem:[%s14537_s1 + $0x1968] ss:$16 sps:$4 sm:$0xff]   ;;  %v10818_v7 = vld [vmem:[%s14537_s1 + $0x1984] ss:$16 sps:$4 sm:$0xff]  }
 0x2f8   :  { %7066 = vmatprep.subr.bf16.mxu0 %v10733_v8  ;;  %7882 = vmatprep.subr.bf16.mxu1 %v10736_v9  ;;  %v10821_v8 = vld [vmem:[%s14537_s1 + $0x198c] ss:$16 sps:$4 sm:$0xff]   ;;  %v10816_v9 = vld [vmem:[%s14537_s1 + $0x1980] ss:$16 sps:$4 sm:$0xff]  }
 0x2fb   :  { %7067 = vmatpush1.bf16.msra.mxu0 %v10731_v10  ;;  %7883 = vmatpush1.bf16.msra.mxu1 %v10734_v11  ;;  %v10819_v10 = vld [vmem:[%s14537_s1 + $0x1988] ss:$16 sps:$4 sm:$0xff]   ;;  %v10824_v11 = vld [vmem:[%s14537_s1 + $0x19a4] ss:$16 sps:$4 sm:$0xff]  }
 0x2fc   :  { %7068 = vmatprep.subr.bf16.mxu0 %v10740_v12  ;;  %7884 = vmatprep.subr.bf16.mxu1 %v10743_v13  ;;  %v10827_v12 = vld [vmem:[%s14537_s1 + $0x19ac] ss:$16 sps:$4 sm:$0xff]   ;;  %v10822_v13 = vld [vmem:[%s14537_s1 + $0x19a0] ss:$16 sps:$4 sm:$0xff]  }
 0x2ff   :  { %7069 = vmatpush1.bf16.msra.mxu0 %v10738_v14  ;;  %7885 = vmatpush1.bf16.msra.mxu1 %v10741_v15  ;;  %v10825_v14 = vld [vmem:[%s14537_s1 + $0x19a8] ss:$16 sps:$4 sm:$0xff]   ;;  %v10831_v15 = vld [vmem:[%s14537_s1 + $0x19c4] ss:$16 sps:$4 sm:$0xff]  }
 0x300   :  { %7089 = vmatprep.subr.bf16.mxu0 %v10746_v16  ;;  %7905 = vmatprep.subr.bf16.mxu1 %v10749_v17  ;;  %v10834_v16 = vld [vmem:[%s14537_s1 + $0x19cc] ss:$16 sps:$4 sm:$0xff]   ;;  %v10829_v17 = vld [vmem:[%s14537_s1 + $0x19c0] ss:$16 sps:$4 sm:$0xff]  }
 0x302   :  { %7071 = vmatmul.mubr.bf16.vlgmr.msra.gmra.mrb[0].mxu0 %v8262_v18  ;;  %7887 = vmatmul.mubr.bf16.vlgmr.msra.gmra.mrb[0].mxu1 %v8262_v18  ;;  %v10832_v18 = vld [vmem:[%s14537_s1 + $0x19c8] ss:$16 sps:$4 sm:$0xff]  }
 0x303   :  { %7090 = vmatpush1.bf16.msra.mxu0 %v10744_v20  ;;  %7906 = vmatpush1.bf16.msra.mxu1 %v10747_v21  ;;  %v10841_v20 = vld [vmem:[%s14537_s1 + $0x19ec] ss:$16 sps:$4 sm:$0xff]   ;;  %v10836_v21 = vld [vmem:[%s14537_s1 + $0x19e0] ss:$16 sps:$4 sm:$0xff]  }
 0x304   :  { %7091 = vmatprep.subr.bf16.mxu0 %v10752_v22  ;;  %7907 = vmatprep.subr.bf16.mxu1 %v10755_v23  ;;  %v10839_v22 = vld [vmem:[%s14537_s1 + $0x19e8] ss:$16 sps:$4 sm:$0xff]   ;;  %v10844_v23 = vld [vmem:[%s14537_s1 + $0x1a04] ss:$16 sps:$4 sm:$0xff]  }
 0x305   :  { %7080 = vmatprep.mubr.bf16.mxu0 %v8295_v24  ;;  %7896 = vmatprep.mubr.bf16.mxu1 %v8295_v24  ;;  %v10847_v24 = vld [vmem:[%s14537_s1 + $0x1a0c] ss:$16 sps:$4 sm:$0xff]  }
 0x307   :  { %7092 = vmatpush1.bf16.msra.mxu0 %v10750_v25  ;;  %7908 = vmatpush1.bf16.msra.mxu1 %v10753_v26  ;;  %v8264_v25 = vcombine.low %v13692_v30, %v13697_v31  ;;  %v57_v26 = vld [vmem:[%s14538_s0 + $0x160] sm:$0xff]  ;;  %v10853_v30 = vld [vmem:[%s14537_s1 + $0x1a2c] ss:$16 sps:$4 sm:$0xff]  }
 0x308   :  { %7093 = vmatprep.subr.bf16.mxu0 %v10758_v27  ;;  %7909 = vmatprep.subr.bf16.mxu1 %v10761_v28  ;;  %v10842_v27 = vld [vmem:[%s14537_s1 + $0x1a00] ss:$16 sps:$4 sm:$0xff]   ;;  %v10845_v28 = vld [vmem:[%s14537_s1 + $0x1a08] ss:$16 sps:$4 sm:$0xff]   ;;  %v8297_v31 = vcombine.high %v57_v26, %v57_v26 }
 0x30a   :  { %7081 = vmatmul.mubr.bf16.gmra.mrb[4].mxu0 %v8294_v29  ;;  %7897 = vmatmul.mubr.bf16.gmra.mrb[4].mxu1 %v8294_v29  ;;  %v10850_v29 = vld [vmem:[%s14537_s1 + $0x1a24] ss:$16 sps:$4 sm:$0xff]  }
 0x30b   :  { %7094 = vmatpush1.bf16.msra.mxu0 %v10756_v32  ;;  %7910 = vmatpush1.bf16.msra.mxu1 %v10759_v33  ;;  %v10848_v32 = vld [vmem:[%s14537_s1 + $0x1a20] ss:$16 sps:$4 sm:$0xff]   ;;  %v10851_v33 = vld [vmem:[%s14537_s1 + $0x1a28] ss:$16 sps:$4 sm:$0xff]  }
 0x30c   :  { %7095 = vmatprep.subr.bf16.mxu0 %v10764_v34  ;;  %7911 = vmatprep.subr.bf16.mxu1 %v10767_v35  ;;  %v10856_v34 = vld [vmem:[%s14537_s1 + $0x1a44] ss:$16 sps:$4 sm:$0xff]   ;;  %v10859_v35 = vld [vmem:[%s14537_s1 + $0x1a4c] ss:$16 sps:$4 sm:$0xff]  }
 0x30d   :  { %7121 = vmatprep.mubr.bf16.mxu0 %v8265_v36  ;;  %7937 = vmatprep.mubr.bf16.mxu1 %v8265_v36  ;;  %v8296_v36 = vcombine.low %v57_v26, %v57_v26  ;;  %v10936_v26 = vld [vmem:[%s14537_s1 + $0x1be4] ss:$16 sps:$4 sm:$0xff]  }
 0x30f   :  { %7096 = vmatpush1.bf16.msra.mxu0 %v10762_v37  ;;  %7912 = vmatpush1.bf16.msra.mxu1 %v10765_v38  ;;  %v13901_v37 = vld [vmem:[%s14538_s0 + $0x68] sm:$0xff] }
 0x310   :  { %7097 = vmatprep.subr.bf16.mxu0 %v10770_v39  ;;  %7913 = vmatprep.subr.bf16.mxu1 %v10773_v40  ;;  %v13906_v38 = vld [vmem:[%s14538_s0 + $0xe8] sm:$0xff]  ;;  %v10854_v39 = vld [vmem:[%s14537_s1 + $0x1a40] ss:$16 sps:$4 sm:$0xff]  }
 0x311   :  { %v10857_v40 = vld [vmem:[%s14537_s1 + $0x1a48] ss:$16 sps:$4 sm:$0xff]  }
 0x313   :  { %7098 = vmatpush1.bf16.msra.mxu0 %v10768_v41  ;;  %7914 = vmatpush1.bf16.msra.mxu1 %v10771_v42  ;;  %v10862_v41 = vld [vmem:[%s14537_s1 + $0x1a64] ss:$16 sps:$4 sm:$0xff]   ;;  %v10865_v42 = vld [vmem:[%s14537_s1 + $0x1a6c] ss:$16 sps:$4 sm:$0xff]  }
 0x314   :  { %7099 = vmatprep.subr.bf16.mxu0 %v10776_v43  ;;  %7915 = vmatprep.subr.bf16.mxu1 %v10779_v46  ;;  %v8267_v43 = vcombine.high %v13901_v37, %v13906_v38  ;;  %v10860_v46 = vld [vmem:[%s14537_s1 + $0x1a60] ss:$16 sps:$4 sm:$0xff]  }
 0x317   :  { %7100 = vmatpush1.bf16.msra.mxu0 %v10774_v44  ;;  %7916 = vmatpush1.bf16.msra.mxu1 %v10777_v45  ;;  %v10863_v44 = vld [vmem:[%s14537_s1 + $0x1a68] ss:$16 sps:$4 sm:$0xff]   ;;  %v10868_v45 = vld [vmem:[%s14537_s1 + $0x1a84] ss:$16 sps:$4 sm:$0xff]  }
 0x318   :  { %7101 = vmatprep.subr.bf16.mxu0 %v10782_v47  ;;  %7917 = vmatprep.subr.bf16.mxu1 %v10785_v48  ;;  %v10871_v47 = vld [vmem:[%s14537_s1 + $0x1a8c] ss:$16 sps:$4 sm:$0xff]   ;;  %v10866_v48 = vld [vmem:[%s14537_s1 + $0x1a80] ss:$16 sps:$4 sm:$0xff]  }
 0x31b   :  { %7102 = vmatpush1.bf16.msra.mxu0 %v10780_v49  ;;  %7918 = vmatpush1.bf16.msra.mxu1 %v10783_v50  ;;  %v10869_v49 = vld [vmem:[%s14537_s1 + $0x1a88] ss:$16 sps:$4 sm:$0xff]   ;;  %v10874_v50 = vld [vmem:[%s14537_s1 + $0x1aa4] ss:$16 sps:$4 sm:$0xff]  }
 0x31c   :  { %7103 = vmatprep.subr.bf16.mxu0 %v10788_v53  ;;  %7919 = vmatprep.subr.bf16.mxu1 %v10791_v51  ;;  %v10877_v53 = vld [vmem:[%s14537_s1 + $0x1aac] ss:$16 sps:$4 sm:$0xff]   ;;  %v10872_v51 = vld [vmem:[%s14537_s1 + $0x1aa0] ss:$16 sps:$4 sm:$0xff]  }
 0x31f   :  { %7104 = vmatpush1.bf16.msra.mxu0 %v10786_v52  ;;  %7920 = vmatpush1.bf16.msra.mxu1 %v10789_v54  ;;  %v10875_v52 = vld [vmem:[%s14537_s1 + $0x1aa8] ss:$16 sps:$4 sm:$0xff]   ;;  %v10880_v54 = vld [vmem:[%s14537_s1 + $0x1ac4] ss:$16 sps:$4 sm:$0xff]  }
 0x320   :  { %7105 = vmatprep.subr.bf16.mxu0 %v10794_v55  ;;  %7921 = vmatprep.subr.bf16.mxu1 %v10797_v56  ;;  %v10883_v55 = vld [vmem:[%s14537_s1 + $0x1acc] ss:$16 sps:$4 sm:$0xff]   ;;  %v10878_v56 = vld [vmem:[%s14537_s1 + $0x1ac0] ss:$16 sps:$4 sm:$0xff]  }
 0x323   :  { %7106 = vmatpush1.bf16.msra.mxu0 %v10792_v57  ;;  %7922 = vmatpush1.bf16.msra.mxu1 %v10795_v60  ;;  %v10881_v57 = vld [vmem:[%s14537_s1 + $0x1ac8] ss:$16 sps:$4 sm:$0xff]   ;;  %v10886_v60 = vld [vmem:[%s14537_s1 + $0x1ae4] ss:$16 sps:$4 sm:$0xff]  }
 0x324   :  { %7107 = vmatprep.subr.bf16.mxu0 %v10800_v58  ;;  %7923 = vmatprep.subr.bf16.mxu1 %v10803_v59  ;;  %v10889_v58 = vld [vmem:[%s14537_s1 + $0x1aec] ss:$16 sps:$4 sm:$0xff]   ;;  %v10884_v59 = vld [vmem:[%s14537_s1 + $0x1ae0] ss:$16 sps:$4 sm:$0xff]  }
 0x327   :  { %7108 = vmatpush1.bf16.msra.mxu0 %v10798_v61  ;;  %7924 = vmatpush1.bf16.msra.mxu1 %v10801_v62  ;;  %v10887_v61 = vld [vmem:[%s14537_s1 + $0x1ae8] ss:$16 sps:$4 sm:$0xff]   ;;  %v10892_v62 = vld [vmem:[%s14537_s1 + $0x1b04] ss:$16 sps:$4 sm:$0xff]  }
 0x328   :  { %7109 = vmatprep.subr.bf16.mxu0 %v10806_v63  ;;  %7925 = vmatprep.subr.bf16.mxu1 %v10809_v0  ;;  %v10895_v63 = vld [vmem:[%s14537_s1 + $0x1b0c] ss:$16 sps:$4 sm:$0xff]   ;;  %v10890_v0 = vld [vmem:[%s14537_s1 + $0x1b00] ss:$16 sps:$4 sm:$0xff]  }
 0x32b   :  { %7110 = vmatpush1.bf16.msra.mxu0 %v10804_v3  ;;  %7926 = vmatpush1.bf16.msra.mxu1 %v10807_v1  ;;  %v10893_v3 = vld [vmem:[%s14537_s1 + $0x1b08] ss:$16 sps:$4 sm:$0xff]   ;;  %v10898_v1 = vld [vmem:[%s14537_s1 + $0x1b24] ss:$16 sps:$4 sm:$0xff]  }
 0x32c   :  { %7111 = vmatprep.subr.bf16.mxu0 %v10812_v2  ;;  %7927 = vmatprep.subr.bf16.mxu1 %v10815_v4  ;;  %v10901_v2 = vld [vmem:[%s14537_s1 + $0x1b2c] ss:$16 sps:$4 sm:$0xff]   ;;  %v10896_v4 = vld [vmem:[%s14537_s1 + $0x1b20] ss:$16 sps:$4 sm:$0xff]  }
 0x32f   :  { %7112 = vmatpush1.bf16.msra.mxu0 %v10810_v5  ;;  %7928 = vmatpush1.bf16.msra.mxu1 %v10813_v6  ;;  %v10899_v5 = vld [vmem:[%s14537_s1 + $0x1b28] ss:$16 sps:$4 sm:$0xff]   ;;  %v10904_v6 = vld [vmem:[%s14537_s1 + $0x1b44] ss:$16 sps:$4 sm:$0xff]  }
 0x330   :  { %7113 = vmatprep.subr.bf16.mxu0 %v10818_v7  ;;  %7929 = vmatprep.subr.bf16.mxu1 %v10821_v8  ;;  %v10907_v7 = vld [vmem:[%s14537_s1 + $0x1b4c] ss:$16 sps:$4 sm:$0xff]   ;;  %v10902_v8 = vld [vmem:[%s14537_s1 + $0x1b40] ss:$16 sps:$4 sm:$0xff]  }
 0x333   :  { %7114 = vmatpush1.bf16.msra.mxu0 %v10816_v9  ;;  %7930 = vmatpush1.bf16.msra.mxu1 %v10819_v10  ;;  %v10905_v9 = vld [vmem:[%s14537_s1 + $0x1b48] ss:$16 sps:$4 sm:$0xff]   ;;  %v10910_v10 = vld [vmem:[%s14537_s1 + $0x1b64] ss:$16 sps:$4 sm:$0xff]  }
 0x334   :  { %7115 = vmatprep.subr.bf16.mxu0 %v10824_v11  ;;  %7931 = vmatprep.subr.bf16.mxu1 %v10827_v12  ;;  %v10913_v11 = vld [vmem:[%s14537_s1 + $0x1b6c] ss:$16 sps:$4 sm:$0xff]   ;;  %v10908_v12 = vld [vmem:[%s14537_s1 + $0x1b60] ss:$16 sps:$4 sm:$0xff]  }
 0x337   :  { %7116 = vmatpush1.bf16.msra.mxu0 %v10822_v13  ;;  %7932 = vmatpush1.bf16.msra.mxu1 %v10825_v14  ;;  %v10911_v13 = vld [vmem:[%s14537_s1 + $0x1b68] ss:$16 sps:$4 sm:$0xff]   ;;  %v10916_v14 = vld [vmem:[%s14537_s1 + $0x1b84] ss:$16 sps:$4 sm:$0xff]  }
 0x338   :  { %7117 = vmatprep.subr.bf16.mxu0 %v10831_v15  ;;  %7933 = vmatprep.subr.bf16.mxu1 %v10834_v16  ;;  %v10919_v15 = vld [vmem:[%s14537_s1 + $0x1b8c] ss:$16 sps:$4 sm:$0xff]   ;;  %v10914_v16 = vld [vmem:[%s14537_s1 + $0x1b80] ss:$16 sps:$4 sm:$0xff]  }
 0x33b   :  { %7118 = vmatpush1.bf16.msra.mxu0 %v10829_v17  ;;  %7934 = vmatpush1.bf16.msra.mxu1 %v10832_v18  ;;  %v10917_v17 = vld [vmem:[%s14537_s1 + $0x1b88] ss:$16 sps:$4 sm:$0xff]   ;;  %v10922_v18 = vld [vmem:[%s14537_s1 + $0x1ba4] ss:$16 sps:$4 sm:$0xff]  }
 0x33c   :  { %7119 = vmatprep.subr.bf16.mxu0 %v10838_v19  ;;  %7935 = vmatprep.subr.bf16.mxu1 %v10841_v20  ;;  %v10925_v19 = vld [vmem:[%s14537_s1 + $0x1bac] ss:$16 sps:$4 sm:$0xff]   ;;  %v10920_v20 = vld [vmem:[%s14537_s1 + $0x1ba0] ss:$16 sps:$4 sm:$0xff]  }
 0x33f   :  { %7120 = vmatpush1.bf16.msra.mxu0 %v10836_v21  ;;  %7936 = vmatpush1.bf16.msra.mxu1 %v10839_v22  ;;  %v10923_v21 = vld [vmem:[%s14537_s1 + $0x1ba8] ss:$16 sps:$4 sm:$0xff]   ;;  %v10929_v22 = vld [vmem:[%s14537_s1 + $0x1bc4] ss:$16 sps:$4 sm:$0xff]  }
 0x340   :  { %7140 = vmatprep.subr.bf16.mxu0 %v10844_v23  ;;  %7956 = vmatprep.subr.bf16.mxu1 %v10847_v24  ;;  %v10932_v23 = vld [vmem:[%s14537_s1 + $0x1bcc] ss:$16 sps:$4 sm:$0xff]   ;;  %v10927_v24 = vld [vmem:[%s14537_s1 + $0x1bc0] ss:$16 sps:$4 sm:$0xff]  }
 0x342   :  { %7122 = vmatmul.mubr.bf16.vlgmr.msra.gmra.mrb[0].mxu0 %v8264_v25  ;;  %7938 = vmatmul.mubr.bf16.vlgmr.msra.gmra.mrb[0].mxu1 %v8264_v25  ;;  %v10930_v25 = vld [vmem:[%s14537_s1 + $0x1bc8] ss:$16 sps:$4 sm:$0xff]  }
 0x343   :  { %7141 = vmatpush1.bf16.msra.mxu0 %v10842_v27  ;;  %7957 = vmatpush1.bf16.msra.mxu1 %v10845_v28  ;;  %v10939_v27 = vld [vmem:[%s14537_s1 + $0x1bec] ss:$16 sps:$4 sm:$0xff]   ;;  %v10934_v28 = vld [vmem:[%s14537_s1 + $0x1be0] ss:$16 sps:$4 sm:$0xff]  }
 0x344   :  { %7142 = vmatprep.subr.bf16.mxu0 %v10850_v29  ;;  %7958 = vmatprep.subr.bf16.mxu1 %v10853_v30  ;;  %v10937_v29 = vld [vmem:[%s14537_s1 + $0x1be8] ss:$16 sps:$4 sm:$0xff]   ;;  %v10942_v30 = vld [vmem:[%s14537_s1 + $0x1c04] ss:$16 sps:$4 sm:$0xff]  }
 0x345   :  { %7131 = vmatprep.mubr.bf16.mxu0 %v8297_v31  ;;  %7947 = vmatprep.mubr.bf16.mxu1 %v8297_v31  ;;  %v10945_v31 = vld [vmem:[%s14537_s1 + $0x1c0c] ss:$16 sps:$4 sm:$0xff]  }
 0x347   :  { %7143 = vmatpush1.bf16.msra.mxu0 %v10848_v32  ;;  %7959 = vmatpush1.bf16.msra.mxu1 %v10851_v33  ;;  %v8266_v32 = vcombine.low %v13901_v37, %v13906_v38  ;;  %v58_v33 = vld [vmem:[%s14538_s0 + $0x168] sm:$0xff] }
 0x348   :  { %7144 = vmatprep.subr.bf16.mxu0 %v10856_v34  ;;  %7960 = vmatprep.subr.bf16.mxu1 %v10859_v35  ;;  %v10940_v34 = vld [vmem:[%s14537_s1 + $0x1c00] ss:$16 sps:$4 sm:$0xff]   ;;  %v10943_v35 = vld [vmem:[%s14537_s1 + $0x1c08] ss:$16 sps:$4 sm:$0xff]   ;;  %v10951_v37 = vld [vmem:[%s14537_s1 + $0x1c2c] ss:$16 sps:$4 sm:$0xff]   ;;  %v8299_v38 = vcombine.high %v58_v33, %v58_v33 }
 0x34a   :  { %7132 = vmatmul.mubr.bf16.gmra.mrb[4].mxu0 %v8296_v36  ;;  %7948 = vmatmul.mubr.bf16.gmra.mrb[4].mxu1 %v8296_v36  ;;  %v10948_v36 = vld [vmem:[%s14537_s1 + $0x1c24] ss:$16 sps:$4 sm:$0xff]  }
 0x34b   :  { %7145 = vmatpush1.bf16.msra.mxu0 %v10854_v39  ;;  %7961 = vmatpush1.bf16.msra.mxu1 %v10857_v40  ;;  %v10946_v39 = vld [vmem:[%s14537_s1 + $0x1c20] ss:$16 sps:$4 sm:$0xff]   ;;  %v10949_v40 = vld [vmem:[%s14537_s1 + $0x1c28] ss:$16 sps:$4 sm:$0xff]  }
 0x34c   :  { %7146 = vmatprep.subr.bf16.mxu0 %v10862_v41  ;;  %7962 = vmatprep.subr.bf16.mxu1 %v10865_v42  ;;  %v10954_v41 = vld [vmem:[%s14537_s1 + $0x1c44] ss:$16 sps:$4 sm:$0xff]   ;;  %v10957_v42 = vld [vmem:[%s14537_s1 + $0x1c4c] ss:$16 sps:$4 sm:$0xff]  }
 0x34d   :  { %7172 = vmatprep.mubr.bf16.mxu0 %v8267_v43  ;;  %7988 = vmatprep.mubr.bf16.mxu1 %v8267_v43  ;;  %v8298_v43 = vcombine.low %v58_v33, %v58_v33  ;;  %v11034_v33 = vld [vmem:[%s14537_s1 + $0x1de4] ss:$16 sps:$4 sm:$0xff]  }
 0x34f   :  { %7147 = vmatpush1.bf16.msra.mxu0 %v10860_v46  ;;  %7963 = vmatpush1.bf16.msra.mxu1 %v10863_v44  ;;  %v14110_v46 = vld [vmem:[%s14538_s0 + $0x70] sm:$0xff] }
 0x350   :  { %7148 = vmatprep.subr.bf16.mxu0 %v10868_v45  ;;  %7964 = vmatprep.subr.bf16.mxu1 %v10871_v47  ;;  %v14115_v44 = vld [vmem:[%s14538_s0 + $0xf0] sm:$0xff]  ;;  %v10955_v47 = vld [vmem:[%s14537_s1 + $0x1c48] ss:$16 sps:$4 sm:$0xff]  }
 0x351   :  { %v10952_v45 = vld [vmem:[%s14537_s1 + $0x1c40] ss:$16 sps:$4 sm:$0xff]  }
 0x353   :  { %7149 = vmatpush1.bf16.msra.mxu0 %v10866_v48  ;;  %7965 = vmatpush1.bf16.msra.mxu1 %v10869_v49  ;;  %v10960_v48 = vld [vmem:[%s14537_s1 + $0x1c64] ss:$16 sps:$4 sm:$0xff]   ;;  %v10963_v49 = vld [vmem:[%s14537_s1 + $0x1c6c] ss:$16 sps:$4 sm:$0xff]  }
 0x354   :  { %7150 = vmatprep.subr.bf16.mxu0 %v10874_v50  ;;  %7966 = vmatprep.subr.bf16.mxu1 %v10877_v53  ;;  %v8269_v50 = vcombine.high %v14110_v46, %v14115_v44  ;;  %v10958_v53 = vld [vmem:[%s14537_s1 + $0x1c60] ss:$16 sps:$4 sm:$0xff]  }
 0x357   :  { %7151 = vmatpush1.bf16.msra.mxu0 %v10872_v51  ;;  %7967 = vmatpush1.bf16.msra.mxu1 %v10875_v52  ;;  %v10961_v51 = vld [vmem:[%s14537_s1 + $0x1c68] ss:$16 sps:$4 sm:$0xff]   ;;  %v10966_v52 = vld [vmem:[%s14537_s1 + $0x1c84] ss:$16 sps:$4 sm:$0xff]  }
 0x358   :  { %7152 = vmatprep.subr.bf16.mxu0 %v10880_v54  ;;  %7968 = vmatprep.subr.bf16.mxu1 %v10883_v55  ;;  %v10969_v54 = vld [vmem:[%s14537_s1 + $0x1c8c] ss:$16 sps:$4 sm:$0xff]   ;;  %v10964_v55 = vld [vmem:[%s14537_s1 + $0x1c80] ss:$16 sps:$4 sm:$0xff]  }
 0x35b   :  { %7153 = vmatpush1.bf16.msra.mxu0 %v10878_v56  ;;  %7969 = vmatpush1.bf16.msra.mxu1 %v10881_v57  ;;  %v10967_v56 = vld [vmem:[%s14537_s1 + $0x1c88] ss:$16 sps:$4 sm:$0xff]   ;;  %v10972_v57 = vld [vmem:[%s14537_s1 + $0x1ca4] ss:$16 sps:$4 sm:$0xff]  }
 0x35c   :  { %7154 = vmatprep.subr.bf16.mxu0 %v10886_v60  ;;  %7970 = vmatprep.subr.bf16.mxu1 %v10889_v58  ;;  %v10975_v60 = vld [vmem:[%s14537_s1 + $0x1cac] ss:$16 sps:$4 sm:$0xff]   ;;  %v10970_v58 = vld [vmem:[%s14537_s1 + $0x1ca0] ss:$16 sps:$4 sm:$0xff]  }
 0x35f   :  { %7155 = vmatpush1.bf16.msra.mxu0 %v10884_v59  ;;  %7971 = vmatpush1.bf16.msra.mxu1 %v10887_v61  ;;  %v10973_v59 = vld [vmem:[%s14537_s1 + $0x1ca8] ss:$16 sps:$4 sm:$0xff]   ;;  %v10978_v61 = vld [vmem:[%s14537_s1 + $0x1cc4] ss:$16 sps:$4 sm:$0xff]  }
 0x360   :  { %7156 = vmatprep.subr.bf16.mxu0 %v10892_v62  ;;  %7972 = vmatprep.subr.bf16.mxu1 %v10895_v63  ;;  %v10981_v62 = vld [vmem:[%s14537_s1 + $0x1ccc] ss:$16 sps:$4 sm:$0xff]   ;;  %v10976_v63 = vld [vmem:[%s14537_s1 + $0x1cc0] ss:$16 sps:$4 sm:$0xff]  }
 0x363   :  { %7157 = vmatpush1.bf16.msra.mxu0 %v10890_v0  ;;  %7973 = vmatpush1.bf16.msra.mxu1 %v10893_v3  ;;  %v10979_v0 = vld [vmem:[%s14537_s1 + $0x1cc8] ss:$16 sps:$4 sm:$0xff]   ;;  %v10984_v3 = vld [vmem:[%s14537_s1 + $0x1ce4] ss:$16 sps:$4 sm:$0xff]  }
 0x364   :  { %7158 = vmatprep.subr.bf16.mxu0 %v10898_v1  ;;  %7974 = vmatprep.subr.bf16.mxu1 %v10901_v2  ;;  %v10987_v1 = vld [vmem:[%s14537_s1 + $0x1cec] ss:$16 sps:$4 sm:$0xff]   ;;  %v10982_v2 = vld [vmem:[%s14537_s1 + $0x1ce0] ss:$16 sps:$4 sm:$0xff]  }
 0x367   :  { %7159 = vmatpush1.bf16.msra.mxu0 %v10896_v4  ;;  %7975 = vmatpush1.bf16.msra.mxu1 %v10899_v5  ;;  %v10985_v4 = vld [vmem:[%s14537_s1 + $0x1ce8] ss:$16 sps:$4 sm:$0xff]   ;;  %v10990_v5 = vld [vmem:[%s14537_s1 + $0x1d04] ss:$16 sps:$4 sm:$0xff]  }
 0x368   :  { %7160 = vmatprep.subr.bf16.mxu0 %v10904_v6  ;;  %7976 = vmatprep.subr.bf16.mxu1 %v10907_v7  ;;  %v10993_v6 = vld [vmem:[%s14537_s1 + $0x1d0c] ss:$16 sps:$4 sm:$0xff]   ;;  %v10988_v7 = vld [vmem:[%s14537_s1 + $0x1d00] ss:$16 sps:$4 sm:$0xff]  }
 0x36b   :  { %7161 = vmatpush1.bf16.msra.mxu0 %v10902_v8  ;;  %7977 = vmatpush1.bf16.msra.mxu1 %v10905_v9  ;;  %v10991_v8 = vld [vmem:[%s14537_s1 + $0x1d08] ss:$16 sps:$4 sm:$0xff]   ;;  %v10996_v9 = vld [vmem:[%s14537_s1 + $0x1d24] ss:$16 sps:$4 sm:$0xff]  }
 0x36c   :  { %7162 = vmatprep.subr.bf16.mxu0 %v10910_v10  ;;  %7978 = vmatprep.subr.bf16.mxu1 %v10913_v11  ;;  %v10999_v10 = vld [vmem:[%s14537_s1 + $0x1d2c] ss:$16 sps:$4 sm:$0xff]   ;;  %v10994_v11 = vld [vmem:[%s14537_s1 + $0x1d20] ss:$16 sps:$4 sm:$0xff]  }
 0x36f   :  { %7163 = vmatpush1.bf16.msra.mxu0 %v10908_v12  ;;  %7979 = vmatpush1.bf16.msra.mxu1 %v10911_v13  ;;  %v10997_v12 = vld [vmem:[%s14537_s1 + $0x1d28] ss:$16 sps:$4 sm:$0xff]   ;;  %v11002_v13 = vld [vmem:[%s14537_s1 + $0x1d44] ss:$16 sps:$4 sm:$0xff]  }
 0x370   :  { %7164 = vmatprep.subr.bf16.mxu0 %v10916_v14  ;;  %7980 = vmatprep.subr.bf16.mxu1 %v10919_v15  ;;  %v11005_v14 = vld [vmem:[%s14537_s1 + $0x1d4c] ss:$16 sps:$4 sm:$0xff]   ;;  %v11000_v15 = vld [vmem:[%s14537_s1 + $0x1d40] ss:$16 sps:$4 sm:$0xff]  }
 0x373   :  { %7165 = vmatpush1.bf16.msra.mxu0 %v10914_v16  ;;  %7981 = vmatpush1.bf16.msra.mxu1 %v10917_v17  ;;  %v11003_v16 = vld [vmem:[%s14537_s1 + $0x1d48] ss:$16 sps:$4 sm:$0xff]   ;;  %v11008_v17 = vld [vmem:[%s14537_s1 + $0x1d64] ss:$16 sps:$4 sm:$0xff]  }
 0x374   :  { %7166 = vmatprep.subr.bf16.mxu0 %v10922_v18  ;;  %7982 = vmatprep.subr.bf16.mxu1 %v10925_v19  ;;  %v11011_v18 = vld [vmem:[%s14537_s1 + $0x1d6c] ss:$16 sps:$4 sm:$0xff]   ;;  %v11006_v19 = vld [vmem:[%s14537_s1 + $0x1d60] ss:$16 sps:$4 sm:$0xff]  }
 0x377   :  { %7167 = vmatpush1.bf16.msra.mxu0 %v10920_v20  ;;  %7983 = vmatpush1.bf16.msra.mxu1 %v10923_v21  ;;  %v11009_v20 = vld [vmem:[%s14537_s1 + $0x1d68] ss:$16 sps:$4 sm:$0xff]   ;;  %v11014_v21 = vld [vmem:[%s14537_s1 + $0x1d84] ss:$16 sps:$4 sm:$0xff]  }
 0x378   :  { %7168 = vmatprep.subr.bf16.mxu0 %v10929_v22  ;;  %7984 = vmatprep.subr.bf16.mxu1 %v10932_v23  ;;  %v11017_v22 = vld [vmem:[%s14537_s1 + $0x1d8c] ss:$16 sps:$4 sm:$0xff]   ;;  %v11012_v23 = vld [vmem:[%s14537_s1 + $0x1d80] ss:$16 sps:$4 sm:$0xff]  }
 0x37b   :  { %7169 = vmatpush1.bf16.msra.mxu0 %v10927_v24  ;;  %7985 = vmatpush1.bf16.msra.mxu1 %v10930_v25  ;;  %v11015_v24 = vld [vmem:[%s14537_s1 + $0x1d88] ss:$16 sps:$4 sm:$0xff]   ;;  %v11020_v25 = vld [vmem:[%s14537_s1 + $0x1da4] ss:$16 sps:$4 sm:$0xff]  }
 0x37c   :  { %7170 = vmatprep.subr.bf16.mxu0 %v10936_v26  ;;  %7986 = vmatprep.subr.bf16.mxu1 %v10939_v27  ;;  %v11023_v26 = vld [vmem:[%s14537_s1 + $0x1dac] ss:$16 sps:$4 sm:$0xff]   ;;  %v11018_v27 = vld [vmem:[%s14537_s1 + $0x1da0] ss:$16 sps:$4 sm:$0xff]  }
 0x37f   :  { %7171 = vmatpush1.bf16.msra.mxu0 %v10934_v28  ;;  %7987 = vmatpush1.bf16.msra.mxu1 %v10937_v29  ;;  %v11021_v28 = vld [vmem:[%s14537_s1 + $0x1da8] ss:$16 sps:$4 sm:$0xff]   ;;  %v11027_v29 = vld [vmem:[%s14537_s1 + $0x1dc4] ss:$16 sps:$4 sm:$0xff]  }
 0x380   :  { %7191 = vmatprep.subr.bf16.mxu0 %v10942_v30  ;;  %8007 = vmatprep.subr.bf16.mxu1 %v10945_v31  ;;  %v11030_v30 = vld [vmem:[%s14537_s1 + $0x1dcc] ss:$16 sps:$4 sm:$0xff]   ;;  %v11025_v31 = vld [vmem:[%s14537_s1 + $0x1dc0] ss:$16 sps:$4 sm:$0xff]  }
 0x382   :  { %7173 = vmatmul.mubr.bf16.vlgmr.msra.gmra.mrb[0].mxu0 %v8266_v32  ;;  %7989 = vmatmul.mubr.bf16.vlgmr.msra.gmra.mrb[0].mxu1 %v8266_v32  ;;  %v11028_v32 = vld [vmem:[%s14537_s1 + $0x1dc8] ss:$16 sps:$4 sm:$0xff]  }
 0x383   :  { %7192 = vmatpush1.bf16.msra.mxu0 %v10940_v34  ;;  %8008 = vmatpush1.bf16.msra.mxu1 %v10943_v35  ;;  %v11037_v34 = vld [vmem:[%s14537_s1 + $0x1dec] ss:$16 sps:$4 sm:$0xff]   ;;  %v11032_v35 = vld [vmem:[%s14537_s1 + $0x1de0] ss:$16 sps:$4 sm:$0xff]  }
 0x384   :  { %7193 = vmatprep.subr.bf16.mxu0 %v10948_v36  ;;  %8009 = vmatprep.subr.bf16.mxu1 %v10951_v37  ;;  %v11035_v36 = vld [vmem:[%s14537_s1 + $0x1de8] ss:$16 sps:$4 sm:$0xff]   ;;  %v11040_v37 = vld [vmem:[%s14537_s1 + $0x1e04] ss:$16 sps:$4 sm:$0xff]  }
 0x385   :  { %7182 = vmatprep.mubr.bf16.mxu0 %v8299_v38  ;;  %7998 = vmatprep.mubr.bf16.mxu1 %v8299_v38  ;;  %v11043_v38 = vld [vmem:[%s14537_s1 + $0x1e0c] ss:$16 sps:$4 sm:$0xff]  }
 0x387   :  { %7194 = vmatpush1.bf16.msra.mxu0 %v10946_v39  ;;  %8010 = vmatpush1.bf16.msra.mxu1 %v10949_v40  ;;  %v8268_v39 = vcombine.low %v14110_v46, %v14115_v44  ;;  %v59_v40 = vld [vmem:[%s14538_s0 + $0x170] sm:$0xff]  ;;  %v11049_v46 = vld [vmem:[%s14537_s1 + $0x1e2c] ss:$16 sps:$4 sm:$0xff]  }
 0x388   :  { %7195 = vmatprep.subr.bf16.mxu0 %v10954_v41  ;;  %8011 = vmatprep.subr.bf16.mxu1 %v10957_v42  ;;  %v11038_v41 = vld [vmem:[%s14537_s1 + $0x1e00] ss:$16 sps:$4 sm:$0xff]   ;;  %v11041_v42 = vld [vmem:[%s14537_s1 + $0x1e08] ss:$16 sps:$4 sm:$0xff]   ;;  %v8301_v44 = vcombine.high %v59_v40, %v59_v40 }
 0x38a   :  { %7183 = vmatmul.mubr.bf16.gmra.mrb[4].mxu0 %v8298_v43  ;;  %7999 = vmatmul.mubr.bf16.gmra.mrb[4].mxu1 %v8298_v43  ;;  %v11046_v43 = vld [vmem:[%s14537_s1 + $0x1e24] ss:$16 sps:$4 sm:$0xff]  }
 0x38b   :  { %7196 = vmatpush1.bf16.msra.mxu0 %v10952_v45  ;;  %8012 = vmatpush1.bf16.msra.mxu1 %v10955_v47  ;;  %v11044_v45 = vld [vmem:[%s14537_s1 + $0x1e20] ss:$16 sps:$4 sm:$0xff]   ;;  %v11047_v47 = vld [vmem:[%s14537_s1 + $0x1e28] ss:$16 sps:$4 sm:$0xff]  }
 0x38c   :  { %7197 = vmatprep.subr.bf16.mxu0 %v10960_v48  ;;  %8013 = vmatprep.subr.bf16.mxu1 %v10963_v49  ;;  %v11052_v48 = vld [vmem:[%s14537_s1 + $0x1e44] ss:$16 sps:$4 sm:$0xff]   ;;  %v11055_v49 = vld [vmem:[%s14537_s1 + $0x1e4c] ss:$16 sps:$4 sm:$0xff]  }
 0x38d   :  { %7223 = vmatprep.mubr.bf16.mxu0 %v8269_v50  ;;  %8039 = vmatprep.mubr.bf16.mxu1 %v8269_v50  ;;  %v8300_v50 = vcombine.low %v59_v40, %v59_v40  ;;  %v11132_v40 = vld [vmem:[%s14537_s1 + $0x1fe4] ss:$16 sps:$4 sm:$0xff]  }
 0x38f   :  { %7198 = vmatpush1.bf16.msra.mxu0 %v10958_v53  ;;  %8014 = vmatpush1.bf16.msra.mxu1 %v10961_v51  ;;  %v14319_v53 = vld [vmem:[%s14538_s0 + $0x78] sm:$0xff] }
 0x390   :  { %7199 = vmatprep.subr.bf16.mxu0 %v10966_v52  ;;  %8015 = vmatprep.subr.bf16.mxu1 %v10969_v54  ;;  %v14324_v51 = vld [vmem:[%s14538_s0 + $0xf8] sm:$0xff]  ;;  %v11050_v52 = vld [vmem:[%s14537_s1 + $0x1e40] ss:$16 sps:$4 sm:$0xff]  }
 0x391   :  { %v11053_v54 = vld [vmem:[%s14537_s1 + $0x1e48] ss:$16 sps:$4 sm:$0xff]  }
 0x393   :  { %7200 = vmatpush1.bf16.msra.mxu0 %v10964_v55  ;;  %8016 = vmatpush1.bf16.msra.mxu1 %v10967_v56  ;;  %v11058_v55 = vld [vmem:[%s14537_s1 + $0x1e64] ss:$16 sps:$4 sm:$0xff]   ;;  %v11061_v56 = vld [vmem:[%s14537_s1 + $0x1e6c] ss:$16 sps:$4 sm:$0xff]  }
 0x394   :  { %7201 = vmatprep.subr.bf16.mxu0 %v10972_v57  ;;  %8017 = vmatprep.subr.bf16.mxu1 %v10975_v60  ;;  %v8271_v57 = vcombine.high %v14319_v53, %v14324_v51  ;;  %v11056_v60 = vld [vmem:[%s14537_s1 + $0x1e60] ss:$16 sps:$4 sm:$0xff]  }
 0x397   :  { %7202 = vmatpush1.bf16.msra.mxu0 %v10970_v58  ;;  %8018 = vmatpush1.bf16.msra.mxu1 %v10973_v59  ;;  %v11059_v58 = vld [vmem:[%s14537_s1 + $0x1e68] ss:$16 sps:$4 sm:$0xff]   ;;  %v11064_v59 = vld [vmem:[%s14537_s1 + $0x1e84] ss:$16 sps:$4 sm:$0xff]  }
 0x398   :  { %7203 = vmatprep.subr.bf16.mxu0 %v10978_v61  ;;  %8019 = vmatprep.subr.bf16.mxu1 %v10981_v62  ;;  %v11067_v61 = vld [vmem:[%s14537_s1 + $0x1e8c] ss:$16 sps:$4 sm:$0xff]   ;;  %v11062_v62 = vld [vmem:[%s14537_s1 + $0x1e80] ss:$16 sps:$4 sm:$0xff]  }
 0x39b   :  { %7204 = vmatpush1.bf16.msra.mxu0 %v10976_v63  ;;  %8020 = vmatpush1.bf16.msra.mxu1 %v10979_v0  ;;  %v11065_v63 = vld [vmem:[%s14537_s1 + $0x1e88] ss:$16 sps:$4 sm:$0xff]   ;;  %v11070_v0 = vld [vmem:[%s14537_s1 + $0x1ea4] ss:$16 sps:$4 sm:$0xff]  }
 0x39c   :  { %7205 = vmatprep.subr.bf16.mxu0 %v10984_v3  ;;  %8021 = vmatprep.subr.bf16.mxu1 %v10987_v1  ;;  %v11073_v3 = vld [vmem:[%s14537_s1 + $0x1eac] ss:$16 sps:$4 sm:$0xff]   ;;  %v11068_v1 = vld [vmem:[%s14537_s1 + $0x1ea0] ss:$16 sps:$4 sm:$0xff]  }
 0x39f   :  { %7206 = vmatpush1.bf16.msra.mxu0 %v10982_v2  ;;  %8022 = vmatpush1.bf16.msra.mxu1 %v10985_v4  ;;  %v11071_v2 = vld [vmem:[%s14537_s1 + $0x1ea8] ss:$16 sps:$4 sm:$0xff]   ;;  %v11076_v4 = vld [vmem:[%s14537_s1 + $0x1ec4] ss:$16 sps:$4 sm:$0xff]  }
 0x3a0   :  { %7207 = vmatprep.subr.bf16.mxu0 %v10990_v5  ;;  %8023 = vmatprep.subr.bf16.mxu1 %v10993_v6  ;;  %v11079_v5 = vld [vmem:[%s14537_s1 + $0x1ecc] ss:$16 sps:$4 sm:$0xff]   ;;  %v11074_v6 = vld [vmem:[%s14537_s1 + $0x1ec0] ss:$16 sps:$4 sm:$0xff]  }
 0x3a3   :  { %7208 = vmatpush1.bf16.msra.mxu0 %v10988_v7  ;;  %8024 = vmatpush1.bf16.msra.mxu1 %v10991_v8  ;;  %v11077_v7 = vld [vmem:[%s14537_s1 + $0x1ec8] ss:$16 sps:$4 sm:$0xff]   ;;  %v11082_v8 = vld [vmem:[%s14537_s1 + $0x1ee4] ss:$16 sps:$4 sm:$0xff]  }
 0x3a4   :  { %7209 = vmatprep.subr.bf16.mxu0 %v10996_v9  ;;  %8025 = vmatprep.subr.bf16.mxu1 %v10999_v10  ;;  %v11085_v9 = vld [vmem:[%s14537_s1 + $0x1eec] ss:$16 sps:$4 sm:$0xff]   ;;  %v11080_v10 = vld [vmem:[%s14537_s1 + $0x1ee0] ss:$16 sps:$4 sm:$0xff]  }
 0x3a7   :  { %7210 = vmatpush1.bf16.msra.mxu0 %v10994_v11  ;;  %8026 = vmatpush1.bf16.msra.mxu1 %v10997_v12  ;;  %v11083_v11 = vld [vmem:[%s14537_s1 + $0x1ee8] ss:$16 sps:$4 sm:$0xff]   ;;  %v11088_v12 = vld [vmem:[%s14537_s1 + $0x1f04] ss:$16 sps:$4 sm:$0xff]  }
 0x3a8   :  { %7211 = vmatprep.subr.bf16.mxu0 %v11002_v13  ;;  %8027 = vmatprep.subr.bf16.mxu1 %v11005_v14  ;;  %v11091_v13 = vld [vmem:[%s14537_s1 + $0x1f0c] ss:$16 sps:$4 sm:$0xff]   ;;  %v11086_v14 = vld [vmem:[%s14537_s1 + $0x1f00] ss:$16 sps:$4 sm:$0xff]  }
 0x3ab   :  { %7212 = vmatpush1.bf16.msra.mxu0 %v11000_v15  ;;  %8028 = vmatpush1.bf16.msra.mxu1 %v11003_v16  ;;  %v11089_v15 = vld [vmem:[%s14537_s1 + $0x1f08] ss:$16 sps:$4 sm:$0xff]   ;;  %v11094_v16 = vld [vmem:[%s14537_s1 + $0x1f24] ss:$16 sps:$4 sm:$0xff]  }
 0x3ac   :  { %7213 = vmatprep.subr.bf16.mxu0 %v11008_v17  ;;  %8029 = vmatprep.subr.bf16.mxu1 %v11011_v18  ;;  %v11097_v17 = vld [vmem:[%s14537_s1 + $0x1f2c] ss:$16 sps:$4 sm:$0xff]   ;;  %v11092_v18 = vld [vmem:[%s14537_s1 + $0x1f20] ss:$16 sps:$4 sm:$0xff]  }
 0x3af   :  { %7214 = vmatpush1.bf16.msra.mxu0 %v11006_v19  ;;  %8030 = vmatpush1.bf16.msra.mxu1 %v11009_v20  ;;  %v11095_v19 = vld [vmem:[%s14537_s1 + $0x1f28] ss:$16 sps:$4 sm:$0xff]   ;;  %v11100_v20 = vld [vmem:[%s14537_s1 + $0x1f44] ss:$16 sps:$4 sm:$0xff]  }
 0x3b0   :  { %7215 = vmatprep.subr.bf16.mxu0 %v11014_v21  ;;  %8031 = vmatprep.subr.bf16.mxu1 %v11017_v22  ;;  %v11103_v21 = vld [vmem:[%s14537_s1 + $0x1f4c] ss:$16 sps:$4 sm:$0xff]   ;;  %v11098_v22 = vld [vmem:[%s14537_s1 + $0x1f40] ss:$16 sps:$4 sm:$0xff]  }
 0x3b3   :  { %7216 = vmatpush1.bf16.msra.mxu0 %v11012_v23  ;;  %8032 = vmatpush1.bf16.msra.mxu1 %v11015_v24  ;;  %v11101_v23 = vld [vmem:[%s14537_s1 + $0x1f48] ss:$16 sps:$4 sm:$0xff]   ;;  %v11106_v24 = vld [vmem:[%s14537_s1 + $0x1f64] ss:$16 sps:$4 sm:$0xff]  }
 0x3b4   :  { %7217 = vmatprep.subr.bf16.mxu0 %v11020_v25  ;;  %8033 = vmatprep.subr.bf16.mxu1 %v11023_v26  ;;  %v11109_v25 = vld [vmem:[%s14537_s1 + $0x1f6c] ss:$16 sps:$4 sm:$0xff]   ;;  %v11104_v26 = vld [vmem:[%s14537_s1 + $0x1f60] ss:$16 sps:$4 sm:$0xff]  }
 0x3b7   :  { %7218 = vmatpush1.bf16.msra.mxu0 %v11018_v27  ;;  %8034 = vmatpush1.bf16.msra.mxu1 %v11021_v28  ;;  %v11107_v27 = vld [vmem:[%s14537_s1 + $0x1f68] ss:$16 sps:$4 sm:$0xff]   ;;  %v11112_v28 = vld [vmem:[%s14537_s1 + $0x1f84] ss:$16 sps:$4 sm:$0xff]  }
 0x3b8   :  { %7219 = vmatprep.subr.bf16.mxu0 %v11027_v29  ;;  %8035 = vmatprep.subr.bf16.mxu1 %v11030_v30  ;;  %v11115_v29 = vld [vmem:[%s14537_s1 + $0x1f8c] ss:$16 sps:$4 sm:$0xff]   ;;  %v11110_v30 = vld [vmem:[%s14537_s1 + $0x1f80] ss:$16 sps:$4 sm:$0xff]  }
 0x3bb   :  { %7220 = vmatpush1.bf16.msra.mxu0 %v11025_v31  ;;  %8036 = vmatpush1.bf16.msra.mxu1 %v11028_v32  ;;  %v11113_v31 = vld [vmem:[%s14537_s1 + $0x1f88] ss:$16 sps:$4 sm:$0xff]   ;;  %v11118_v32 = vld [vmem:[%s14537_s1 + $0x1fa4] ss:$16 sps:$4 sm:$0xff]  }
 0x3bc   :  { %7221 = vmatprep.subr.bf16.mxu0 %v11034_v33  ;;  %8037 = vmatprep.subr.bf16.mxu1 %v11037_v34  ;;  %v11121_v33 = vld [vmem:[%s14537_s1 + $0x1fac] ss:$16 sps:$4 sm:$0xff]   ;;  %v11116_v34 = vld [vmem:[%s14537_s1 + $0x1fa0] ss:$16 sps:$4 sm:$0xff]  }
 0x3bf   :  { %7222 = vmatpush1.bf16.msra.mxu0 %v11032_v35  ;;  %8038 = vmatpush1.bf16.msra.mxu1 %v11035_v36  ;;  %v11119_v35 = vld [vmem:[%s14537_s1 + $0x1fa8] ss:$16 sps:$4 sm:$0xff]   ;;  %v11126_v36 = vld [vmem:[%s14537_s1 + $0x1fc4] ss:$16 sps:$4 sm:$0xff]  }
 0x3c0   :  { %7242 = vmatprep.subr.bf16.mxu0 %v11040_v37  ;;  %8058 = vmatprep.subr.bf16.mxu1 %v11043_v38  ;;  %v11129_v37 = vld [vmem:[%s14537_s1 + $0x1fcc] ss:$16 sps:$4 sm:$0xff]   ;;  %v11124_v38 = vld [vmem:[%s14537_s1 + $0x1fc0] ss:$16 sps:$4 sm:$0xff]  }
 0x3c2   :  { %7224 = vmatmul.mubr.bf16.vlgmr.msra.gmra.mrb[0].mxu0 %v8268_v39  ;;  %8040 = vmatmul.mubr.bf16.vlgmr.msra.gmra.mrb[0].mxu1 %v8268_v39  ;;  %v11127_v39 = vld [vmem:[%s14537_s1 + $0x1fc8] ss:$16 sps:$4 sm:$0xff]  }
 0x3c3   :  { %7243 = vmatpush1.bf16.msra.mxu0 %v11038_v41  ;;  %8059 = vmatpush1.bf16.msra.mxu1 %v11041_v42  ;;  %v11135_v41 = vld [vmem:[%s14537_s1 + $0x1fec] ss:$16 sps:$4 sm:$0xff]   ;;  %v11130_v42 = vld [vmem:[%s14537_s1 + $0x1fe0] ss:$16 sps:$4 sm:$0xff]  }
 0x3c4   :  { %7244 = vmatprep.subr.bf16.mxu0 %v11046_v43  ;;  %8060 = vmatprep.subr.bf16.mxu1 %v11049_v46  ;;  %v11133_v43 = vld [vmem:[%s14537_s1 + $0x1fe8] ss:$16 sps:$4 sm:$0xff]  }
 0x3c5   :  { %7233 = vmatprep.mubr.bf16.mxu0 %v8301_v44  ;;  %8049 = vmatprep.mubr.bf16.mxu1 %v8301_v44  ;;  %v60_v46 = vld [vmem:[%s14538_s0 + $0x178] sm:$0xff]  ;;  %v8270_v44 = vcombine.low %v14319_v53, %v14324_v51 }
 0x3c7   :  { %7245 = vmatpush1.bf16.msra.mxu0 %v11044_v45  ;;  %8061 = vmatpush1.bf16.msra.mxu1 %v11047_v47  ;;  %v8303_v45 = vcombine.high %v60_v46, %v60_v46  ;;  %v8302_v47 = vcombine.low %v60_v46, %v60_v46 }
 0x3c8   :  { %7246 = vmatprep.subr.bf16.mxu0 %v11052_v48  ;;  %8062 = vmatprep.subr.bf16.mxu1 %v11055_v49 }
 0x3ca   :  { %7234 = vmatmul.mubr.bf16.gmra.mrb[4].mxu0 %v8300_v50  ;;  %8050 = vmatmul.mubr.bf16.gmra.mrb[4].mxu1 %v8300_v50 }
 0x3cb   :  { %7247 = vmatpush1.bf16.msra.mxu0 %v11050_v52  ;;  %8063 = vmatpush1.bf16.msra.mxu1 %v11053_v54 }
 0x3cc   :  { %7248 = vmatprep.subr.bf16.mxu0 %v11058_v55  ;;  %8064 = vmatprep.subr.bf16.mxu1 %v11061_v56 }
 0x3cd   :  { %7274 = vmatprep.mubr.bf16.mxu0 %v8271_v57  ;;  %8090 = vmatprep.mubr.bf16.mxu1 %v8271_v57 }
 0x3cf   :  { %7249 = vmatpush1.bf16.msra.mxu0 %v11056_v60  ;;  %8065 = vmatpush1.bf16.msra.mxu1 %v11059_v58 }
 0x3d0   :  { %7250 = vmatprep.subr.bf16.mxu0 %v11064_v59  ;;  %8066 = vmatprep.subr.bf16.mxu1 %v11067_v61 }
 0x3d3   :  { %7251 = vmatpush1.bf16.msra.mxu0 %v11062_v62  ;;  %8067 = vmatpush1.bf16.msra.mxu1 %v11065_v63 }
 0x3d4   :  { %7252 = vmatprep.subr.bf16.mxu0 %v11070_v0  ;;  %8068 = vmatprep.subr.bf16.mxu1 %v11073_v3 }
 0x3d7   :  { %7253 = vmatpush1.bf16.msra.mxu0 %v11068_v1  ;;  %8069 = vmatpush1.bf16.msra.mxu1 %v11071_v2 }
 0x3d8   :  { %7254 = vmatprep.subr.bf16.mxu0 %v11076_v4  ;;  %8070 = vmatprep.subr.bf16.mxu1 %v11079_v5 }
 0x3db   :  { %7255 = vmatpush1.bf16.msra.mxu0 %v11074_v6  ;;  %8071 = vmatpush1.bf16.msra.mxu1 %v11077_v7 }
 0x3dc   :  { %7256 = vmatprep.subr.bf16.mxu0 %v11082_v8  ;;  %8072 = vmatprep.subr.bf16.mxu1 %v11085_v9 }
 0x3df   :  { %7257 = vmatpush1.bf16.msra.mxu0 %v11080_v10  ;;  %8073 = vmatpush1.bf16.msra.mxu1 %v11083_v11  ;;  %v11138_v10 = vmov 1983009808  }
 0x3e0   :  { %7258 = vmatprep.subr.bf16.mxu0 %v11088_v12  ;;  %8074 = vmatprep.subr.bf16.mxu1 %v11091_v13  ;;  %v14519_v11 = vunpack.c.l.s4 %v11138_v10  ;;  %v8217_v12 = vlaneseq }
 0x3e3   :  { %7259 = vmatpush1.bf16.msra.mxu0 %v11086_v14  ;;  %8075 = vmatpush1.bf16.msra.mxu1 %v11089_v15 }
 0x3e4   :  { %7260 = vmatprep.subr.bf16.mxu0 %v11094_v16  ;;  %8076 = vmatprep.subr.bf16.mxu1 %v11097_v17 }
 0x3e7   :  { %7261 = vmatpush1.bf16.msra.mxu0 %v11092_v18  ;;  %8077 = vmatpush1.bf16.msra.mxu1 %v11095_v19 }
 0x3e8   :  { %7262 = vmatprep.subr.bf16.mxu0 %v11100_v20  ;;  %8078 = vmatprep.subr.bf16.mxu1 %v11103_v21 }
 0x3eb   :  { %7263 = vmatpush1.bf16.msra.mxu0 %v11098_v22  ;;  %8079 = vmatpush1.bf16.msra.mxu1 %v11101_v23 }
 0x3ec   :  { %7264 = vmatprep.subr.bf16.mxu0 %v11106_v24  ;;  %8080 = vmatprep.subr.bf16.mxu1 %v11109_v25 }
 0x3ef   :  { %7265 = vmatpush1.bf16.msra.mxu0 %v11104_v26  ;;  %8081 = vmatpush1.bf16.msra.mxu1 %v11107_v27 }
 0x3f0   :  { %7266 = vmatprep.subr.bf16.mxu0 %v11112_v28  ;;  %8082 = vmatprep.subr.bf16.mxu1 %v11115_v29 }
 0x3f3   :  { %7267 = vmatpush1.bf16.msra.mxu0 %v11110_v30  ;;  %8083 = vmatpush1.bf16.msra.mxu1 %v11113_v31 }
 0x3f4   :  { %7268 = vmatprep.subr.bf16.mxu0 %v11118_v32  ;;  %8084 = vmatprep.subr.bf16.mxu1 %v11121_v33 }
 0x3f7   :  { %7269 = vmatpush1.bf16.msra.mxu0 %v11116_v34  ;;  %8085 = vmatpush1.bf16.msra.mxu1 %v11119_v35 }
 0x3f8   :  { %7270 = vmatprep.subr.bf16.mxu0 %v11126_v36  ;;  %8086 = vmatprep.subr.bf16.mxu1 %v11129_v37 }
 0x3fb   :  { %7271 = vmatpush1.bf16.msra.mxu0 %v11124_v38  ;;  %8087 = vmatpush1.bf16.msra.mxu1 %v11127_v39 }
 0x3fc   :  { %7272 = vmatprep.subr.bf16.mxu0 %v11132_v40  ;;  %8088 = vmatprep.subr.bf16.mxu1 %v11135_v41 }
 0x3ff   :  { %7273 = vmatpush1.bf16.msra.mxu0 %v11130_v42  ;;  %8089 = vmatpush1.bf16.msra.mxu1 %v11133_v43 }
 0x402   :  { %7275 = vmatmul.mubr.bf16.vlgmr.msra.gmra.mrb[0].mxu0 %v8270_v44  ;;  %8091 = vmatmul.mubr.bf16.vlgmr.msra.gmra.mrb[0].mxu1 %v8270_v44 }
 0x403   :  { %7284 = vmatprep.mubr.bf16.mxu0 %v8303_v45  ;;  %8100 = vmatprep.mubr.bf16.mxu1 %v8303_v45 }
 0x40a   :  { %7285 = vmatmul.mubr.bf16.gmra.mrb[4].mxu0 %v8302_v47  ;;  %8101 = vmatmul.mubr.bf16.gmra.mrb[4].mxu1 %v8302_v47 }
 0x4d5   :  { %v7276_v48 = vpop.f32.mrb[0].mxu0  ;;  %v8092_v49 = vpop.f32.mrb[0].mxu1 }
 0x4d6   :  { %8109 = vst [vmem:[%s14539_s2] sm:$0xff] %v7276_v48  ;;  %8111 = vst [vmem:[%s14539_s2 + $0x10] sm:$0xff] %v8092_v49  ;;  %v7278_v50 = vpop.f32.mrb[1].mxu0  ;;  %v8094_v53 = vpop.f32.mrb[1].mxu1  ;;  %v8158_v51 = vmul.f32 %v7276_v48, %v7276_v48  ;;  %v8160_v52 = vmul.f32 %v8092_v49, %v8092_v49 }
 0x4d7   :  { %8110 = vst [vmem:[%s14539_s2 + $0x8] sm:$0xff] %v7278_v50  ;;  %v8159_v54 = vmul.f32 %v7278_v50, %v7278_v50  ;;  %8112 = vst [vmem:[%s14539_s2 + $0x18] sm:$0xff] %v8094_v53  ;;  %v8161_v55 = vmul.f32 %v8094_v53, %v8094_v53  ;;  %v7280_v56 = vpop.f32.mrb[2].mxu0  ;;  %v8096_v57 = vpop.f32.mrb[2].mxu1 }
 0x4d8   :  { %8113 = vst [vmem:[%s14539_s2 + $0x20] sm:$0xff] %v7280_v56  ;;  %v8126_v60 = vadd.f32 %v7280_v56, %v7276_v48  ;;  %v8162_v58 = vmul.f32 %v7280_v56, %v7280_v56  ;;  %8115 = vst [vmem:[%s14539_s2 + $0x30] sm:$0xff] %v8096_v57  ;;  %v8142_v59 = vadd.f32 %v8096_v57, %v8092_v49  ;;  %v7282_v62 = vpop.f32.mrb[3].mxu0  ;;  %v8098_v63 = vpop.f32.mrb[3].mxu1 }
 0x4d9   :  { %v8164_v61 = vmul.f32 %v8096_v57, %v8096_v57  ;;  %8114 = vst [vmem:[%s14539_s2 + $0x28] sm:$0xff] %v7282_v62  ;;  %v8134_v0 = vadd.f32 %v7282_v62, %v7278_v50  ;;  %v8163_v3 = vmul.f32 %v7282_v62, %v7282_v62  ;;  %8116 = vst [vmem:[%s14539_s2 + $0x38] sm:$0xff] %v8098_v63 }
 0x4da   :  { %v8150_v1 = vadd.f32 %v8098_v63, %v8094_v53  ;;  %v8165_v2 = vmul.f32 %v8098_v63, %v8098_v63  ;;  %v8170_v4 = vadd.f32 %v8162_v58, %v8158_v51 }
 0x4db   :  { %v8186_v5 = vadd.f32 %v8164_v61, %v8160_v52  ;;  %v8178_v6 = vadd.f32 %v8163_v3, %v8159_v54 }
 0x4dc   :  { %v8194_v7 = vadd.f32 %v8165_v2, %v8161_v55 }
 0x4dd   :  { %v7286_v8 = vpop.f32.mrb[4].mxu0  ;;  %v8102_v9 = vpop.f32.mrb[4].mxu1 }
 0x4de   :  { %8117 = vst [vmem:[%s14539_s2 + $0x40] sm:$0xff] %v7286_v8  ;;  %v8127_v13 = vadd.f32 %v8126_v60, %v7286_v8  ;;  %v8166_v14 = vmul.f32 %v7286_v8, %v7286_v8  ;;  %8119 = vst [vmem:[%s14539_s2 + $0x50] sm:$0xff] %v8102_v9  ;;  %v8143_v15 = vadd.f32 %v8142_v59, %v8102_v9  ;;  %v7288_v17 = vpop.f32.mrb[5].mxu0  ;;  %v8104_v18 = vpop.f32.mrb[5].mxu1 }
 0x4df   :  { %v8168_v16 = vmul.f32 %v8102_v9, %v8102_v9  ;;  %8118 = vst [vmem:[%s14539_s2 + $0x48] sm:$0xff] %v7288_v17  ;;  %v8135_v19 = vadd.f32 %v8134_v0, %v7288_v17  ;;  %v8167_v20 = vmul.f32 %v7288_v17, %v7288_v17  ;;  %8120 = vst [vmem:[%s14539_s2 + $0x58] sm:$0xff] %v8104_v18  ;;  %v7290_v23 = vpop.f32.mrb[6].mxu0  ;;  %v8106_v24 = vpop.f32.mrb[6].mxu1 }
 0x4e0   :  { %v8151_v21 = vadd.f32 %v8150_v1, %v8104_v18  ;;  %v8169_v22 = vmul.f32 %v8104_v18, %v8104_v18  ;;  %v8128_v25 = vrot.slane %v8127_v13, 4  ;;  %v8171_v26 = vadd.f32 %v8170_v4, %v8166_v14  ;;  %v7291_v29 = vpop.f32.mrb[7].mxu0  ;;  %v8107_v30 = vpop.f32.mrb[7].mxu1 }
 0x4e1   :  { %v8144_v27 = vrot.slane %v8143_v15, 4  ;;  %v8187_v28 = vadd.f32 %v8186_v5, %v8168_v16  ;;  %v8136_v31 = vrot.slane %v8135_v19, 4  ;;  %v8179_v32 = vadd.f32 %v8178_v6, %v8167_v20 }
 0x4e2   :  { %v8152_v33 = vrot.slane %v8151_v21, 4  ;;  %v8195_v34 = vadd.f32 %v8194_v7, %v8169_v22  ;;  %v8129_v35 = vadd.f32 %v8128_v25, %v8127_v13  ;;  %v8172_v36 = vrot.slane %v8171_v26, 4 }
 0x4e3   :  { %v8145_v37 = vadd.f32 %v8144_v27, %v8143_v15  ;;  %v8188_v38 = vrot.slane %v8187_v28, 4  ;;  %v8137_v39 = vadd.f32 %v8136_v31, %v8135_v19  ;;  %v8180_v40 = vrot.slane %v8179_v32, 4 }
 0x4e4   :  { %v8153_v41 = vadd.f32 %v8152_v33, %v8151_v21  ;;  %v8196_v42 = vrot.slane %v8195_v34, 4  ;;  %v8130_v43 = vrot.slane %v8129_v35, 2  ;;  %v8173_v46 = vadd.f32 %v8172_v36, %v8171_v26 }
 0x4e5   :  { %v8146_v44 = vrot.slane %v8145_v37, 2  ;;  %v8189_v45 = vadd.f32 %v8188_v38, %v8187_v28  ;;  %v8138_v47 = vrot.slane %v8137_v39, 2  ;;  %v8181_v48 = vadd.f32 %v8180_v40, %v8179_v32 }
 0x4e6   :  { %v8154_v49 = vrot.slane %v8153_v41, 2  ;;  %v8197_v50 = vadd.f32 %v8196_v42, %v8195_v34  ;;  %v8131_v53 = vadd.f32 %v8130_v43, %v8129_v35  ;;  %v8174_v51 = vrot.slane %v8173_v46, 2 }
 0x4e7   :  { %v8147_v52 = vadd.f32 %v8146_v44, %v8145_v37  ;;  %v8190_v54 = vrot.slane %v8189_v45, 2  ;;  %v8139_v55 = vadd.f32 %v8138_v47, %v8137_v39  ;;  %v8182_v56 = vrot.slane %v8181_v48, 2 }
 0x4e8   :  { %v8155_v57 = vadd.f32 %v8154_v49, %v8153_v41  ;;  %v8198_v60 = vrot.slane %v8197_v50, 2  ;;  %v8132_v58 = vrot.slane %v8131_v53, 1  ;;  %v8175_v59 = vadd.f32 %v8174_v51, %v8173_v46 }
 0x4e9   :  { %v8148_v61 = vrot.slane %v8147_v52, 1  ;;  %v8191_v62 = vadd.f32 %v8190_v54, %v8189_v45  ;;  %v8140_v63 = vrot.slane %v8139_v55, 1  ;;  %v8183_v0 = vadd.f32 %v8182_v56, %v8181_v48 }
 0x4ea   :  { %v8156_v3 = vrot.slane %v8155_v57, 1  ;;  %v8199_v1 = vadd.f32 %v8198_v60, %v8197_v50  ;;  %v8176_v2 = vrot.slane %v8175_v59, 1  ;;  %v8216_v5 = vunpack.c.0.s8 %v14519_v11 }
 0x4eb   :  { %v8192_v4 = vrot.slane %v8191_v62, 1  ;;  %v8218_v6 = vshrl.u32 %v8217_v12, 7  ;;  %v8184_v7 = vrot.slane %v8183_v0, 1  ;;  %v8133_v9 = vadd.f32 %v8132_v58, %v8131_v53 }
 0x4ec   :  { %v8200_v8 = vrot.slane %v8199_v1, 1  ;;  %v8177_v10 = vadd.f32 %v8176_v2, %v8175_v59  ;;  %v8149_v13 = vadd.f32 %v8148_v61, %v8147_v52  ;;  %v8141_v15 = vadd.f32 %v8140_v63, %v8139_v55 }
 0x4ed   :  { %v8193_v14 = vadd.f32 %v8192_v4, %v8191_v62  ;;  %v8185_v16 = vadd.f32 %v8184_v7, %v8183_v0  ;;  %v8157_v17 = vadd.f32 %v8156_v3, %v8155_v57  ;;  %v8219_v21 = vsub.s32 %v8216_v5, %v8218_v6 }
 0x4ee   :  { %v8201_v18 = vadd.f32 %v8200_v8, %v8199_v1  ;;  %v8203_v19 = vsel %vm8202_vm0, %v8133_v9, %v8177_v10 }
 0x4ef   :  { %v8205_v20 = vsel %vm8202_vm0, %v8149_v13, %v8193_v14  ;;  %v8204_v22 = vsel %vm8202_vm0, %v8141_v15, %v8185_v16 }
 0x4f0   :  { %v8206_v23 = vsel %vm8202_vm0, %v8157_v17, %v8201_v18  ;;  %v8212_v24 = vcombine.low %v8203_v19, %v8204_v22 }
 0x4f1   :  { %v8213_v25 = vcombine.low %v8205_v20, %v8206_v23 }
 0x4f2   :  { %v8220_v11 = vrot.slane %v8212_v24, %v8219_v21 }
 0x4f3   :  { %v8227_v12 = vrot.slane %v8213_v25, %v8219_v21 }
 0x4f5   :  { %v8228_v26 = vcombine.low %v8220_v11, %v8227_v12 }
 0x4f7   :  { %8231 = vst [vmem:[%s14540_s3] sm:$0xff] %v8228_v26 }

// kernel: discriminator_forward.15
= control target key start
LH: loop header
LB: loop body
LE: loop exit
PB: predicated region body
PF: predicated region fallthrough
CT: control target
= control target key end

     0   :  { %s9198_s1 = inlined_call_operand.vmem [shape: bf16[8192,128], index: 1, kind: input, shape index: {}]   ;;  %s9199_s0 = inlined_call_operand.vmem [shape: bf16[8,8192], index: 0, kind: input, shape index: {}]   ;;  %s9200_s2 = inlined_call_operand.vmem [shape: f32[1,128], index: 2, kind: input, shape index: {}]   ;;  %s9201_s3 = inlined_call_operand.vmem [shape: f32[8,128], index: 3, kind: output, shape index: {}]  }
   0x1   :  { %v6940_v0 = vld [vmem:[%s9198_s1 + $0x40] sm:$0xff]   ;;  %v6944_v4 = vld [vmem:[%s9198_s1 + $0x48] sm:$0xff]   ;;  %v6948_v8 = vld [vmem:[%s9198_s1 + $0x50] sm:$0xff]  }
   0x2   :  { %v6941_v1 = vld [vmem:[%s9198_s1 + $0xc0] sm:$0xff]   ;;  %6236 = vmatprep.subr.bf16.mxu0 %v6940_v0  ;;  %v6945_v5 = vld [vmem:[%s9198_s1 + $0xc8] sm:$0xff]   ;;  %v6949_v9 = vld [vmem:[%s9198_s1 + $0xd0] sm:$0xff]  }
   0x3   :  { %v6942_v2 = vld [vmem:[%s9198_s1] sm:$0xff]   ;;  %6258 = vmatprep.subr.bf16.mxu1 %v6941_v1  ;;  %v6946_v6 = vld [vmem:[%s9198_s1 + $0x8] sm:$0xff]   ;;  %v6950_v10 = vld [vmem:[%s9198_s1 + $0x10] sm:$0xff]  }
   0x4   :  { %v6943_v3 = vld [vmem:[%s9198_s1 + $0x80] sm:$0xff]   ;;  %6237 = vmatpush3.bf16.msra.mxu0 %v6942_v2  ;;  %v6947_v7 = vld [vmem:[%s9198_s1 + $0x88] sm:$0xff]   ;;  %v6951_v11 = vld [vmem:[%s9198_s1 + $0x90] sm:$0xff]  }
   0x5   :  { %6259 = vmatpush3.bf16.msra.mxu1 %v6943_v3  ;;  %6238 = vmatprep.subr.bf16.mxu0 %v6944_v4  ;;  %v6952_v12 = vld [vmem:[%s9198_s1 + $0x58] sm:$0xff]   ;;  %v6956_v16 = vld [vmem:[%s9198_s1 + $0x60] sm:$0xff]   ;;  %v6960_v20 = vld [vmem:[%s9198_s1 + $0x68] sm:$0xff]  }
   0x6   :  { %6260 = vmatprep.subr.bf16.mxu1 %v6945_v5  ;;  %v6953_v13 = vld [vmem:[%s9198_s1 + $0xd8] sm:$0xff]   ;;  %v6957_v17 = vld [vmem:[%s9198_s1 + $0xe0] sm:$0xff]   ;;  %v6961_v21 = vld [vmem:[%s9198_s1 + $0xe8] sm:$0xff]  }
   0x7   :  { %v6954_v14 = vld [vmem:[%s9198_s1 + $0x18] sm:$0xff]   ;;  %v6958_v18 = vld [vmem:[%s9198_s1 + $0x20] sm:$0xff]   ;;  %v6962_v22 = vld [vmem:[%s9198_s1 + $0x28] sm:$0xff]  }
   0x8   :  { %6239 = vmatpush3.bf16.msra.mxu0 %v6946_v6  ;;  %v6955_v15 = vld [vmem:[%s9198_s1 + $0x98] sm:$0xff]   ;;  %v6959_v19 = vld [vmem:[%s9198_s1 + $0xa0] sm:$0xff]   ;;  %v6963_v23 = vld [vmem:[%s9198_s1 + $0xa8] sm:$0xff]  }
   0x9   :  { %6261 = vmatpush3.bf16.msra.mxu1 %v6947_v7  ;;  %6240 = vmatprep.subr.bf16.mxu0 %v6948_v8  ;;  %v6964_v24 = vld [vmem:[%s9198_s1 + $0x70] sm:$0xff]   ;;  %v6968_v28 = vld [vmem:[%s9198_s1 + $0x78] sm:$0xff]   ;;  %v15_v32 = vld [vmem:[%s9199_s0] sm:$0xff] }
   0xa   :  { %6262 = vmatprep.subr.bf16.mxu1 %v6949_v9  ;;  %v6965_v25 = vld [vmem:[%s9198_s1 + $0xf0] sm:$0xff]   ;;  %v6969_v29 = vld [vmem:[%s9198_s1 + $0xf8] sm:$0xff]   ;;  %v16_v33 = vld [vmem:[%s9199_s0 + $0x8] sm:$0xff]  ;;  %v5660_v34 = vcombine.low %v15_v32, %v15_v32  ;;  %v5661_v35 = vcombine.high %v15_v32, %v15_v32 }
   0xb   :  { %v6966_v26 = vld [vmem:[%s9198_s1 + $0x30] sm:$0xff]   ;;  %v6970_v30 = vld [vmem:[%s9198_s1 + $0x38] sm:$0xff]   ;;  %v5662_v36 = vcombine.low %v16_v33, %v16_v33  ;;  %v5663_v37 = vcombine.high %v16_v33, %v16_v33  ;;  %v6976_v38 = vld [vmem:[%s9198_s1 + $0x140] sm:$0xff]  }
   0xc   :  { %6241 = vmatpush3.bf16.msra.mxu0 %v6950_v10  ;;  %v6967_v27 = vld [vmem:[%s9198_s1 + $0xb0] sm:$0xff]   ;;  %v6971_v31 = vld [vmem:[%s9198_s1 + $0xb8] sm:$0xff]   ;;  %v6977_v39 = vld [vmem:[%s9198_s1 + $0x1c0] sm:$0xff]   ;;  %4406 = vmatprep.mubr.bf16.mxu0 %v5661_v35 }
   0xd   :  { %6263 = vmatpush3.bf16.msra.mxu1 %v6951_v11  ;;  %6242 = vmatprep.subr.bf16.mxu0 %v6952_v12  ;;  %v6978_v40 = vld [vmem:[%s9198_s1 + $0x100] sm:$0xff]   ;;  %v6980_v42 = vld [vmem:[%s9198_s1 + $0x148] sm:$0xff]   ;;  %v6984_v46 = vld [vmem:[%s9198_s1 + $0x150] sm:$0xff]  }
   0xe   :  { %6264 = vmatprep.subr.bf16.mxu1 %v6953_v13  ;;  %4446 = vmatprep.mubr.bf16.mxu1 %v5663_v37  ;;  %v6979_v41 = vld [vmem:[%s9198_s1 + $0x180] sm:$0xff]   ;;  %v6981_v43 = vld [vmem:[%s9198_s1 + $0x1c8] sm:$0xff]   ;;  %v6985_v47 = vld [vmem:[%s9198_s1 + $0x1d0] sm:$0xff]  }
   0xf   :  { %v6982_v44 = vld [vmem:[%s9198_s1 + $0x108] sm:$0xff]   ;;  %v6986_v48 = vld [vmem:[%s9198_s1 + $0x110] sm:$0xff]   ;;  %v6988_v50 = vld [vmem:[%s9198_s1 + $0x158] sm:$0xff]  }
  0x10   :  { %6243 = vmatpush3.bf16.msra.mxu0 %v6954_v14  ;;  %v6983_v45 = vld [vmem:[%s9198_s1 + $0x188] sm:$0xff]   ;;  %v6987_v49 = vld [vmem:[%s9198_s1 + $0x190] sm:$0xff]   ;;  %v6989_v51 = vld [vmem:[%s9198_s1 + $0x1d8] sm:$0xff]  }
  0x11   :  { %6265 = vmatpush3.bf16.msra.mxu1 %v6955_v15  ;;  %6244 = vmatprep.subr.bf16.mxu0 %v6956_v16  ;;  %v6990_v52 = vld [vmem:[%s9198_s1 + $0x118] sm:$0xff]   ;;  %v6992_v54 = vld [vmem:[%s9198_s1 + $0x160] sm:$0xff]   ;;  %v6996_v58 = vld [vmem:[%s9198_s1 + $0x168] sm:$0xff]  }
  0x12   :  { %6266 = vmatprep.subr.bf16.mxu1 %v6957_v17  ;;  %v6991_v53 = vld [vmem:[%s9198_s1 + $0x198] sm:$0xff]   ;;  %v6993_v55 = vld [vmem:[%s9198_s1 + $0x1e0] sm:$0xff]   ;;  %v6997_v59 = vld [vmem:[%s9198_s1 + $0x1e8] sm:$0xff]  }
  0x13   :  { %v6994_v56 = vld [vmem:[%s9198_s1 + $0x120] sm:$0xff]   ;;  %v6998_v60 = vld [vmem:[%s9198_s1 + $0x128] sm:$0xff]   ;;  %v7000_v62 = vld [vmem:[%s9198_s1 + $0x170] sm:$0xff]  }
  0x14   :  { %6245 = vmatpush3.bf16.msra.mxu0 %v6958_v18  ;;  %v6995_v57 = vld [vmem:[%s9198_s1 + $0x1a0] sm:$0xff]   ;;  %v6999_v61 = vld [vmem:[%s9198_s1 + $0x1a8] sm:$0xff]   ;;  %v7001_v63 = vld [vmem:[%s9198_s1 + $0x1f0] sm:$0xff]  }
  0x15   :  { %6267 = vmatpush3.bf16.msra.mxu1 %v6959_v19  ;;  %6246 = vmatprep.subr.bf16.mxu0 %v6960_v20  ;;  %v7002_v0 = vld [vmem:[%s9198_s1 + $0x130] sm:$0xff]   ;;  %v7004_v2 = vld [vmem:[%s9198_s1 + $0x178] sm:$0xff]   ;;  %v7012_v12 = vld [vmem:[%s9198_s1 + $0x240] sm:$0xff]  }
  0x16   :  { %6268 = vmatprep.subr.bf16.mxu1 %v6961_v21  ;;  %v7003_v1 = vld [vmem:[%s9198_s1 + $0x1b0] sm:$0xff]   ;;  %v7005_v3 = vld [vmem:[%s9198_s1 + $0x1f8] sm:$0xff]   ;;  %v7013_v13 = vld [vmem:[%s9198_s1 + $0x2c0] sm:$0xff]  }
  0x17   :  { %v7006_v4 = vld [vmem:[%s9198_s1 + $0x138] sm:$0xff]   ;;  %v17_v6 = vld [vmem:[%s9199_s0 + $0x10] sm:$0xff]  ;;  %v7014_v14 = vld [vmem:[%s9198_s1 + $0x200] sm:$0xff]  }
  0x18   :  { %6247 = vmatpush3.bf16.msra.mxu0 %v6962_v22  ;;  %v7007_v5 = vld [vmem:[%s9198_s1 + $0x1b8] sm:$0xff]   ;;  %v5664_v7 = vcombine.low %v17_v6, %v17_v6  ;;  %v5665_v8 = vcombine.high %v17_v6, %v17_v6  ;;  %v7015_v15 = vld [vmem:[%s9198_s1 + $0x280] sm:$0xff]   ;;  %v7016_v16 = vld [vmem:[%s9198_s1 + $0x248] sm:$0xff]  }
  0x19   :  { %6269 = vmatpush3.bf16.msra.mxu1 %v6963_v23  ;;  %6248 = vmatprep.subr.bf16.mxu0 %v6964_v24  ;;  %v18_v9 = vld [vmem:[%s9199_s0 + $0x18] sm:$0xff]  ;;  %v7017_v17 = vld [vmem:[%s9198_s1 + $0x2c8] sm:$0xff]   ;;  %v7020_v20 = vld [vmem:[%s9198_s1 + $0x250] sm:$0xff]  }
  0x1a   :  { %6270 = vmatprep.subr.bf16.mxu1 %v6965_v25  ;;  %v5666_v10 = vcombine.low %v18_v9, %v18_v9  ;;  %v5667_v11 = vcombine.high %v18_v9, %v18_v9  ;;  %v7018_v18 = vld [vmem:[%s9198_s1 + $0x208] sm:$0xff]   ;;  %v7021_v21 = vld [vmem:[%s9198_s1 + $0x2d0] sm:$0xff]   ;;  %v7024_v24 = vld [vmem:[%s9198_s1 + $0x258] sm:$0xff]  }
  0x1b   :  { %v7019_v19 = vld [vmem:[%s9198_s1 + $0x288] sm:$0xff]   ;;  %v7022_v22 = vld [vmem:[%s9198_s1 + $0x210] sm:$0xff]   ;;  %v7025_v25 = vld [vmem:[%s9198_s1 + $0x2d8] sm:$0xff]  }
  0x1c   :  { %6249 = vmatpush3.bf16.msra.mxu0 %v6966_v26  ;;  %v7023_v23 = vld [vmem:[%s9198_s1 + $0x290] sm:$0xff]   ;;  %v7026_v26 = vld [vmem:[%s9198_s1 + $0x218] sm:$0xff]   ;;  %v7032_v32 = vld [vmem:[%s9198_s1 + $0x268] sm:$0xff]  }
  0x1d   :  { %6271 = vmatpush3.bf16.msra.mxu1 %v6967_v27  ;;  %6250 = vmatprep.subr.bf16.mxu0 %v6968_v28  ;;  %v7027_v27 = vld [vmem:[%s9198_s1 + $0x298] sm:$0xff]   ;;  %v7028_v28 = vld [vmem:[%s9198_s1 + $0x260] sm:$0xff]   ;;  %v7033_v33 = vld [vmem:[%s9198_s1 + $0x2e8] sm:$0xff]  }
  0x1e   :  { %6272 = vmatprep.subr.bf16.mxu1 %v6969_v29  ;;  %v7029_v29 = vld [vmem:[%s9198_s1 + $0x2e0] sm:$0xff]   ;;  %v7035_v35 = vld [vmem:[%s9198_s1 + $0x2a8] sm:$0xff]   ;;  %v7037_v37 = vld [vmem:[%s9198_s1 + $0x2f0] sm:$0xff]  }
  0x1f   :  { %v7068_v6 = vld [vmem:[%s9198_s1 + $0x368] sm:$0xff]  }
  0x20   :  { %6251 = vmatpush3.bf16.msra.mxu0 %v6970_v30  ;;  %v7030_v30 = vld [vmem:[%s9198_s1 + $0x220] sm:$0xff]   ;;  %v7071_v9 = vld [vmem:[%s9198_s1 + $0x3a8] sm:$0xff]  }
  0x21   :  { %6273 = vmatpush3.bf16.msra.mxu1 %v6971_v31  ;;  %6280 = vmatprep.subr.bf16.mxu0 %v6976_v38  ;;  %v7031_v31 = vld [vmem:[%s9198_s1 + $0x2a0] sm:$0xff]   ;;  %v7038_v38 = vld [vmem:[%s9198_s1 + $0x230] sm:$0xff]  }
  0x22   :  { %6302 = vmatprep.subr.bf16.mxu1 %v6977_v39  ;;  %v7039_v39 = vld [vmem:[%s9198_s1 + $0x2b0] sm:$0xff]  }
  0x23   :  { %4407 = vmatmul.mubr.bf16.vlgmr.msra.gmra.mrb[0].mxu0 %v5660_v34  ;;  %v7034_v34 = vld [vmem:[%s9198_s1 + $0x228] sm:$0xff]  }
  0x24   :  { %4447 = vmatmul.mubr.bf16.vlgmr.msra.gmra.mrb[0].mxu1 %v5662_v36  ;;  %6281 = vmatpush3.bf16.msra.mxu0 %v6978_v40  ;;  %v7036_v36 = vld [vmem:[%s9198_s1 + $0x270] sm:$0xff]   ;;  %v7040_v40 = vld [vmem:[%s9198_s1 + $0x278] sm:$0xff]  }
  0x25   :  { %6303 = vmatpush3.bf16.msra.mxu1 %v6979_v41  ;;  %6282 = vmatprep.subr.bf16.mxu0 %v6980_v42  ;;  %v7041_v41 = vld [vmem:[%s9198_s1 + $0x2f8] sm:$0xff]  }
  0x26   :  { %6304 = vmatprep.subr.bf16.mxu1 %v6981_v43  ;;  %4486 = vmatprep.mubr.bf16.mxu0 %v5665_v8  ;;  %v7042_v42 = vld [vmem:[%s9198_s1 + $0x238] sm:$0xff]   ;;  %v7070_v8 = vld [vmem:[%s9198_s1 + $0x328] sm:$0xff]  }
  0x27   :  { %4526 = vmatprep.mubr.bf16.mxu1 %v5667_v11  ;;  %v7043_v43 = vld [vmem:[%s9198_s1 + $0x2b8] sm:$0xff]   ;;  %v7073_v11 = vld [vmem:[%s9198_s1 + $0x3f0] sm:$0xff]  }
  0x28   :  { %6283 = vmatpush3.bf16.msra.mxu0 %v6982_v44  ;;  %v19_v44 = vld [vmem:[%s9199_s0 + $0x20] sm:$0xff] }
  0x29   :  { %6305 = vmatpush3.bf16.msra.mxu1 %v6983_v45  ;;  %6284 = vmatprep.subr.bf16.mxu0 %v6984_v46  ;;  %v20_v45 = vld [vmem:[%s9199_s0 + $0x28] sm:$0xff]  ;;  %v5668_v46 = vcombine.low %v19_v44, %v19_v44 }
  0x2a   :  { %6306 = vmatprep.subr.bf16.mxu1 %v6985_v47  ;;  %v5669_v47 = vcombine.high %v19_v44, %v19_v44  ;;  %v7104_v44 = vld [vmem:[%s9198_s1 + $0x468] sm:$0xff]  }
  0x2c   :  { %6285 = vmatpush3.bf16.msra.mxu0 %v6986_v48  ;;  %v5670_v48 = vcombine.low %v20_v45, %v20_v45 }
  0x2d   :  { %6307 = vmatpush3.bf16.msra.mxu1 %v6987_v49  ;;  %6286 = vmatprep.subr.bf16.mxu0 %v6988_v50  ;;  %v5671_v49 = vcombine.high %v20_v45, %v20_v45  ;;  %v7048_v50 = vld [vmem:[%s9198_s1 + $0x340] sm:$0xff]   ;;  %v7105_v45 = vld [vmem:[%s9198_s1 + $0x4e8] sm:$0xff]  }
  0x2e   :  { %6308 = vmatprep.subr.bf16.mxu1 %v6989_v51  ;;  %v7049_v51 = vld [vmem:[%s9198_s1 + $0x3c0] sm:$0xff]  }
  0x30   :  { %6287 = vmatpush3.bf16.msra.mxu0 %v6990_v52  ;;  %v7050_v52 = vld [vmem:[%s9198_s1 + $0x300] sm:$0xff]  }
  0x31   :  { %6309 = vmatpush3.bf16.msra.mxu1 %v6991_v53  ;;  %6288 = vmatprep.subr.bf16.mxu0 %v6992_v54  ;;  %v7051_v53 = vld [vmem:[%s9198_s1 + $0x380] sm:$0xff]   ;;  %v7052_v54 = vld [vmem:[%s9198_s1 + $0x348] sm:$0xff]  }
  0x32   :  { %6310 = vmatprep.subr.bf16.mxu1 %v6993_v55  ;;  %v7053_v55 = vld [vmem:[%s9198_s1 + $0x3c8] sm:$0xff]  }
  0x34   :  { %6289 = vmatpush3.bf16.msra.mxu0 %v6994_v56  ;;  %v7054_v56 = vld [vmem:[%s9198_s1 + $0x308] sm:$0xff]  }
  0x35   :  { %6311 = vmatpush3.bf16.msra.mxu1 %v6995_v57  ;;  %6290 = vmatprep.subr.bf16.mxu0 %v6996_v58  ;;  %v7055_v57 = vld [vmem:[%s9198_s1 + $0x388] sm:$0xff]   ;;  %v7056_v58 = vld [vmem:[%s9198_s1 + $0x350] sm:$0xff]  }
  0x36   :  { %6312 = vmatprep.subr.bf16.mxu1 %v6997_v59  ;;  %v7057_v59 = vld [vmem:[%s9198_s1 + $0x3d0] sm:$0xff]  }
  0x38   :  { %6291 = vmatpush3.bf16.msra.mxu0 %v6998_v60  ;;  %v7058_v60 = vld [vmem:[%s9198_s1 + $0x310] sm:$0xff]  }
  0x39   :  { %6313 = vmatpush3.bf16.msra.mxu1 %v6999_v61  ;;  %6292 = vmatprep.subr.bf16.mxu0 %v7000_v62  ;;  %v7059_v61 = vld [vmem:[%s9198_s1 + $0x390] sm:$0xff]   ;;  %v7060_v62 = vld [vmem:[%s9198_s1 + $0x358] sm:$0xff]  }
  0x3a   :  { %6314 = vmatprep.subr.bf16.mxu1 %v7001_v63  ;;  %v7061_v63 = vld [vmem:[%s9198_s1 + $0x3d8] sm:$0xff]  }
  0x3c   :  { %6293 = vmatpush3.bf16.msra.mxu0 %v7002_v0  ;;  %v7062_v0 = vld [vmem:[%s9198_s1 + $0x318] sm:$0xff]  }
  0x3d   :  { %6315 = vmatpush3.bf16.msra.mxu1 %v7003_v1  ;;  %6294 = vmatprep.subr.bf16.mxu0 %v7004_v2  ;;  %v7063_v1 = vld [vmem:[%s9198_s1 + $0x398] sm:$0xff]   ;;  %v7064_v2 = vld [vmem:[%s9198_s1 + $0x360] sm:$0xff]  }
  0x3e   :  { %6316 = vmatprep.subr.bf16.mxu1 %v7005_v3  ;;  %v7065_v3 = vld [vmem:[%s9198_s1 + $0x3e0] sm:$0xff]  }
  0x40   :  { %6295 = vmatpush3.bf16.msra.mxu0 %v7006_v4  ;;  %v7066_v4 = vld [vmem:[%s9198_s1 + $0x320] sm:$0xff]  }
  0x41   :  { %6317 = vmatpush3.bf16.msra.mxu1 %v7007_v5  ;;  %6324 = vmatprep.subr.bf16.mxu0 %v7012_v12  ;;  %v7067_v5 = vld [vmem:[%s9198_s1 + $0x3a0] sm:$0xff]   ;;  %v7074_v12 = vld [vmem:[%s9198_s1 + $0x330] sm:$0xff]  }
  0x42   :  { %6346 = vmatprep.subr.bf16.mxu1 %v7013_v13  ;;  %v7075_v13 = vld [vmem:[%s9198_s1 + $0x3b0] sm:$0xff]  }
  0x43   :  { %4487 = vmatmul.mubr.bf16.vlgmr.msra.gmra.mrb[4].mxu0 %v5664_v7  ;;  %v7069_v7 = vld [vmem:[%s9198_s1 + $0x3e8] sm:$0xff]  }
  0x44   :  { %4527 = vmatmul.mubr.bf16.vlgmr.msra.gmra.mrb[4].mxu1 %v5666_v10  ;;  %6325 = vmatpush3.bf16.msra.mxu0 %v7014_v14  ;;  %v7072_v10 = vld [vmem:[%s9198_s1 + $0x370] sm:$0xff]   ;;  %v7076_v14 = vld [vmem:[%s9198_s1 + $0x378] sm:$0xff]  }
  0x45   :  { %6347 = vmatpush3.bf16.msra.mxu1 %v7015_v15  ;;  %6326 = vmatprep.subr.bf16.mxu0 %v7016_v16  ;;  %v7077_v15 = vld [vmem:[%s9198_s1 + $0x3f8] sm:$0xff]  }
  0x46   :  { %6348 = vmatprep.subr.bf16.mxu1 %v7017_v17  ;;  %4566 = vmatprep.mubr.bf16.mxu0 %v5669_v47  ;;  %v7078_v16 = vld [vmem:[%s9198_s1 + $0x338] sm:$0xff]   ;;  %v7107_v47 = vld [vmem:[%s9198_s1 + $0x4a8] sm:$0xff]  }
  0x47   :  { %4606 = vmatprep.mubr.bf16.mxu1 %v5671_v49  ;;  %v7079_v17 = vld [vmem:[%s9198_s1 + $0x3b8] sm:$0xff]   ;;  %v7109_v49 = vld [vmem:[%s9198_s1 + $0x4f0] sm:$0xff]  }
  0x48   :  { %6327 = vmatpush3.bf16.msra.mxu0 %v7018_v18  ;;  %v21_v18 = vld [vmem:[%s9199_s0 + $0x30] sm:$0xff] }
  0x49   :  { %6349 = vmatpush3.bf16.msra.mxu1 %v7019_v19  ;;  %6328 = vmatprep.subr.bf16.mxu0 %v7020_v20  ;;  %v22_v19 = vld [vmem:[%s9199_s0 + $0x38] sm:$0xff]  ;;  %v5672_v20 = vcombine.low %v21_v18, %v21_v18 }
  0x4a   :  { %6350 = vmatprep.subr.bf16.mxu1 %v7021_v21  ;;  %v5673_v21 = vcombine.high %v21_v18, %v21_v18  ;;  %v7140_v18 = vld [vmem:[%s9198_s1 + $0x568] sm:$0xff]  }
  0x4c   :  { %6329 = vmatpush3.bf16.msra.mxu0 %v7022_v22  ;;  %v5674_v22 = vcombine.low %v22_v19, %v22_v19 }
  0x4d   :  { %6351 = vmatpush3.bf16.msra.mxu1 %v7023_v23  ;;  %6330 = vmatprep.subr.bf16.mxu0 %v7024_v24  ;;  %v7084_v23 = vld [vmem:[%s9198_s1 + $0x440] sm:$0xff]   ;;  %v5675_v24 = vcombine.high %v22_v19, %v22_v19  ;;  %v7141_v19 = vld [vmem:[%s9198_s1 + $0x5e8] sm:$0xff]  }
  0x4e   :  { %6352 = vmatprep.subr.bf16.mxu1 %v7025_v25  ;;  %v7085_v25 = vld [vmem:[%s9198_s1 + $0x4c0] sm:$0xff]  }
  0x50   :  { %6331 = vmatpush3.bf16.msra.mxu0 %v7026_v26  ;;  %v7086_v26 = vld [vmem:[%s9198_s1 + $0x400] sm:$0xff]  }
  0x51   :  { %6353 = vmatpush3.bf16.msra.mxu1 %v7027_v27  ;;  %6332 = vmatprep.subr.bf16.mxu0 %v7028_v28  ;;  %v7087_v27 = vld [vmem:[%s9198_s1 + $0x480] sm:$0xff]   ;;  %v7088_v28 = vld [vmem:[%s9198_s1 + $0x448] sm:$0xff]  }
  0x52   :  { %6354 = vmatprep.subr.bf16.mxu1 %v7029_v29  ;;  %v7089_v29 = vld [vmem:[%s9198_s1 + $0x4c8] sm:$0xff]  }
  0x54   :  { %6333 = vmatpush3.bf16.msra.mxu0 %v7030_v30  ;;  %v7090_v30 = vld [vmem:[%s9198_s1 + $0x408] sm:$0xff]  }
  0x55   :  { %6355 = vmatpush3.bf16.msra.mxu1 %v7031_v31  ;;  %6334 = vmatprep.subr.bf16.mxu0 %v7032_v32  ;;  %v7091_v31 = vld [vmem:[%s9198_s1 + $0x488] sm:$0xff]   ;;  %v7092_v32 = vld [vmem:[%s9198_s1 + $0x450] sm:$0xff]  }
  0x56   :  { %6356 = vmatprep.subr.bf16.mxu1 %v7033_v33  ;;  %v7093_v33 = vld [vmem:[%s9198_s1 + $0x4d0] sm:$0xff]  }
  0x58   :  { %6335 = vmatpush3.bf16.msra.mxu0 %v7034_v34  ;;  %v7094_v34 = vld [vmem:[%s9198_s1 + $0x410] sm:$0xff]  }
  0x59   :  { %6357 = vmatpush3.bf16.msra.mxu1 %v7035_v35  ;;  %6336 = vmatprep.subr.bf16.mxu0 %v7036_v36  ;;  %v7095_v35 = vld [vmem:[%s9198_s1 + $0x490] sm:$0xff]   ;;  %v7096_v36 = vld [vmem:[%s9198_s1 + $0x458] sm:$0xff]  }
  0x5a   :  { %6358 = vmatprep.subr.bf16.mxu1 %v7037_v37  ;;  %v7097_v37 = vld [vmem:[%s9198_s1 + $0x4d8] sm:$0xff]  }
  0x5c   :  { %6337 = vmatpush3.bf16.msra.mxu0 %v7038_v38  ;;  %v7098_v38 = vld [vmem:[%s9198_s1 + $0x418] sm:$0xff]  }
  0x5d   :  { %6359 = vmatpush3.bf16.msra.mxu1 %v7039_v39  ;;  %6338 = vmatprep.subr.bf16.mxu0 %v7040_v40  ;;  %v7099_v39 = vld [vmem:[%s9198_s1 + $0x498] sm:$0xff]   ;;  %v7100_v40 = vld [vmem:[%s9198_s1 + $0x460] sm:$0xff]  }
  0x5e   :  { %6360 = vmatprep.subr.bf16.mxu1 %v7041_v41  ;;  %v7101_v41 = vld [vmem:[%s9198_s1 + $0x4e0] sm:$0xff]  }
  0x60   :  { %6339 = vmatpush3.bf16.msra.mxu0 %v7042_v42  ;;  %v7102_v42 = vld [vmem:[%s9198_s1 + $0x420] sm:$0xff]  }
  0x61   :  { %6361 = vmatpush3.bf16.msra.mxu1 %v7043_v43  ;;  %6368 = vmatprep.subr.bf16.mxu0 %v7048_v50  ;;  %v7103_v43 = vld [vmem:[%s9198_s1 + $0x4a0] sm:$0xff]   ;;  %v7110_v50 = vld [vmem:[%s9198_s1 + $0x430] sm:$0xff]  }
  0x62   :  { %6390 = vmatprep.subr.bf16.mxu1 %v7049_v51  ;;  %v7111_v51 = vld [vmem:[%s9198_s1 + $0x4b0] sm:$0xff]  }
  0x63   :  { %4567 = vmatmul.mubr.bf16.vlgmr.msra.gmra.mrb[8].mxu0 %v5668_v46  ;;  %v7106_v46 = vld [vmem:[%s9198_s1 + $0x428] sm:$0xff]  }
  0x64   :  { %4607 = vmatmul.mubr.bf16.vlgmr.msra.gmra.mrb[8].mxu1 %v5670_v48  ;;  %6369 = vmatpush3.bf16.msra.mxu0 %v7050_v52  ;;  %v7108_v48 = vld [vmem:[%s9198_s1 + $0x470] sm:$0xff]   ;;  %v7112_v52 = vld [vmem:[%s9198_s1 + $0x478] sm:$0xff]  }
  0x65   :  { %6391 = vmatpush3.bf16.msra.mxu1 %v7051_v53  ;;  %6370 = vmatprep.subr.bf16.mxu0 %v7052_v54  ;;  %v7113_v53 = vld [vmem:[%s9198_s1 + $0x4f8] sm:$0xff]  }
  0x66   :  { %6392 = vmatprep.subr.bf16.mxu1 %v7053_v55  ;;  %4646 = vmatprep.mubr.bf16.mxu0 %v5673_v21  ;;  %v7114_v54 = vld [vmem:[%s9198_s1 + $0x438] sm:$0xff]   ;;  %v7143_v21 = vld [vmem:[%s9198_s1 + $0x5a8] sm:$0xff]  }
  0x67   :  { %4686 = vmatprep.mubr.bf16.mxu1 %v5675_v24  ;;  %v7115_v55 = vld [vmem:[%s9198_s1 + $0x4b8] sm:$0xff]   ;;  %v7146_v24 = vld [vmem:[%s9198_s1 + $0x530] sm:$0xff]  }
  0x68   :  { %6371 = vmatpush3.bf16.msra.mxu0 %v7054_v56  ;;  %v23_v56 = vld [vmem:[%s9199_s0 + $0x40] sm:$0xff] }
  0x69   :  { %6393 = vmatpush3.bf16.msra.mxu1 %v7055_v57  ;;  %6372 = vmatprep.subr.bf16.mxu0 %v7056_v58  ;;  %v5676_v57 = vcombine.low %v23_v56, %v23_v56  ;;  %v5677_v58 = vcombine.high %v23_v56, %v23_v56  ;;  %v7176_v56 = vld [vmem:[%s9198_s1 + $0x668] sm:$0xff]  }
  0x6a   :  { %6394 = vmatprep.subr.bf16.mxu1 %v7057_v59  ;;  %v24_v59 = vld [vmem:[%s9199_s0 + $0x48] sm:$0xff] }
  0x6c   :  { %6373 = vmatpush3.bf16.msra.mxu0 %v7058_v60  ;;  %v5678_v60 = vcombine.low %v24_v59, %v24_v59 }
  0x6d   :  { %6395 = vmatpush3.bf16.msra.mxu1 %v7059_v61  ;;  %6374 = vmatprep.subr.bf16.mxu0 %v7060_v62  ;;  %v5679_v61 = vcombine.high %v24_v59, %v24_v59  ;;  %v7120_v62 = vld [vmem:[%s9198_s1 + $0x540] sm:$0xff]   ;;  %v7179_v59 = vld [vmem:[%s9198_s1 + $0x6a8] sm:$0xff]  }
  0x6e   :  { %6396 = vmatprep.subr.bf16.mxu1 %v7061_v63  ;;  %v7121_v63 = vld [vmem:[%s9198_s1 + $0x5c0] sm:$0xff]  }
  0x70   :  { %6375 = vmatpush3.bf16.msra.mxu0 %v7062_v0  ;;  %v7122_v0 = vld [vmem:[%s9198_s1 + $0x500] sm:$0xff]  }
  0x71   :  { %6397 = vmatpush3.bf16.msra.mxu1 %v7063_v1  ;;  %6376 = vmatprep.subr.bf16.mxu0 %v7064_v2  ;;  %v7123_v1 = vld [vmem:[%s9198_s1 + $0x580] sm:$0xff]   ;;  %v7124_v2 = vld [vmem:[%s9198_s1 + $0x548] sm:$0xff]  }
  0x72   :  { %6398 = vmatprep.subr.bf16.mxu1 %v7065_v3  ;;  %v7125_v3 = vld [vmem:[%s9198_s1 + $0x5c8] sm:$0xff]  }
  0x74   :  { %6377 = vmatpush3.bf16.msra.mxu0 %v7066_v4  ;;  %v7126_v4 = vld [vmem:[%s9198_s1 + $0x508] sm:$0xff]  }
  0x75   :  { %6399 = vmatpush3.bf16.msra.mxu1 %v7067_v5  ;;  %6378 = vmatprep.subr.bf16.mxu0 %v7068_v6  ;;  %v7127_v5 = vld [vmem:[%s9198_s1 + $0x588] sm:$0xff]   ;;  %v7128_v6 = vld [vmem:[%s9198_s1 + $0x550] sm:$0xff]  }
  0x76   :  { %6400 = vmatprep.subr.bf16.mxu1 %v7069_v7  ;;  %v7129_v7 = vld [vmem:[%s9198_s1 + $0x5d0] sm:$0xff]  }
  0x78   :  { %6379 = vmatpush3.bf16.msra.mxu0 %v7070_v8  ;;  %v7130_v8 = vld [vmem:[%s9198_s1 + $0x510] sm:$0xff]  }
  0x79   :  { %6401 = vmatpush3.bf16.msra.mxu1 %v7071_v9  ;;  %6380 = vmatprep.subr.bf16.mxu0 %v7072_v10  ;;  %v7131_v9 = vld [vmem:[%s9198_s1 + $0x590] sm:$0xff]   ;;  %v7132_v10 = vld [vmem:[%s9198_s1 + $0x558] sm:$0xff]  }
  0x7a   :  { %6402 = vmatprep.subr.bf16.mxu1 %v7073_v11  ;;  %v7133_v11 = vld [vmem:[%s9198_s1 + $0x5d8] sm:$0xff]  }
  0x7c   :  { %6381 = vmatpush3.bf16.msra.mxu0 %v7074_v12  ;;  %v7134_v12 = vld [vmem:[%s9198_s1 + $0x518] sm:$0xff]  }
  0x7d   :  { %6403 = vmatpush3.bf16.msra.mxu1 %v7075_v13  ;;  %6382 = vmatprep.subr.bf16.mxu0 %v7076_v14  ;;  %v7135_v13 = vld [vmem:[%s9198_s1 + $0x598] sm:$0xff]   ;;  %v7136_v14 = vld [vmem:[%s9198_s1 + $0x560] sm:$0xff]  }
  0x7e   :  { %6404 = vmatprep.subr.bf16.mxu1 %v7077_v15  ;;  %v7137_v15 = vld [vmem:[%s9198_s1 + $0x5e0] sm:$0xff]  }
  0x80   :  { %6383 = vmatpush3.bf16.msra.mxu0 %v7078_v16  ;;  %v7138_v16 = vld [vmem:[%s9198_s1 + $0x520] sm:$0xff]  }
  0x81   :  { %6405 = vmatpush3.bf16.msra.mxu1 %v7079_v17  ;;  %6412 = vmatprep.subr.bf16.mxu0 %v7084_v23  ;;  %v7139_v17 = vld [vmem:[%s9198_s1 + $0x5a0] sm:$0xff]   ;;  %v7145_v23 = vld [vmem:[%s9198_s1 + $0x5f0] sm:$0xff]  }
  0x82   :  { %6434 = vmatprep.subr.bf16.mxu1 %v7085_v25  ;;  %v7147_v25 = vld [vmem:[%s9198_s1 + $0x5b0] sm:$0xff]  }
  0x83   :  { %4647 = vmatmul.mubr.bf16.vlgmr.msra.gmra.mrb[12].mxu0 %v5672_v20  ;;  %v7142_v20 = vld [vmem:[%s9198_s1 + $0x528] sm:$0xff]  }
  0x84   :  { %4687 = vmatmul.mubr.bf16.vlgmr.msra.gmra.mrb[12].mxu1 %v5674_v22  ;;  %6413 = vmatpush3.bf16.msra.mxu0 %v7086_v26  ;;  %v7144_v22 = vld [vmem:[%s9198_s1 + $0x570] sm:$0xff]   ;;  %v7148_v26 = vld [vmem:[%s9198_s1 + $0x578] sm:$0xff]  }
  0x85   :  { %6435 = vmatpush3.bf16.msra.mxu1 %v7087_v27  ;;  %6414 = vmatprep.subr.bf16.mxu0 %v7088_v28  ;;  %v7149_v27 = vld [vmem:[%s9198_s1 + $0x5f8] sm:$0xff]  }
  0x86   :  { %6436 = vmatprep.subr.bf16.mxu1 %v7089_v29  ;;  %4726 = vmatprep.mubr.bf16.mxu0 %v5677_v58  ;;  %v7150_v28 = vld [vmem:[%s9198_s1 + $0x538] sm:$0xff]   ;;  %v7178_v58 = vld [vmem:[%s9198_s1 + $0x628] sm:$0xff]  }
  0x87   :  { %4766 = vmatprep.mubr.bf16.mxu1 %v5679_v61  ;;  %v7151_v29 = vld [vmem:[%s9198_s1 + $0x5b8] sm:$0xff]   ;;  %v7181_v61 = vld [vmem:[%s9198_s1 + $0x6f0] sm:$0xff]  }
  0x88   :  { %6415 = vmatpush3.bf16.msra.mxu0 %v7090_v30  ;;  %v25_v30 = vld [vmem:[%s9199_s0 + $0x50] sm:$0xff] }
  0x89   :  { %6437 = vmatpush3.bf16.msra.mxu1 %v7091_v31  ;;  %6416 = vmatprep.subr.bf16.mxu0 %v7092_v32  ;;  %v26_v31 = vld [vmem:[%s9199_s0 + $0x58] sm:$0xff]  ;;  %v5680_v32 = vcombine.low %v25_v30, %v25_v30 }
  0x8a   :  { %6438 = vmatprep.subr.bf16.mxu1 %v7093_v33  ;;  %v5681_v33 = vcombine.high %v25_v30, %v25_v30  ;;  %v7211_v30 = vld [vmem:[%s9198_s1 + $0x7a0] sm:$0xff]  }
  0x8c   :  { %6417 = vmatpush3.bf16.msra.mxu0 %v7094_v34  ;;  %v5682_v34 = vcombine.low %v26_v31, %v26_v31 }
  0x8d   :  { %6439 = vmatpush3.bf16.msra.mxu1 %v7095_v35  ;;  %6418 = vmatprep.subr.bf16.mxu0 %v7096_v36  ;;  %v5683_v35 = vcombine.high %v26_v31, %v26_v31  ;;  %v7156_v36 = vld [vmem:[%s9198_s1 + $0x640] sm:$0xff]  }
  0x8e   :  { %6440 = vmatprep.subr.bf16.mxu1 %v7097_v37  ;;  %v7157_v37 = vld [vmem:[%s9198_s1 + $0x6c0] sm:$0xff]  }
  0x90   :  { %6419 = vmatpush3.bf16.msra.mxu0 %v7098_v38  ;;  %v7158_v38 = vld [vmem:[%s9198_s1 + $0x600] sm:$0xff]  }
  0x91   :  { %6441 = vmatpush3.bf16.msra.mxu1 %v7099_v39  ;;  %6420 = vmatprep.subr.bf16.mxu0 %v7100_v40  ;;  %v7159_v39 = vld [vmem:[%s9198_s1 + $0x680] sm:$0xff]   ;;  %v7160_v40 = vld [vmem:[%s9198_s1 + $0x648] sm:$0xff]  }
  0x92   :  { %6442 = vmatprep.subr.bf16.mxu1 %v7101_v41  ;;  %v7161_v41 = vld [vmem:[%s9198_s1 + $0x6c8] sm:$0xff]  }
  0x94   :  { %6421 = vmatpush3.bf16.msra.mxu0 %v7102_v42  ;;  %v7162_v42 = vld [vmem:[%s9198_s1 + $0x608] sm:$0xff]  }
  0x95   :  { %6443 = vmatpush3.bf16.msra.mxu1 %v7103_v43  ;;  %6422 = vmatprep.subr.bf16.mxu0 %v7104_v44  ;;  %v7163_v43 = vld [vmem:[%s9198_s1 + $0x688] sm:$0xff]   ;;  %v7164_v44 = vld [vmem:[%s9198_s1 + $0x650] sm:$0xff]  }
  0x96   :  { %6444 = vmatprep.subr.bf16.mxu1 %v7105_v45  ;;  %v7165_v45 = vld [vmem:[%s9198_s1 + $0x6d0] sm:$0xff]  }
  0x98   :  { %6423 = vmatpush3.bf16.msra.mxu0 %v7106_v46  ;;  %v7166_v46 = vld [vmem:[%s9198_s1 + $0x610] sm:$0xff]  }
  0x99   :  { %6445 = vmatpush3.bf16.msra.mxu1 %v7107_v47  ;;  %6424 = vmatprep.subr.bf16.mxu0 %v7108_v48  ;;  %v7167_v47 = vld [vmem:[%s9198_s1 + $0x690] sm:$0xff]   ;;  %v7168_v48 = vld [vmem:[%s9198_s1 + $0x658] sm:$0xff]  }
  0x9a   :  { %6446 = vmatprep.subr.bf16.mxu1 %v7109_v49  ;;  %v7169_v49 = vld [vmem:[%s9198_s1 + $0x6d8] sm:$0xff]  }
  0x9c   :  { %6425 = vmatpush3.bf16.msra.mxu0 %v7110_v50  ;;  %v7170_v50 = vld [vmem:[%s9198_s1 + $0x618] sm:$0xff]  }
  0x9d   :  { %6447 = vmatpush3.bf16.msra.mxu1 %v7111_v51  ;;  %6426 = vmatprep.subr.bf16.mxu0 %v7112_v52  ;;  %v7171_v51 = vld [vmem:[%s9198_s1 + $0x698] sm:$0xff]   ;;  %v7172_v52 = vld [vmem:[%s9198_s1 + $0x660] sm:$0xff]  }
  0x9e   :  { %6448 = vmatprep.subr.bf16.mxu1 %v7113_v53  ;;  %v7173_v53 = vld [vmem:[%s9198_s1 + $0x6e0] sm:$0xff]  }
  0xa0   :  { %6427 = vmatpush3.bf16.msra.mxu0 %v7114_v54  ;;  %v7174_v54 = vld [vmem:[%s9198_s1 + $0x620] sm:$0xff]  }
  0xa1   :  { %6449 = vmatpush3.bf16.msra.mxu1 %v7115_v55  ;;  %6456 = vmatprep.subr.bf16.mxu0 %v7120_v62  ;;  %v7175_v55 = vld [vmem:[%s9198_s1 + $0x6a0] sm:$0xff]   ;;  %v7182_v62 = vld [vmem:[%s9198_s1 + $0x630] sm:$0xff]  }
  0xa2   :  { %6478 = vmatprep.subr.bf16.mxu1 %v7121_v63  ;;  %v7183_v63 = vld [vmem:[%s9198_s1 + $0x6b0] sm:$0xff]  }
  0xa3   :  { %4727 = vmatmul.mubr.bf16.vlgmr.msra.gmra.mrb[16].mxu0 %v5676_v57  ;;  %v7177_v57 = vld [vmem:[%s9198_s1 + $0x6e8] sm:$0xff]  }
  0xa4   :  { %4767 = vmatmul.mubr.bf16.vlgmr.msra.gmra.mrb[16].mxu1 %v5678_v60  ;;  %6457 = vmatpush3.bf16.msra.mxu0 %v7122_v0  ;;  %v7180_v60 = vld [vmem:[%s9198_s1 + $0x670] sm:$0xff]   ;;  %v7184_v0 = vld [vmem:[%s9198_s1 + $0x678] sm:$0xff]  }
  0xa5   :  { %6479 = vmatpush3.bf16.msra.mxu1 %v7123_v1  ;;  %6458 = vmatprep.subr.bf16.mxu0 %v7124_v2  ;;  %v7185_v1 = vld [vmem:[%s9198_s1 + $0x6f8] sm:$0xff]  }
  0xa6   :  { %6480 = vmatprep.subr.bf16.mxu1 %v7125_v3  ;;  %4806 = vmatprep.mubr.bf16.mxu0 %v5681_v33  ;;  %v7186_v2 = vld [vmem:[%s9198_s1 + $0x638] sm:$0xff]  }
  0xa7   :  { %4846 = vmatprep.mubr.bf16.mxu1 %v5683_v35  ;;  %v7187_v3 = vld [vmem:[%s9198_s1 + $0x6b8] sm:$0xff]  }
  0xa8   :  { %6459 = vmatpush3.bf16.msra.mxu0 %v7126_v4  ;;  %v27_v4 = vld [vmem:[%s9199_s0 + $0x60] sm:$0xff] }
  0xa9   :  { %6481 = vmatpush3.bf16.msra.mxu1 %v7127_v5  ;;  %6460 = vmatprep.subr.bf16.mxu0 %v7128_v6  ;;  %v28_v5 = vld [vmem:[%s9199_s0 + $0x68] sm:$0xff]  ;;  %v5684_v6 = vcombine.low %v27_v4, %v27_v4 }
  0xaa   :  { %6482 = vmatprep.subr.bf16.mxu1 %v7129_v7  ;;  %v5685_v7 = vcombine.high %v27_v4, %v27_v4  ;;  %v7235_v4 = vld [vmem:[%s9198_s1 + $0x888] sm:$0xff]  }
  0xac   :  { %6461 = vmatpush3.bf16.msra.mxu0 %v7130_v8  ;;  %v5686_v8 = vcombine.low %v28_v5, %v28_v5 }
  0xad   :  { %6483 = vmatpush3.bf16.msra.mxu1 %v7131_v9  ;;  %6462 = vmatprep.subr.bf16.mxu0 %v7132_v10  ;;  %v7192_v9 = vld [vmem:[%s9198_s1 + $0x740] sm:$0xff]   ;;  %v5687_v10 = vcombine.high %v28_v5, %v28_v5  ;;  %v7236_v5 = vld [vmem:[%s9198_s1 + $0x850] sm:$0xff]  }
  0xae   :  { %6484 = vmatprep.subr.bf16.mxu1 %v7133_v11  ;;  %v7193_v11 = vld [vmem:[%s9198_s1 + $0x7c0] sm:$0xff]  }
  0xb0   :  { %6463 = vmatpush3.bf16.msra.mxu0 %v7134_v12  ;;  %v7194_v12 = vld [vmem:[%s9198_s1 + $0x700] sm:$0xff]  }
  0xb1   :  { %6485 = vmatpush3.bf16.msra.mxu1 %v7135_v13  ;;  %6464 = vmatprep.subr.bf16.mxu0 %v7136_v14  ;;  %v7195_v13 = vld [vmem:[%s9198_s1 + $0x780] sm:$0xff]   ;;  %v7196_v14 = vld [vmem:[%s9198_s1 + $0x748] sm:$0xff]  }
  0xb2   :  { %6486 = vmatprep.subr.bf16.mxu1 %v7137_v15  ;;  %v7197_v15 = vld [vmem:[%s9198_s1 + $0x7c8] sm:$0xff]  }
  0xb4   :  { %6465 = vmatpush3.bf16.msra.mxu0 %v7138_v16  ;;  %v7198_v16 = vld [vmem:[%s9198_s1 + $0x708] sm:$0xff]  }
  0xb5   :  { %6487 = vmatpush3.bf16.msra.mxu1 %v7139_v17  ;;  %6466 = vmatprep.subr.bf16.mxu0 %v7140_v18  ;;  %v7199_v17 = vld [vmem:[%s9198_s1 + $0x788] sm:$0xff]   ;;  %v7200_v18 = vld [vmem:[%s9198_s1 + $0x750] sm:$0xff]  }
  0xb6   :  { %6488 = vmatprep.subr.bf16.mxu1 %v7141_v19  ;;  %v7201_v19 = vld [vmem:[%s9198_s1 + $0x7d0] sm:$0xff]  }
  0xb8   :  { %6467 = vmatpush3.bf16.msra.mxu0 %v7142_v20  ;;  %v7202_v20 = vld [vmem:[%s9198_s1 + $0x710] sm:$0xff]  }
  0xb9   :  { %6489 = vmatpush3.bf16.msra.mxu1 %v7143_v21  ;;  %6468 = vmatprep.subr.bf16.mxu0 %v7144_v22  ;;  %v7203_v21 = vld [vmem:[%s9198_s1 + $0x790] sm:$0xff]   ;;  %v7204_v22 = vld [vmem:[%s9198_s1 + $0x758] sm:$0xff]  }
  0xba   :  { %6490 = vmatprep.subr.bf16.mxu1 %v7145_v23  ;;  %v7205_v23 = vld [vmem:[%s9198_s1 + $0x7d8] sm:$0xff]  }
  0xbc   :  { %6469 = vmatpush3.bf16.msra.mxu0 %v7146_v24  ;;  %v7206_v24 = vld [vmem:[%s9198_s1 + $0x718] sm:$0xff]  }
  0xbd   :  { %6491 = vmatpush3.bf16.msra.mxu1 %v7147_v25  ;;  %6470 = vmatprep.subr.bf16.mxu0 %v7148_v26  ;;  %v7207_v25 = vld [vmem:[%s9198_s1 + $0x798] sm:$0xff]   ;;  %v7208_v26 = vld [vmem:[%s9198_s1 + $0x760] sm:$0xff]  }
  0xbe   :  { %6492 = vmatprep.subr.bf16.mxu1 %v7149_v27  ;;  %v7209_v27 = vld [vmem:[%s9198_s1 + $0x7e0] sm:$0xff]  }
  0xc0   :  { %6471 = vmatpush3.bf16.msra.mxu0 %v7150_v28  ;;  %v7210_v28 = vld [vmem:[%s9198_s1 + $0x720] sm:$0xff]  }
  0xc1   :  { %6493 = vmatpush3.bf16.msra.mxu1 %v7151_v29  ;;  %6500 = vmatprep.subr.bf16.mxu0 %v7156_v36 }
  0xc2   :  { %6522 = vmatprep.subr.bf16.mxu1 %v7157_v37  ;;  %v7212_v37 = vld [vmem:[%s9198_s1 + $0x768] sm:$0xff]  }
  0xc3   :  { %4807 = vmatmul.mubr.bf16.vlgmr.msra.gmra.mrb[20].mxu0 %v5680_v32  ;;  %v5659_v32 = vld [vmem:[%s9200_s2] ss:$0 sm:$0xff] }
  0xc4   :  { %4847 = vmatmul.mubr.bf16.vlgmr.msra.gmra.mrb[20].mxu1 %v5682_v34  ;;  %6501 = vmatpush3.bf16.msra.mxu0 %v7158_v38 }
  0xc5   :  { %6523 = vmatpush3.bf16.msra.mxu1 %v7159_v39  ;;  %6502 = vmatprep.subr.bf16.mxu0 %v7160_v40  ;;  %v7213_v39 = vld [vmem:[%s9198_s1 + $0x7e8] sm:$0xff]  }
  0xc6   :  { %6524 = vmatprep.subr.bf16.mxu1 %v7161_v41  ;;  %4886 = vmatprep.mubr.bf16.mxu0 %v5685_v7  ;;  %v7238_v7 = vld [vmem:[%s9198_s1 + $0x810] sm:$0xff]  }
  0xc7   :  { %4926 = vmatprep.mubr.bf16.mxu1 %v5687_v10  ;;  %v7241_v10 = vld [vmem:[%s9198_s1 + $0x8d8] sm:$0xff]  }
  0xc8   :  { %6503 = vmatpush3.bf16.msra.mxu0 %v7162_v42  ;;  %v7214_v42 = vld [vmem:[%s9198_s1 + $0x728] sm:$0xff]  }
  0xc9   :  { %6525 = vmatpush3.bf16.msra.mxu1 %v7163_v43  ;;  %6504 = vmatprep.subr.bf16.mxu0 %v7164_v44  ;;  %v7215_v44 = vld [vmem:[%s9198_s1 + $0x7a8] sm:$0xff]  }
  0xca   :  { %6526 = vmatprep.subr.bf16.mxu1 %v7165_v45 }
  0xcc   :  { %6505 = vmatpush3.bf16.msra.mxu0 %v7166_v46 }
  0xcd   :  { %6527 = vmatpush3.bf16.msra.mxu1 %v7167_v47  ;;  %6506 = vmatprep.subr.bf16.mxu0 %v7168_v48  ;;  %v7216_v47 = vld [vmem:[%s9198_s1 + $0x770] sm:$0xff]  }
  0xce   :  { %6528 = vmatprep.subr.bf16.mxu1 %v7169_v49  ;;  %v7217_v48 = vld [vmem:[%s9198_s1 + $0x7f0] sm:$0xff]  }
  0xcf   :  { %v7218_v49 = vld [vmem:[%s9198_s1 + $0x730] sm:$0xff]  }
  0xd0   :  { %6507 = vmatpush3.bf16.msra.mxu0 %v7170_v50  ;;  %v7219_v50 = vld [vmem:[%s9198_s1 + $0x7b0] sm:$0xff]  }
  0xd1   :  { %6529 = vmatpush3.bf16.msra.mxu1 %v7171_v51  ;;  %6508 = vmatprep.subr.bf16.mxu0 %v7172_v52  ;;  %v7220_v51 = vld [vmem:[%s9198_s1 + $0x778] sm:$0xff]  }
  0xd2   :  { %6530 = vmatprep.subr.bf16.mxu1 %v7173_v53  ;;  %v7221_v52 = vld [vmem:[%s9198_s1 + $0x7f8] sm:$0xff]  }
  0xd3   :  { %v7222_v53 = vld [vmem:[%s9198_s1 + $0x738] sm:$0xff]  }
  0xd4   :  { %6509 = vmatpush3.bf16.msra.mxu0 %v7174_v54  ;;  %v7223_v54 = vld [vmem:[%s9198_s1 + $0x7b8] sm:$0xff]  }
  0xd5   :  { %6531 = vmatpush3.bf16.msra.mxu1 %v7175_v55  ;;  %6510 = vmatprep.subr.bf16.mxu0 %v7176_v56  ;;  %v29_v55 = vld [vmem:[%s9199_s0 + $0x70] sm:$0xff]  ;;  %v30_v56 = vld [vmem:[%s9199_s0 + $0x78] sm:$0xff] }
  0xd6   :  { %6532 = vmatprep.subr.bf16.mxu1 %v7177_v57  ;;  %v5688_v57 = vcombine.low %v29_v55, %v29_v55 }
  0xd8   :  { %6511 = vmatpush3.bf16.msra.mxu0 %v7178_v58  ;;  %v5689_v58 = vcombine.high %v29_v55, %v29_v55  ;;  %v7272_v55 = vld [vmem:[%s9198_s1 + $0x950] sm:$0xff]  }
  0xd9   :  { %6533 = vmatpush3.bf16.msra.mxu1 %v7179_v59  ;;  %6512 = vmatprep.subr.bf16.mxu0 %v7180_v60  ;;  %v5690_v59 = vcombine.low %v30_v56, %v30_v56  ;;  %v5691_v60 = vcombine.high %v30_v56, %v30_v56  ;;  %v7273_v56 = vld [vmem:[%s9198_s1 + $0x9d0] sm:$0xff]  }
  0xda   :  { %6534 = vmatprep.subr.bf16.mxu1 %v7181_v61  ;;  %v7228_v61 = vld [vmem:[%s9198_s1 + $0x840] sm:$0xff]  }
  0xdc   :  { %6513 = vmatpush3.bf16.msra.mxu0 %v7182_v62  ;;  %v7229_v62 = vld [vmem:[%s9198_s1 + $0x8c0] sm:$0xff]  }
  0xdd   :  { %6535 = vmatpush3.bf16.msra.mxu1 %v7183_v63  ;;  %6514 = vmatprep.subr.bf16.mxu0 %v7184_v0  ;;  %v7230_v63 = vld [vmem:[%s9198_s1 + $0x800] sm:$0xff]  }
  0xde   :  { %6536 = vmatprep.subr.bf16.mxu1 %v7185_v1  ;;  %v7231_v0 = vld [vmem:[%s9198_s1 + $0x880] sm:$0xff]   ;;  %v7232_v1 = vld [vmem:[%s9198_s1 + $0x848] sm:$0xff]  }
  0xe0   :  { %6515 = vmatpush3.bf16.msra.mxu0 %v7186_v2  ;;  %v7233_v2 = vld [vmem:[%s9198_s1 + $0x8c8] sm:$0xff]  }
  0xe1   :  { %6537 = vmatpush3.bf16.msra.mxu1 %v7187_v3  ;;  %6544 = vmatprep.subr.bf16.mxu0 %v7192_v9  ;;  %v7234_v3 = vld [vmem:[%s9198_s1 + $0x808] sm:$0xff]   ;;  %v7240_v9 = vld [vmem:[%s9198_s1 + $0x858] sm:$0xff]  }
  0xe2   :  { %6566 = vmatprep.subr.bf16.mxu1 %v7193_v11  ;;  %v7242_v11 = vld [vmem:[%s9198_s1 + $0x818] sm:$0xff]  }
  0xe3   :  { %4887 = vmatmul.mubr.bf16.vlgmr.msra.gmra.mrb[24].mxu0 %v5684_v6  ;;  %v7237_v6 = vld [vmem:[%s9198_s1 + $0x8d0] sm:$0xff]  }
  0xe4   :  { %4927 = vmatmul.mubr.bf16.vlgmr.msra.gmra.mrb[24].mxu1 %v5686_v8  ;;  %6545 = vmatpush3.bf16.msra.mxu0 %v7194_v12  ;;  %v7239_v8 = vld [vmem:[%s9198_s1 + $0x890] sm:$0xff]   ;;  %v7243_v12 = vld [vmem:[%s9198_s1 + $0x898] sm:$0xff]  }
  0xe5   :  { %6567 = vmatpush3.bf16.msra.mxu1 %v7195_v13  ;;  %6546 = vmatprep.subr.bf16.mxu0 %v7196_v14  ;;  %v7244_v13 = vld [vmem:[%s9198_s1 + $0x860] sm:$0xff]  }
  0xe6   :  { %6568 = vmatprep.subr.bf16.mxu1 %v7197_v15  ;;  %4966 = vmatprep.mubr.bf16.mxu0 %v5689_v58  ;;  %v7245_v14 = vld [vmem:[%s9198_s1 + $0x8e0] sm:$0xff]   ;;  %v7275_v58 = vld [vmem:[%s9198_s1 + $0x990] sm:$0xff]  }
  0xe7   :  { %5006 = vmatprep.mubr.bf16.mxu1 %v5691_v60  ;;  %v7246_v15 = vld [vmem:[%s9198_s1 + $0x820] sm:$0xff]   ;;  %v7277_v60 = vld [vmem:[%s9198_s1 + $0x9d8] sm:$0xff]  }
  0xe8   :  { %6547 = vmatpush3.bf16.msra.mxu0 %v7198_v16 }
  0xe9   :  { %6569 = vmatpush3.bf16.msra.mxu1 %v7199_v17  ;;  %6548 = vmatprep.subr.bf16.mxu0 %v7200_v18  ;;  %v7247_v17 = vld [vmem:[%s9198_s1 + $0x8a0] sm:$0xff]  }
  0xea   :  { %6570 = vmatprep.subr.bf16.mxu1 %v7201_v19 }
  0xec   :  { %6549 = vmatpush3.bf16.msra.mxu0 %v7202_v20 }
  0xed   :  { %6571 = vmatpush3.bf16.msra.mxu1 %v7203_v21  ;;  %6550 = vmatprep.subr.bf16.mxu0 %v7204_v22 }
  0xee   :  { %6572 = vmatprep.subr.bf16.mxu1 %v7205_v23  ;;  %v7248_v23 = vld [vmem:[%s9198_s1 + $0x868] sm:$0xff]  }
  0xf0   :  { %6551 = vmatpush3.bf16.msra.mxu0 %v7206_v24 }
  0xf1   :  { %6573 = vmatpush3.bf16.msra.mxu1 %v7207_v25  ;;  %6552 = vmatprep.subr.bf16.mxu0 %v7208_v26  ;;  %v7249_v25 = vld [vmem:[%s9198_s1 + $0x8e8] sm:$0xff]  }
  0xf2   :  { %6574 = vmatprep.subr.bf16.mxu1 %v7209_v27 }
  0xf4   :  { %6553 = vmatpush3.bf16.msra.mxu0 %v7210_v28  ;;  %v7250_v28 = vld [vmem:[%s9198_s1 + $0x828] sm:$0xff]  }
  0xf5   :  { %6575 = vmatpush3.bf16.msra.mxu1 %v7211_v30  ;;  %6554 = vmatprep.subr.bf16.mxu0 %v7212_v37  ;;  %v7251_v30 = vld [vmem:[%s9198_s1 + $0x8a8] sm:$0xff]   ;;  %v7256_v37 = vld [vmem:[%s9198_s1 + $0x878] sm:$0xff]  }
  0xf6   :  { %v6252_v29 = vpop.f32.mrb[0].mxu0  ;;  %6576 = vmatprep.subr.bf16.mxu1 %v7213_v39  ;;  %v7258_v39 = vld [vmem:[%s9198_s1 + $0x838] sm:$0xff]  }
  0xf7   :  { %v6274_v31 = vpop.f32.mrb[0].mxu1  ;;  %v6253_v33 = vpop.f32.mrb[1].mxu0 }
  0xf8   :  { %v6275_v34 = vpop.f32.mrb[1].mxu1  ;;  %v6254_v35 = vadd.f32 %v6253_v33, %v6252_v29  ;;  %v6255_v38 = vpop.f32.mrb[2].mxu0  ;;  %6555 = vmatpush3.bf16.msra.mxu0 %v7214_v42  ;;  %v7252_v33 = vld [vmem:[%s9198_s1 + $0x870] sm:$0xff]   ;;  %v32_v42 = vld [vmem:[%s9199_s0 + $0x88] sm:$0xff] }
  0xf9   :  { %v6276_v36 = vadd.f32 %v6275_v34, %v6274_v31  ;;  %v6277_v40 = vpop.f32.mrb[2].mxu1  ;;  %v6256_v43 = vpop.f32.mrb[3].mxu0  ;;  %6577 = vmatpush3.bf16.msra.mxu1 %v7215_v44  ;;  %6556 = vmatprep.subr.bf16.mxu0 %v7216_v47  ;;  %v7253_v34 = vld [vmem:[%s9198_s1 + $0x8f0] sm:$0xff]   ;;  %v7257_v38 = vld [vmem:[%s9198_s1 + $0x8f8] sm:$0xff]   ;;  %v7264_v47 = vld [vmem:[%s9198_s1 + $0x940] sm:$0xff]  }
  0xfa   :  { %v4409_v41 = vadd.f32 %v6254_v35, %v5659_v32  ;;  %v6278_v45 = vpop.f32.mrb[3].mxu1  ;;  %6578 = vmatprep.subr.bf16.mxu1 %v7217_v48  ;;  %v7254_v35 = vld [vmem:[%s9198_s1 + $0x830] sm:$0xff]   ;;  %v7259_v40 = vld [vmem:[%s9198_s1 + $0x8b8] sm:$0xff]   ;;  %v7265_v48 = vld [vmem:[%s9198_s1 + $0x9c0] sm:$0xff]  }
  0xfb   :  { %v5694_v45 = vcombine.low %v32_v42, %v32_v42 }
  0xfc   :  { %v8325_v46 = vadd.f32 %v6276_v36, %v4409_v41  ;;  %6557 = vmatpush3.bf16.msra.mxu0 %v7218_v49  ;;  %v7255_v36 = vld [vmem:[%s9198_s1 + $0x8b0] sm:$0xff]   ;;  %v31_v41 = vld [vmem:[%s9199_s0 + $0x80] sm:$0xff] }
  0xfd   :  { %6579 = vmatpush3.bf16.msra.mxu1 %v7219_v50  ;;  %6558 = vmatprep.subr.bf16.mxu0 %v7220_v51  ;;  %v5692_v43 = vcombine.low %v31_v41, %v31_v41  ;;  %v5693_v44 = vcombine.high %v31_v41, %v31_v41  ;;  %v7266_v49 = vld [vmem:[%s9198_s1 + $0x900] sm:$0xff]   ;;  %v7268_v51 = vld [vmem:[%s9198_s1 + $0x948] sm:$0xff]   ;;  %v7308_v41 = vld [vmem:[%s9198_s1 + $0xa50] sm:$0xff]  }
  0xfe   :  { %6580 = vmatprep.subr.bf16.mxu1 %v7221_v52  ;;  %v7267_v50 = vld [vmem:[%s9198_s1 + $0x980] sm:$0xff]   ;;  %v7269_v52 = vld [vmem:[%s9198_s1 + $0x9c8] sm:$0xff]  }
 0x100   :  { %6559 = vmatpush3.bf16.msra.mxu0 %v7222_v53  ;;  %v7270_v53 = vld [vmem:[%s9198_s1 + $0x908] sm:$0xff]  }
 0x101   :  { %6581 = vmatpush3.bf16.msra.mxu1 %v7223_v54  ;;  %6588 = vmatprep.subr.bf16.mxu0 %v7228_v61  ;;  %v7271_v54 = vld [vmem:[%s9198_s1 + $0x988] sm:$0xff]   ;;  %v7278_v61 = vld [vmem:[%s9198_s1 + $0x918] sm:$0xff]  }
 0x102   :  { %6610 = vmatprep.subr.bf16.mxu1 %v7229_v62  ;;  %v7279_v62 = vld [vmem:[%s9198_s1 + $0x998] sm:$0xff]  }
 0x103   :  { %4967 = vmatmul.mubr.bf16.vlgmr.msra.gmra.mrb[28].mxu0 %v5688_v57  ;;  %v7274_v57 = vld [vmem:[%s9198_s1 + $0x910] sm:$0xff]  }
 0x104   :  { %5007 = vmatmul.mubr.bf16.vlgmr.msra.gmra.mrb[28].mxu1 %v5690_v59  ;;  %6589 = vmatpush3.bf16.msra.mxu0 %v7230_v63  ;;  %v7276_v59 = vld [vmem:[%s9198_s1 + $0x958] sm:$0xff]   ;;  %v7280_v63 = vld [vmem:[%s9198_s1 + $0x960] sm:$0xff]  }
 0x105   :  { %6611 = vmatpush3.bf16.msra.mxu1 %v7231_v0  ;;  %6590 = vmatprep.subr.bf16.mxu0 %v7232_v1  ;;  %v7281_v0 = vld [vmem:[%s9198_s1 + $0x9e0] sm:$0xff]  }
 0x106   :  { %6612 = vmatprep.subr.bf16.mxu1 %v7233_v2  ;;  %5046 = vmatprep.mubr.bf16.mxu0 %v5693_v44  ;;  %v7282_v2 = vld [vmem:[%s9198_s1 + $0x920] sm:$0xff]   ;;  %v7311_v44 = vld [vmem:[%s9198_s1 + $0xa90] sm:$0xff]  }
 0x108   :  { %6591 = vmatpush3.bf16.msra.mxu0 %v7234_v3 }
 0x109   :  { %6613 = vmatpush3.bf16.msra.mxu1 %v7235_v4  ;;  %6592 = vmatprep.subr.bf16.mxu0 %v7236_v5  ;;  %v7283_v4 = vld [vmem:[%s9198_s1 + $0x9a0] sm:$0xff]  }
 0x10a   :  { %6614 = vmatprep.subr.bf16.mxu1 %v7237_v6 }
 0x10c   :  { %6593 = vmatpush3.bf16.msra.mxu0 %v7238_v7 }
 0x10d   :  { %6615 = vmatpush3.bf16.msra.mxu1 %v7239_v8  ;;  %6594 = vmatprep.subr.bf16.mxu0 %v7240_v9  ;;  %v7284_v8 = vld [vmem:[%s9198_s1 + $0x968] sm:$0xff]  }
 0x10e   :  { %6616 = vmatprep.subr.bf16.mxu1 %v7241_v10  ;;  %v7285_v10 = vld [vmem:[%s9198_s1 + $0x9e8] sm:$0xff]  }
 0x110   :  { %6595 = vmatpush3.bf16.msra.mxu0 %v7242_v11 }
 0x111   :  { %6617 = vmatpush3.bf16.msra.mxu1 %v7243_v12  ;;  %6596 = vmatprep.subr.bf16.mxu0 %v7244_v13 }
 0x112   :  { %6618 = vmatprep.subr.bf16.mxu1 %v7245_v14  ;;  %v7286_v14 = vld [vmem:[%s9198_s1 + $0x928] sm:$0xff]  }
 0x114   :  { %6597 = vmatpush3.bf16.msra.mxu0 %v7246_v15  ;;  %v7287_v15 = vld [vmem:[%s9198_s1 + $0x9a8] sm:$0xff]  }
 0x115   :  { %6619 = vmatpush3.bf16.msra.mxu1 %v7247_v17  ;;  %6598 = vmatprep.subr.bf16.mxu0 %v7248_v23  ;;  %v7292_v23 = vld [vmem:[%s9198_s1 + $0x978] sm:$0xff]  }
 0x116   :  { %v6296_v16 = vpop.f32.mrb[4].mxu0  ;;  %6620 = vmatprep.subr.bf16.mxu1 %v7249_v25  ;;  %v7294_v25 = vld [vmem:[%s9198_s1 + $0x938] sm:$0xff]  }
 0x117   :  { %v6318_v18 = vpop.f32.mrb[4].mxu1  ;;  %v6297_v19 = vpop.f32.mrb[5].mxu0 }
 0x118   :  { %v6319_v20 = vpop.f32.mrb[5].mxu1  ;;  %v6298_v21 = vadd.f32 %v6297_v19, %v6296_v16  ;;  %v6299_v24 = vpop.f32.mrb[6].mxu0  ;;  %6599 = vmatpush3.bf16.msra.mxu0 %v7250_v28  ;;  %v7288_v19 = vld [vmem:[%s9198_s1 + $0x970] sm:$0xff]   ;;  %v34_v28 = vld [vmem:[%s9199_s0 + $0x98] sm:$0xff] }
 0x119   :  { %v6320_v22 = vadd.f32 %v6319_v20, %v6318_v18  ;;  %v6321_v26 = vpop.f32.mrb[6].mxu1  ;;  %v6300_v29 = vpop.f32.mrb[7].mxu0  ;;  %6621 = vmatpush3.bf16.msra.mxu1 %v7251_v30  ;;  %6600 = vmatprep.subr.bf16.mxu0 %v7252_v33  ;;  %v7289_v20 = vld [vmem:[%s9198_s1 + $0x9f0] sm:$0xff]   ;;  %v7293_v24 = vld [vmem:[%s9198_s1 + $0x9f8] sm:$0xff]   ;;  %v5699_v33 = vcombine.high %v34_v28, %v34_v28 }
 0x11a   :  { %v4489_v27 = vadd.f32 %v6298_v21, %v8325_v46  ;;  %v6322_v31 = vpop.f32.mrb[7].mxu1  ;;  %6622 = vmatprep.subr.bf16.mxu1 %v7253_v34  ;;  %v5695_v46 = vcombine.high %v32_v42, %v32_v42  ;;  %v7290_v21 = vld [vmem:[%s9198_s1 + $0x930] sm:$0xff]   ;;  %v7295_v26 = vld [vmem:[%s9198_s1 + $0x9b8] sm:$0xff]   ;;  %v7301_v34 = vld [vmem:[%s9198_s1 + $0xac0] sm:$0xff]  }
 0x11b   :  { %v5698_v31 = vcombine.low %v34_v28, %v34_v28  ;;  %v7309_v42 = vld [vmem:[%s9198_s1 + $0xad0] sm:$0xff]  }
 0x11c   :  { %v8430_v32 = vadd.f32 %v6320_v22, %v4489_v27  ;;  %6601 = vmatpush3.bf16.msra.mxu0 %v7254_v35  ;;  %5086 = vmatprep.mubr.bf16.mxu1 %v5695_v46  ;;  %v7291_v22 = vld [vmem:[%s9198_s1 + $0x9b0] sm:$0xff]   ;;  %v7302_v35 = vld [vmem:[%s9198_s1 + $0xa00] sm:$0xff]   ;;  %v7313_v46 = vld [vmem:[%s9198_s1 + $0xad8] sm:$0xff]  }
 0x11d   :  { %6623 = vmatpush3.bf16.msra.mxu1 %v7255_v36  ;;  %6602 = vmatprep.subr.bf16.mxu0 %v7256_v37  ;;  %v33_v27 = vld [vmem:[%s9199_s0 + $0x90] sm:$0xff]  ;;  %v7303_v36 = vld [vmem:[%s9198_s1 + $0xa80] sm:$0xff]   ;;  %v7304_v37 = vld [vmem:[%s9198_s1 + $0xa48] sm:$0xff]  }
 0x11e   :  { %6624 = vmatprep.subr.bf16.mxu1 %v7257_v38  ;;  %v5696_v29 = vcombine.low %v33_v27, %v33_v27  ;;  %v5697_v30 = vcombine.high %v33_v27, %v33_v27  ;;  %v7305_v38 = vld [vmem:[%s9198_s1 + $0xac8] sm:$0xff]   ;;  %v7344_v27 = vld [vmem:[%s9198_s1 + $0xb50] sm:$0xff]  }
 0x11f   :  { %v7345_v28 = vld [vmem:[%s9198_s1 + $0xbd0] sm:$0xff]  }
 0x120   :  { %6603 = vmatpush3.bf16.msra.mxu0 %v7258_v39  ;;  %v7306_v39 = vld [vmem:[%s9198_s1 + $0xa08] sm:$0xff]  }
 0x121   :  { %6625 = vmatpush3.bf16.msra.mxu1 %v7259_v40  ;;  %6632 = vmatprep.subr.bf16.mxu0 %v7264_v47  ;;  %v7307_v40 = vld [vmem:[%s9198_s1 + $0xa88] sm:$0xff]   ;;  %v7314_v47 = vld [vmem:[%s9198_s1 + $0xa18] sm:$0xff]  }
 0x122   :  { %6654 = vmatprep.subr.bf16.mxu1 %v7265_v48  ;;  %v7315_v48 = vld [vmem:[%s9198_s1 + $0xa98] sm:$0xff]  }
 0x123   :  { %5047 = vmatmul.mubr.bf16.vlgmr.msra.gmra.mrb[32].mxu0 %v5692_v43  ;;  %v7310_v43 = vld [vmem:[%s9198_s1 + $0xa10] sm:$0xff]  }
 0x124   :  { %5087 = vmatmul.mubr.bf16.vlgmr.msra.gmra.mrb[32].mxu1 %v5694_v45  ;;  %6633 = vmatpush3.bf16.msra.mxu0 %v7266_v49  ;;  %v7312_v45 = vld [vmem:[%s9198_s1 + $0xa58] sm:$0xff]   ;;  %v7316_v49 = vld [vmem:[%s9198_s1 + $0xa60] sm:$0xff]  }
 0x125   :  { %6655 = vmatpush3.bf16.msra.mxu1 %v7267_v50  ;;  %6634 = vmatprep.subr.bf16.mxu0 %v7268_v51  ;;  %v7317_v50 = vld [vmem:[%s9198_s1 + $0xae0] sm:$0xff]  }
 0x126   :  { %6656 = vmatprep.subr.bf16.mxu1 %v7269_v52  ;;  %5126 = vmatprep.mubr.bf16.mxu0 %v5697_v30  ;;  %v7318_v52 = vld [vmem:[%s9198_s1 + $0xa20] sm:$0xff]   ;;  %v7347_v30 = vld [vmem:[%s9198_s1 + $0xb90] sm:$0xff]  }
 0x127   :  { %5166 = vmatprep.mubr.bf16.mxu1 %v5699_v33  ;;  %v7350_v33 = vld [vmem:[%s9198_s1 + $0xb18] sm:$0xff]  }
 0x128   :  { %6635 = vmatpush3.bf16.msra.mxu0 %v7270_v53 }
 0x129   :  { %6657 = vmatpush3.bf16.msra.mxu1 %v7271_v54  ;;  %6636 = vmatprep.subr.bf16.mxu0 %v7272_v55  ;;  %v7319_v54 = vld [vmem:[%s9198_s1 + $0xaa0] sm:$0xff]  }
 0x12a   :  { %6658 = vmatprep.subr.bf16.mxu1 %v7273_v56 }
 0x12c   :  { %6637 = vmatpush3.bf16.msra.mxu0 %v7274_v57  ;;  %v7320_v57 = vld [vmem:[%s9198_s1 + $0xa68] sm:$0xff]  }
 0x12d   :  { %6659 = vmatpush3.bf16.msra.mxu1 %v7275_v58  ;;  %6638 = vmatprep.subr.bf16.mxu0 %v7276_v59 }
 0x12e   :  { %6660 = vmatprep.subr.bf16.mxu1 %v7277_v60  ;;  %v7321_v60 = vld [vmem:[%s9198_s1 + $0xae8] sm:$0xff]  }
 0x130   :  { %6639 = vmatpush3.bf16.msra.mxu0 %v7278_v61 }
 0x131   :  { %6661 = vmatpush3.bf16.msra.mxu1 %v7279_v62  ;;  %6640 = vmatprep.subr.bf16.mxu0 %v7280_v63  ;;  %v7322_v63 = vld [vmem:[%s9198_s1 + $0xa28] sm:$0xff]  }
 0x132   :  { %6662 = vmatprep.subr.bf16.mxu1 %v7281_v0 }
 0x134   :  { %6641 = vmatpush3.bf16.msra.mxu0 %v7282_v2 }
 0x135   :  { %6663 = vmatpush3.bf16.msra.mxu1 %v7283_v4  ;;  %6642 = vmatprep.subr.bf16.mxu0 %v7284_v8  ;;  %v7324_v4 = vld [vmem:[%s9198_s1 + $0xa70] sm:$0xff]  }
 0x136   :  { %v6340_v1 = vpop.f32.mrb[8].mxu0  ;;  %6664 = vmatprep.subr.bf16.mxu1 %v7285_v10  ;;  %v7327_v8 = vld [vmem:[%s9198_s1 + $0xab0] sm:$0xff]   ;;  %v7329_v10 = vld [vmem:[%s9198_s1 + $0xaf8] sm:$0xff]  }
 0x137   :  { %v6362_v3 = vpop.f32.mrb[8].mxu1  ;;  %v6341_v5 = vpop.f32.mrb[9].mxu0 }
 0x138   :  { %v6342_v6 = vadd.f32 %v6341_v5, %v6340_v1  ;;  %v6363_v7 = vpop.f32.mrb[9].mxu1  ;;  %v6343_v11 = vpop.f32.mrb[10].mxu0  ;;  %6643 = vmatpush3.bf16.msra.mxu0 %v7286_v14  ;;  %v7323_v1 = vld [vmem:[%s9198_s1 + $0xaa8] sm:$0xff]  }
 0x139   :  { %v6364_v9 = vadd.f32 %v6363_v7, %v6362_v3  ;;  %v6365_v13 = vpop.f32.mrb[10].mxu1  ;;  %v6344_v16 = vpop.f32.mrb[11].mxu0  ;;  %6665 = vmatpush3.bf16.msra.mxu1 %v7287_v15  ;;  %6644 = vmatprep.subr.bf16.mxu0 %v7288_v19  ;;  %v7326_v7 = vld [vmem:[%s9198_s1 + $0xa30] sm:$0xff]   ;;  %v7330_v11 = vld [vmem:[%s9198_s1 + $0xa38] sm:$0xff]   ;;  %v7336_v19 = vld [vmem:[%s9198_s1 + $0xb40] sm:$0xff]  }
 0x13a   :  { %v4569_v12 = vadd.f32 %v6342_v6, %v8430_v32  ;;  %v6366_v18 = vpop.f32.mrb[11].mxu1  ;;  %6666 = vmatprep.subr.bf16.mxu1 %v7289_v20  ;;  %v7300_v32 = vld [vmem:[%s9198_s1 + $0xa40] sm:$0xff]   ;;  %v7325_v6 = vld [vmem:[%s9198_s1 + $0xaf0] sm:$0xff]   ;;  %v36_v16 = vld [vmem:[%s9199_s0 + $0xa8] sm:$0xff] }
 0x13b   :  { %v35_v13 = vld [vmem:[%s9199_s0 + $0xa0] sm:$0xff]  ;;  %v5703_v18 = vcombine.high %v36_v16, %v36_v16 }
 0x13c   :  { %v8535_v17 = vadd.f32 %v6364_v9, %v4569_v12  ;;  %6645 = vmatpush3.bf16.msra.mxu0 %v7290_v21  ;;  %v7328_v9 = vld [vmem:[%s9198_s1 + $0xa78] sm:$0xff]   ;;  %v5700_v14 = vcombine.low %v35_v13, %v35_v13  ;;  %v5701_v15 = vcombine.high %v35_v13, %v35_v13  ;;  %v7337_v20 = vld [vmem:[%s9198_s1 + $0xbc0] sm:$0xff]   ;;  %v7380_v13 = vld [vmem:[%s9198_s1 + $0xc50] sm:$0xff]  }
 0x13d   :  { %6667 = vmatpush3.bf16.msra.mxu1 %v7291_v22  ;;  %6646 = vmatprep.subr.bf16.mxu0 %v7292_v23  ;;  %v7331_v12 = vld [vmem:[%s9198_s1 + $0xab8] sm:$0xff]   ;;  %v7338_v21 = vld [vmem:[%s9198_s1 + $0xb00] sm:$0xff]   ;;  %v7340_v23 = vld [vmem:[%s9198_s1 + $0xb48] sm:$0xff]  }
 0x13e   :  { %6668 = vmatprep.subr.bf16.mxu1 %v7293_v24  ;;  %v7339_v22 = vld [vmem:[%s9198_s1 + $0xb80] sm:$0xff]   ;;  %v7341_v24 = vld [vmem:[%s9198_s1 + $0xbc8] sm:$0xff]  }
 0x140   :  { %6647 = vmatpush3.bf16.msra.mxu0 %v7294_v25  ;;  %v7342_v25 = vld [vmem:[%s9198_s1 + $0xb08] sm:$0xff]  }
 0x141   :  { %6669 = vmatpush3.bf16.msra.mxu1 %v7295_v26  ;;  %6676 = vmatprep.subr.bf16.mxu0 %v7300_v32  ;;  %v7343_v26 = vld [vmem:[%s9198_s1 + $0xb88] sm:$0xff]   ;;  %v7349_v32 = vld [vmem:[%s9198_s1 + $0xbd8] sm:$0xff]  }
 0x142   :  { %6698 = vmatprep.subr.bf16.mxu1 %v7301_v34  ;;  %v7351_v34 = vld [vmem:[%s9198_s1 + $0xb98] sm:$0xff]  }
 0x143   :  { %5127 = vmatmul.mubr.bf16.vlgmr.msra.gmra.mrb[36].mxu0 %v5696_v29  ;;  %v7346_v29 = vld [vmem:[%s9198_s1 + $0xb10] sm:$0xff]  }
 0x144   :  { %5167 = vmatmul.mubr.bf16.vlgmr.msra.gmra.mrb[36].mxu1 %v5698_v31  ;;  %6677 = vmatpush3.bf16.msra.mxu0 %v7302_v35  ;;  %v7348_v31 = vld [vmem:[%s9198_s1 + $0xb58] sm:$0xff]   ;;  %v7352_v35 = vld [vmem:[%s9198_s1 + $0xb60] sm:$0xff]  }
 0x145   :  { %6699 = vmatpush3.bf16.msra.mxu1 %v7303_v36  ;;  %6678 = vmatprep.subr.bf16.mxu0 %v7304_v37  ;;  %v7353_v36 = vld [vmem:[%s9198_s1 + $0xbe0] sm:$0xff]  }
 0x146   :  { %6700 = vmatprep.subr.bf16.mxu1 %v7305_v38  ;;  %5206 = vmatprep.mubr.bf16.mxu0 %v5701_v15  ;;  %v7354_v38 = vld [vmem:[%s9198_s1 + $0xb20] sm:$0xff]   ;;  %v7382_v15 = vld [vmem:[%s9198_s1 + $0xc10] sm:$0xff]  }
 0x147   :  { %5246 = vmatprep.mubr.bf16.mxu1 %v5703_v18  ;;  %v7385_v18 = vld [vmem:[%s9198_s1 + $0xcd8] sm:$0xff]  }
 0x148   :  { %6679 = vmatpush3.bf16.msra.mxu0 %v7306_v39 }
 0x149   :  { %6701 = vmatpush3.bf16.msra.mxu1 %v7307_v40  ;;  %6680 = vmatprep.subr.bf16.mxu0 %v7308_v41  ;;  %v7355_v40 = vld [vmem:[%s9198_s1 + $0xba0] sm:$0xff]  }
 0x14a   :  { %6702 = vmatprep.subr.bf16.mxu1 %v7309_v42 }
 0x14c   :  { %6681 = vmatpush3.bf16.msra.mxu0 %v7310_v43  ;;  %v7356_v43 = vld [vmem:[%s9198_s1 + $0xb68] sm:$0xff]  }
 0x14d   :  { %6703 = vmatpush3.bf16.msra.mxu1 %v7311_v44  ;;  %6682 = vmatprep.subr.bf16.mxu0 %v7312_v45 }
 0x14e   :  { %6704 = vmatprep.subr.bf16.mxu1 %v7313_v46  ;;  %v7357_v46 = vld [vmem:[%s9198_s1 + $0xbe8] sm:$0xff]  }
 0x150   :  { %6683 = vmatpush3.bf16.msra.mxu0 %v7314_v47 }
 0x151   :  { %6705 = vmatpush3.bf16.msra.mxu1 %v7315_v48  ;;  %6684 = vmatprep.subr.bf16.mxu0 %v7316_v49  ;;  %v7358_v49 = vld [vmem:[%s9198_s1 + $0xb28] sm:$0xff]  }
 0x152   :  { %6706 = vmatprep.subr.bf16.mxu1 %v7317_v50 }
 0x154   :  { %6685 = vmatpush3.bf16.msra.mxu0 %v7318_v52 }
 0x155   :  { %6707 = vmatpush3.bf16.msra.mxu1 %v7319_v54  ;;  %6686 = vmatprep.subr.bf16.mxu0 %v7320_v57  ;;  %v7360_v54 = vld [vmem:[%s9198_s1 + $0xb70] sm:$0xff]  }
 0x156   :  { %v6384_v51 = vpop.f32.mrb[12].mxu0  ;;  %6708 = vmatprep.subr.bf16.mxu1 %v7321_v60  ;;  %v7362_v57 = vld [vmem:[%s9198_s1 + $0xb30] sm:$0xff]   ;;  %v7365_v60 = vld [vmem:[%s9198_s1 + $0xbf8] sm:$0xff]  }
 0x157   :  { %v6406_v53 = vpop.f32.mrb[12].mxu1  ;;  %v6385_v55 = vpop.f32.mrb[13].mxu0 }
 0x158   :  { %v6407_v56 = vpop.f32.mrb[13].mxu1  ;;  %v6386_v58 = vadd.f32 %v6385_v55, %v6384_v51  ;;  %v6387_v61 = vpop.f32.mrb[14].mxu0  ;;  %6687 = vmatpush3.bf16.msra.mxu0 %v7322_v63  ;;  %v7359_v51 = vld [vmem:[%s9198_s1 + $0xba8] sm:$0xff]   ;;  %v37_v63 = vld [vmem:[%s9199_s0 + $0xb0] sm:$0xff] }
 0x159   :  { %v6408_v59 = vadd.f32 %v6407_v56, %v6406_v53  ;;  %v6409_v62 = vpop.f32.mrb[14].mxu1  ;;  %v6388_v2 = vpop.f32.mrb[15].mxu0  ;;  %6709 = vmatpush3.bf16.msra.mxu1 %v7323_v1  ;;  %6688 = vmatprep.subr.bf16.mxu0 %v7324_v4  ;;  %v7361_v56 = vld [vmem:[%s9198_s1 + $0xbf0] sm:$0xff]   ;;  %v7366_v61 = vld [vmem:[%s9198_s1 + $0xb38] sm:$0xff]   ;;  %v5704_v1 = vcombine.low %v37_v63, %v37_v63 }
 0x15a   :  { %v4649_v0 = vadd.f32 %v6386_v58, %v8535_v17  ;;  %v6410_v3 = vpop.f32.mrb[15].mxu1  ;;  %6710 = vmatprep.subr.bf16.mxu1 %v7325_v6  ;;  %v5702_v17 = vcombine.low %v36_v16, %v36_v16  ;;  %v7363_v58 = vld [vmem:[%s9198_s1 + $0xbb0] sm:$0xff]   ;;  %v7367_v62 = vld [vmem:[%s9198_s1 + $0xbb8] sm:$0xff]   ;;  %v5705_v2 = vcombine.high %v37_v63, %v37_v63  ;;  %v7373_v6 = vld [vmem:[%s9198_s1 + $0xcc0] sm:$0xff]  }
 0x15b   :  { %v7383_v16 = vld [vmem:[%s9198_s1 + $0xc90] sm:$0xff]  }
 0x15c   :  { %v8643_v5 = vadd.f32 %v6408_v59, %v4649_v0  ;;  %6689 = vmatpush3.bf16.msra.mxu0 %v7326_v7  ;;  %v7364_v59 = vld [vmem:[%s9198_s1 + $0xb78] sm:$0xff]   ;;  %v7374_v7 = vld [vmem:[%s9198_s1 + $0xc00] sm:$0xff]   ;;  %v7416_v63 = vld [vmem:[%s9198_s1 + $0xd50] sm:$0xff]  }
 0x15d   :  { %6711 = vmatpush3.bf16.msra.mxu1 %v7327_v8  ;;  %6690 = vmatprep.subr.bf16.mxu0 %v7328_v9  ;;  %v38_v0 = vld [vmem:[%s9199_s0 + $0xb8] sm:$0xff]  ;;  %v7375_v8 = vld [vmem:[%s9198_s1 + $0xc80] sm:$0xff]   ;;  %v7376_v9 = vld [vmem:[%s9198_s1 + $0xc48] sm:$0xff]  }
 0x15e   :  { %6712 = vmatprep.subr.bf16.mxu1 %v7329_v10  ;;  %v5706_v3 = vcombine.low %v38_v0, %v38_v0  ;;  %v5707_v4 = vcombine.high %v38_v0, %v38_v0  ;;  %v7377_v10 = vld [vmem:[%s9198_s1 + $0xcc8] sm:$0xff]   ;;  %v7417_v0 = vld [vmem:[%s9198_s1 + $0xdd0] sm:$0xff]  }
 0x160   :  { %6691 = vmatpush3.bf16.msra.mxu0 %v7330_v11  ;;  %v7378_v11 = vld [vmem:[%s9198_s1 + $0xc08] sm:$0xff]  }
 0x161   :  { %6713 = vmatpush3.bf16.msra.mxu1 %v7331_v12  ;;  %6720 = vmatprep.subr.bf16.mxu0 %v7336_v19  ;;  %v7379_v12 = vld [vmem:[%s9198_s1 + $0xc88] sm:$0xff]   ;;  %v7386_v19 = vld [vmem:[%s9198_s1 + $0xc18] sm:$0xff]  }
 0x162   :  { %6742 = vmatprep.subr.bf16.mxu1 %v7337_v20  ;;  %v7387_v20 = vld [vmem:[%s9198_s1 + $0xc98] sm:$0xff]  }
 0x163   :  { %5207 = vmatmul.mubr.bf16.vlgmr.msra.gmra.mrb[40].mxu0 %v5700_v14  ;;  %v7381_v14 = vld [vmem:[%s9198_s1 + $0xcd0] sm:$0xff]  }
 0x164   :  { %5247 = vmatmul.mubr.bf16.vlgmr.msra.gmra.mrb[40].mxu1 %v5702_v17  ;;  %6721 = vmatpush3.bf16.msra.mxu0 %v7338_v21  ;;  %v7384_v17 = vld [vmem:[%s9198_s1 + $0xc58] sm:$0xff]   ;;  %v7388_v21 = vld [vmem:[%s9198_s1 + $0xc60] sm:$0xff]  }
 0x165   :  { %6743 = vmatpush3.bf16.msra.mxu1 %v7339_v22  ;;  %6722 = vmatprep.subr.bf16.mxu0 %v7340_v23  ;;  %v7389_v22 = vld [vmem:[%s9198_s1 + $0xce0] sm:$0xff]  }
 0x166   :  { %6744 = vmatprep.subr.bf16.mxu1 %v7341_v24  ;;  %5286 = vmatprep.mubr.bf16.mxu0 %v5705_v2  ;;  %v7390_v24 = vld [vmem:[%s9198_s1 + $0xc20] sm:$0xff]   ;;  %v7419_v2 = vld [vmem:[%s9198_s1 + $0xd90] sm:$0xff]  }
 0x167   :  { %5326 = vmatprep.mubr.bf16.mxu1 %v5707_v4  ;;  %v7421_v4 = vld [vmem:[%s9198_s1 + $0xdd8] sm:$0xff]  }
 0x168   :  { %6723 = vmatpush3.bf16.msra.mxu0 %v7342_v25 }
 0x169   :  { %6745 = vmatpush3.bf16.msra.mxu1 %v7343_v26  ;;  %6724 = vmatprep.subr.bf16.mxu0 %v7344_v27  ;;  %v7391_v26 = vld [vmem:[%s9198_s1 + $0xca0] sm:$0xff]  }
 0x16a   :  { %6746 = vmatprep.subr.bf16.mxu1 %v7345_v28 }
 0x16c   :  { %6725 = vmatpush3.bf16.msra.mxu0 %v7346_v29 }
 0x16d   :  { %6747 = vmatpush3.bf16.msra.mxu1 %v7347_v30  ;;  %6726 = vmatprep.subr.bf16.mxu0 %v7348_v31  ;;  %v7392_v30 = vld [vmem:[%s9198_s1 + $0xc68] sm:$0xff]  }
 0x16e   :  { %6748 = vmatprep.subr.bf16.mxu1 %v7349_v32  ;;  %v7393_v32 = vld [vmem:[%s9198_s1 + $0xce8] sm:$0xff]  }
 0x170   :  { %6727 = vmatpush3.bf16.msra.mxu0 %v7350_v33 }
 0x171   :  { %6749 = vmatpush3.bf16.msra.mxu1 %v7351_v34  ;;  %6728 = vmatprep.subr.bf16.mxu0 %v7352_v35 }
 0x172   :  { %6750 = vmatprep.subr.bf16.mxu1 %v7353_v36  ;;  %v7394_v36 = vld [vmem:[%s9198_s1 + $0xc28] sm:$0xff]  }
 0x174   :  { %6729 = vmatpush3.bf16.msra.mxu0 %v7354_v38 }
 0x175   :  { %6751 = vmatpush3.bf16.msra.mxu1 %v7355_v40  ;;  %6730 = vmatprep.subr.bf16.mxu0 %v7356_v43  ;;  %v7398_v43 = vld [vmem:[%s9198_s1 + $0xc30] sm:$0xff]  }
 0x176   :  { %v6428_v37 = vpop.f32.mrb[16].mxu0  ;;  %6752 = vmatprep.subr.bf16.mxu1 %v7357_v46  ;;  %v7401_v46 = vld [vmem:[%s9198_s1 + $0xcf8] sm:$0xff]  }
 0x177   :  { %v6450_v39 = vpop.f32.mrb[16].mxu1  ;;  %v6429_v41 = vpop.f32.mrb[17].mxu0 }
 0x178   :  { %v6451_v42 = vpop.f32.mrb[17].mxu1  ;;  %v6430_v44 = vadd.f32 %v6429_v41, %v6428_v37  ;;  %v6431_v47 = vpop.f32.mrb[18].mxu0  ;;  %6731 = vmatpush3.bf16.msra.mxu0 %v7358_v49  ;;  %v7395_v37 = vld [vmem:[%s9198_s1 + $0xca8] sm:$0xff]   ;;  %v7396_v41 = vld [vmem:[%s9198_s1 + $0xc70] sm:$0xff]   ;;  %v39_v49 = vld [vmem:[%s9199_s0 + $0xc0] sm:$0xff] }
 0x179   :  { %v6452_v45 = vadd.f32 %v6451_v42, %v6450_v39  ;;  %v6453_v48 = vpop.f32.mrb[18].mxu1  ;;  %v6432_v52 = vpop.f32.mrb[19].mxu0  ;;  %6753 = vmatpush3.bf16.msra.mxu1 %v7359_v51  ;;  %6732 = vmatprep.subr.bf16.mxu0 %v7360_v54  ;;  %v7397_v42 = vld [vmem:[%s9198_s1 + $0xcf0] sm:$0xff]   ;;  %v7402_v47 = vld [vmem:[%s9198_s1 + $0xc38] sm:$0xff]   ;;  %v5708_v51 = vcombine.low %v39_v49, %v39_v49  ;;  %v7408_v54 = vld [vmem:[%s9198_s1 + $0xd40] sm:$0xff]  }
 0x17a   :  { %v4729_v50 = vadd.f32 %v6430_v44, %v8643_v5  ;;  %v6454_v53 = vpop.f32.mrb[19].mxu1  ;;  %6754 = vmatprep.subr.bf16.mxu1 %v7361_v56  ;;  %v7372_v5 = vld [vmem:[%s9198_s1 + $0xc40] sm:$0xff]   ;;  %v7399_v44 = vld [vmem:[%s9198_s1 + $0xcb0] sm:$0xff]   ;;  %v7403_v48 = vld [vmem:[%s9198_s1 + $0xcb8] sm:$0xff]   ;;  %v5709_v52 = vcombine.high %v39_v49, %v39_v49 }
 0x17b   :  { %v7409_v56 = vld [vmem:[%s9198_s1 + $0xdc0] sm:$0xff]   ;;  %v7452_v49 = vld [vmem:[%s9198_s1 + $0xe50] sm:$0xff]  }
 0x17c   :  { %v8748_v55 = vadd.f32 %v6452_v45, %v4729_v50  ;;  %6733 = vmatpush3.bf16.msra.mxu0 %v7362_v57  ;;  %v7400_v45 = vld [vmem:[%s9198_s1 + $0xc78] sm:$0xff]   ;;  %v40_v50 = vld [vmem:[%s9199_s0 + $0xc8] sm:$0xff]  ;;  %v7410_v57 = vld [vmem:[%s9198_s1 + $0xd00] sm:$0xff]  }
 0x17d   :  { %6755 = vmatpush3.bf16.msra.mxu1 %v7363_v58  ;;  %6734 = vmatprep.subr.bf16.mxu0 %v7364_v59  ;;  %v5710_v53 = vcombine.low %v40_v50, %v40_v50  ;;  %v7411_v58 = vld [vmem:[%s9198_s1 + $0xd80] sm:$0xff]   ;;  %v7412_v59 = vld [vmem:[%s9198_s1 + $0xd48] sm:$0xff]  }
 0x17e   :  { %6756 = vmatprep.subr.bf16.mxu1 %v7365_v60  ;;  %v7413_v60 = vld [vmem:[%s9198_s1 + $0xdc8] sm:$0xff]  }
 0x180   :  { %6735 = vmatpush3.bf16.msra.mxu0 %v7366_v61  ;;  %v7414_v61 = vld [vmem:[%s9198_s1 + $0xd08] sm:$0xff]  }
 0x181   :  { %6757 = vmatpush3.bf16.msra.mxu1 %v7367_v62  ;;  %6764 = vmatprep.subr.bf16.mxu0 %v7372_v5  ;;  %v7415_v62 = vld [vmem:[%s9198_s1 + $0xd88] sm:$0xff]   ;;  %v7422_v5 = vld [vmem:[%s9198_s1 + $0xd18] sm:$0xff]  }
 0x182   :  { %6786 = vmatprep.subr.bf16.mxu1 %v7373_v6  ;;  %v7423_v6 = vld [vmem:[%s9198_s1 + $0xd98] sm:$0xff]  }
 0x183   :  { %5287 = vmatmul.mubr.bf16.vlgmr.msra.gmra.mrb[44].mxu0 %v5704_v1  ;;  %v7418_v1 = vld [vmem:[%s9198_s1 + $0xd10] sm:$0xff]  }
 0x184   :  { %5327 = vmatmul.mubr.bf16.vlgmr.msra.gmra.mrb[44].mxu1 %v5706_v3  ;;  %6765 = vmatpush3.bf16.msra.mxu0 %v7374_v7  ;;  %v7420_v3 = vld [vmem:[%s9198_s1 + $0xd58] sm:$0xff]   ;;  %v7424_v7 = vld [vmem:[%s9198_s1 + $0xd60] sm:$0xff]  }
 0x185   :  { %6787 = vmatpush3.bf16.msra.mxu1 %v7375_v8  ;;  %6766 = vmatprep.subr.bf16.mxu0 %v7376_v9  ;;  %v7425_v8 = vld [vmem:[%s9198_s1 + $0xde0] sm:$0xff]  }
 0x186   :  { %6788 = vmatprep.subr.bf16.mxu1 %v7377_v10  ;;  %5366 = vmatprep.mubr.bf16.mxu0 %v5709_v52  ;;  %v7426_v10 = vld [vmem:[%s9198_s1 + $0xd20] sm:$0xff]   ;;  %v7455_v52 = vld [vmem:[%s9198_s1 + $0xe90] sm:$0xff]  }
 0x188   :  { %6767 = vmatpush3.bf16.msra.mxu0 %v7378_v11 }
 0x189   :  { %6789 = vmatpush3.bf16.msra.mxu1 %v7379_v12  ;;  %6768 = vmatprep.subr.bf16.mxu0 %v7380_v13  ;;  %v7427_v12 = vld [vmem:[%s9198_s1 + $0xda0] sm:$0xff]  }
 0x18a   :  { %6790 = vmatprep.subr.bf16.mxu1 %v7381_v14 }
 0x18c   :  { %6769 = vmatpush3.bf16.msra.mxu0 %v7382_v15  ;;  %v7428_v15 = vld [vmem:[%s9198_s1 + $0xd68] sm:$0xff]  }
 0x18d   :  { %6791 = vmatpush3.bf16.msra.mxu1 %v7383_v16  ;;  %6770 = vmatprep.subr.bf16.mxu0 %v7384_v17 }
 0x18e   :  { %6792 = vmatprep.subr.bf16.mxu1 %v7385_v18  ;;  %v7429_v18 = vld [vmem:[%s9198_s1 + $0xde8] sm:$0xff]  }
 0x190   :  { %6771 = vmatpush3.bf16.msra.mxu0 %v7386_v19 }
 0x191   :  { %6793 = vmatpush3.bf16.msra.mxu1 %v7387_v20  ;;  %6772 = vmatprep.subr.bf16.mxu0 %v7388_v21  ;;  %v7430_v21 = vld [vmem:[%s9198_s1 + $0xd28] sm:$0xff]  }
 0x192   :  { %6794 = vmatprep.subr.bf16.mxu1 %v7389_v22 }
 0x194   :  { %6773 = vmatpush3.bf16.msra.mxu0 %v7390_v24 }
 0x195   :  { %6795 = vmatpush3.bf16.msra.mxu1 %v7391_v26  ;;  %6774 = vmatprep.subr.bf16.mxu0 %v7392_v30  ;;  %v7432_v26 = vld [vmem:[%s9198_s1 + $0xd70] sm:$0xff]  }
 0x196   :  { %v6472_v23 = vpop.f32.mrb[20].mxu0  ;;  %6796 = vmatprep.subr.bf16.mxu1 %v7393_v32  ;;  %v7435_v30 = vld [vmem:[%s9198_s1 + $0xdb0] sm:$0xff]   ;;  %v7437_v32 = vld [vmem:[%s9198_s1 + $0xdf8] sm:$0xff]  }
 0x197   :  { %v6494_v25 = vpop.f32.mrb[20].mxu1  ;;  %v6473_v27 = vpop.f32.mrb[21].mxu0 }
 0x198   :  { %v6474_v28 = vadd.f32 %v6473_v27, %v6472_v23  ;;  %v6495_v29 = vpop.f32.mrb[21].mxu1  ;;  %v6475_v33 = vpop.f32.mrb[22].mxu0  ;;  %6775 = vmatpush3.bf16.msra.mxu0 %v7394_v36  ;;  %v7431_v23 = vld [vmem:[%s9198_s1 + $0xda8] sm:$0xff]  }
 0x199   :  { %v6496_v31 = vadd.f32 %v6495_v29, %v6494_v25  ;;  %v6497_v35 = vpop.f32.mrb[22].mxu1  ;;  %v6476_v38 = vpop.f32.mrb[23].mxu0  ;;  %6797 = vmatpush3.bf16.msra.mxu1 %v7395_v37  ;;  %6776 = vmatprep.subr.bf16.mxu0 %v7396_v41  ;;  %v7434_v29 = vld [vmem:[%s9198_s1 + $0xd30] sm:$0xff]   ;;  %v7438_v33 = vld [vmem:[%s9198_s1 + $0xd38] sm:$0xff]   ;;  %v7444_v41 = vld [vmem:[%s9198_s1 + $0xe40] sm:$0xff]  }
 0x19a   :  { %v4809_v34 = vadd.f32 %v6474_v28, %v8748_v55  ;;  %v6498_v40 = vpop.f32.mrb[23].mxu1  ;;  %6798 = vmatprep.subr.bf16.mxu1 %v7397_v42  ;;  %v5711_v55 = vcombine.high %v40_v50, %v40_v50  ;;  %v7433_v28 = vld [vmem:[%s9198_s1 + $0xdf0] sm:$0xff]   ;;  %v42_v38 = vld [vmem:[%s9199_s0 + $0xd8] sm:$0xff]  ;;  %v7445_v42 = vld [vmem:[%s9198_s1 + $0xec0] sm:$0xff]  }
 0x19b   :  { %v41_v35 = vld [vmem:[%s9199_s0 + $0xd0] sm:$0xff]  ;;  %v5715_v40 = vcombine.high %v42_v38, %v42_v38 }
 0x19c   :  { %v8850_v39 = vadd.f32 %v6496_v31, %v4809_v34  ;;  %6777 = vmatpush3.bf16.msra.mxu0 %v7398_v43  ;;  %5406 = vmatprep.mubr.bf16.mxu1 %v5711_v55  ;;  %v7436_v31 = vld [vmem:[%s9198_s1 + $0xd78] sm:$0xff]   ;;  %v5712_v36 = vcombine.low %v41_v35, %v41_v35  ;;  %v5713_v37 = vcombine.high %v41_v35, %v41_v35  ;;  %v7446_v43 = vld [vmem:[%s9198_s1 + $0xe00] sm:$0xff]   ;;  %v7453_v50 = vld [vmem:[%s9198_s1 + $0xed0] sm:$0xff]  }
 0x19d   :  { %6799 = vmatpush3.bf16.msra.mxu1 %v7399_v44  ;;  %6778 = vmatprep.subr.bf16.mxu0 %v7400_v45  ;;  %v7439_v34 = vld [vmem:[%s9198_s1 + $0xdb8] sm:$0xff]   ;;  %v7447_v44 = vld [vmem:[%s9198_s1 + $0xe80] sm:$0xff]   ;;  %v7448_v45 = vld [vmem:[%s9198_s1 + $0xe48] sm:$0xff]  }
 0x19e   :  { %6800 = vmatprep.subr.bf16.mxu1 %v7401_v46  ;;  %v7449_v46 = vld [vmem:[%s9198_s1 + $0xec8] sm:$0xff]   ;;  %v7458_v55 = vld [vmem:[%s9198_s1 + $0xe18] sm:$0xff]   ;;  %v7488_v35 = vld [vmem:[%s9198_s1 + $0xf50] sm:$0xff]  }
 0x1a0   :  { %6779 = vmatpush3.bf16.msra.mxu0 %v7402_v47  ;;  %v7450_v47 = vld [vmem:[%s9198_s1 + $0xe08] sm:$0xff]  }
 0x1a1   :  { %6801 = vmatpush3.bf16.msra.mxu1 %v7403_v48  ;;  %6808 = vmatprep.subr.bf16.mxu0 %v7408_v54  ;;  %v7451_v48 = vld [vmem:[%s9198_s1 + $0xe88] sm:$0xff]   ;;  %v7457_v54 = vld [vmem:[%s9198_s1 + $0xed8] sm:$0xff]  }
 0x1a2   :  { %6830 = vmatprep.subr.bf16.mxu1 %v7409_v56  ;;  %v7459_v56 = vld [vmem:[%s9198_s1 + $0xe98] sm:$0xff]  }
 0x1a3   :  { %5367 = vmatmul.mubr.bf16.vlgmr.msra.gmra.mrb[48].mxu0 %v5708_v51  ;;  %v7454_v51 = vld [vmem:[%s9198_s1 + $0xe10] sm:$0xff]  }
 0x1a4   :  { %5407 = vmatmul.mubr.bf16.vlgmr.msra.gmra.mrb[48].mxu1 %v5710_v53  ;;  %6809 = vmatpush3.bf16.msra.mxu0 %v7410_v57  ;;  %v7456_v53 = vld [vmem:[%s9198_s1 + $0xe58] sm:$0xff]   ;;  %v7460_v57 = vld [vmem:[%s9198_s1 + $0xe60] sm:$0xff]  }
 0x1a5   :  { %6831 = vmatpush3.bf16.msra.mxu1 %v7411_v58  ;;  %6810 = vmatprep.subr.bf16.mxu0 %v7412_v59  ;;  %v7461_v58 = vld [vmem:[%s9198_s1 + $0xee0] sm:$0xff]  }
 0x1a6   :  { %6832 = vmatprep.subr.bf16.mxu1 %v7413_v60  ;;  %5446 = vmatprep.mubr.bf16.mxu0 %v5713_v37  ;;  %v7462_v60 = vld [vmem:[%s9198_s1 + $0xe20] sm:$0xff]   ;;  %v7490_v37 = vld [vmem:[%s9198_s1 + $0xf10] sm:$0xff]  }
 0x1a7   :  { %5486 = vmatprep.mubr.bf16.mxu1 %v5715_v40  ;;  %v7493_v40 = vld [vmem:[%s9198_s1 + $0xfd8] sm:$0xff]  }
 0x1a8   :  { %6811 = vmatpush3.bf16.msra.mxu0 %v7414_v61 }
 0x1a9   :  { %6833 = vmatpush3.bf16.msra.mxu1 %v7415_v62  ;;  %6812 = vmatprep.subr.bf16.mxu0 %v7416_v63  ;;  %v7463_v62 = vld [vmem:[%s9198_s1 + $0xea0] sm:$0xff]  }
 0x1aa   :  { %6834 = vmatprep.subr.bf16.mxu1 %v7417_v0 }
 0x1ac   :  { %6813 = vmatpush3.bf16.msra.mxu0 %v7418_v1  ;;  %v7464_v1 = vld [vmem:[%s9198_s1 + $0xe68] sm:$0xff]  }
 0x1ad   :  { %6835 = vmatpush3.bf16.msra.mxu1 %v7419_v2  ;;  %6814 = vmatprep.subr.bf16.mxu0 %v7420_v3 }
 0x1ae   :  { %6836 = vmatprep.subr.bf16.mxu1 %v7421_v4  ;;  %v7465_v4 = vld [vmem:[%s9198_s1 + $0xee8] sm:$0xff]  }
 0x1b0   :  { %6815 = vmatpush3.bf16.msra.mxu0 %v7422_v5 }
 0x1b1   :  { %6837 = vmatpush3.bf16.msra.mxu1 %v7423_v6  ;;  %6816 = vmatprep.subr.bf16.mxu0 %v7424_v7  ;;  %v7466_v7 = vld [vmem:[%s9198_s1 + $0xe28] sm:$0xff]  }
 0x1b2   :  { %6838 = vmatprep.subr.bf16.mxu1 %v7425_v8 }
 0x1b4   :  { %6817 = vmatpush3.bf16.msra.mxu0 %v7426_v10 }
 0x1b5   :  { %6839 = vmatpush3.bf16.msra.mxu1 %v7427_v12  ;;  %6818 = vmatprep.subr.bf16.mxu0 %v7428_v15  ;;  %v7468_v12 = vld [vmem:[%s9198_s1 + $0xe70] sm:$0xff]  }
 0x1b6   :  { %v6516_v9 = vpop.f32.mrb[24].mxu0  ;;  %6840 = vmatprep.subr.bf16.mxu1 %v7429_v18  ;;  %v7470_v15 = vld [vmem:[%s9198_s1 + $0xe30] sm:$0xff]   ;;  %v7473_v18 = vld [vmem:[%s9198_s1 + $0xef8] sm:$0xff]  }
 0x1b7   :  { %v6538_v11 = vpop.f32.mrb[24].mxu1  ;;  %v6517_v13 = vpop.f32.mrb[25].mxu0 }
 0x1b8   :  { %v6539_v14 = vpop.f32.mrb[25].mxu1  ;;  %v6518_v16 = vadd.f32 %v6517_v13, %v6516_v9  ;;  %v6519_v19 = vpop.f32.mrb[26].mxu0  ;;  %6819 = vmatpush3.bf16.msra.mxu0 %v7430_v21  ;;  %v7467_v9 = vld [vmem:[%s9198_s1 + $0xea8] sm:$0xff]   ;;  %v43_v21 = vld [vmem:[%s9199_s0 + $0xe0] sm:$0xff] }
 0x1b9   :  { %v6540_v17 = vadd.f32 %v6539_v14, %v6538_v11  ;;  %v6541_v20 = vpop.f32.mrb[26].mxu1  ;;  %v6520_v24 = vpop.f32.mrb[27].mxu0  ;;  %6841 = vmatpush3.bf16.msra.mxu1 %v7431_v23  ;;  %6820 = vmatprep.subr.bf16.mxu0 %v7432_v26  ;;  %v7469_v14 = vld [vmem:[%s9198_s1 + $0xef0] sm:$0xff]   ;;  %v7474_v19 = vld [vmem:[%s9198_s1 + $0xe38] sm:$0xff]   ;;  %v5716_v23 = vcombine.low %v43_v21, %v43_v21 }
 0x1ba   :  { %v4889_v22 = vadd.f32 %v6518_v16, %v8850_v39  ;;  %v6542_v25 = vpop.f32.mrb[27].mxu1  ;;  %6842 = vmatprep.subr.bf16.mxu1 %v7433_v28  ;;  %v5714_v39 = vcombine.low %v42_v38, %v42_v38  ;;  %v7471_v16 = vld [vmem:[%s9198_s1 + $0xeb0] sm:$0xff]   ;;  %v7475_v20 = vld [vmem:[%s9198_s1 + $0xeb8] sm:$0xff]   ;;  %v5717_v24 = vcombine.high %v43_v21, %v43_v21  ;;  %v7481_v28 = vld [vmem:[%s9198_s1 + $0xfc0] sm:$0xff]  }
 0x1bb   :  { %v7491_v38 = vld [vmem:[%s9198_s1 + $0xf90] sm:$0xff]  }
 0x1bc   :  { %v8958_v27 = vadd.f32 %v6540_v17, %v4889_v22  ;;  %6821 = vmatpush3.bf16.msra.mxu0 %v7434_v29  ;;  %v7472_v17 = vld [vmem:[%s9198_s1 + $0xe78] sm:$0xff]   ;;  %v44_v22 = vld [vmem:[%s9199_s0 + $0xe8] sm:$0xff]  ;;  %v7482_v29 = vld [vmem:[%s9198_s1 + $0xf00] sm:$0xff]  }
 0x1bd   :  { %6843 = vmatpush3.bf16.msra.mxu1 %v7435_v30  ;;  %6822 = vmatprep.subr.bf16.mxu0 %v7436_v31  ;;  %v5718_v25 = vcombine.low %v44_v22, %v44_v22  ;;  %v5719_v26 = vcombine.high %v44_v22, %v44_v22  ;;  %v7483_v30 = vld [vmem:[%s9198_s1 + $0xf80] sm:$0xff]   ;;  %v7484_v31 = vld [vmem:[%s9198_s1 + $0xf48] sm:$0xff]  }
 0x1be   :  { %6844 = vmatprep.subr.bf16.mxu1 %v7437_v32  ;;  %v7485_v32 = vld [vmem:[%s9198_s1 + $0xfc8] sm:$0xff]  }
 0x1c0   :  { %6823 = vmatpush3.bf16.msra.mxu0 %v7438_v33  ;;  %v7486_v33 = vld [vmem:[%s9198_s1 + $0xf08] sm:$0xff]  }
 0x1c1   :  { %6845 = vmatpush3.bf16.msra.mxu1 %v7439_v34  ;;  %6852 = vmatprep.subr.bf16.mxu0 %v7444_v41  ;;  %v7487_v34 = vld [vmem:[%s9198_s1 + $0xf88] sm:$0xff]   ;;  %v7494_v41 = vld [vmem:[%s9198_s1 + $0xf18] sm:$0xff]  }
 0x1c2   :  { %6874 = vmatprep.subr.bf16.mxu1 %v7445_v42  ;;  %v7495_v42 = vld [vmem:[%s9198_s1 + $0xf98] sm:$0xff]  }
 0x1c3   :  { %5447 = vmatmul.mubr.bf16.vlgmr.msra.gmra.mrb[52].mxu0 %v5712_v36  ;;  %v7489_v36 = vld [vmem:[%s9198_s1 + $0xfd0] sm:$0xff]  }
 0x1c4   :  { %5487 = vmatmul.mubr.bf16.vlgmr.msra.gmra.mrb[52].mxu1 %v5714_v39  ;;  %6853 = vmatpush3.bf16.msra.mxu0 %v7446_v43  ;;  %v7492_v39 = vld [vmem:[%s9198_s1 + $0xf58] sm:$0xff]   ;;  %v7496_v43 = vld [vmem:[%s9198_s1 + $0xf60] sm:$0xff]  }
 0x1c5   :  { %6875 = vmatpush3.bf16.msra.mxu1 %v7447_v44  ;;  %6854 = vmatprep.subr.bf16.mxu0 %v7448_v45  ;;  %v7497_v44 = vld [vmem:[%s9198_s1 + $0xfe0] sm:$0xff]  }
 0x1c6   :  { %6876 = vmatprep.subr.bf16.mxu1 %v7449_v46  ;;  %5526 = vmatprep.mubr.bf16.mxu0 %v5717_v24  ;;  %v7498_v45 = vld [vmem:[%s9198_s1 + $0xf20] sm:$0xff]  }
 0x1c7   :  { %5566 = vmatprep.mubr.bf16.mxu1 %v5719_v26 }
 0x1c8   :  { %6855 = vmatpush3.bf16.msra.mxu0 %v7450_v47  ;;  %v7499_v47 = vld [vmem:[%s9198_s1 + $0xfa0] sm:$0xff]  }
 0x1c9   :  { %6877 = vmatpush3.bf16.msra.mxu1 %v7451_v48  ;;  %6856 = vmatprep.subr.bf16.mxu0 %v7452_v49 }
 0x1ca   :  { %6878 = vmatprep.subr.bf16.mxu1 %v7453_v50 }
 0x1cc   :  { %6857 = vmatpush3.bf16.msra.mxu0 %v7454_v51 }
 0x1cd   :  { %6879 = vmatpush3.bf16.msra.mxu1 %v7455_v52  ;;  %6858 = vmatprep.subr.bf16.mxu0 %v7456_v53  ;;  %v7500_v53 = vld [vmem:[%s9198_s1 + $0xf68] sm:$0xff]  }
 0x1ce   :  { %6880 = vmatprep.subr.bf16.mxu1 %v7457_v54 }
 0x1d0   :  { %6859 = vmatpush3.bf16.msra.mxu0 %v7458_v55  ;;  %v7501_v55 = vld [vmem:[%s9198_s1 + $0xfe8] sm:$0xff]  }
 0x1d1   :  { %6881 = vmatpush3.bf16.msra.mxu1 %v7459_v56  ;;  %6860 = vmatprep.subr.bf16.mxu0 %v7460_v57 }
 0x1d2   :  { %6882 = vmatprep.subr.bf16.mxu1 %v7461_v58  ;;  %v7502_v58 = vld [vmem:[%s9198_s1 + $0xf28] sm:$0xff]  }
 0x1d4   :  { %6861 = vmatpush3.bf16.msra.mxu0 %v7462_v60  ;;  %v7503_v60 = vld [vmem:[%s9198_s1 + $0xfa8] sm:$0xff]  }
 0x1d5   :  { %6883 = vmatpush3.bf16.msra.mxu1 %v7463_v62  ;;  %6862 = vmatprep.subr.bf16.mxu0 %v7464_v1  ;;  %v7506_v1 = vld [vmem:[%s9198_s1 + $0xf30] sm:$0xff]  }
 0x1d6   :  { %v6560_v59 = vpop.f32.mrb[28].mxu0  ;;  %6884 = vmatprep.subr.bf16.mxu1 %v7465_v4  ;;  %v7509_v4 = vld [vmem:[%s9198_s1 + $0xff8] sm:$0xff]  }
 0x1d7   :  { %v6582_v61 = vpop.f32.mrb[28].mxu1  ;;  %v6561_v63 = vpop.f32.mrb[29].mxu0 }
 0x1d8   :  { %v6583_v0 = vpop.f32.mrb[29].mxu1  ;;  %v6562_v2 = vadd.f32 %v6561_v63, %v6560_v59  ;;  %v6563_v5 = vpop.f32.mrb[30].mxu0  ;;  %6863 = vmatpush3.bf16.msra.mxu0 %v7466_v7  ;;  %v7504_v63 = vld [vmem:[%s9198_s1 + $0xf70] sm:$0xff]  }
 0x1d9   :  { %v6584_v3 = vadd.f32 %v6583_v0, %v6582_v61  ;;  %v6585_v6 = vpop.f32.mrb[30].mxu1  ;;  %v6564_v10 = vpop.f32.mrb[31].mxu0  ;;  %6885 = vmatpush3.bf16.msra.mxu1 %v7467_v9  ;;  %6864 = vmatprep.subr.bf16.mxu0 %v7468_v12  ;;  %v7505_v0 = vld [vmem:[%s9198_s1 + $0xff0] sm:$0xff]   ;;  %v7510_v5 = vld [vmem:[%s9198_s1 + $0xf38] sm:$0xff]  }
 0x1da   :  { %v4969_v8 = vadd.f32 %v6562_v2, %v8958_v27  ;;  %v6586_v11 = vpop.f32.mrb[31].mxu1  ;;  %6886 = vmatprep.subr.bf16.mxu1 %v7469_v14  ;;  %v7480_v27 = vld [vmem:[%s9198_s1 + $0xf40] sm:$0xff]   ;;  %v7507_v2 = vld [vmem:[%s9198_s1 + $0xfb0] sm:$0xff]   ;;  %v7511_v6 = vld [vmem:[%s9198_s1 + $0xfb8] sm:$0xff]  }
 0x1db   :  { %v45_v7 = vld [vmem:[%s9199_s0 + $0xf0] sm:$0xff] }
 0x1dc   :  { %v9063_v13 = vadd.f32 %v6584_v3, %v4969_v8  ;;  %6865 = vmatpush3.bf16.msra.mxu0 %v7470_v15  ;;  %v7508_v3 = vld [vmem:[%s9198_s1 + $0xf78] sm:$0xff]   ;;  %v5720_v9 = vcombine.low %v45_v7, %v45_v7  ;;  %v5721_v10 = vcombine.high %v45_v7, %v45_v7 }
 0x1dd   :  { %6887 = vmatpush3.bf16.msra.mxu1 %v7471_v16  ;;  %6866 = vmatprep.subr.bf16.mxu0 %v7472_v17  ;;  %v46_v8 = vld [vmem:[%s9199_s0 + $0xf8] sm:$0xff] }
 0x1de   :  { %6888 = vmatprep.subr.bf16.mxu1 %v7473_v18  ;;  %v5722_v11 = vcombine.low %v46_v8, %v46_v8  ;;  %v5723_v12 = vcombine.high %v46_v8, %v46_v8 }
 0x1e0   :  { %6867 = vmatpush3.bf16.msra.mxu0 %v7474_v19 }
 0x1e1   :  { %6889 = vmatpush3.bf16.msra.mxu1 %v7475_v20  ;;  %6896 = vmatprep.subr.bf16.mxu0 %v7480_v27 }
 0x1e2   :  { %6918 = vmatprep.subr.bf16.mxu1 %v7481_v28 }
 0x1e3   :  { %5527 = vmatmul.mubr.bf16.vlgmr.msra.gmra.mrb[56].mxu0 %v5716_v23 }
 0x1e4   :  { %5567 = vmatmul.mubr.bf16.vlgmr.msra.gmra.mrb[56].mxu1 %v5718_v25  ;;  %6897 = vmatpush3.bf16.msra.mxu0 %v7482_v29 }
 0x1e5   :  { %6919 = vmatpush3.bf16.msra.mxu1 %v7483_v30  ;;  %6898 = vmatprep.subr.bf16.mxu0 %v7484_v31 }
 0x1e6   :  { %6920 = vmatprep.subr.bf16.mxu1 %v7485_v32  ;;  %5606 = vmatprep.mubr.bf16.mxu0 %v5721_v10 }
 0x1e7   :  { %5646 = vmatprep.mubr.bf16.mxu1 %v5723_v12 }
 0x1e8   :  { %6899 = vmatpush3.bf16.msra.mxu0 %v7486_v33 }
 0x1e9   :  { %6921 = vmatpush3.bf16.msra.mxu1 %v7487_v34  ;;  %6900 = vmatprep.subr.bf16.mxu0 %v7488_v35 }
 0x1ea   :  { %6922 = vmatprep.subr.bf16.mxu1 %v7489_v36 }
 0x1ec   :  { %6901 = vmatpush3.bf16.msra.mxu0 %v7490_v37 }
 0x1ed   :  { %6923 = vmatpush3.bf16.msra.mxu1 %v7491_v38  ;;  %6902 = vmatprep.subr.bf16.mxu0 %v7492_v39 }
 0x1ee   :  { %6924 = vmatprep.subr.bf16.mxu1 %v7493_v40 }
 0x1f0   :  { %6903 = vmatpush3.bf16.msra.mxu0 %v7494_v41 }
 0x1f1   :  { %6925 = vmatpush3.bf16.msra.mxu1 %v7495_v42  ;;  %6904 = vmatprep.subr.bf16.mxu0 %v7496_v43 }
 0x1f2   :  { %6926 = vmatprep.subr.bf16.mxu1 %v7497_v44 }
 0x1f4   :  { %6905 = vmatpush3.bf16.msra.mxu0 %v7498_v45 }
 0x1f5   :  { %6927 = vmatpush3.bf16.msra.mxu1 %v7499_v47  ;;  %6906 = vmatprep.subr.bf16.mxu0 %v7500_v53 }
 0x1f6   :  { %v6604_v46 = vpop.f32.mrb[32].mxu0  ;;  %6928 = vmatprep.subr.bf16.mxu1 %v7501_v55 }
 0x1f7   :  { %v6626_v48 = vpop.f32.mrb[32].mxu1  ;;  %v6605_v49 = vpop.f32.mrb[33].mxu0 }
 0x1f8   :  { %v6627_v50 = vpop.f32.mrb[33].mxu1  ;;  %v6606_v51 = vadd.f32 %v6605_v49, %v6604_v46  ;;  %v6607_v54 = vpop.f32.mrb[34].mxu0  ;;  %6907 = vmatpush3.bf16.msra.mxu0 %v7502_v58 }
 0x1f9   :  { %v6628_v52 = vadd.f32 %v6627_v50, %v6626_v48  ;;  %v6629_v56 = vpop.f32.mrb[34].mxu1  ;;  %v6608_v59 = vpop.f32.mrb[35].mxu0  ;;  %6929 = vmatpush3.bf16.msra.mxu1 %v7503_v60  ;;  %6908 = vmatprep.subr.bf16.mxu0 %v7504_v63 }
 0x1fa   :  { %v5049_v57 = vadd.f32 %v6606_v51, %v9063_v13  ;;  %v6630_v61 = vpop.f32.mrb[35].mxu1  ;;  %6930 = vmatprep.subr.bf16.mxu1 %v7505_v0 }
 0x1fc   :  { %v5089_v62 = vadd.f32 %v6628_v52, %v5049_v57  ;;  %6909 = vmatpush3.bf16.msra.mxu0 %v7506_v1 }
 0x1fd   :  { %6931 = vmatpush3.bf16.msra.mxu1 %v7507_v2  ;;  %6910 = vmatprep.subr.bf16.mxu0 %v7508_v3 }
 0x1fe   :  { %6932 = vmatprep.subr.bf16.mxu1 %v7509_v4 }
 0x200   :  { %6911 = vmatpush3.bf16.msra.mxu0 %v7510_v5 }
 0x201   :  { %6933 = vmatpush3.bf16.msra.mxu1 %v7511_v6 }
 0x203   :  { %5607 = vmatmul.mubr.bf16.vlgmr.msra.gmra.mrb[60].mxu0 %v5720_v9 }
 0x204   :  { %5647 = vmatmul.mubr.bf16.vlgmr.msra.gmra.mrb[60].mxu1 %v5722_v11 }
 0x216   :  { %v6648_v13 = vpop.f32.mrb[36].mxu0 }
 0x217   :  { %v6670_v14 = vpop.f32.mrb[36].mxu1  ;;  %v6649_v15 = vpop.f32.mrb[37].mxu0 }
 0x218   :  { %v6650_v16 = vadd.f32 %v6649_v15, %v6648_v13  ;;  %v6671_v17 = vpop.f32.mrb[37].mxu1  ;;  %v6651_v18 = vpop.f32.mrb[38].mxu0 }
 0x219   :  { %v6672_v19 = vadd.f32 %v6671_v17, %v6670_v14  ;;  %v6673_v20 = vpop.f32.mrb[38].mxu1  ;;  %v6652_v21 = vpop.f32.mrb[39].mxu0 }
 0x21a   :  { %v5129_v22 = vadd.f32 %v6650_v16, %v5089_v62  ;;  %v6674_v23 = vpop.f32.mrb[39].mxu1 }
 0x21c   :  { %v5169_v24 = vadd.f32 %v6672_v19, %v5129_v22 }
 0x236   :  { %v6692_v25 = vpop.f32.mrb[40].mxu0 }
 0x237   :  { %v6714_v26 = vpop.f32.mrb[40].mxu1  ;;  %v6693_v27 = vpop.f32.mrb[41].mxu0 }
 0x238   :  { %v6715_v28 = vpop.f32.mrb[41].mxu1  ;;  %v6694_v29 = vadd.f32 %v6693_v27, %v6692_v25  ;;  %v6695_v31 = vpop.f32.mrb[42].mxu0 }
 0x239   :  { %v6716_v30 = vadd.f32 %v6715_v28, %v6714_v26  ;;  %v6717_v32 = vpop.f32.mrb[42].mxu1  ;;  %v6696_v33 = vpop.f32.mrb[43].mxu0 }
 0x23a   :  { %v6718_v34 = vpop.f32.mrb[43].mxu1  ;;  %v5209_v35 = vadd.f32 %v6694_v29, %v5169_v24 }
 0x23c   :  { %v5249_v36 = vadd.f32 %v6716_v30, %v5209_v35 }
 0x256   :  { %v6736_v37 = vpop.f32.mrb[44].mxu0 }
 0x257   :  { %v6758_v38 = vpop.f32.mrb[44].mxu1  ;;  %v6737_v39 = vpop.f32.mrb[45].mxu0 }
 0x258   :  { %v6738_v40 = vadd.f32 %v6737_v39, %v6736_v37  ;;  %v6759_v41 = vpop.f32.mrb[45].mxu1  ;;  %v6739_v42 = vpop.f32.mrb[46].mxu0 }
 0x259   :  { %v6760_v43 = vadd.f32 %v6759_v41, %v6758_v38  ;;  %v6761_v44 = vpop.f32.mrb[46].mxu1  ;;  %v6740_v45 = vpop.f32.mrb[47].mxu0 }
 0x25a   :  { %v5289_v46 = vadd.f32 %v6738_v40, %v5249_v36  ;;  %v6762_v47 = vpop.f32.mrb[47].mxu1 }
 0x25c   :  { %v5329_v48 = vadd.f32 %v6760_v43, %v5289_v46 }
 0x276   :  { %v6780_v49 = vpop.f32.mrb[48].mxu0 }
 0x277   :  { %v6802_v50 = vpop.f32.mrb[48].mxu1  ;;  %v6781_v51 = vpop.f32.mrb[49].mxu0 }
 0x278   :  { %v6782_v52 = vadd.f32 %v6781_v51, %v6780_v49  ;;  %v6803_v53 = vpop.f32.mrb[49].mxu1  ;;  %v6783_v54 = vpop.f32.mrb[50].mxu0 }
 0x279   :  { %v6804_v55 = vadd.f32 %v6803_v53, %v6802_v50  ;;  %v6805_v56 = vpop.f32.mrb[50].mxu1  ;;  %v6784_v57 = vpop.f32.mrb[51].mxu0 }
 0x27a   :  { %v5369_v58 = vadd.f32 %v6782_v52, %v5329_v48  ;;  %v6806_v59 = vpop.f32.mrb[51].mxu1 }
 0x27c   :  { %v5409_v60 = vadd.f32 %v6804_v55, %v5369_v58 }
 0x296   :  { %v6824_v61 = vpop.f32.mrb[52].mxu0 }
 0x297   :  { %v6846_v62 = vpop.f32.mrb[52].mxu1  ;;  %v6825_v63 = vpop.f32.mrb[53].mxu0 }
 0x298   :  { %v6847_v0 = vpop.f32.mrb[53].mxu1  ;;  %v6826_v1 = vadd.f32 %v6825_v63, %v6824_v61  ;;  %v6827_v3 = vpop.f32.mrb[54].mxu0 }
 0x299   :  { %v6848_v2 = vadd.f32 %v6847_v0, %v6846_v62  ;;  %v6849_v4 = vpop.f32.mrb[54].mxu1  ;;  %v6828_v5 = vpop.f32.mrb[55].mxu0 }
 0x29a   :  { %v6850_v6 = vpop.f32.mrb[55].mxu1  ;;  %v5449_v7 = vadd.f32 %v6826_v1, %v5409_v60 }
 0x29c   :  { %v5489_v8 = vadd.f32 %v6848_v2, %v5449_v7 }
 0x2b6   :  { %v6868_v9 = vpop.f32.mrb[56].mxu0 }
 0x2b7   :  { %v6890_v10 = vpop.f32.mrb[56].mxu1  ;;  %v6869_v11 = vpop.f32.mrb[57].mxu0 }
 0x2b8   :  { %v6870_v12 = vadd.f32 %v6869_v11, %v6868_v9  ;;  %v6891_v13 = vpop.f32.mrb[57].mxu1  ;;  %v6871_v14 = vpop.f32.mrb[58].mxu0 }
 0x2b9   :  { %v6892_v15 = vadd.f32 %v6891_v13, %v6890_v10  ;;  %v6893_v16 = vpop.f32.mrb[58].mxu1  ;;  %v6872_v17 = vpop.f32.mrb[59].mxu0 }
 0x2ba   :  { %v5529_v18 = vadd.f32 %v6870_v12, %v5489_v8  ;;  %v6894_v19 = vpop.f32.mrb[59].mxu1 }
 0x2bc   :  { %v5569_v20 = vadd.f32 %v6892_v15, %v5529_v18 }
 0x2d6   :  { %v6912_v21 = vpop.f32.mrb[60].mxu0 }
 0x2d7   :  { %v6934_v22 = vpop.f32.mrb[60].mxu1  ;;  %v6913_v23 = vpop.f32.mrb[61].mxu0 }
 0x2d8   :  { %v6914_v24 = vadd.f32 %v6913_v23, %v6912_v21  ;;  %v6935_v25 = vpop.f32.mrb[61].mxu1  ;;  %v6915_v26 = vpop.f32.mrb[62].mxu0 }
 0x2d9   :  { %v6936_v27 = vadd.f32 %v6935_v25, %v6934_v22  ;;  %v6937_v28 = vpop.f32.mrb[62].mxu1  ;;  %v6916_v29 = vpop.f32.mrb[63].mxu0 }
 0x2da   :  { %v5609_v30 = vadd.f32 %v6914_v24, %v5569_v20  ;;  %v6938_v31 = vpop.f32.mrb[63].mxu1 }
 0x2dc   :  { %v5649_v32 = vadd.f32 %v6936_v27, %v5609_v30 }
 0x2de   :  { %5654 = vst [vmem:[%s9201_s3] sm:$0xff] %v5649_v32 }

</bundles_post_ra>
